<compile_context>
chip_gen: v6e
topology: v6e:2x2x1
jax: 0.10.0
libtpu: 0.0.40
codegen_flags: <defaults>
</compile_context>

<pallas_src>
import functools

import numpy as np
import jax
import jax.numpy as jnp
from jax.experimental import pallas as pl
from jax.experimental.pallas import tpu as pltpu

GN_EPS = 1e-5  # nn.GroupNorm default


# ----------------------------------------------------------------------------
# In-kernel helpers
# ----------------------------------------------------------------------------
def _gn_relu(acc, a_mat, pgb, layer_idx, c_out):
    """bias + GroupNorm(affine) + ReLU on a (C_out, T) f32 tile.

    a_mat: (C_out, C_out) block-diagonal group-average matrix (1/cpg entries).
    pgb:   (3*C_out, n_norm) packed [conv bias; gamma; beta] columns per layer.
    """
    b = pgb[0 * c_out:1 * c_out, layer_idx:layer_idx + 1]       # (C_out, 1)
    gamma = pgb[1 * c_out:2 * c_out, layer_idx:layer_idx + 1]
    beta = pgb[2 * c_out:3 * c_out, layer_idx:layer_idx + 1]
    acc = acc + b
    ch_mean = jnp.mean(acc, axis=1, keepdims=True)              # (C_out, 1)
    ch_ms = jnp.mean(acc * acc, axis=1, keepdims=True)          # (C_out, 1)
    stats = jnp.dot(a_mat, jnp.concatenate([ch_mean, ch_ms], axis=1),
                    preferred_element_type=jnp.float32)         # (C_out, 2)
    g_mean = stats[:, 0:1]
    g_var = jnp.maximum(stats[:, 1:2] - g_mean * g_mean, 0.0)
    scale = gamma * jax.lax.rsqrt(g_var + GN_EPS)
    shift = beta - g_mean * scale
    return jnp.maximum(acc * scale + shift, 0.0)                # ReLU


def _conv3_same_stride1(xv, w_flat):
    """'same'-padded k=3/stride=1 conv of (C, T) with flattened (C_out, 3C) weight."""
    c, t = xv.shape
    z1 = jnp.zeros((c, 1), jnp.float32)
    left = jnp.concatenate([z1, xv[:, :t - 1]], axis=1)   # tap0[j] = x[j-1]
    right = jnp.concatenate([xv[:, 1:], z1], axis=1)      # tap2[j] = x[j+1]
    zz = jnp.concatenate([left, xv, right], axis=0)       # (3C, T)
    return jnp.dot(w_flat, zz, preferred_element_type=jnp.float32)


# ----------------------------------------------------------------------------
# Fused AFSDNeck kernel (one grid step == one batch element)
# ----------------------------------------------------------------------------
def _afsd_neck_kernel(*refs, layer_num, c_out):
    n_fixed = 8
    (x_ref, mask_ref, w0_ref, w3_ref, wd3_ref, pgb_ref, a_ref, u_ref) = refs[:n_fixed]
    s_refs = refs[n_fixed:n_fixed + layer_num - 1]          # stride-2 tap selectors
    out_refs = refs[n_fixed + layer_num - 1:]
    pyr_refs = out_refs[:layer_num]
    frame_ref = out_refs[layer_num]

    a_mat = a_ref[...]                                       # (C_out, C_out)
    pgb = pgb_ref[...]                                       # (3*C_out, L+3)

    # ---- pyramid level 0: 1x1 conv -> GN -> ReLU -> mask ----
    x = x_ref[0].astype(jnp.float32)                         # (C_in, T)
    acc = jnp.dot(w0_ref[...], x, preferred_element_type=jnp.float32)
    m = mask_ref[0]                                          # (1, T)
    y = _gn_relu(acc, a_mat, pgb, 0, c_out) * m
    pyr_refs[0][0] = y.astype(pyr_refs[0].dtype)
    y0 = y                                                   # kept for deconv path

    # ---- pyramid levels 1..L-1: k=3, stride=2 conv -> GN -> ReLU -> mask ----
    for i in range(1, layer_num):
        s = s_refs[i - 1][...]                               # (T_in, 3*T_out) 0/1
        t_out = s.shape[1] // 3
        taps = jnp.dot(y, s, preferred_element_type=jnp.float32)   # (C_out, 3*T_out)
        z = jnp.concatenate([taps[:, 0:t_out],
                             taps[:, t_out:2 * t_out],
                             taps[:, 2 * t_out:3 * t_out]], axis=0)  # (3*C_out, T_out)
        acc = jnp.dot(w3_ref[i - 1], z, preferred_element_type=jnp.float32)
        # mask = max_pool1d(mask, kernel=2, stride=2): max of tap0/tap1 lanes.
        m_taps = jnp.dot(m, s, preferred_element_type=jnp.float32)  # (1, 3*T_out)
        m = jnp.maximum(m_taps[:, 0:t_out], m_taps[:, t_out:2 * t_out])
        y = _gn_relu(acc, a_mat, pgb, i, c_out) * m
        pyr_refs[i][0] = y.astype(pyr_refs[i].dtype)

    # ---- frame-level path: nearest upsample (selection matmul) + 3 deconv ----
    up = jnp.dot(y0, u_ref[...], preferred_element_type=jnp.float32)  # (C_out, F)
    h = _gn_relu(_conv3_same_stride1(up, w3_ref[layer_num - 1]),
                 a_mat, pgb, layer_num + 0, c_out)
    h = _gn_relu(_conv3_same_stride1(h, w3_ref[layer_num]),
                 a_mat, pgb, layer_num + 1, c_out)
    h = _gn_relu(jnp.dot(wd3_ref[...], h, preferred_element_type=jnp.float32),
                 a_mat, pgb, layer_num + 2, c_out)
    frame_ref[0] = h.astype(frame_ref.dtype)


# ----------------------------------------------------------------------------
# Host-side constant builders (numpy, compile-time)
# ----------------------------------------------------------------------------
def _build_stride2_select(t_in):
    """0/1 matrix (T_in, 3*T_out) gathering the 3 taps of a k=3/stride=2 'same' conv."""
    t_out = t_in // 2
    s = np.zeros((t_in, 3 * t_out), np.float32)
    for mtap in range(3):
        for j in range(t_out):
            src = 2 * j + mtap            # pad_front = 0, pad_back = 1 for even T
            if src < t_in:
                s[src, mtap * t_out + j] = 1.0
    return s


def _build_upsample_select(t0, frame_num):
    """0/1 matrix (T0, F): nearest-neighbor interpolate (floor indexing)."""
    u = np.zeros((t0, frame_num), np.float32)
    idx = (np.arange(frame_num) * t0) // frame_num
    u[idx, np.arange(frame_num)] = 1.0
    return u


def _build_group_avg(c_out, groups):
    """Block-diagonal (C_out, C_out) matrix averaging per-channel stats per group."""
    cpg = c_out // groups
    a = np.zeros((c_out, c_out), np.float32)
    for g in range(groups):
        a[g * cpg:(g + 1) * cpg, g * cpg:(g + 1) * cpg] = 1.0 / cpg
    return a


# ----------------------------------------------------------------------------
# Parameter init (matches AFSDNeck.init_weights: glorot-uniform convs,
# zero conv biases, GroupNorm gamma=1 / beta=0) -- packed for the fused kernel.
# ----------------------------------------------------------------------------
def init_afsd_neck_params(key, in_channels, out_channels, layer_num=6):
    assert out_channels % 32 == 0, "GroupNorm(32) requires out_channels % 32 == 0"
    keys = jax.random.split(key, layer_num + 3)

    def glorot(k, c_out, c_in, ksz):
        fan_in, fan_out = c_in * ksz, c_out * ksz
        limit = float(np.sqrt(3.0 / max(1.0, (fan_in + fan_out) / 2.0)))
        return jax.random.uniform(k, (c_out, c_in, ksz), jnp.float32, -limit, limit)

    def flat3(w):  # (C_out, C, 3) -> (C_out, 3*C) with tap-major column blocks
        return jnp.concatenate([w[:, :, m] for m in range(3)], axis=1)

    w0 = glorot(keys[0], out_channels, in_channels, 1)[:, :, 0]        # (C_out, C_in)
    w3_list = [flat3(glorot(keys[i], out_channels, out_channels, 3))
               for i in range(1, layer_num)]                           # pyramid 1..L-1
    w3_list += [flat3(glorot(keys[layer_num + j], out_channels, out_channels, 3))
                for j in range(2)]                                     # deconv k=3 x2
    w3 = jnp.stack(w3_list, axis=0)                                    # (L+1, C_out, 3*C_out)
    wd3 = glorot(keys[layer_num + 2], out_channels, out_channels, 1)[:, :, 0]

    n_norm = layer_num + 3
    pgb = jnp.concatenate([
        jnp.zeros((out_channels, n_norm), jnp.float32),   # conv biases
        jnp.ones((out_channels, n_norm), jnp.float32),    # GN gamma
        jnp.zeros((out_channels, n_norm), jnp.float32),   # GN beta
    ], axis=0)                                            # (3*C_out, L+3)
    return {"w0": w0, "w3": w3, "wd3": wd3, "pgb": pgb}


# ----------------------------------------------------------------------------
# Forward (AFSDNeck.forward, e2e=False) -- one pallas_call
# ----------------------------------------------------------------------------
@functools.partial(jax.jit, static_argnums=(3,))
def afsd_neck_forward(params, feat, mask_bool, frame_num):
    w0, w3, wd3, pgb = params["w0"], params["w3"], params["wd3"], params["pgb"]
    B, C_in, T = feat.shape
    C_out = w0.shape[0]
    L = pgb.shape[1] - 3
    assert T % (1 << (L - 1)) == 0, "temporal length must be divisible by 2**(layer_num-1)"

    a_mat = jnp.asarray(_build_group_avg(C_out, 32))
    u = jnp.asarray(_build_upsample_select(T, frame_num))
    s_mats = [jnp.asarray(_build_stride2_select(T >> (i - 1))) for i in range(1, L)]
    mask_f = mask_bool.astype(jnp.float32).reshape(B, 1, T)

    out_shape = tuple([jax.ShapeDtypeStruct((B, C_out, T >> l), feat.dtype) for l in range(L)]
                      + [jax.ShapeDtypeStruct((B, C_out, frame_num), feat.dtype)])
    out_specs = ([pl.BlockSpec((1, C_out, T >> l), lambda i: (i, 0, 0)) for l in range(L)]
                 + [pl.BlockSpec((1, C_out, frame_num), lambda i: (i, 0, 0))])
    in_specs = ([pl.BlockSpec((1, C_in, T), lambda i: (i, 0, 0)),   # feat
                 pl.BlockSpec((1, 1, T), lambda i: (i, 0, 0)),      # mask
                 pl.BlockSpec(w0.shape, lambda i: (0, 0)),
                 pl.BlockSpec(w3.shape, lambda i: (0, 0, 0)),
                 pl.BlockSpec(wd3.shape, lambda i: (0, 0)),
                 pl.BlockSpec(pgb.shape, lambda i: (0, 0)),
                 pl.BlockSpec(a_mat.shape, lambda i: (0, 0)),
                 pl.BlockSpec(u.shape, lambda i: (0, 0))]
                + [pl.BlockSpec(s.shape, lambda i: (0, 0)) for s in s_mats])

    kern = functools.partial(_afsd_neck_kernel, layer_num=L, c_out=C_out)
    outs = pl.pallas_call(
        kern,
        out_shape=out_shape,
        grid=(B,),
        in_specs=in_specs,
        out_specs=out_specs,
        compiler_params=pltpu.CompilerParams(
            dimension_semantics=("parallel",)),
    )(feat, mask_f, w0, w3, wd3, pgb, a_mat, u, *s_mats)

    pyramid_feats = list(outs[:L])
    frame_level_feat = outs[L]
    return pyramid_feats, frame_level_feat


# ----------------------------------------------------------------------------
if __name__ == "__main__":
    key = jax.random.PRNGKey(0)
    k_feat, k_par = jax.random.split(key)

    B, C_in, C_out = 2, 16, 64       # C_out must be divisible by 32 (GroupNorm(32))
    T, frame_num, layer_num = 64, 128, 6

    feat = jax.random.normal(k_feat, (B, C_in, T), jnp.float32)
    lengths = jnp.array([T, 40])
    mask = jnp.arange(T)[None, :] < lengths[:, None]       # bool temporal mask (B, T)

    params = init_afsd_neck_params(k_par, C_in, C_out, layer_num)
    pyramid_feats, frame_level_feat = afsd_neck_forward(params, feat, mask, frame_num)

    for f in pyramid_feats:
        jax.block_until_ready(f)
    jax.block_until_ready(frame_level_feat)

    assert frame_level_feat.shape == (B, C_out, frame_num)
    assert [f.shape[-1] for f in pyramid_feats] == [T >> i for i in range(layer_num)]
    print("KERNEL_OK")
</pallas_src>

<mosaic_0001>
module attributes {stable_mosaic.version = 11 : i64} {
  func.func @_afsd_neck_kernel(%arg0: i32, %arg1: memref<1x16x64xf32, #tpu.memory_space<vmem>>, %arg2: memref<1x1x64xf32, #tpu.memory_space<vmem>>, %arg3: memref<64x16xf32, #tpu.memory_space<vmem>>, %arg4: memref<7x64x192xf32, #tpu.memory_space<vmem>>, %arg5: memref<64x64xf32, #tpu.memory_space<vmem>>, %arg6: memref<192x9xf32, #tpu.memory_space<vmem>>, %arg7: memref<64x64xf32, #tpu.memory_space<vmem>>, %arg8: memref<64x128xf32, #tpu.memory_space<vmem>>, %arg9: memref<64x96xf32, #tpu.memory_space<vmem>>, %arg10: memref<32x48xf32, #tpu.memory_space<vmem>>, %arg11: memref<16x24xf32, #tpu.memory_space<vmem>>, %arg12: memref<8x12xf32, #tpu.memory_space<vmem>>, %arg13: memref<4x6xf32, #tpu.memory_space<vmem>>, %arg14: memref<1x64x64xf32, #tpu.memory_space<vmem>>, %arg15: memref<1x64x32xf32, #tpu.memory_space<vmem>>, %arg16: memref<1x64x16xf32, #tpu.memory_space<vmem>>, %arg17: memref<1x64x8xf32, #tpu.memory_space<vmem>>, %arg18: memref<1x64x4xf32, #tpu.memory_space<vmem>>, %arg19: memref<1x64x2xf32, #tpu.memory_space<vmem>>, %arg20: memref<1x64x128xf32, #tpu.memory_space<vmem>>) attributes {dimension_semantics = [#tpu.dimension_semantics<parallel>], iteration_bounds = array<i64: 2>, scalar_prefetch = 0 : i64, scratch_operands = 0 : i64, tpu.core_type = #tpu.core_type<tc>, window_params = [{transform_indices = @transform_0, window_bounds = array<i64: 1, 16, 64>}, {transform_indices = @transform_1, window_bounds = array<i64: 1, 1, 64>}, {pipeline_mode = #tpu.pipeline_mode<synchronous>, transform_indices = @transform_2, window_bounds = array<i64: 64, 16>}, {pipeline_mode = #tpu.pipeline_mode<synchronous>, transform_indices = @transform_3, window_bounds = array<i64: 7, 64, 192>}, {pipeline_mode = #tpu.pipeline_mode<synchronous>, transform_indices = @transform_4, window_bounds = array<i64: 64, 64>}, {pipeline_mode = #tpu.pipeline_mode<synchronous>, transform_indices = @transform_5, window_bounds = array<i64: 192, 9>}, {pipeline_mode = #tpu.pipeline_mode<synchronous>, transform_indices = @transform_6, window_bounds = array<i64: 64, 64>}, {pipeline_mode = #tpu.pipeline_mode<synchronous>, transform_indices = @transform_7, window_bounds = array<i64: 64, 128>}, {pipeline_mode = #tpu.pipeline_mode<synchronous>, transform_indices = @transform_8, window_bounds = array<i64: 64, 96>}, {pipeline_mode = #tpu.pipeline_mode<synchronous>, transform_indices = @transform_9, window_bounds = array<i64: 32, 48>}, {pipeline_mode = #tpu.pipeline_mode<synchronous>, transform_indices = @transform_10, window_bounds = array<i64: 16, 24>}, {pipeline_mode = #tpu.pipeline_mode<synchronous>, transform_indices = @transform_11, window_bounds = array<i64: 8, 12>}, {pipeline_mode = #tpu.pipeline_mode<synchronous>, transform_indices = @transform_12, window_bounds = array<i64: 4, 6>}, {transform_indices = @transform_13, window_bounds = array<i64: 1, 64, 64>}, {transform_indices = @transform_14, window_bounds = array<i64: 1, 64, 32>}, {transform_indices = @transform_15, window_bounds = array<i64: 1, 64, 16>}, {transform_indices = @transform_16, window_bounds = array<i64: 1, 64, 8>}, {transform_indices = @transform_17, window_bounds = array<i64: 1, 64, 4>}, {transform_indices = @transform_18, window_bounds = array<i64: 1, 64, 2>}, {transform_indices = @transform_19, window_bounds = array<i64: 1, 64, 128>}]} {
    %c0 = arith.constant 0 : index
    %c0_0 = arith.constant 0 : index
    %0 = vector.load %arg7[%c0, %c0_0] : memref<64x64xf32, #tpu.memory_space<vmem>>, vector<64x64xf32>
    %c0_1 = arith.constant 0 : index
    %c0_2 = arith.constant 0 : index
    %1 = vector.load %arg6[%c0_1, %c0_2] : memref<192x9xf32, #tpu.memory_space<vmem>>, vector<192x9xf32>
    %c0_3 = arith.constant 0 : index
    %c0_4 = arith.constant 0 : index
    %c0_5 = arith.constant 0 : index
    %2 = vector.load %arg1[%c0_3, %c0_4, %c0_5] : memref<1x16x64xf32, #tpu.memory_space<vmem>>, vector<1x16x64xf32>
    %3 = vector.shape_cast %2 : vector<1x16x64xf32> to vector<16x64xf32>
    %c0_6 = arith.constant 0 : index
    %c0_7 = arith.constant 0 : index
    %4 = vector.load %arg3[%c0_6, %c0_7] : memref<64x16xf32, #tpu.memory_space<vmem>>, vector<64x16xf32>
    %cst = arith.constant dense<0.000000e+00> : vector<64x64xf32>
    %5 = tpu.matmul %4, %3, %cst {dimension_numbers = #tpu.dot_dimension_numbers<[1], [0], [0], [1], [0, 0, 1, 1], [], []>} : vector<64x16xf32>, vector<16x64xf32>, vector<64x64xf32> -> vector<64x64xf32>
    %c0_8 = arith.constant 0 : index
    %c0_9 = arith.constant 0 : index
    %c0_10 = arith.constant 0 : index
    %6 = vector.load %arg2[%c0_8, %c0_9, %c0_10] : memref<1x1x64xf32, #tpu.memory_space<vmem>>, vector<1x1x64xf32>
    %7 = vector.shape_cast %6 : vector<1x1x64xf32> to vector<1x64xf32>
    %8 = vector.extract_strided_slice %1 {offsets = [0, 0], sizes = [64, 1], strides = [1, 1]} : vector<192x9xf32> to vector<64x1xf32>
    %9 = vector.extract_strided_slice %1 {offsets = [64, 0], sizes = [64, 1], strides = [1, 1]} : vector<192x9xf32> to vector<64x1xf32>
    %10 = vector.extract_strided_slice %1 {offsets = [128, 0], sizes = [64, 1], strides = [1, 1]} : vector<192x9xf32> to vector<64x1xf32>
    %11 = vector.broadcast %8 : vector<64x1xf32> to vector<64x64xf32>
    %12 = arith.addf %5, %11 : vector<64x64xf32>
    %cst_11 = arith.constant dense<0.000000e+00> : vector<64xf32>
    %13 = vector.multi_reduction <add>, %12, %cst_11 [1] : vector<64x64xf32> to vector<64xf32>
    %14 = vector.shape_cast %13 : vector<64xf32> to vector<64x1xf32>
    %cst_12 = arith.constant 6.400000e+01 : f32
    %15 = vector.broadcast %cst_12 : f32 to vector<64x1xf32>
    %16 = arith.divf %14, %15 : vector<64x1xf32>
    %17 = arith.mulf %12, %12 : vector<64x64xf32>
    %cst_13 = arith.constant dense<0.000000e+00> : vector<64xf32>
    %18 = vector.multi_reduction <add>, %17, %cst_13 [1] : vector<64x64xf32> to vector<64xf32>
    %19 = vector.shape_cast %18 : vector<64xf32> to vector<64x1xf32>
    %cst_14 = arith.constant 6.400000e+01 : f32
    %20 = vector.broadcast %cst_14 : f32 to vector<64x1xf32>
    %21 = arith.divf %19, %20 : vector<64x1xf32>
    %22 = tpu.concatenate %16, %21 in 1 : vector<64x1xf32>, vector<64x1xf32> -> vector<64x2xf32>
    %cst_15 = arith.constant dense<0.000000e+00> : vector<64x2xf32>
    %23 = tpu.matmul %0, %22, %cst_15 {dimension_numbers = #tpu.dot_dimension_numbers<[1], [0], [0], [1], [0, 0, 1, 1], [], []>} : vector<64x64xf32>, vector<64x2xf32>, vector<64x2xf32> -> vector<64x2xf32>
    %24 = vector.extract_strided_slice %23 {offsets = [0, 0], sizes = [64, 1], strides = [1, 1]} : vector<64x2xf32> to vector<64x1xf32>
    %25 = vector.extract_strided_slice %23 {offsets = [0, 1], sizes = [64, 1], strides = [1, 1]} : vector<64x2xf32> to vector<64x1xf32>
    %26 = arith.mulf %24, %24 : vector<64x1xf32>
    %27 = arith.subf %25, %26 : vector<64x1xf32>
    %cst_16 = arith.constant 0.000000e+00 : f32
    %28 = vector.broadcast %cst_16 : f32 to vector<64x1xf32>
    %29 = arith.maximumf %27, %28 : vector<64x1xf32>
    %cst_17 = arith.constant 9.99999974E-6 : f32
    %30 = vector.broadcast %cst_17 : f32 to vector<64x1xf32>
    %31 = arith.addf %29, %30 : vector<64x1xf32>
    %32 = math.rsqrt %31 : vector<64x1xf32>
    %33 = arith.mulf %9, %32 : vector<64x1xf32>
    %34 = arith.mulf %24, %33 : vector<64x1xf32>
    %35 = arith.subf %10, %34 : vector<64x1xf32>
    %36 = vector.broadcast %33 : vector<64x1xf32> to vector<64x64xf32>
    %37 = arith.mulf %12, %36 : vector<64x64xf32>
    %38 = vector.broadcast %35 : vector<64x1xf32> to vector<64x64xf32>
    %39 = arith.addf %37, %38 : vector<64x64xf32>
    %cst_18 = arith.constant 0.000000e+00 : f32
    %40 = vector.broadcast %cst_18 : f32 to vector<64x64xf32>
    %41 = arith.maximumf %39, %40 : vector<64x64xf32>
    %42 = vector.broadcast %7 : vector<1x64xf32> to vector<64x64xf32>
    %43 = arith.mulf %41, %42 : vector<64x64xf32>
    %c0_19 = arith.constant 0 : index
    %c0_20 = arith.constant 0 : index
    %c0_21 = arith.constant 0 : index
    %44 = vector.load %arg14[%c0_19, %c0_20, %c0_21] : memref<1x64x64xf32, #tpu.memory_space<vmem>>, vector<1x64x64xf32>
    %45 = vector.shape_cast %44 : vector<1x64x64xf32> to vector<64x64xf32>
    %46 = vector.shape_cast %43 : vector<64x64xf32> to vector<1x64x64xf32>
    tpu.vector_store %arg14[%c0_19, %c0_20, %c0_21], %46 {strides = array<i32>} : memref<1x64x64xf32, #tpu.memory_space<vmem>>, vector<1x64x64xf32>,
    %c0_22 = arith.constant 0 : index
    %c0_23 = arith.constant 0 : index
    %47 = vector.load %arg9[%c0_22, %c0_23] : memref<64x96xf32, #tpu.memory_space<vmem>>, vector<64x96xf32>
    %cst_24 = arith.constant dense<0.000000e+00> : vector<64x96xf32>
    %48 = tpu.matmul %43, %47, %cst_24 {dimension_numbers = #tpu.dot_dimension_numbers<[1], [0], [0], [1], [0, 0, 1, 1], [], []>} : vector<64x64xf32>, vector<64x96xf32>, vector<64x96xf32> -> vector<64x96xf32>
    %49 = vector.extract_strided_slice %48 {offsets = [0, 0], sizes = [64, 32], strides = [1, 1]} : vector<64x96xf32> to vector<64x32xf32>
    %50 = vector.extract_strided_slice %48 {offsets = [0, 32], sizes = [64, 32], strides = [1, 1]} : vector<64x96xf32> to vector<64x32xf32>
    %51 = vector.extract_strided_slice %48 {offsets = [0, 64], sizes = [64, 32], strides = [1, 1]} : vector<64x96xf32> to vector<64x32xf32>
    %52 = tpu.concatenate %49, %50, %51 in 0 : vector<64x32xf32>, vector<64x32xf32>, vector<64x32xf32> -> vector<192x32xf32>
    %c0_25 = arith.constant 0 : index
    %c0_26 = arith.constant 0 : index
    %c0_27 = arith.constant 0 : index
    %53 = vector.load %arg4[%c0_25, %c0_26, %c0_27] : memref<7x64x192xf32, #tpu.memory_space<vmem>>, vector<1x64x192xf32>
    %54 = vector.shape_cast %53 : vector<1x64x192xf32> to vector<64x192xf32>
    %cst_28 = arith.constant dense<0.000000e+00> : vector<64x32xf32>
    %55 = tpu.matmul %54, %52, %cst_28 {dimension_numbers = #tpu.dot_dimension_numbers<[1], [0], [0], [1], [0, 0, 1, 1], [], []>} : vector<64x192xf32>, vector<192x32xf32>, vector<64x32xf32> -> vector<64x32xf32>
    %cst_29 = arith.constant dense<0.000000e+00> : vector<1x96xf32>
    %56 = tpu.matmul %7, %47, %cst_29 {dimension_numbers = #tpu.dot_dimension_numbers<[1], [0], [0], [1], [0, 0, 1, 1], [], []>} : vector<1x64xf32>, vector<64x96xf32>, vector<1x96xf32> -> vector<1x96xf32>
    %57 = vector.extract_strided_slice %56 {offsets = [0, 0], sizes = [1, 32], strides = [1, 1]} : vector<1x96xf32> to vector<1x32xf32>
    %58 = vector.extract_strided_slice %56 {offsets = [0, 32], sizes = [1, 32], strides = [1, 1]} : vector<1x96xf32> to vector<1x32xf32>
    %59 = arith.maximumf %57, %58 : vector<1x32xf32>
    %60 = vector.extract_strided_slice %1 {offsets = [0, 1], sizes = [64, 1], strides = [1, 1]} : vector<192x9xf32> to vector<64x1xf32>
    %61 = vector.extract_strided_slice %1 {offsets = [64, 1], sizes = [64, 1], strides = [1, 1]} : vector<192x9xf32> to vector<64x1xf32>
    %62 = vector.extract_strided_slice %1 {offsets = [128, 1], sizes = [64, 1], strides = [1, 1]} : vector<192x9xf32> to vector<64x1xf32>
    %63 = vector.broadcast %60 : vector<64x1xf32> to vector<64x32xf32>
    %64 = arith.addf %55, %63 : vector<64x32xf32>
    %cst_30 = arith.constant dense<0.000000e+00> : vector<64xf32>
    %65 = vector.multi_reduction <add>, %64, %cst_30 [1] : vector<64x32xf32> to vector<64xf32>
    %66 = vector.shape_cast %65 : vector<64xf32> to vector<64x1xf32>
    %cst_31 = arith.constant 3.200000e+01 : f32
    %67 = vector.broadcast %cst_31 : f32 to vector<64x1xf32>
    %68 = arith.divf %66, %67 : vector<64x1xf32>
    %69 = arith.mulf %64, %64 : vector<64x32xf32>
    %cst_32 = arith.constant dense<0.000000e+00> : vector<64xf32>
    %70 = vector.multi_reduction <add>, %69, %cst_32 [1] : vector<64x32xf32> to vector<64xf32>
    %71 = vector.shape_cast %70 : vector<64xf32> to vector<64x1xf32>
    %cst_33 = arith.constant 3.200000e+01 : f32
    %72 = vector.broadcast %cst_33 : f32 to vector<64x1xf32>
    %73 = arith.divf %71, %72 : vector<64x1xf32>
    %74 = tpu.concatenate %68, %73 in 1 : vector<64x1xf32>, vector<64x1xf32> -> vector<64x2xf32>
    %cst_34 = arith.constant dense<0.000000e+00> : vector<64x2xf32>
    %75 = tpu.matmul %0, %74, %cst_34 {dimension_numbers = #tpu.dot_dimension_numbers<[1], [0], [0], [1], [0, 0, 1, 1], [], []>} : vector<64x64xf32>, vector<64x2xf32>, vector<64x2xf32> -> vector<64x2xf32>
    %76 = vector.extract_strided_slice %75 {offsets = [0, 0], sizes = [64, 1], strides = [1, 1]} : vector<64x2xf32> to vector<64x1xf32>
    %77 = vector.extract_strided_slice %75 {offsets = [0, 1], sizes = [64, 1], strides = [1, 1]} : vector<64x2xf32> to vector<64x1xf32>
    %78 = arith.mulf %76, %76 : vector<64x1xf32>
    %79 = arith.subf %77, %78 : vector<64x1xf32>
    %cst_35 = arith.constant 0.000000e+00 : f32
    %80 = vector.broadcast %cst_35 : f32 to vector<64x1xf32>
    %81 = arith.maximumf %79, %80 : vector<64x1xf32>
    %cst_36 = arith.constant 9.99999974E-6 : f32
    %82 = vector.broadcast %cst_36 : f32 to vector<64x1xf32>
    %83 = arith.addf %81, %82 : vector<64x1xf32>
    %84 = math.rsqrt %83 : vector<64x1xf32>
    %85 = arith.mulf %61, %84 : vector<64x1xf32>
    %86 = arith.mulf %76, %85 : vector<64x1xf32>
    %87 = arith.subf %62, %86 : vector<64x1xf32>
    %88 = vector.broadcast %85 : vector<64x1xf32> to vector<64x32xf32>
    %89 = arith.mulf %64, %88 : vector<64x32xf32>
    %90 = vector.broadcast %87 : vector<64x1xf32> to vector<64x32xf32>
    %91 = arith.addf %89, %90 : vector<64x32xf32>
    %cst_37 = arith.constant 0.000000e+00 : f32
    %92 = vector.broadcast %cst_37 : f32 to vector<64x32xf32>
    %93 = arith.maximumf %91, %92 : vector<64x32xf32>
    %94 = vector.broadcast %59 : vector<1x32xf32> to vector<64x32xf32>
    %95 = arith.mulf %93, %94 : vector<64x32xf32>
    %c0_38 = arith.constant 0 : index
    %c0_39 = arith.constant 0 : index
    %c0_40 = arith.constant 0 : index
    %96 = vector.load %arg15[%c0_38, %c0_39, %c0_40] : memref<1x64x32xf32, #tpu.memory_space<vmem>>, vector<1x64x32xf32>
    %97 = vector.shape_cast %96 : vector<1x64x32xf32> to vector<64x32xf32>
    %98 = vector.shape_cast %95 : vector<64x32xf32> to vector<1x64x32xf32>
    tpu.vector_store %arg15[%c0_38, %c0_39, %c0_40], %98 {strides = array<i32>} : memref<1x64x32xf32, #tpu.memory_space<vmem>>, vector<1x64x32xf32>,
    %c0_41 = arith.constant 0 : index
    %c0_42 = arith.constant 0 : index
    %99 = vector.load %arg10[%c0_41, %c0_42] : memref<32x48xf32, #tpu.memory_space<vmem>>, vector<32x48xf32>
    %cst_43 = arith.constant dense<0.000000e+00> : vector<64x48xf32>
    %100 = tpu.matmul %95, %99, %cst_43 {dimension_numbers = #tpu.dot_dimension_numbers<[1], [0], [0], [1], [0, 0, 1, 1], [], []>} : vector<64x32xf32>, vector<32x48xf32>, vector<64x48xf32> -> vector<64x48xf32>
    %101 = vector.extract_strided_slice %100 {offsets = [0, 0], sizes = [64, 16], strides = [1, 1]} : vector<64x48xf32> to vector<64x16xf32>
    %102 = vector.extract_strided_slice %100 {offsets = [0, 16], sizes = [64, 16], strides = [1, 1]} : vector<64x48xf32> to vector<64x16xf32>
    %103 = vector.extract_strided_slice %100 {offsets = [0, 32], sizes = [64, 16], strides = [1, 1]} : vector<64x48xf32> to vector<64x16xf32>
    %104 = tpu.concatenate %101, %102, %103 in 0 : vector<64x16xf32>, vector<64x16xf32>, vector<64x16xf32> -> vector<192x16xf32>
    %c1 = arith.constant 1 : index
    %c0_44 = arith.constant 0 : index
    %c0_45 = arith.constant 0 : index
    %105 = vector.load %arg4[%c1, %c0_44, %c0_45] : memref<7x64x192xf32, #tpu.memory_space<vmem>>, vector<1x64x192xf32>
    %106 = vector.shape_cast %105 : vector<1x64x192xf32> to vector<64x192xf32>
    %cst_46 = arith.constant dense<0.000000e+00> : vector<64x16xf32>
    %107 = tpu.matmul %106, %104, %cst_46 {dimension_numbers = #tpu.dot_dimension_numbers<[1], [0], [0], [1], [0, 0, 1, 1], [], []>} : vector<64x192xf32>, vector<192x16xf32>, vector<64x16xf32> -> vector<64x16xf32>
    %cst_47 = arith.constant dense<0.000000e+00> : vector<1x48xf32>
    %108 = tpu.matmul %59, %99, %cst_47 {dimension_numbers = #tpu.dot_dimension_numbers<[1], [0], [0], [1], [0, 0, 1, 1], [], []>} : vector<1x32xf32>, vector<32x48xf32>, vector<1x48xf32> -> vector<1x48xf32>
    %109 = vector.extract_strided_slice %108 {offsets = [0, 0], sizes = [1, 16], strides = [1, 1]} : vector<1x48xf32> to vector<1x16xf32>
    %110 = vector.extract_strided_slice %108 {offsets = [0, 16], sizes = [1, 16], strides = [1, 1]} : vector<1x48xf32> to vector<1x16xf32>
    %111 = arith.maximumf %109, %110 : vector<1x16xf32>
    %112 = vector.extract_strided_slice %1 {offsets = [0, 2], sizes = [64, 1], strides = [1, 1]} : vector<192x9xf32> to vector<64x1xf32>
    %113 = vector.extract_strided_slice %1 {offsets = [64, 2], sizes = [64, 1], strides = [1, 1]} : vector<192x9xf32> to vector<64x1xf32>
    %114 = vector.extract_strided_slice %1 {offsets = [128, 2], sizes = [64, 1], strides = [1, 1]} : vector<192x9xf32> to vector<64x1xf32>
    %115 = vector.broadcast %112 : vector<64x1xf32> to vector<64x16xf32>
    %116 = arith.addf %107, %115 : vector<64x16xf32>
    %cst_48 = arith.constant dense<0.000000e+00> : vector<64xf32>
    %117 = vector.multi_reduction <add>, %116, %cst_48 [1] : vector<64x16xf32> to vector<64xf32>
    %118 = vector.shape_cast %117 : vector<64xf32> to vector<64x1xf32>
    %cst_49 = arith.constant 1.600000e+01 : f32
    %119 = vector.broadcast %cst_49 : f32 to vector<64x1xf32>
    %120 = arith.divf %118, %119 : vector<64x1xf32>
    %121 = arith.mulf %116, %116 : vector<64x16xf32>
    %cst_50 = arith.constant dense<0.000000e+00> : vector<64xf32>
    %122 = vector.multi_reduction <add>, %121, %cst_50 [1] : vector<64x16xf32> to vector<64xf32>
    %123 = vector.shape_cast %122 : vector<64xf32> to vector<64x1xf32>
    %cst_51 = arith.constant 1.600000e+01 : f32
    %124 = vector.broadcast %cst_51 : f32 to vector<64x1xf32>
    %125 = arith.divf %123, %124 : vector<64x1xf32>
    %126 = tpu.concatenate %120, %125 in 1 : vector<64x1xf32>, vector<64x1xf32> -> vector<64x2xf32>
    %cst_52 = arith.constant dense<0.000000e+00> : vector<64x2xf32>
    %127 = tpu.matmul %0, %126, %cst_52 {dimension_numbers = #tpu.dot_dimension_numbers<[1], [0], [0], [1], [0, 0, 1, 1], [], []>} : vector<64x64xf32>, vector<64x2xf32>, vector<64x2xf32> -> vector<64x2xf32>
    %128 = vector.extract_strided_slice %127 {offsets = [0, 0], sizes = [64, 1], strides = [1, 1]} : vector<64x2xf32> to vector<64x1xf32>
    %129 = vector.extract_strided_slice %127 {offsets = [0, 1], sizes = [64, 1], strides = [1, 1]} : vector<64x2xf32> to vector<64x1xf32>
    %130 = arith.mulf %128, %128 : vector<64x1xf32>
    %131 = arith.subf %129, %130 : vector<64x1xf32>
    %cst_53 = arith.constant 0.000000e+00 : f32
    %132 = vector.broadcast %cst_53 : f32 to vector<64x1xf32>
    %133 = arith.maximumf %131, %132 : vector<64x1xf32>
    %cst_54 = arith.constant 9.99999974E-6 : f32
    %134 = vector.broadcast %cst_54 : f32 to vector<64x1xf32>
    %135 = arith.addf %133, %134 : vector<64x1xf32>
    %136 = math.rsqrt %135 : vector<64x1xf32>
    %137 = arith.mulf %113, %136 : vector<64x1xf32>
    %138 = arith.mulf %128, %137 : vector<64x1xf32>
    %139 = arith.subf %114, %138 : vector<64x1xf32>
    %140 = vector.broadcast %137 : vector<64x1xf32> to vector<64x16xf32>
    %141 = arith.mulf %116, %140 : vector<64x16xf32>
    %142 = vector.broadcast %139 : vector<64x1xf32> to vector<64x16xf32>
    %143 = arith.addf %141, %142 : vector<64x16xf32>
    %cst_55 = arith.constant 0.000000e+00 : f32
    %144 = vector.broadcast %cst_55 : f32 to vector<64x16xf32>
    %145 = arith.maximumf %143, %144 : vector<64x16xf32>
    %146 = vector.broadcast %111 : vector<1x16xf32> to vector<64x16xf32>
    %147 = arith.mulf %145, %146 : vector<64x16xf32>
    %c0_56 = arith.constant 0 : index
    %c0_57 = arith.constant 0 : index
    %c0_58 = arith.constant 0 : index
    %148 = vector.load %arg16[%c0_56, %c0_57, %c0_58] : memref<1x64x16xf32, #tpu.memory_space<vmem>>, vector<1x64x16xf32>
    %149 = vector.shape_cast %148 : vector<1x64x16xf32> to vector<64x16xf32>
    %150 = vector.shape_cast %147 : vector<64x16xf32> to vector<1x64x16xf32>
    tpu.vector_store %arg16[%c0_56, %c0_57, %c0_58], %150 {strides = array<i32>} : memref<1x64x16xf32, #tpu.memory_space<vmem>>, vector<1x64x16xf32>,
    %c0_59 = arith.constant 0 : index
    %c0_60 = arith.constant 0 : index
    %151 = vector.load %arg11[%c0_59, %c0_60] : memref<16x24xf32, #tpu.memory_space<vmem>>, vector<16x24xf32>
    %cst_61 = arith.constant dense<0.000000e+00> : vector<64x24xf32>
    %152 = tpu.matmul %147, %151, %cst_61 {dimension_numbers = #tpu.dot_dimension_numbers<[1], [0], [0], [1], [0, 0, 1, 1], [], []>} : vector<64x16xf32>, vector<16x24xf32>, vector<64x24xf32> -> vector<64x24xf32>
    %153 = vector.extract_strided_slice %152 {offsets = [0, 0], sizes = [64, 8], strides = [1, 1]} : vector<64x24xf32> to vector<64x8xf32>
    %154 = vector.extract_strided_slice %152 {offsets = [0, 8], sizes = [64, 8], strides = [1, 1]} : vector<64x24xf32> to vector<64x8xf32>
    %155 = vector.extract_strided_slice %152 {offsets = [0, 16], sizes = [64, 8], strides = [1, 1]} : vector<64x24xf32> to vector<64x8xf32>
    %156 = tpu.concatenate %153, %154, %155 in 0 : vector<64x8xf32>, vector<64x8xf32>, vector<64x8xf32> -> vector<192x8xf32>
    %c2 = arith.constant 2 : index
    %c0_62 = arith.constant 0 : index
    %c0_63 = arith.constant 0 : index
    %157 = vector.load %arg4[%c2, %c0_62, %c0_63] : memref<7x64x192xf32, #tpu.memory_space<vmem>>, vector<1x64x192xf32>
    %158 = vector.shape_cast %157 : vector<1x64x192xf32> to vector<64x192xf32>
    %cst_64 = arith.constant dense<0.000000e+00> : vector<64x8xf32>
    %159 = tpu.matmul %158, %156, %cst_64 {dimension_numbers = #tpu.dot_dimension_numbers<[1], [0], [0], [1], [0, 0, 1, 1], [], []>} : vector<64x192xf32>, vector<192x8xf32>, vector<64x8xf32> -> vector<64x8xf32>
    %cst_65 = arith.constant dense<0.000000e+00> : vector<1x24xf32>
    %160 = tpu.matmul %111, %151, %cst_65 {dimension_numbers = #tpu.dot_dimension_numbers<[1], [0], [0], [1], [0, 0, 1, 1], [], []>} : vector<1x16xf32>, vector<16x24xf32>, vector<1x24xf32> -> vector<1x24xf32>
    %161 = vector.extract_strided_slice %160 {offsets = [0, 0], sizes = [1, 8], strides = [1, 1]} : vector<1x24xf32> to vector<1x8xf32>
    %162 = vector.extract_strided_slice %160 {offsets = [0, 8], sizes = [1, 8], strides = [1, 1]} : vector<1x24xf32> to vector<1x8xf32>
    %163 = arith.maximumf %161, %162 : vector<1x8xf32>
    %164 = vector.extract_strided_slice %1 {offsets = [0, 3], sizes = [64, 1], strides = [1, 1]} : vector<192x9xf32> to vector<64x1xf32>
    %165 = vector.extract_strided_slice %1 {offsets = [64, 3], sizes = [64, 1], strides = [1, 1]} : vector<192x9xf32> to vector<64x1xf32>
    %166 = vector.extract_strided_slice %1 {offsets = [128, 3], sizes = [64, 1], strides = [1, 1]} : vector<192x9xf32> to vector<64x1xf32>
    %167 = vector.broadcast %164 : vector<64x1xf32> to vector<64x8xf32>
    %168 = arith.addf %159, %167 : vector<64x8xf32>
    %cst_66 = arith.constant dense<0.000000e+00> : vector<64xf32>
    %169 = vector.multi_reduction <add>, %168, %cst_66 [1] : vector<64x8xf32> to vector<64xf32>
    %170 = vector.shape_cast %169 : vector<64xf32> to vector<64x1xf32>
    %cst_67 = arith.constant 8.000000e+00 : f32
    %171 = vector.broadcast %cst_67 : f32 to vector<64x1xf32>
    %172 = arith.divf %170, %171 : vector<64x1xf32>
    %173 = arith.mulf %168, %168 : vector<64x8xf32>
    %cst_68 = arith.constant dense<0.000000e+00> : vector<64xf32>
    %174 = vector.multi_reduction <add>, %173, %cst_68 [1] : vector<64x8xf32> to vector<64xf32>
    %175 = vector.shape_cast %174 : vector<64xf32> to vector<64x1xf32>
    %cst_69 = arith.constant 8.000000e+00 : f32
    %176 = vector.broadcast %cst_69 : f32 to vector<64x1xf32>
    %177 = arith.divf %175, %176 : vector<64x1xf32>
    %178 = tpu.concatenate %172, %177 in 1 : vector<64x1xf32>, vector<64x1xf32> -> vector<64x2xf32>
    %cst_70 = arith.constant dense<0.000000e+00> : vector<64x2xf32>
    %179 = tpu.matmul %0, %178, %cst_70 {dimension_numbers = #tpu.dot_dimension_numbers<[1], [0], [0], [1], [0, 0, 1, 1], [], []>} : vector<64x64xf32>, vector<64x2xf32>, vector<64x2xf32> -> vector<64x2xf32>
    %180 = vector.extract_strided_slice %179 {offsets = [0, 0], sizes = [64, 1], strides = [1, 1]} : vector<64x2xf32> to vector<64x1xf32>
    %181 = vector.extract_strided_slice %179 {offsets = [0, 1], sizes = [64, 1], strides = [1, 1]} : vector<64x2xf32> to vector<64x1xf32>
    %182 = arith.mulf %180, %180 : vector<64x1xf32>
    %183 = arith.subf %181, %182 : vector<64x1xf32>
    %cst_71 = arith.constant 0.000000e+00 : f32
    %184 = vector.broadcast %cst_71 : f32 to vector<64x1xf32>
    %185 = arith.maximumf %183, %184 : vector<64x1xf32>
    %cst_72 = arith.constant 9.99999974E-6 : f32
    %186 = vector.broadcast %cst_72 : f32 to vector<64x1xf32>
    %187 = arith.addf %185, %186 : vector<64x1xf32>
    %188 = math.rsqrt %187 : vector<64x1xf32>
    %189 = arith.mulf %165, %188 : vector<64x1xf32>
    %190 = arith.mulf %180, %189 : vector<64x1xf32>
    %191 = arith.subf %166, %190 : vector<64x1xf32>
    %192 = vector.broadcast %189 : vector<64x1xf32> to vector<64x8xf32>
    %193 = arith.mulf %168, %192 : vector<64x8xf32>
    %194 = vector.broadcast %191 : vector<64x1xf32> to vector<64x8xf32>
    %195 = arith.addf %193, %194 : vector<64x8xf32>
    %cst_73 = arith.constant 0.000000e+00 : f32
    %196 = vector.broadcast %cst_73 : f32 to vector<64x8xf32>
    %197 = arith.maximumf %195, %196 : vector<64x8xf32>
    %198 = vector.broadcast %163 : vector<1x8xf32> to vector<64x8xf32>
    %199 = arith.mulf %197, %198 : vector<64x8xf32>
    %c0_74 = arith.constant 0 : index
    %c0_75 = arith.constant 0 : index
    %c0_76 = arith.constant 0 : index
    %200 = vector.load %arg17[%c0_74, %c0_75, %c0_76] : memref<1x64x8xf32, #tpu.memory_space<vmem>>, vector<1x64x8xf32>
    %201 = vector.shape_cast %200 : vector<1x64x8xf32> to vector<64x8xf32>
    %202 = vector.shape_cast %199 : vector<64x8xf32> to vector<1x64x8xf32>
    tpu.vector_store %arg17[%c0_74, %c0_75, %c0_76], %202 {strides = array<i32>} : memref<1x64x8xf32, #tpu.memory_space<vmem>>, vector<1x64x8xf32>,
    %c0_77 = arith.constant 0 : index
    %c0_78 = arith.constant 0 : index
    %203 = vector.load %arg12[%c0_77, %c0_78] : memref<8x12xf32, #tpu.memory_space<vmem>>, vector<8x12xf32>
    %cst_79 = arith.constant dense<0.000000e+00> : vector<64x12xf32>
    %204 = tpu.matmul %199, %203, %cst_79 {dimension_numbers = #tpu.dot_dimension_numbers<[1], [0], [0], [1], [0, 0, 1, 1], [], []>} : vector<64x8xf32>, vector<8x12xf32>, vector<64x12xf32> -> vector<64x12xf32>
    %205 = vector.extract_strided_slice %204 {offsets = [0, 0], sizes = [64, 4], strides = [1, 1]} : vector<64x12xf32> to vector<64x4xf32>
    %206 = vector.extract_strided_slice %204 {offsets = [0, 4], sizes = [64, 4], strides = [1, 1]} : vector<64x12xf32> to vector<64x4xf32>
    %207 = vector.extract_strided_slice %204 {offsets = [0, 8], sizes = [64, 4], strides = [1, 1]} : vector<64x12xf32> to vector<64x4xf32>
    %208 = tpu.concatenate %205, %206, %207 in 0 : vector<64x4xf32>, vector<64x4xf32>, vector<64x4xf32> -> vector<192x4xf32>
    %c3 = arith.constant 3 : index
    %c0_80 = arith.constant 0 : index
    %c0_81 = arith.constant 0 : index
    %209 = vector.load %arg4[%c3, %c0_80, %c0_81] : memref<7x64x192xf32, #tpu.memory_space<vmem>>, vector<1x64x192xf32>
    %210 = vector.shape_cast %209 : vector<1x64x192xf32> to vector<64x192xf32>
    %cst_82 = arith.constant dense<0.000000e+00> : vector<64x4xf32>
    %211 = tpu.matmul %210, %208, %cst_82 {dimension_numbers = #tpu.dot_dimension_numbers<[1], [0], [0], [1], [0, 0, 1, 1], [], []>} : vector<64x192xf32>, vector<192x4xf32>, vector<64x4xf32> -> vector<64x4xf32>
    %cst_83 = arith.constant dense<0.000000e+00> : vector<1x12xf32>
    %212 = tpu.matmul %163, %203, %cst_83 {dimension_numbers = #tpu.dot_dimension_numbers<[1], [0], [0], [1], [0, 0, 1, 1], [], []>} : vector<1x8xf32>, vector<8x12xf32>, vector<1x12xf32> -> vector<1x12xf32>
    %213 = vector.extract_strided_slice %212 {offsets = [0, 0], sizes = [1, 4], strides = [1, 1]} : vector<1x12xf32> to vector<1x4xf32>
    %214 = vector.extract_strided_slice %212 {offsets = [0, 4], sizes = [1, 4], strides = [1, 1]} : vector<1x12xf32> to vector<1x4xf32>
    %215 = arith.maximumf %213, %214 : vector<1x4xf32>
    %216 = vector.extract_strided_slice %1 {offsets = [0, 4], sizes = [64, 1], strides = [1, 1]} : vector<192x9xf32> to vector<64x1xf32>
    %217 = vector.extract_strided_slice %1 {offsets = [64, 4], sizes = [64, 1], strides = [1, 1]} : vector<192x9xf32> to vector<64x1xf32>
    %218 = vector.extract_strided_slice %1 {offsets = [128, 4], sizes = [64, 1], strides = [1, 1]} : vector<192x9xf32> to vector<64x1xf32>
    %219 = vector.broadcast %216 : vector<64x1xf32> to vector<64x4xf32>
    %220 = arith.addf %211, %219 : vector<64x4xf32>
    %cst_84 = arith.constant dense<0.000000e+00> : vector<64xf32>
    %221 = vector.multi_reduction <add>, %220, %cst_84 [1] : vector<64x4xf32> to vector<64xf32>
    %222 = vector.shape_cast %221 : vector<64xf32> to vector<64x1xf32>
    %cst_85 = arith.constant 4.000000e+00 : f32
    %223 = vector.broadcast %cst_85 : f32 to vector<64x1xf32>
    %224 = arith.divf %222, %223 : vector<64x1xf32>
    %225 = arith.mulf %220, %220 : vector<64x4xf32>
    %cst_86 = arith.constant dense<0.000000e+00> : vector<64xf32>
    %226 = vector.multi_reduction <add>, %225, %cst_86 [1] : vector<64x4xf32> to vector<64xf32>
    %227 = vector.shape_cast %226 : vector<64xf32> to vector<64x1xf32>
    %cst_87 = arith.constant 4.000000e+00 : f32
    %228 = vector.broadcast %cst_87 : f32 to vector<64x1xf32>
    %229 = arith.divf %227, %228 : vector<64x1xf32>
    %230 = tpu.concatenate %224, %229 in 1 : vector<64x1xf32>, vector<64x1xf32> -> vector<64x2xf32>
    %cst_88 = arith.constant dense<0.000000e+00> : vector<64x2xf32>
    %231 = tpu.matmul %0, %230, %cst_88 {dimension_numbers = #tpu.dot_dimension_numbers<[1], [0], [0], [1], [0, 0, 1, 1], [], []>} : vector<64x64xf32>, vector<64x2xf32>, vector<64x2xf32> -> vector<64x2xf32>
    %232 = vector.extract_strided_slice %231 {offsets = [0, 0], sizes = [64, 1], strides = [1, 1]} : vector<64x2xf32> to vector<64x1xf32>
    %233 = vector.extract_strided_slice %231 {offsets = [0, 1], sizes = [64, 1], strides = [1, 1]} : vector<64x2xf32> to vector<64x1xf32>
    %234 = arith.mulf %232, %232 : vector<64x1xf32>
    %235 = arith.subf %233, %234 : vector<64x1xf32>
    %cst_89 = arith.constant 0.000000e+00 : f32
    %236 = vector.broadcast %cst_89 : f32 to vector<64x1xf32>
    %237 = arith.maximumf %235, %236 : vector<64x1xf32>
    %cst_90 = arith.constant 9.99999974E-6 : f32
    %238 = vector.broadcast %cst_90 : f32 to vector<64x1xf32>
    %239 = arith.addf %237, %238 : vector<64x1xf32>
    %240 = math.rsqrt %239 : vector<64x1xf32>
    %241 = arith.mulf %217, %240 : vector<64x1xf32>
    %242 = arith.mulf %232, %241 : vector<64x1xf32>
    %243 = arith.subf %218, %242 : vector<64x1xf32>
    %244 = vector.broadcast %241 : vector<64x1xf32> to vector<64x4xf32>
    %245 = arith.mulf %220, %244 : vector<64x4xf32>
    %246 = vector.broadcast %243 : vector<64x1xf32> to vector<64x4xf32>
    %247 = arith.addf %245, %246 : vector<64x4xf32>
    %cst_91 = arith.constant 0.000000e+00 : f32
    %248 = vector.broadcast %cst_91 : f32 to vector<64x4xf32>
    %249 = arith.maximumf %247, %248 : vector<64x4xf32>
    %250 = vector.broadcast %215 : vector<1x4xf32> to vector<64x4xf32>
    %251 = arith.mulf %249, %250 : vector<64x4xf32>
    %c0_92 = arith.constant 0 : index
    %c0_93 = arith.constant 0 : index
    %c0_94 = arith.constant 0 : index
    %252 = vector.load %arg18[%c0_92, %c0_93, %c0_94] : memref<1x64x4xf32, #tpu.memory_space<vmem>>, vector<1x64x4xf32>
    %253 = vector.shape_cast %252 : vector<1x64x4xf32> to vector<64x4xf32>
    %254 = vector.shape_cast %251 : vector<64x4xf32> to vector<1x64x4xf32>
    tpu.vector_store %arg18[%c0_92, %c0_93, %c0_94], %254 {strides = array<i32>} : memref<1x64x4xf32, #tpu.memory_space<vmem>>, vector<1x64x4xf32>,
    %c0_95 = arith.constant 0 : index
    %c0_96 = arith.constant 0 : index
    %255 = vector.load %arg13[%c0_95, %c0_96] : memref<4x6xf32, #tpu.memory_space<vmem>>, vector<4x6xf32>
    %cst_97 = arith.constant dense<0.000000e+00> : vector<64x6xf32>
    %256 = tpu.matmul %251, %255, %cst_97 {dimension_numbers = #tpu.dot_dimension_numbers<[1], [0], [0], [1], [0, 0, 1, 1], [], []>} : vector<64x4xf32>, vector<4x6xf32>, vector<64x6xf32> -> vector<64x6xf32>
    %257 = vector.extract_strided_slice %256 {offsets = [0, 0], sizes = [64, 2], strides = [1, 1]} : vector<64x6xf32> to vector<64x2xf32>
    %258 = vector.extract_strided_slice %256 {offsets = [0, 2], sizes = [64, 2], strides = [1, 1]} : vector<64x6xf32> to vector<64x2xf32>
    %259 = vector.extract_strided_slice %256 {offsets = [0, 4], sizes = [64, 2], strides = [1, 1]} : vector<64x6xf32> to vector<64x2xf32>
    %260 = tpu.concatenate %257, %258, %259 in 0 : vector<64x2xf32>, vector<64x2xf32>, vector<64x2xf32> -> vector<192x2xf32>
    %c4 = arith.constant 4 : index
    %c0_98 = arith.constant 0 : index
    %c0_99 = arith.constant 0 : index
    %261 = vector.load %arg4[%c4, %c0_98, %c0_99] : memref<7x64x192xf32, #tpu.memory_space<vmem>>, vector<1x64x192xf32>
    %262 = vector.shape_cast %261 : vector<1x64x192xf32> to vector<64x192xf32>
    %cst_100 = arith.constant dense<0.000000e+00> : vector<64x2xf32>
    %263 = tpu.matmul %262, %260, %cst_100 {dimension_numbers = #tpu.dot_dimension_numbers<[1], [0], [0], [1], [0, 0, 1, 1], [], []>} : vector<64x192xf32>, vector<192x2xf32>, vector<64x2xf32> -> vector<64x2xf32>
    %cst_101 = arith.constant dense<0.000000e+00> : vector<1x6xf32>
    %264 = tpu.matmul %215, %255, %cst_101 {dimension_numbers = #tpu.dot_dimension_numbers<[1], [0], [0], [1], [0, 0, 1, 1], [], []>} : vector<1x4xf32>, vector<4x6xf32>, vector<1x6xf32> -> vector<1x6xf32>
    %265 = vector.extract_strided_slice %264 {offsets = [0, 0], sizes = [1, 2], strides = [1, 1]} : vector<1x6xf32> to vector<1x2xf32>
    %266 = vector.extract_strided_slice %264 {offsets = [0, 2], sizes = [1, 2], strides = [1, 1]} : vector<1x6xf32> to vector<1x2xf32>
    %267 = arith.maximumf %265, %266 : vector<1x2xf32>
    %268 = vector.extract_strided_slice %1 {offsets = [0, 5], sizes = [64, 1], strides = [1, 1]} : vector<192x9xf32> to vector<64x1xf32>
    %269 = vector.extract_strided_slice %1 {offsets = [64, 5], sizes = [64, 1], strides = [1, 1]} : vector<192x9xf32> to vector<64x1xf32>
    %270 = vector.extract_strided_slice %1 {offsets = [128, 5], sizes = [64, 1], strides = [1, 1]} : vector<192x9xf32> to vector<64x1xf32>
    %271 = vector.broadcast %268 : vector<64x1xf32> to vector<64x2xf32>
    %272 = arith.addf %263, %271 : vector<64x2xf32>
    %cst_102 = arith.constant dense<0.000000e+00> : vector<64xf32>
    %273 = vector.multi_reduction <add>, %272, %cst_102 [1] : vector<64x2xf32> to vector<64xf32>
    %274 = vector.shape_cast %273 : vector<64xf32> to vector<64x1xf32>
    %cst_103 = arith.constant 2.000000e+00 : f32
    %275 = vector.broadcast %cst_103 : f32 to vector<64x1xf32>
    %276 = arith.divf %274, %275 : vector<64x1xf32>
    %277 = arith.mulf %272, %272 : vector<64x2xf32>
    %cst_104 = arith.constant dense<0.000000e+00> : vector<64xf32>
    %278 = vector.multi_reduction <add>, %277, %cst_104 [1] : vector<64x2xf32> to vector<64xf32>
    %279 = vector.shape_cast %278 : vector<64xf32> to vector<64x1xf32>
    %cst_105 = arith.constant 2.000000e+00 : f32
    %280 = vector.broadcast %cst_105 : f32 to vector<64x1xf32>
    %281 = arith.divf %279, %280 : vector<64x1xf32>
    %282 = tpu.concatenate %276, %281 in 1 : vector<64x1xf32>, vector<64x1xf32> -> vector<64x2xf32>
    %cst_106 = arith.constant dense<0.000000e+00> : vector<64x2xf32>
    %283 = tpu.matmul %0, %282, %cst_106 {dimension_numbers = #tpu.dot_dimension_numbers<[1], [0], [0], [1], [0, 0, 1, 1], [], []>} : vector<64x64xf32>, vector<64x2xf32>, vector<64x2xf32> -> vector<64x2xf32>
    %284 = vector.extract_strided_slice %283 {offsets = [0, 0], sizes = [64, 1], strides = [1, 1]} : vector<64x2xf32> to vector<64x1xf32>
    %285 = vector.extract_strided_slice %283 {offsets = [0, 1], sizes = [64, 1], strides = [1, 1]} : vector<64x2xf32> to vector<64x1xf32>
    %286 = arith.mulf %284, %284 : vector<64x1xf32>
    %287 = arith.subf %285, %286 : vector<64x1xf32>
    %cst_107 = arith.constant 0.000000e+00 : f32
    %288 = vector.broadcast %cst_107 : f32 to vector<64x1xf32>
    %289 = arith.maximumf %287, %288 : vector<64x1xf32>
    %cst_108 = arith.constant 9.99999974E-6 : f32
    %290 = vector.broadcast %cst_108 : f32 to vector<64x1xf32>
    %291 = arith.addf %289, %290 : vector<64x1xf32>
    %292 = math.rsqrt %291 : vector<64x1xf32>
    %293 = arith.mulf %269, %292 : vector<64x1xf32>
    %294 = arith.mulf %284, %293 : vector<64x1xf32>
    %295 = arith.subf %270, %294 : vector<64x1xf32>
    %296 = vector.broadcast %293 : vector<64x1xf32> to vector<64x2xf32>
    %297 = arith.mulf %272, %296 : vector<64x2xf32>
    %298 = vector.broadcast %295 : vector<64x1xf32> to vector<64x2xf32>
    %299 = arith.addf %297, %298 : vector<64x2xf32>
    %cst_109 = arith.constant 0.000000e+00 : f32
    %300 = vector.broadcast %cst_109 : f32 to vector<64x2xf32>
    %301 = arith.maximumf %299, %300 : vector<64x2xf32>
    %302 = vector.broadcast %267 : vector<1x2xf32> to vector<64x2xf32>
    %303 = arith.mulf %301, %302 : vector<64x2xf32>
    %c0_110 = arith.constant 0 : index
    %c0_111 = arith.constant 0 : index
    %c0_112 = arith.constant 0 : index
    %304 = vector.load %arg19[%c0_110, %c0_111, %c0_112] : memref<1x64x2xf32, #tpu.memory_space<vmem>>, vector<1x64x2xf32>
    %305 = vector.shape_cast %304 : vector<1x64x2xf32> to vector<64x2xf32>
    %306 = vector.shape_cast %303 : vector<64x2xf32> to vector<1x64x2xf32>
    tpu.vector_store %arg19[%c0_110, %c0_111, %c0_112], %306 {strides = array<i32>} : memref<1x64x2xf32, #tpu.memory_space<vmem>>, vector<1x64x2xf32>,
    %c0_113 = arith.constant 0 : index
    %c0_114 = arith.constant 0 : index
    %307 = vector.load %arg8[%c0_113, %c0_114] : memref<64x128xf32, #tpu.memory_space<vmem>>, vector<64x128xf32>
    %cst_115 = arith.constant dense<0.000000e+00> : vector<64x128xf32>
    %308 = tpu.matmul %43, %307, %cst_115 {dimension_numbers = #tpu.dot_dimension_numbers<[1], [0], [0], [1], [0, 0, 1, 1], [], []>} : vector<64x64xf32>, vector<64x128xf32>, vector<64x128xf32> -> vector<64x128xf32>
    %c5 = arith.constant 5 : index
    %c0_116 = arith.constant 0 : index
    %c0_117 = arith.constant 0 : index
    %309 = vector.load %arg4[%c5, %c0_116, %c0_117] : memref<7x64x192xf32, #tpu.memory_space<vmem>>, vector<1x64x192xf32>
    %310 = vector.shape_cast %309 : vector<1x64x192xf32> to vector<64x192xf32>
    %cst_118 = arith.constant 0.000000e+00 : f32
    %311 = vector.broadcast %cst_118 : f32 to vector<64x1xf32>
    %312 = vector.extract_strided_slice %308 {offsets = [0, 0], sizes = [64, 127], strides = [1, 1]} : vector<64x128xf32> to vector<64x127xf32>
    %313 = tpu.concatenate %311, %312 in 1 : vector<64x1xf32>, vector<64x127xf32> -> vector<64x128xf32>
    %314 = vector.extract_strided_slice %308 {offsets = [0, 1], sizes = [64, 127], strides = [1, 1]} : vector<64x128xf32> to vector<64x127xf32>
    %315 = tpu.concatenate %314, %311 in 1 : vector<64x127xf32>, vector<64x1xf32> -> vector<64x128xf32>
    %316 = tpu.concatenate %313, %308, %315 in 0 : vector<64x128xf32>, vector<64x128xf32>, vector<64x128xf32> -> vector<192x128xf32>
    %cst_119 = arith.constant dense<0.000000e+00> : vector<64x128xf32>
    %317 = tpu.matmul %310, %316, %cst_119 {dimension_numbers = #tpu.dot_dimension_numbers<[1], [0], [0], [1], [0, 0, 1, 1], [], []>} : vector<64x192xf32>, vector<192x128xf32>, vector<64x128xf32> -> vector<64x128xf32>
    %318 = vector.extract_strided_slice %1 {offsets = [0, 6], sizes = [64, 1], strides = [1, 1]} : vector<192x9xf32> to vector<64x1xf32>
    %319 = vector.extract_strided_slice %1 {offsets = [64, 6], sizes = [64, 1], strides = [1, 1]} : vector<192x9xf32> to vector<64x1xf32>
    %320 = vector.extract_strided_slice %1 {offsets = [128, 6], sizes = [64, 1], strides = [1, 1]} : vector<192x9xf32> to vector<64x1xf32>
    %321 = vector.broadcast %318 : vector<64x1xf32> to vector<64x128xf32>
    %322 = arith.addf %317, %321 : vector<64x128xf32>
    %cst_120 = arith.constant dense<0.000000e+00> : vector<64xf32>
    %323 = vector.multi_reduction <add>, %322, %cst_120 [1] : vector<64x128xf32> to vector<64xf32>
    %324 = vector.shape_cast %323 : vector<64xf32> to vector<64x1xf32>
    %cst_121 = arith.constant 1.280000e+02 : f32
    %325 = vector.broadcast %cst_121 : f32 to vector<64x1xf32>
    %326 = arith.divf %324, %325 : vector<64x1xf32>
    %327 = arith.mulf %322, %322 : vector<64x128xf32>
    %cst_122 = arith.constant dense<0.000000e+00> : vector<64xf32>
    %328 = vector.multi_reduction <add>, %327, %cst_122 [1] : vector<64x128xf32> to vector<64xf32>
    %329 = vector.shape_cast %328 : vector<64xf32> to vector<64x1xf32>
    %cst_123 = arith.constant 1.280000e+02 : f32
    %330 = vector.broadcast %cst_123 : f32 to vector<64x1xf32>
    %331 = arith.divf %329, %330 : vector<64x1xf32>
    %332 = tpu.concatenate %326, %331 in 1 : vector<64x1xf32>, vector<64x1xf32> -> vector<64x2xf32>
    %cst_124 = arith.constant dense<0.000000e+00> : vector<64x2xf32>
    %333 = tpu.matmul %0, %332, %cst_124 {dimension_numbers = #tpu.dot_dimension_numbers<[1], [0], [0], [1], [0, 0, 1, 1], [], []>} : vector<64x64xf32>, vector<64x2xf32>, vector<64x2xf32> -> vector<64x2xf32>
    %334 = vector.extract_strided_slice %333 {offsets = [0, 0], sizes = [64, 1], strides = [1, 1]} : vector<64x2xf32> to vector<64x1xf32>
    %335 = vector.extract_strided_slice %333 {offsets = [0, 1], sizes = [64, 1], strides = [1, 1]} : vector<64x2xf32> to vector<64x1xf32>
    %336 = arith.mulf %334, %334 : vector<64x1xf32>
    %337 = arith.subf %335, %336 : vector<64x1xf32>
    %cst_125 = arith.constant 0.000000e+00 : f32
    %338 = vector.broadcast %cst_125 : f32 to vector<64x1xf32>
    %339 = arith.maximumf %337, %338 : vector<64x1xf32>
    %cst_126 = arith.constant 9.99999974E-6 : f32
    %340 = vector.broadcast %cst_126 : f32 to vector<64x1xf32>
    %341 = arith.addf %339, %340 : vector<64x1xf32>
    %342 = math.rsqrt %341 : vector<64x1xf32>
    %343 = arith.mulf %319, %342 : vector<64x1xf32>
    %344 = arith.mulf %334, %343 : vector<64x1xf32>
    %345 = arith.subf %320, %344 : vector<64x1xf32>
    %346 = vector.broadcast %343 : vector<64x1xf32> to vector<64x128xf32>
    %347 = arith.mulf %322, %346 : vector<64x128xf32>
    %348 = vector.broadcast %345 : vector<64x1xf32> to vector<64x128xf32>
    %349 = arith.addf %347, %348 : vector<64x128xf32>
    %cst_127 = arith.constant 0.000000e+00 : f32
    %350 = vector.broadcast %cst_127 : f32 to vector<64x128xf32>
    %351 = arith.maximumf %349, %350 : vector<64x128xf32>
    %c6 = arith.constant 6 : index
    %c0_128 = arith.constant 0 : index
    %c0_129 = arith.constant 0 : index
    %352 = vector.load %arg4[%c6, %c0_128, %c0_129] : memref<7x64x192xf32, #tpu.memory_space<vmem>>, vector<1x64x192xf32>
    %353 = vector.shape_cast %352 : vector<1x64x192xf32> to vector<64x192xf32>
    %cst_130 = arith.constant 0.000000e+00 : f32
    %354 = vector.broadcast %cst_130 : f32 to vector<64x1xf32>
    %355 = vector.extract_strided_slice %351 {offsets = [0, 0], sizes = [64, 127], strides = [1, 1]} : vector<64x128xf32> to vector<64x127xf32>
    %356 = tpu.concatenate %354, %355 in 1 : vector<64x1xf32>, vector<64x127xf32> -> vector<64x128xf32>
    %357 = vector.extract_strided_slice %351 {offsets = [0, 1], sizes = [64, 127], strides = [1, 1]} : vector<64x128xf32> to vector<64x127xf32>
    %358 = tpu.concatenate %357, %354 in 1 : vector<64x127xf32>, vector<64x1xf32> -> vector<64x128xf32>
    %359 = tpu.concatenate %356, %351, %358 in 0 : vector<64x128xf32>, vector<64x128xf32>, vector<64x128xf32> -> vector<192x128xf32>
    %cst_131 = arith.constant dense<0.000000e+00> : vector<64x128xf32>
    %360 = tpu.matmul %353, %359, %cst_131 {dimension_numbers = #tpu.dot_dimension_numbers<[1], [0], [0], [1], [0, 0, 1, 1], [], []>} : vector<64x192xf32>, vector<192x128xf32>, vector<64x128xf32> -> vector<64x128xf32>
    %361 = vector.extract_strided_slice %1 {offsets = [0, 7], sizes = [64, 1], strides = [1, 1]} : vector<192x9xf32> to vector<64x1xf32>
    %362 = vector.extract_strided_slice %1 {offsets = [64, 7], sizes = [64, 1], strides = [1, 1]} : vector<192x9xf32> to vector<64x1xf32>
    %363 = vector.extract_strided_slice %1 {offsets = [128, 7], sizes = [64, 1], strides = [1, 1]} : vector<192x9xf32> to vector<64x1xf32>
    %364 = vector.broadcast %361 : vector<64x1xf32> to vector<64x128xf32>
    %365 = arith.addf %360, %364 : vector<64x128xf32>
    %cst_132 = arith.constant dense<0.000000e+00> : vector<64xf32>
    %366 = vector.multi_reduction <add>, %365, %cst_132 [1] : vector<64x128xf32> to vector<64xf32>
    %367 = vector.shape_cast %366 : vector<64xf32> to vector<64x1xf32>
    %cst_133 = arith.constant 1.280000e+02 : f32
    %368 = vector.broadcast %cst_133 : f32 to vector<64x1xf32>
    %369 = arith.divf %367, %368 : vector<64x1xf32>
    %370 = arith.mulf %365, %365 : vector<64x128xf32>
    %cst_134 = arith.constant dense<0.000000e+00> : vector<64xf32>
    %371 = vector.multi_reduction <add>, %370, %cst_134 [1] : vector<64x128xf32> to vector<64xf32>
    %372 = vector.shape_cast %371 : vector<64xf32> to vector<64x1xf32>
    %cst_135 = arith.constant 1.280000e+02 : f32
    %373 = vector.broadcast %cst_135 : f32 to vector<64x1xf32>
    %374 = arith.divf %372, %373 : vector<64x1xf32>
    %375 = tpu.concatenate %369, %374 in 1 : vector<64x1xf32>, vector<64x1xf32> -> vector<64x2xf32>
    %cst_136 = arith.constant dense<0.000000e+00> : vector<64x2xf32>
    %376 = tpu.matmul %0, %375, %cst_136 {dimension_numbers = #tpu.dot_dimension_numbers<[1], [0], [0], [1], [0, 0, 1, 1], [], []>} : vector<64x64xf32>, vector<64x2xf32>, vector<64x2xf32> -> vector<64x2xf32>
    %377 = vector.extract_strided_slice %376 {offsets = [0, 0], sizes = [64, 1], strides = [1, 1]} : vector<64x2xf32> to vector<64x1xf32>
    %378 = vector.extract_strided_slice %376 {offsets = [0, 1], sizes = [64, 1], strides = [1, 1]} : vector<64x2xf32> to vector<64x1xf32>
    %379 = arith.mulf %377, %377 : vector<64x1xf32>
    %380 = arith.subf %378, %379 : vector<64x1xf32>
    %cst_137 = arith.constant 0.000000e+00 : f32
    %381 = vector.broadcast %cst_137 : f32 to vector<64x1xf32>
    %382 = arith.maximumf %380, %381 : vector<64x1xf32>
    %cst_138 = arith.constant 9.99999974E-6 : f32
    %383 = vector.broadcast %cst_138 : f32 to vector<64x1xf32>
    %384 = arith.addf %382, %383 : vector<64x1xf32>
    %385 = math.rsqrt %384 : vector<64x1xf32>
    %386 = arith.mulf %362, %385 : vector<64x1xf32>
    %387 = arith.mulf %377, %386 : vector<64x1xf32>
    %388 = arith.subf %363, %387 : vector<64x1xf32>
    %389 = vector.broadcast %386 : vector<64x1xf32> to vector<64x128xf32>
    %390 = arith.mulf %365, %389 : vector<64x128xf32>
    %391 = vector.broadcast %388 : vector<64x1xf32> to vector<64x128xf32>
    %392 = arith.addf %390, %391 : vector<64x128xf32>
    %cst_139 = arith.constant 0.000000e+00 : f32
    %393 = vector.broadcast %cst_139 : f32 to vector<64x128xf32>
    %394 = arith.maximumf %392, %393 : vector<64x128xf32>
    %c0_140 = arith.constant 0 : index
    %c0_141 = arith.constant 0 : index
    %395 = vector.load %arg5[%c0_140, %c0_141] : memref<64x64xf32, #tpu.memory_space<vmem>>, vector<64x64xf32>
    %cst_142 = arith.constant dense<0.000000e+00> : vector<64x128xf32>
    %396 = tpu.matmul %395, %394, %cst_142 {dimension_numbers = #tpu.dot_dimension_numbers<[1], [0], [0], [1], [0, 0, 1, 1], [], []>} : vector<64x64xf32>, vector<64x128xf32>, vector<64x128xf32> -> vector<64x128xf32>
    %397 = vector.extract_strided_slice %1 {offsets = [0, 8], sizes = [64, 1], strides = [1, 1]} : vector<192x9xf32> to vector<64x1xf32>
    %398 = vector.extract_strided_slice %1 {offsets = [64, 8], sizes = [64, 1], strides = [1, 1]} : vector<192x9xf32> to vector<64x1xf32>
    %399 = vector.extract_strided_slice %1 {offsets = [128, 8], sizes = [64, 1], strides = [1, 1]} : vector<192x9xf32> to vector<64x1xf32>
    %400 = vector.broadcast %397 : vector<64x1xf32> to vector<64x128xf32>
    %401 = arith.addf %396, %400 : vector<64x128xf32>
    %cst_143 = arith.constant dense<0.000000e+00> : vector<64xf32>
    %402 = vector.multi_reduction <add>, %401, %cst_143 [1] : vector<64x128xf32> to vector<64xf32>
    %403 = vector.shape_cast %402 : vector<64xf32> to vector<64x1xf32>
    %cst_144 = arith.constant 1.280000e+02 : f32
    %404 = vector.broadcast %cst_144 : f32 to vector<64x1xf32>
    %405 = arith.divf %403, %404 : vector<64x1xf32>
    %406 = arith.mulf %401, %401 : vector<64x128xf32>
    %cst_145 = arith.constant dense<0.000000e+00> : vector<64xf32>
    %407 = vector.multi_reduction <add>, %406, %cst_145 [1] : vector<64x128xf32> to vector<64xf32>
    %408 = vector.shape_cast %407 : vector<64xf32> to vector<64x1xf32>
    %cst_146 = arith.constant 1.280000e+02 : f32
    %409 = vector.broadcast %cst_146 : f32 to vector<64x1xf32>
    %410 = arith.divf %408, %409 : vector<64x1xf32>
    %411 = tpu.concatenate %405, %410 in 1 : vector<64x1xf32>, vector<64x1xf32> -> vector<64x2xf32>
    %cst_147 = arith.constant dense<0.000000e+00> : vector<64x2xf32>
    %412 = tpu.matmul %0, %411, %cst_147 {dimension_numbers = #tpu.dot_dimension_numbers<[1], [0], [0], [1], [0, 0, 1, 1], [], []>} : vector<64x64xf32>, vector<64x2xf32>, vector<64x2xf32> -> vector<64x2xf32>
    %413 = vector.extract_strided_slice %412 {offsets = [0, 0], sizes = [64, 1], strides = [1, 1]} : vector<64x2xf32> to vector<64x1xf32>
    %414 = vector.extract_strided_slice %412 {offsets = [0, 1], sizes = [64, 1], strides = [1, 1]} : vector<64x2xf32> to vector<64x1xf32>
    %415 = arith.mulf %413, %413 : vector<64x1xf32>
    %416 = arith.subf %414, %415 : vector<64x1xf32>
    %cst_148 = arith.constant 0.000000e+00 : f32
    %417 = vector.broadcast %cst_148 : f32 to vector<64x1xf32>
    %418 = arith.maximumf %416, %417 : vector<64x1xf32>
    %cst_149 = arith.constant 9.99999974E-6 : f32
    %419 = vector.broadcast %cst_149 : f32 to vector<64x1xf32>
    %420 = arith.addf %418, %419 : vector<64x1xf32>
    %421 = math.rsqrt %420 : vector<64x1xf32>
    %422 = arith.mulf %398, %421 : vector<64x1xf32>
    %423 = arith.mulf %413, %422 : vector<64x1xf32>
    %424 = arith.subf %399, %423 : vector<64x1xf32>
    %425 = vector.broadcast %422 : vector<64x1xf32> to vector<64x128xf32>
    %426 = arith.mulf %401, %425 : vector<64x128xf32>
    %427 = vector.broadcast %424 : vector<64x1xf32> to vector<64x128xf32>
    %428 = arith.addf %426, %427 : vector<64x128xf32>
    %cst_150 = arith.constant 0.000000e+00 : f32
    %429 = vector.broadcast %cst_150 : f32 to vector<64x128xf32>
    %430 = arith.maximumf %428, %429 : vector<64x128xf32>
    %c0_151 = arith.constant 0 : index
    %c0_152 = arith.constant 0 : index
    %c0_153 = arith.constant 0 : index
    %431 = vector.load %arg20[%c0_151, %c0_152, %c0_153] : memref<1x64x128xf32, #tpu.memory_space<vmem>>, vector<1x64x128xf32>
    %432 = vector.shape_cast %431 : vector<1x64x128xf32> to vector<64x128xf32>
    %433 = vector.shape_cast %430 : vector<64x128xf32> to vector<1x64x128xf32>
    tpu.vector_store %arg20[%c0_151, %c0_152, %c0_153], %433 {strides = array<i32>} : memref<1x64x128xf32, #tpu.memory_space<vmem>>, vector<1x64x128xf32>,
    return
  }
  func.func @transform_0(%arg0: i32) -> (i32, i32, i32) {
    %c0_i32 = arith.constant 0 : i32
    %c0_i32_0 = arith.constant 0 : i32
    %c0_i32_1 = arith.constant 0 : i32
    return %arg0, %c0_i32, %c0_i32_0 : i32, i32, i32
  }
  func.func @transform_1(%arg0: i32) -> (i32, i32, i32) {
    %c0_i32 = arith.constant 0 : i32
    %c0_i32_0 = arith.constant 0 : i32
    %c0_i32_1 = arith.constant 0 : i32
    return %arg0, %c0_i32, %c0_i32_0 : i32, i32, i32
  }
  func.func @transform_2(%arg0: i32) -> (i32, i32) {
    %c0_i32 = arith.constant 0 : i32
    %c0_i32_0 = arith.constant 0 : i32
    %c0_i32_1 = arith.constant 0 : i32
    return %c0_i32, %c0_i32_0 : i32, i32
  }
  func.func @transform_3(%arg0: i32) -> (i32, i32, i32) {
    %c0_i32 = arith.constant 0 : i32
    %c0_i32_0 = arith.constant 0 : i32
    %c0_i32_1 = arith.constant 0 : i32
    %c0_i32_2 = arith.constant 0 : i32
    return %c0_i32, %c0_i32_0, %c0_i32_1 : i32, i32, i32
  }
  func.func @transform_4(%arg0: i32) -> (i32, i32) {
    %c0_i32 = arith.constant 0 : i32
    %c0_i32_0 = arith.constant 0 : i32
    %c0_i32_1 = arith.constant 0 : i32
    return %c0_i32, %c0_i32_0 : i32, i32
  }
  func.func @transform_5(%arg0: i32) -> (i32, i32) {
    %c0_i32 = arith.constant 0 : i32
    %c0_i32_0 = arith.constant 0 : i32
    %c0_i32_1 = arith.constant 0 : i32
    return %c0_i32, %c0_i32_0 : i32, i32
  }
  func.func @transform_6(%arg0: i32) -> (i32, i32) {
    %c0_i32 = arith.constant 0 : i32
    %c0_i32_0 = arith.constant 0 : i32
    %c0_i32_1 = arith.constant 0 : i32
    return %c0_i32, %c0_i32_0 : i32, i32
  }
  func.func @transform_7(%arg0: i32) -> (i32, i32) {
    %c0_i32 = arith.constant 0 : i32
    %c0_i32_0 = arith.constant 0 : i32
    %c0_i32_1 = arith.constant 0 : i32
    return %c0_i32, %c0_i32_0 : i32, i32
  }
  func.func @transform_8(%arg0: i32) -> (i32, i32) {
    %c0_i32 = arith.constant 0 : i32
    %c0_i32_0 = arith.constant 0 : i32
    %c0_i32_1 = arith.constant 0 : i32
    return %c0_i32, %c0_i32_0 : i32, i32
  }
  func.func @transform_9(%arg0: i32) -> (i32, i32) {
    %c0_i32 = arith.constant 0 : i32
    %c0_i32_0 = arith.constant 0 : i32
    %c0_i32_1 = arith.constant 0 : i32
    return %c0_i32, %c0_i32_0 : i32, i32
  }
  func.func @transform_10(%arg0: i32) -> (i32, i32) {
    %c0_i32 = arith.constant 0 : i32
    %c0_i32_0 = arith.constant 0 : i32
    %c0_i32_1 = arith.constant 0 : i32
    return %c0_i32, %c0_i32_0 : i32, i32
  }
  func.func @transform_11(%arg0: i32) -> (i32, i32) {
    %c0_i32 = arith.constant 0 : i32
    %c0_i32_0 = arith.constant 0 : i32
    %c0_i32_1 = arith.constant 0 : i32
    return %c0_i32, %c0_i32_0 : i32, i32
  }
  func.func @transform_12(%arg0: i32) -> (i32, i32) {
    %c0_i32 = arith.constant 0 : i32
    %c0_i32_0 = arith.constant 0 : i32
    %c0_i32_1 = arith.constant 0 : i32
    return %c0_i32, %c0_i32_0 : i32, i32
  }
  func.func @transform_13(%arg0: i32) -> (i32, i32, i32) {
    %c0_i32 = arith.constant 0 : i32
    %c0_i32_0 = arith.constant 0 : i32
    %c0_i32_1 = arith.constant 0 : i32
    return %arg0, %c0_i32, %c0_i32_0 : i32, i32, i32
  }
  func.func @transform_14(%arg0: i32) -> (i32, i32, i32) {
    %c0_i32 = arith.constant 0 : i32
    %c0_i32_0 = arith.constant 0 : i32
    %c0_i32_1 = arith.constant 0 : i32
    return %arg0, %c0_i32, %c0_i32_0 : i32, i32, i32
  }
  func.func @transform_15(%arg0: i32) -> (i32, i32, i32) {
    %c0_i32 = arith.constant 0 : i32
    %c0_i32_0 = arith.constant 0 : i32
    %c0_i32_1 = arith.constant 0 : i32
    return %arg0, %c0_i32, %c0_i32_0 : i32, i32, i32
  }
  func.func @transform_16(%arg0: i32) -> (i32, i32, i32) {
    %c0_i32 = arith.constant 0 : i32
    %c0_i32_0 = arith.constant 0 : i32
    %c0_i32_1 = arith.constant 0 : i32
    return %arg0, %c0_i32, %c0_i32_0 : i32, i32, i32
  }
  func.func @transform_17(%arg0: i32) -> (i32, i32, i32) {
    %c0_i32 = arith.constant 0 : i32
    %c0_i32_0 = arith.constant 0 : i32
    %c0_i32_1 = arith.constant 0 : i32
    return %arg0, %c0_i32, %c0_i32_0 : i32, i32, i32
  }
  func.func @transform_18(%arg0: i32) -> (i32, i32, i32) {
    %c0_i32 = arith.constant 0 : i32
    %c0_i32_0 = arith.constant 0 : i32
    %c0_i32_1 = arith.constant 0 : i32
    return %arg0, %c0_i32, %c0_i32_0 : i32, i32, i32
  }
  func.func @transform_19(%arg0: i32) -> (i32, i32, i32) {
    %c0_i32 = arith.constant 0 : i32
    %c0_i32_0 = arith.constant 0 : i32
    %c0_i32_1 = arith.constant 0 : i32
    return %arg0, %c0_i32, %c0_i32_0 : i32, i32, i32
  }
}

</mosaic_0001>

<bundles_post_ra>
// kernel: afsd_neck_forward.1
= control target key start
LH: loop header
LB: loop body
LE: loop exit
PB: predicated region body
PF: predicated region fallthrough
CT: control target
= control target key end

     0   :  { %s14077_s0 = inlined_call_operand.hbm [shape: f32[2,16,64], index: 0, kind: input, shape index: {}]   ;;  %s14078_s1 = inlined_call_operand.vmem [shape: f32[2,1,64], index: 1, kind: input, shape index: {}]   ;;  %s14079_s2 = inlined_call_operand.vmem [shape: f32[64,16], index: 2, kind: input, shape index: {}]   ;;  %s14080_s3 = inlined_call_operand.hbm [shape: f32[7,64,192], index: 3, kind: input, shape index: {}]   ;;  %s14081_s4 = inlined_call_operand.vmem [shape: f32[64,64], index: 4, kind: input, shape index: {}]   ;;  %s14082_s5 = inlined_call_operand.vmem [shape: f32[192,9], index: 5, kind: input, shape index: {}]   ;;  %s14083_s6 = inlined_call_operand.vmem [shape: f32[64,64], index: 6, kind: input, shape index: {}]   ;;  %s14084_s7 = inlined_call_operand.vmem [shape: f32[64,128], index: 7, kind: input, shape index: {}]   ;;  %s14085_s8 = inlined_call_operand.vmem [shape: f32[64,96], index: 8, kind: input, shape index: {}]   ;;  %s14086_s9 = inlined_call_operand.vmem [shape: f32[32,48], index: 9, kind: input, shape index: {}]   ;;  %s14087_s10 = inlined_call_operand.hbm [shape: f32[16,24], index: 10, kind: input, shape index: {}]   ;;  %s14088_s11 = inlined_call_operand.hbm [shape: f32[8,12], index: 11, kind: input, shape index: {}]   ;;  %s14089_s12 = inlined_call_operand.vmem [shape: f32[4,6], index: 12, kind: input, shape index: {}]   ;;  %s14090_s13 = inlined_call_operand.hbm [shape: f32[2,64,64], index: 13, kind: output, shape index: {0}]   ;;  %s14091_s14 = inlined_call_operand.vmem [shape: f32[2,64,32], index: 14, kind: output, shape index: {1}]   ;;  %s14092_s15 = inlined_call_operand.vmem [shape: f32[2,64,16], index: 15, kind: output, shape index: {2}]   ;;  %s14093_s16 = inlined_call_operand.vmem [shape: f32[2,64,8], index: 16, kind: output, shape index: {3}]   ;;  %s14094_s17 = inlined_call_operand.vmem [shape: f32[2,64,4], index: 17, kind: output, shape index: {4}]   ;;  %s14095_s18 = inlined_call_operand.vmem [shape: f32[2,64,2], index: 18, kind: output, shape index: {5}]   ;;  %s14096_s19 = inlined_call_operand.hbm [shape: f32[2,64,128], index: 19, kind: output, shape index: {6}]  }
   0x1   :  { %14156 = sst [smem:[#allocation43_spill]] %s14077_s0 }
   0x2   :  { %14157 = sst [smem:[#allocation44_spill]] %s14078_s1 }
   0x3   :  { %14158 = sst [smem:[#allocation45_spill]] %s14079_s2 }
   0x4   :  { %14159 = sst [smem:[#allocation46_spill]] %s14080_s3 }
   0x5   :  { %14160 = sst [smem:[#allocation47_spill]] %s14087_s10 }
   0x6   :  { %14161 = sst [smem:[#allocation48_spill]] %s14088_s11 }
   0x7   :  { %14162 = sst [smem:[#allocation49_spill]] %s14095_s18 }
   0x8   :  { %14163 = sst [smem:[#allocation50_spill]] %s14096_s19 }
   0x9   :  { %25 = vsyncpa [#allocation3], 0 }
   0xa   :  { %27 = vsyncpa [#allocation3 + $0x1], 0 }
   0xb   :  { %28 = vsyncpa [#allocation6], 0 }
   0xc   :  { %29 = vsyncpa [#allocation9], 0 }
   0xd   :  { %30 = vsyncpa [#allocation4], 0 }
   0xe   :  { %32 = vsyncpa [#allocation4 + $0x1], 0 }
   0xf   :  { %33 = vsyncpa [#allocation12], 0 }
  0x10   :  { %35 = vsyncpa [#allocation12 + $0x1], 0  ;;  %s10401_s0 = smov 0   ;;  %s10403_s30 = smov 0  }
  0x11   :  { %s10405_s20 = smov 0   ;;  %s10407_s21 = smov 0  }
  0x12 LB: > { %14164 = sst [smem:[#allocation18_spill]] %s10246_s0  ;;  %s10422_s1 = sadd.s32 4294967295, %s10258_s21   ;;  %s10258_s21 = sphi %s10407_s21, %s14268_s21   ;;  %s10254_s20 = sphi %s10405_s20, %s14270_s20   ;;  %s10250_s30 = sphi %s10403_s30, %s14272_s30   ;;  %s10246_s0 = sphi %s10401_s0, %s14271_s0  }
  0x13   : > { %14165 = sst [smem:[#allocation19_spill]] %s10254_s20  ;;  %s8598_s22 = sadd.s32 4294967294, %s10258_s21  }
  0x14   : > { %14166 = sst [smem:[#allocation20_spill]] %s10258_s21  ;;  %p61_p0 = scmp.ne.s32.totalorder %s10250_s30, %s10246_s0 }
  0x15   : > { %p14102_p1 = scmp.eq.s32.totalorder %s10422_s1, 0  ;;  %p348_p3 = scmp.eq.s32.totalorder %s8598_s22, 1 }
  0x16   : > { %p8599_p5 = scmp.ge.s32.totalorder %s10258_s21, 1  ;;  %p511_p7 = scmp.lt.s32.totalorder %s10258_s21, 3 }
  0x17   : > { %p10431_p4 = por %p14102_p1, %p61_p0  ;;  %p10436_p6 = por %p348_p3, %p61_p0 }
  0x18   : > { %p10441_p8 = pnand %p8599_p5, %p511_p7  ;;  %s10260_s25 = smov [#allocation5]  }
  0x19   : > { %s14167_s2 = scalar_select %p10431_p4, 1, 0 }
  0x1a   : > { %s14168_s23 = scalar_select %p10436_p6, 1, 0 }
  0x1b   : > { %s14170_s24 = scalar_select %p10441_p8, 1, 0 }
  0x1c   : > { %14169 = sst [smem:[#allocation21_spill]] %s14168_s23  ;;  %s526_s3 = sshll.u32 %s10260_s25, 4  ;;  %s527_s3 = int_to_ptr.vmem [resolvable:$true] %s526_s3 }
  0x1d   : > { %p9647_p9 = pneg %p10441_p8  ;;  %s10261_s27 = smov [#allocation7]  }
  0x1e   : > { %s557_s28 = sshll.u32 %s10261_s27, 4  ;;  %s10061_s29 = scalar_lea.vmem %s527_s3, 14336  ;;  %s558_s28 = int_to_ptr.vmem [resolvable:$true] %s557_s28 }
  0x1f   : > { %p10450_p11 = pnand %p9647_p9, %p14102_p1  ;;  %p10062_p13 = scmp.ne.s32.totalorder %s527_s3, %s10061_s29 }
  0x20   : > { %p10069_p5 = scmp.lt.s32.totalorder %s527_s3, %s527_s3  ;;  %p10070_p7 = scmp.lt.s32.totalorder %s10061_s29, %s10061_s29 }
  0x21   : > { %p10052_p12 = pneg %p10450_p11 }
  0x22   : > { %p10071_p10 = por %p10070_p7, %p10069_p5 }
  0x23   : > { %p10064_p0 = pnand %p10062_p13, %p10052_p12 }
  0x25   : > { %p10065_p3 = pneg %p10064_p0 }
  0x27   : > { %p10072_p9 = pnand %p10071_p10, %p10065_p3 }
  0x29   : > { %10075 = shalt.err (!%p10072_p9)
}
  0x2a   : > { %s10262_s22 = smov 256   ;;  %s10263_s25 = smov 16  }
  0x2b   : > { %s14172_s0 = sld [smem:[#allocation46_spill]]  ;;  %s10087_s19 = scalar_lea.vmem %s558_s28, 256 }
  0x2c   : > { %p10088_p1 = scmp.ne.s32.totalorder %s558_s28, %s10087_s19  ;;  %p10095_p2 = scmp.lt.s32.totalorder %s558_s28, %s558_s28 }
  0x2d   : > { %p10096_p6 = scmp.lt.s32.totalorder %s10087_s19, %s10087_s19 }
  0x2e   : > { %p10090_p13 = pnand %p10088_p1, %p10052_p12 }
  0x2f   : > { %p10097_p5 = por %p10096_p6, %p10095_p2 }
  0x30   : > { %p10091_p0 = pneg %p10090_p13 }
  0x31   : > { %9650 = dma.hbm_to_vmem [thread:$0]  (!%p10450_p11), %s14172_s0, 14336, %s527_s3, [#allocation6], %s10262_s22, %s10262_s22, %s10263_s25  }
  0x32   : > { %p10098_p10 = pnand %p10097_p5, %p10091_p0 }
  0x34   : > { %10101 = shalt.err (!%p10098_p10)
}
  0x35   : > { %s14103_s29 = smov 128   ;;  %s14104_s18 = smov 8  }
  0x36   : > { %s14173_s10 = sld [smem:[#allocation47_spill]]  ;;  %s10266_s3 = smov [#allocation8]  }
  0x37   : > { %s571_s22 = sshll.u32 %s10266_s3, 4  ;;  %s10476_s19 = sadd.s32 1, %s10258_s21   ;;  %s572_s22 = int_to_ptr.vmem [resolvable:$true] %s571_s22 }
  0x38   : > { %14174 = sst [smem:[#allocation22_spill]] %s10476_s19  ;;  %s10113_s25 = scalar_lea.vmem %s572_s22, 128 }
  0x39   : > { %p10114_p1 = scmp.ne.s32.totalorder %s572_s22, %s10113_s25  ;;  %p10121_p3 = scmp.lt.s32.totalorder %s572_s22, %s572_s22 }
  0x3a   : > { %p10122_p7 = scmp.lt.s32.totalorder %s10113_s25, %s10113_s25 }
  0x3b   : > { %p10116_p2 = pnand %p10114_p1, %p10052_p12 }
  0x3c   : > { %9653 = dma.hbm_to_vmem [thread:$0]  (!%p10450_p11), %s14173_s10, 256, %s558_s28, [#allocation6], %s14103_s29, %s14103_s29, %s14104_s18  }
  0x3d   : > { %p10117_p6 = pneg %p10116_p2  ;;  %p10123_p9 = por %p10122_p7, %p10121_p3 }
  0x3f   : > { %p10124_p13 = pnand %p10123_p9, %p10117_p6 }
  0x41   : > { %10127 = shalt.err (!%p10124_p13)
}
  0x42   : > { %s14175_s11 = sld [smem:[#allocation48_spill]]  ;;  %s45_s0 = ssub.s32 %s10258_s21, %s10476_s19 }
  0x43   : > { %s48_s23 = sadd.s32 1, %s10254_s20  ;;  %p46_p12 = scmp.eq.s32.totalorder %s45_s0, 0 }
  0x44   : > { %p55_p0 = scmp.ne.s32.totalorder %s10254_s20, %s10250_s30  ;;  %p56_p5 = scmp.eq.s32.totalorder %s10258_s21, 0 }
  0x45   : > { %p9671_p10 = scmp.lt.s32.totalorder %s10258_s21, 2  ;;  %p14177_p2 = scmp.eq.s32.totalorder %s10422_s1, 1 }
  0x46   : > { %s10494_s26 = scalar_select %p46_p12, %s10254_s20, %s48_s23  }
  0x47   : > { %p57_p1 = por %p56_p5, %p55_p0  ;;  %p10498_p6 = por %p14177_p2, %p55_p0 }
  0x48   : > { %9656 = dma.hbm_to_vmem [thread:$0]  (!%p10450_p11), %s14175_s11, 128, %s572_s22, [#allocation9]  }
  0x49   : > { %14176 = sst [smem:[#allocation23_spill]] %s10494_s26  ;;  %s585_s25 = sand.u32 1, %s10254_s20  }
  0x4a   : > { %s14178_s3 = scalar_select %p10498_p6, 1, 0 }
  0x4b   : > { %s8879_s27 = sshll.u32 %s10258_s21, 8  ;;  %s8604_s28 = sshll.u32 %s585_s25, 4 }
  0x4c   : > { %s14179_s22 = sld [smem:[#allocation43_spill]]  ;;  %s589_s0 = scalar_lea.vmem [#allocation2], %s8604_s28 }
  0x4d   : > { %s596_s23 = sshll.u32 %s589_s0, 4  ;;  %p10509_p11 = pnand %p9671_p10, %p57_p1  ;;  %s10513_s23 = int_to_ptr.vmem [resolvable:$true] %s596_s23 }
  0x4e   : > { %s10515_s26 = scalar_lea.sflag [#allocation3], %s585_s25 }
  0x4f   : > { %p10130_p7 = pneg %p10509_p11 }
  0x52   : > { %s10507_s10 = scalar_lea.hbm %s14179_s22, %s8879_s27  ;;  %s10133_s27 = scalar_lea.hbm %s14179_s22, 512 }
  0x53   : > { %s10128_s20 = scalar_lea.hbm %s10507_s10, 256  ;;  %p10134_p12 = scmp.lt.s32.totalorder %s10507_s10, %s14179_s22 }
  0x54   : > { %p10129_p3 = scmp.ne.s32.totalorder %s10507_s10, %s10128_s20  ;;  %p10135_p0 = scmp.lt.s32.totalorder %s10133_s27, %s10128_s20 }
  0x56   : > { %p10131_p9 = pnand %p10130_p7, %p10129_p3  ;;  %p10136_p5 = por %p10135_p0, %p10134_p12 }
  0x58   : > { %p10132_p13 = pneg %p10131_p9 }
  0x5a   : > { %p10137_p10 = pnand %p10136_p5, %p10132_p13 }
  0x5c   : > { %10140 = shalt.err (!%p10137_p10)
}
  0x5d   : > { %s10141_s25 = scalar_lea.vmem %s10513_s23, 256  ;;  %s10267_s19 = smov [#allocation2]  }
  0x5e   : > { %p10142_p1 = scmp.ne.s32.totalorder %s10513_s23, %s10141_s25  ;;  %s10146_s21 = sshll.u32 %s10267_s19, 4  ;;  %s10147_s21 = int_to_ptr.vmem [resolvable:$false] %s10146_s21 }
  0x5f   : > { %s10148_s18 = scalar_lea.vmem %s10147_s21, 512  ;;  %p10149_p9 = scmp.lt.s32.totalorder %s10513_s23, %s10147_s21 }
  0x60   : > { %p10144_p2 = pnand %p10142_p1, %p10130_p7  ;;  %p10150_p6 = scmp.lt.s32.totalorder %s10148_s18, %s10141_s25 }
  0x62   : > { %p10145_p3 = pneg %p10144_p2  ;;  %p10151_p4 = por %p10150_p6, %p10149_p9 }
  0x64   : > { %p10152_p8 = pnand %p10151_p4, %p10145_p3 }
  0x66   : > { %10155 = shalt.err (!%p10152_p8)
}
  0x67   : > { %s14181_s20 = smov 8   ;;  %s14182_s29 = smov 128  }
  0x68   : > { %9660 = dma.hbm_to_vmem [thread:$0]  (!%p10509_p11), %s10507_s10, 256, %s10513_s23, %s10515_s26, %s14182_s29, %s14182_s29, %s14181_s20  }
  0x69   : > { %p14183_p7 = scmp.ne.s32.totalorder %s14170_s24, 0 }
  0x6b   : > { %614 = sbr.rel (%p14183_p7) target bundleno = 12236 (0x2fcc), region = 72 }
  0x70   : > { %s10542_s19 = sand.u32 1, %s10250_s30   ;;  %p14184_p4 = scmp.ne.s32.totalorder %s14167_s2, 0 }
  0x71   : > { %s8608_s21 = sshll.u32 %s10542_s19, 4  ;;  %s617_s27 = scalar_lea.sflag [#allocation3], %s10542_s19 }
  0x72   : > { %s620_s28 = scalar_lea.vmem [#allocation2], %s8608_s21 }
  0x73   : > { %10225 = dma.done.wait (%p14184_p4), %s617_s27, 256  }
  0x74   : > { %10227 = vsyncadd (%p14184_p4), %s617_s27, 4294967040  ;;  %p14185_p8 = scmp.eq.s32.totalorder %s10422_s1, 0 }
  0x76   : > { %10229 = dma.done.wait (%p14185_p8), [#allocation6], 14592   ;;  %p14186_p6 = pmov %p14185_p8 }
  0x78   : > { %10231 = vsyncadd (%p14186_p6), [#allocation6], 4294952704  ;;  %p14187_p11 = pmov %p14186_p6 }
  0x79   : > { %p14188_p13 = pmov %p14186_p6 }
  0x7a   : > { %10233 = dma.done.wait (%p14187_p11), [#allocation9], 128  }
  0x7b   : > { %10235 = vsyncadd (%p14188_p13), [#allocation9], 4294967168  ;;  %v10268_v0 = vmov 0   ;;  %vm831_vm0 = vcmask 130048   ;;  %v781_v1 = vld [vmem:[%s620_s28 + $0x8] sm:$0xff]  ;;  %v780_v2 = vld [vmem:[%s620_s28] sm:$0xff] }
  0x7c   : > { %9746 = vset.pattern.permute.xlu0 %v10268_v0  ;;  %9747 = vset.pattern.permute.xlu1 %v10268_v0  ;;  %s14189_s2 = sld [smem:[#allocation45_spill]]  ;;  %v10571_v6 = vld [vmem:[%s14082_s5 + $0x38] sm:$0xff]  ;;  %v10576_v7 = vld [vmem:[%s14082_s5 + $0x28] sm:$0xff]  ;;  %v10584_v8 = vld [vmem:[%s14082_s5 + $0x30] sm:$0xff]  ;;  %vm961_vm1 = vcmask 523264   ;;  %vm1035_vm2 = vcmask 7168  }
  0x7d   : > { %9150 = vmatprep.subr.mxu0 %v781_v1  ;;  %828 = vperm.xlu0 %9746, %v10571_v6   ;;  %v10593_v10 = vld [vmem:[%s14082_s5 + $0x20] sm:$0xff]  ;;  %v10604_v12 = vld [vmem:[%s14082_s5 + $0x18] sm:$0xff]  ;;  %v10613_v14 = vld [vmem:[%s14082_s5 + $0x10] sm:$0xff]  ;;  %s10269_s29 = smov 1   ;;  %s14113_s21 = smov 127   ;;  %vm1874_vm3 = vcmask 261120  }
  0x7e   : > { %9151 = vmatpush3.msra.mxu0 %v781_v1  ;;  %818 = vperm.xlu1 %9747, %v10576_v7   ;;  %v10624_v16 = vld [vmem:[%s14082_s5 + $0x8] sm:$0xff]  ;;  %v10633_v18 = vld [vmem:[%s14082_s5] sm:$0xff]  ;;  %p720_p12 = scmp.lt.s32.totalorder %s10422_s1, 1  ;;  %s14190_s0 = sld [smem:[#allocation44_spill]]  ;;  %vm10275_vm4 = vmmov 0   ;;  %vm3719_vm5 = vcmask 64512   ;;  %vm12959_vm9 = vmneg %vm1035_vm2 }
  0x7f   : > { %9152 = vmatprep.subr.mxu0 %v780_v2  ;;  %s14112_s18 = sshll.u32 %s10542_s19, 6  ;;  %s10272_s27 = smov 96   ;;  %vm4656_vm6 = vcmask 31744   ;;  %vm5176_vm7 = vcmask 1043456   ;;  %vm5597_vm8 = vcmask 15360   ;;  %vm6286_vm10 = vcmask 1039360  }
  0x80   : > { %9153 = vmatpush3.msra.mxu0 %v780_v2  ;;  %s10922_s24 = scalar_select %p720_p12, %s10422_s1, 1 }
  0x81   : > { %823 = vperm.xlu0 %9746, %v10584_v8   ;;  %s10941_s20 = scalar_lea.vmem [#allocation10], %s14112_s18  ;;  %s10273_s28 = smov 64  }
  0x82   : > { %v782_v3 = vld [vmem:[%s14189_s2] sm:$0xff]  ;;  %v783_v4 = vld [vmem:[%s14189_s2 + $0x8] sm:$0xff]  ;;  %v784_v5 = vld [vmem:[%s14189_s2 + $0x10] sm:$0xff]  ;;  %813 = vperm.xlu1 %9747, %v10593_v10   ;;  %s14153_s26 = smov 126   ;;  %s10279_s10 = smov 2  }
  0x83   : > { %9154 = vmatprep.mubr.msk.f32.mxu0 %vm831_vm0, %v782_v3  ;;  %v785_v9 = vld [vmem:[%s14189_s2 + $0x18] sm:$0xff]  ;;  %v786_v11 = vld [vmem:[%s14189_s2 + $0x20] sm:$0xff]  ;;  %v787_v13 = vld [vmem:[%s14189_s2 + $0x28] sm:$0xff]  ;;  %s14200_s11 = smov 112   ;;  %p14247_p5 = scmp.ne.s32.totalorder %s14178_s3, 0 }
  0x84   : > { %9155 = vmatmul.mubr.msk.f32.vlgmr.msra.gmra.mxu0 %vm831_vm0, %v783_v4  ;;  %v788_v15 = vld [vmem:[%s14189_s2 + $0x30] sm:$0xff]  ;;  %v789_v17 = vld [vmem:[%s14189_s2 + $0x38] sm:$0xff]  ;;  %v748_v3 = vld [vmem:[%s14083_s6] sm:$0xff]  ;;  %s722_s25 = scalar_lea.vmem %s14190_s0, %s10922_s24  ;;  %s10290_s0 = smov 122  }
  0x85   : > { %9157 = vmatprep.mubr.msk.f32.mxu0 %vm831_vm0, %v784_v5  ;;  %808 = vperm.xlu0 %9746, %v10604_v12  }
  0x86   : > { %803 = vperm.xlu1 %9747, %v10613_v14   ;;  %9182 = vmatprep.mubr.msk.f32.mxu1 %vm961_vm1, %v748_v3 }
  0x88   : > { %9158 = vmatmul.mubr.msk.f32.gmra.mxu0 %vm831_vm0, %v785_v9 }
  0x89   : > { %9160 = vmatprep.mubr.msk.f32.mxu0 %vm831_vm0, %v786_v11  ;;  %798 = vperm.xlu0 %9746, %v10624_v16  }
  0x8a   : > { %793 = vperm.xlu1 %9747, %v10633_v18  }
  0x8c   : > { %9161 = vmatmul.mubr.msk.f32.gmra.mxu0 %vm831_vm0, %v787_v13 }
  0x8d   : > { %9163 = vmatprep.mubr.msk.f32.mxu0 %vm831_vm0, %v788_v15 }
  0x90   : > { %9164 = vmatmul.mubr.msk.f32.gmra.mxu0 %vm831_vm0, %v789_v17 }
  0xf8   : > { %v829_v21 = vpop.permute.xlu0 %828 }
  0xf9   : > { %v819_v22 = vpop.permute.xlu1 %818 }
  0xfc   : > { %v824_v26 = vpop.permute.xlu0 %823 }
  0xfd   : > { %v814_v28 = vpop.permute.xlu1 %813 }
 0x100   : > { %v809_v38 = vpop.permute.xlu0 %808 }
 0x101   : > { %v804_v45 = vpop.permute.xlu1 %803 }
 0x104   : > { %v799_v49 = vpop.permute.xlu0 %798 }
 0x105   : > { %v794_v54 = vpop.permute.xlu1 %793 }
 0x144   : > { %v9156_v19 = vpop.f32.mrf.mxu0 }
 0x145   : > { %v10670_v52 = vadd.f32 %v9156_v19, %v799_v49 }
 0x146   : > { %v922_v20 = vpop.f32.mrf.mxu0 }
 0x147   : > { %v10678_v57 = vadd.f32 %v922_v20, %v794_v54  ;;  %v965_v58 = vsel %vm961_vm1, %v10670_v52, 0.0  ;;  %v996_v63 = vmul.f32 %v10670_v52, %v10670_v52 }
 0x148   : > { %v9159_v23 = vpop.f32.mrf.mxu0 }
 0x149   : > { %v10653_v39 = vadd.f32 %v9159_v23, %v809_v38  ;;  %v962_v61 = vsel %vm961_vm1, %v10678_v57, 0.0  ;;  %v1006_v0 = vsel %vm961_vm1, %v996_v63, 0.0  ;;  %v995_v1 = vmul.f32 %v10678_v57, %v10678_v57  ;;  %v752_v63 = vld [vmem:[%s14083_s6 + $0x20] sm:$0xff] }
 0x14a   : > { %v932_v24 = vpop.f32.mrf.mxu0 }
 0x14b   : > { %v998_v44 = vmul.f32 %v10653_v39, %v10653_v39  ;;  %v10663_v47 = vadd.f32 %v932_v24, %v804_v45  ;;  %v971_v48 = vsel %vm961_vm1, %v10653_v39, 0.0  ;;  %v1003_v2 = vsel %vm961_vm1, %v995_v1, 0.0  ;;  %v754_v1 = vld [vmem:[%s14083_s6 + $0x30] sm:$0xff] }
 0x14c   : > { %v9162_v25 = vpop.f32.mrf.mxu0 }
 0x14d   : > { %v10638_v27 = vadd.f32 %v9162_v25, %v819_v22  ;;  %v1012_v51 = vsel %vm961_vm1, %v998_v44, 0.0  ;;  %v968_v53 = vsel %vm961_vm1, %v10663_v47, 0.0  ;;  %v997_v60 = vmul.f32 %v10663_v47, %v10663_v47 }
 0x14e   : > { %v942_v29 = vpop.f32.mrf.mxu0 }
 0x14f   : > { %v10640_v30 = vadd.f32 %v942_v29, %v814_v28  ;;  %v977_v31 = vsel %vm961_vm1, %v10638_v27, 0.0  ;;  %v1000_v32 = vmul.f32 %v10638_v27, %v10638_v27  ;;  %v1009_v62 = vsel %vm961_vm1, %v997_v60, 0.0  ;;  %v749_v60 = vld [vmem:[%s14083_s6 + $0x8] sm:$0xff] }
 0x150   : > { %v9165_v33 = vpop.f32.mrf.mxu0  ;;  %978 = vadd.xlane.f32.xlu1 %v977_v31 }
 0x151   : > { %v10646_v34 = vadd.f32 %v9165_v33, %v829_v21  ;;  %v1018_v35 = vsel %vm961_vm1, %v1000_v32, 0.0  ;;  %v974_v36 = vsel %vm961_vm1, %v10640_v30, 0.0  ;;  %v999_v41 = vmul.f32 %v10640_v30, %v10640_v30 }
 0x152   : > { %1019 = vadd.xlane.f32.xlu0 %v1018_v35  ;;  %v952_v46 = vpop.f32.mrf.mxu0 }
 0x153   : > { %v1002_v37 = vmul.f32 %v10646_v34, %v10646_v34  ;;  %v983_v40 = vsel %vm961_vm1, %v10646_v34, 0.0  ;;  %v1015_v43 = vsel %vm961_vm1, %v999_v41, 0.0  ;;  %v10667_v50 = vadd.f32 %v952_v46, %v824_v26 }
 0x154   : > { %975 = vadd.xlane.f32.xlu1 %v974_v36 }
 0x155   : > { %v1024_v42 = vsel %vm961_vm1, %v1002_v37, 0.0  ;;  %v980_v55 = vsel %vm961_vm1, %v10667_v50, 0.0  ;;  %v1001_v56 = vmul.f32 %v10667_v50, %v10667_v50 }
 0x156   : > { %984 = vadd.xlane.f32.xlu0 %v983_v40 }
 0x157   : > { %v1021_v59 = vsel %vm961_vm1, %v1001_v56, 0.0 }
 0x158   : > { %1025 = vadd.xlane.f32.xlu1 %v1024_v42 }
 0x15a   : > { %1016 = vadd.xlane.f32.xlu0 %v1015_v43 }
 0x15c   : > { %972 = vadd.xlane.f32.xlu1 %v971_v48 }
 0x15e   : > { %1013 = vadd.xlane.f32.xlu0 %v1012_v51 }
 0x160   : > { %969 = vadd.xlane.f32.xlu1 %v968_v53 }
 0x162   : > { %981 = vadd.xlane.f32.xlu0 %v980_v55 }
 0x164   : > { %966 = vadd.xlane.f32.xlu1 %v965_v58 }
 0x166   : > { %1022 = vadd.xlane.f32.xlu0 %v1021_v59 }
 0x168   : > { %963 = vadd.xlane.f32.xlu1 %v962_v61  ;;  %v750_v61 = vld [vmem:[%s14083_s6 + $0x10] sm:$0xff] }
 0x16a   : > { %1010 = vadd.xlane.f32.xlu0 %v1009_v62  ;;  %v751_v62 = vld [vmem:[%s14083_s6 + $0x18] sm:$0xff] }
 0x16e   : > { %1007 = vadd.xlane.f32.xlu0 %v1006_v0  ;;  %v753_v0 = vld [vmem:[%s14083_s6 + $0x28] sm:$0xff] }
 0x172   : > { %1004 = vadd.xlane.f32.xlu0 %v1003_v2  ;;  %v755_v2 = vld [vmem:[%s14083_s6 + $0x38] sm:$0xff] }
 0x1d9   : > { %v979_v4 = vpop.xlane.xlu1 %978 }
 0x1da   : > { %v992_v31 = vmul.f32 0.015625, %v979_v4 }
 0x1db   : > { %v1020_v5 = vpop.xlane.xlu0 %1019 }
 0x1dc   : > { %v1032_v26 = vmul.f32 0.015625, %v1020_v5 }
 0x1dd   : > { %v976_v9 = vpop.xlane.xlu1 %975 }
 0x1de   : > { %v991_v37 = vmul.f32 0.015625, %v976_v9  ;;  %v1041_v40 = vsel %vm1035_vm2, %v992_v31, %v1032_v26 }
 0x1df   : > { %v985_v11 = vpop.xlane.xlu0 %984 }
 0x1e0   : > { %v994_v15 = vmul.f32 0.015625, %v985_v11 }
 0x1e1   : > { %v1026_v13 = vpop.xlane.xlu1 %1025 }
 0x1e2   : > { %v1034_v17 = vmul.f32 0.015625, %v1026_v13 }
 0x1e3   : > { %v1017_v19 = vpop.xlane.xlu0 %1016 }
 0x1e4   : > { %v1043_v20 = vsel %vm1035_vm2, %v994_v15, %v1034_v17  ;;  %v1031_v32 = vmul.f32 0.015625, %v1017_v19 }
 0x1e5   : > { %9166 = vmatprep.subr.mxu1 %v1043_v20  ;;  %v973_v21 = vpop.xlane.xlu1 %972 }
 0x1e6   : > { %9167 = vmatpush3.msra.mxu1 %v1043_v20  ;;  %v990_v41 = vmul.f32 0.015625, %v973_v21  ;;  %v1040_v43 = vsel %vm1035_vm2, %v991_v37, %v1031_v32 }
 0x1e7   : > { %v1014_v22 = vpop.xlane.xlu0 %1013 }
 0x1e8   : > { %v1030_v38 = vmul.f32 0.015625, %v1014_v22 }
 0x1e9   : > { %v970_v24 = vpop.xlane.xlu1 %969 }
 0x1ea   : > { %v989_v45 = vmul.f32 0.015625, %v970_v24  ;;  %v1039_v48 = vsel %vm1035_vm2, %v990_v41, %v1030_v38 }
 0x1eb   : > { %v982_v23 = vpop.xlane.xlu0 %981 }
 0x1ec   : > { %v993_v28 = vmul.f32 0.015625, %v982_v23 }
 0x1ed   : > { %v967_v35 = vpop.xlane.xlu1 %966 }
 0x1ee   : > { %v988_v51 = vmul.f32 0.015625, %v967_v35 }
 0x1ef   : > { %v1023_v25 = vpop.xlane.xlu0 %1022 }
 0x1f0   : > { %v1033_v29 = vmul.f32 0.015625, %v1023_v25 }
 0x1f1   : > { %v964_v49 = vpop.xlane.xlu1 %963 }
 0x1f2   : > { %v1042_v33 = vsel %vm1035_vm2, %v993_v28, %v1033_v29  ;;  %v987_v55 = vmul.f32 0.015625, %v964_v49 }
 0x1f3   : > { %v1011_v36 = vpop.xlane.xlu0 %1010  ;;  %9168 = vmatprep.subr.mxu1 %v1042_v33 }
 0x1f4   : > { %9169 = vmatpush3.msra.mxu1 %v1042_v33  ;;  %v1029_v42 = vmul.f32 0.015625, %v1011_v36 }
 0x1f5   : > { %9170 = vmatprep.subr.mxu1 %v1041_v40 }
 0x1f6   : > { %9171 = vmatpush3.msra.mxu1 %v1041_v40  ;;  %v1038_v53 = vsel %vm1035_vm2, %v989_v45, %v1029_v42 }
 0x1f7   : > { %v1008_v44 = vpop.xlane.xlu0 %1007  ;;  %9172 = vmatprep.subr.mxu1 %v1040_v43 }
 0x1f8   : > { %v1028_v46 = vmul.f32 0.015625, %v1008_v44  ;;  %9173 = vmatpush3.msra.mxu1 %v1040_v43 }
 0x1f9   : > { %9174 = vmatprep.subr.mxu1 %v1039_v48 }
 0x1fa   : > { %9175 = vmatpush3.msra.mxu1 %v1039_v48  ;;  %v1037_v58 = vsel %vm1035_vm2, %v988_v51, %v1028_v46 }
 0x1fb   : > { %v1005_v54 = vpop.xlane.xlu0 %1004  ;;  %9176 = vmatprep.subr.mxu1 %v1038_v53 }
 0x1fc   : > { %v1027_v56 = vmul.f32 0.015625, %v1005_v54  ;;  %9177 = vmatpush3.msra.mxu1 %v1038_v53 }
 0x1fd   : > { %9178 = vmatprep.subr.mxu1 %v1037_v58 }
 0x1fe   : > { %9179 = vmatpush3.msra.mxu1 %v1037_v58  ;;  %v1036_v59 = vsel %vm1035_vm2, %v987_v55, %v1027_v56 }
 0x1ff   : > { %9180 = vmatprep.subr.mxu1 %v1036_v59 }
 0x200   : > { %9181 = vmatpush3.msra.mxu1 %v1036_v59 }
 0x201   : > { %9183 = vmatmul.mubr.msk.f32.vlgmr.msra.gmra.mxu1 %vm961_vm1, %v749_v60 }
 0x202   : > { %9185 = vmatprep.mubr.msk.f32.mxu1 %vm961_vm1, %v750_v61 }
 0x205   : > { %9186 = vmatmul.mubr.msk.f32.gmra.mxu1 %vm961_vm1, %v751_v62 }
 0x206   : > { %9188 = vmatprep.mubr.msk.f32.mxu1 %vm961_vm1, %v752_v63 }
 0x209   : > { %9189 = vmatmul.mubr.msk.f32.gmra.mxu1 %vm961_vm1, %v753_v0 }
 0x20a   : > { %9191 = vmatprep.mubr.msk.f32.mxu1 %vm961_vm1, %v754_v1 }
 0x20d   : > { %9192 = vmatmul.mubr.msk.f32.gmra.mxu1 %vm961_vm1, %v755_v2 }
 0x2c1   : > { %v10734_v3 = vpop.f32.mrf.mxu1 }
 0x2c2   : > { %v1174_v4 = vmul.f32 %v10734_v3, %v10734_v3 }
 0x2c3   : > { %v10738_v5 = vpop.f32.mrf.mxu1 }
 0x2c4   : > { %1191 = vrot.lane.b32.xlu0 %v1174_v4, %s10269_s29  ;;  %v1173_v9 = vmul.f32 %v10738_v5, %v10738_v5 }
 0x2c5   : > { %v10743_v11 = vpop.f32.mrf.mxu1 }
 0x2c6   : > { %1189 = vrot.lane.b32.xlu1 %v1173_v9, %s10269_s29  ;;  %v1176_v20 = vmul.f32 %v10743_v11, %v10743_v11 }
 0x2c7   : > { %v10746_v13 = vpop.f32.mrf.mxu1 }
 0x2c8   : > { %v1175_v15 = vmul.f32 %v10746_v13, %v10746_v13 }
 0x2c9   : > { %v10750_v17 = vpop.f32.mrf.mxu1 }
 0x2ca   : > { %1193 = vrot.lane.b32.xlu1 %v1175_v15, %s10269_s29  ;;  %v1178_v23 = vmul.f32 %v10750_v17, %v10750_v17 }
 0x2cb   : > { %v10753_v19 = vpop.f32.mrf.mxu1 }
 0x2cc   : > { %v1177_v21 = vmul.f32 %v10753_v19, %v10753_v19 }
 0x2cd   : > { %v10759_v22 = vpop.f32.mrf.mxu1 }
 0x2ce   : > { %1195 = vrot.lane.b32.xlu1 %v1176_v20, %s10269_s29  ;;  %1197 = vrot.lane.b32.xlu0 %v1177_v21, %s10269_s29  ;;  %v1180_v26 = vmul.f32 %v10759_v22, %v10759_v22 }
 0x2cf   : > { %v10765_v24 = vpop.f32.mrf.mxu1 }
 0x2d0   : > { %v1179_v25 = vmul.f32 %v10765_v24, %v10765_v24 }
 0x2d2   : > { %1199 = vrot.lane.b32.xlu1 %v1178_v23, %s10269_s29  ;;  %1201 = vrot.lane.b32.xlu0 %v1179_v25, %s10269_s29 }
 0x2d6   : > { %1203 = vrot.lane.b32.xlu1 %v1180_v26, %s10269_s29 }
 0x336   : > { %v1192_v28 = vpop.permute.xlu0 %1191 }
 0x337   : > { %v1214_v29 = vsub.f32 %v10734_v3, %v1192_v28  ;;  %v10793_v28 = vld [vmem:[%s14085_s8 + $0x38] sm:$0xff] }
 0x338   : > { %v1190_v31 = vpop.permute.xlu1 %1189  ;;  %9194 = vmatprep.subr.mxu0 %v10793_v28 }
 0x339   : > { %v1222_v32 = vmax.f32 %v1214_v29, 0.0  ;;  %v1213_v33 = vsub.f32 %v10738_v5, %v1190_v31  ;;  %v10798_v29 = vld [vmem:[%s14085_s8 + $0x30] sm:$0xff]  ;;  %9195 = vmatpush3.msra.mxu0 %v10793_v28  ;;  %v765_v31 = vld [vmem:[%s14082_s5 + $0x48] sm:$0xff] }
 0x33a   : > { %9196 = vmatprep.subr.mxu0 %v10798_v29 }
 0x33b   : > { %v1230_v35 = vadd.f32 1e-05, %v1222_v32  ;;  %v1221_v36 = vmax.f32 %v1213_v33, 0.0  ;;  %9197 = vmatpush3.msra.mxu0 %v10798_v29  ;;  %v10810_v32 = vld [vmem:[%s14085_s8 + $0x28] sm:$0xff] }
 0x33c   : > { %v1194_v37 = vpop.permute.xlu1 %1193  ;;  %9198 = vmatprep.subr.mxu0 %v10810_v32 }
 0x33d   : > { %9768 = vrsqrt.f32 %v1230_v35  ;;  %v1229_v38 = vadd.f32 1e-05, %v1221_v36  ;;  %v1215_v40 = vsub.f32 %v10746_v13, %v1194_v37  ;;  %v764_v35 = vld [vmem:[%s14082_s5 + $0x40] sm:$0xff]  ;;  %9199 = vmatpush3.msra.mxu0 %v10810_v32 }
 0x33e   : > { %v10820_v37 = vld [vmem:[%s14085_s8 + $0x20] sm:$0xff] }
 0x33f   : > { %9770 = vrsqrt.f32 %v1229_v38  ;;  %v1223_v41 = vmax.f32 %v1215_v40, 0.0  ;;  %v773_v40 = vld [vmem:[%s14082_s5 + $0x88] sm:$0xff]  ;;  %9200 = vmatprep.subr.mxu0 %v10820_v37 }
 0x340   : > { %v1196_v42 = vpop.permute.xlu1 %1195  ;;  %v1198_v43 = vpop.permute.xlu0 %1197  ;;  %9201 = vmatpush3.msra.mxu0 %v10820_v37 }
 0x341   : > { %v1231_v44 = vadd.f32 1e-05, %v1223_v41  ;;  %v1216_v45 = vsub.f32 %v10743_v11, %v1196_v42  ;;  %v1217_v46 = vsub.f32 %v10753_v19, %v1198_v43  ;;  %v10831_v43 = vld [vmem:[%s14082_s5 + $0x50] sm:$0xff] }
 0x343   : > { %9772 = vrsqrt.f32 %v1231_v44  ;;  %v1224_v48 = vmax.f32 %v1216_v45, 0.0  ;;  %v1225_v49 = vmax.f32 %v1217_v46, 0.0  ;;  %v772_v44 = vld [vmem:[%s14082_s5 + $0x80] sm:$0xff]  ;;  %v10839_v45 = vld [vmem:[%s14085_s8 + $0x18] sm:$0xff] }
 0x344   : > { %v1200_v51 = vpop.permute.xlu1 %1199  ;;  %v1202_v53 = vpop.permute.xlu0 %1201  ;;  %9202 = vmatprep.subr.mxu0 %v10839_v45 }
 0x345   : > { %v1232_v54 = vadd.f32 1e-05, %v1224_v48  ;;  %v1233_v55 = vadd.f32 1e-05, %v1225_v49  ;;  %v1218_v56 = vsub.f32 %v10750_v17, %v1200_v51  ;;  %v1219_v58 = vsub.f32 %v10765_v24, %v1202_v53  ;;  %9203 = vmatpush3.msra.mxu0 %v10839_v45  ;;  %v10847_v49 = vld [vmem:[%s14085_s8 + $0x10] sm:$0xff] }
 0x346   : > { %9204 = vmatprep.subr.mxu0 %v10847_v49 }
 0x347   : > { %9774 = vrsqrt.f32 %v1232_v54  ;;  %v1226_v59 = vmax.f32 %v1218_v56, 0.0  ;;  %v1227_v60 = vmax.f32 %v1219_v58, 0.0  ;;  %9205 = vmatpush3.msra.mxu0 %v10847_v49  ;;  %v10860_v54 = vld [vmem:[%s14085_s8 + $0x8] sm:$0xff]  ;;  %v10867_v56 = vld [vmem:[%s14085_s8] sm:$0xff] }
 0x348   : > { %9776 = vrsqrt.f32 %v1233_v55  ;;  %v1204_v61 = vpop.permute.xlu1 %1203  ;;  %9206 = vmatprep.subr.mxu0 %v10860_v54 }
 0x349   : > { %v1234_v62 = vadd.f32 1e-05, %v1226_v59  ;;  %v1235_v63 = vadd.f32 1e-05, %v1227_v60  ;;  %v1220_v0 = vsub.f32 %v10759_v22, %v1204_v61  ;;  %9207 = vmatpush3.msra.mxu0 %v10860_v54  ;;  %v10874_v60 = vld [vmem:[%s14082_s5 + $0x60] sm:$0xff] }
 0x34a   : > { %v9769_v1 = vpop.eup %9768  ;;  %9208 = vmatprep.subr.mxu0 %v10867_v56 }
 0x34b   : > { %9778 = vrsqrt.f32 %v1234_v62  ;;  %v1228_v2 = vmax.f32 %v1220_v0, 0.0  ;;  %1255 = vrot.lane.b32.xlu1 %v9769_v1, %s14113_s21  ;;  %v10880_v62 = vld [vmem:[%s14082_s5 + $0x68] sm:$0xff]  ;;  %9209 = vmatpush3.msra.mxu0 %v10867_v56 }
 0x34c   : > { %v9771_v4 = vpop.eup %9770  ;;  %9780 = vrsqrt.f32 %v1235_v63  ;;  %v775_v63 = vld [vmem:[%s14082_s5 + $0x98] sm:$0xff] }
 0x34d   : > { %v1236_v9 = vadd.f32 1e-05, %v1228_v2  ;;  %1253 = vrot.lane.b32.xlu0 %v9771_v4, %s14113_s21 }
 0x34f   : > { %9782 = vrsqrt.f32 %v1236_v9 }
 0x350   : > { %v9773_v15 = vpop.eup %9772 }
 0x351   : > { %1257 = vrot.lane.b32.xlu0 %v9773_v15, %s14113_s21 }
 0x354   : > { %v9775_v20 = vpop.eup %9774 }
 0x355   : > { %v9777_v21 = vpop.eup %9776  ;;  %1259 = vrot.lane.b32.xlu1 %v9775_v20, %s14113_s21 }
 0x356   : > { %1261 = vrot.lane.b32.xlu0 %v9777_v21, %s14113_s21 }
 0x358   : > { %v9779_v23 = vpop.eup %9778 }
 0x359   : > { %v9781_v25 = vpop.eup %9780  ;;  %1263 = vrot.lane.b32.xlu1 %v9779_v23, %s14113_s21  ;;  %v10897_v23 = vld [vmem:[%s14082_s5 + $0x70] sm:$0xff] }
 0x35a   : > { %1265 = vrot.lane.b32.xlu0 %v9781_v25, %s14113_s21  ;;  %v10902_v25 = vld [vmem:[%s14082_s5 + $0x78] sm:$0xff] }
 0x35c   : > { %v9783_v26 = vpop.eup %9782 }
 0x35d   : > { %1267 = vrot.lane.b32.xlu1 %v9783_v26, %s14113_s21 }
 0x3bd   : > { %v1256_v33 = vpop.permute.xlu1 %1255 }
 0x3be   : > { %v1278_v36 = vmul.f32 %v1256_v33, %v765_v31  ;;  %v777_v31 = vld [vmem:[%s14082_s5 + $0xa8] sm:$0xff] }
 0x3bf   : > { %v1254_v38 = vpop.permute.xlu0 %1253 }
 0x3c0   : > { %v1286_v41 = vmul.f32 %v10734_v3, %v1278_v36  ;;  %v1277_v42 = vmul.f32 %v1254_v38, %v764_v35  ;;  %1308 = vperm.xlu1 %9747, %v1278_v36  }
 0x3c2   : > { %v1285_v3 = vmul.f32 %v1277_v42, %v10738_v5  ;;  %1303 = vperm.xlu0 %9746, %v1277_v42   ;;  %v1294_v46 = vsub.f32 %v773_v40, %v1286_v41  ;;  %v10854_v5 = vld [vmem:[%s14082_s5 + $0x58] sm:$0xff]  ;;  %v778_v42 = vld [vmem:[%s14082_s5 + $0xb0] sm:$0xff] }
 0x3c3   : > { %v1258_v48 = vpop.permute.xlu0 %1257  ;;  %v779_v41 = vld [vmem:[%s14082_s5 + $0xb8] sm:$0xff] }
 0x3c4   : > { %v1279_v51 = vmul.f32 %v1258_v48, %v10831_v43  ;;  %1356 = vperm.xlu1 %9747, %v1294_v46   ;;  %v1293_v53 = vsub.f32 %v772_v44, %v1285_v3  ;;  %v1406_v46 = vlaneseq }
 0x3c6   : > { %1351 = vperm.xlu0 %9746, %v1293_v53   ;;  %v1287_v58 = vmul.f32 %v1279_v51, %v10746_v13  ;;  %v774_v13 = vld [vmem:[%s14082_s5 + $0x90] sm:$0xff]  ;;  %v10930_v53 = vld [vmem:[%s722_s25] sm:$0x1]  ;;  %s10282_s25 = smov 125  }
 0x3c7   : > { %v1260_v55 = vpop.permute.xlu1 %1259 }
 0x3c8   : > { %v1280_v59 = vmul.f32 %v1260_v55, %v10854_v5  ;;  %v1262_v61 = vpop.permute.xlu0 %1261  ;;  %v1295_v15 = vsub.f32 %v774_v13, %v1287_v58 }
 0x3c9   : > { %v1281_v2 = vmul.f32 %v1262_v61, %v10874_v60 }
 0x3ca   : > { %v1288_v0 = vmul.f32 %v10743_v11, %v1280_v59  ;;  %1318 = vperm.xlu1 %9747, %v1280_v59   ;;  %1313 = vperm.xlu0 %9746, %v1279_v51  }
 0x3cb   : > { %v1264_v1 = vpop.permute.xlu1 %1263  ;;  %v1289_v20 = vmul.f32 %v1281_v2, %v10753_v19 }
 0x3cc   : > { %v1282_v4 = vmul.f32 %v1264_v1, %v10880_v62  ;;  %v1296_v9 = vsub.f32 %v775_v63, %v1288_v0  ;;  %v1266_v11 = vpop.permute.xlu0 %1265 }
 0x3cd   : > { %v1283_v19 = vmul.f32 %v1266_v11, %v10897_v23 }
 0x3ce   : > { %1366 = vperm.xlu1 %9747, %v1296_v9   ;;  %1361 = vperm.xlu0 %9746, %v1295_v15   ;;  %v1290_v21 = vmul.f32 %v10750_v17, %v1282_v4  ;;  %v776_v17 = vld [vmem:[%s14082_s5 + $0xa0] sm:$0xff] }
 0x3cf   : > { %v1268_v26 = vpop.permute.xlu1 %1267  ;;  %v1297_v36 = vsub.f32 %v776_v17, %v1289_v20  ;;  %v1291_v38 = vmul.f32 %v1283_v19, %v10765_v24 }
 0x3d0   : > { %v1284_v33 = vmul.f32 %v1268_v26, %v10902_v25  ;;  %v1298_v35 = vsub.f32 %v777_v31, %v1290_v21 }
 0x3d1   : > { %v1299_v3 = vsub.f32 %v778_v42, %v1291_v38 }
 0x3d2   : > { %1328 = vperm.xlu1 %9747, %v1282_v4   ;;  %1323 = vperm.xlu0 %9746, %v1281_v2   ;;  %v1292_v40 = vmul.f32 %v10759_v22, %v1284_v33  ;;  %v1407_v22 = vshrl.u32 %v1406_v46, 7 }
 0x3d4   : > { %v1300_v44 = vsub.f32 %v779_v41, %v1292_v40  ;;  %v10928_v48 = vsub.s32 0, %v1407_v22 }
 0x3d6   : > { %1376 = vperm.xlu1 %9747, %v1298_v35   ;;  %1371 = vperm.xlu0 %9746, %v1297_v36   ;;  %14191 = vst [vmem:[#allocation24_spill] sm:$0xff] %v10928_v48  ;;  %v1409_v61 = vrot.slane %v10930_v53, %v10928_v48 }
 0x3da   : > { %1338 = vperm.xlu1 %9747, %v1284_v33   ;;  %1333 = vperm.xlu0 %9746, %v1283_v19  }
 0x3de   : > { %1386 = vperm.xlu1 %9747, %v1300_v44   ;;  %1381 = vperm.xlu0 %9746, %v1299_v3  }
 0x43b   : > { %v1309_v24 = vpop.permute.xlu1 %1308 }
 0x43c   : > { %v1342_v55 = vmul.f32 %v1309_v24, %v10670_v52 }
 0x43d   : > { %v1304_v51 = vpop.permute.xlu0 %1303 }
 0x43e   : > { %v1341_v59 = vmul.f32 %v1304_v51, %v10678_v57 }
 0x43f   : > { %v1357_v58 = vpop.permute.xlu1 %1356 }
 0x440   : > { %v1390_v63 = vadd.f32 %v1357_v58, %v1342_v55 }
 0x441   : > { %v1352_v13 = vpop.permute.xlu0 %1351 }
 0x442   : > { %v1398_v0 = vmax.f32 %v1390_v63, 0.0  ;;  %v1389_v1 = vadd.f32 %v1352_v13, %v1341_v59 }
 0x444   : > { %v10937_v2 = vmul.f32 %v1409_v61, %v1398_v0  ;;  %v1397_v4 = vmax.f32 %v1389_v1, 0.0 }
 0x445   : > { %v1319_v9 = vpop.permute.xlu1 %1318  ;;  %v1314_v15 = vpop.permute.xlu0 %1313 }
 0x446   : > { %14192 = vst [vmem:[#allocation25_spill] sm:$0xff] %v10937_v2  ;;  %1420 = vst.msk [vmem:[%s10941_s20 + $0x8] sm:$0xff] %vm961_vm1, %v10937_v2  ;;  %v10946_v52 = vmul.f32 %v1409_v61, %v1397_v4  ;;  %v1344_v57 = vmul.f32 %v1319_v9, %v10653_v39  ;;  %v1343_v20 = vmul.f32 %v1314_v15, %v10663_v47 }
 0x448   : > { %14193 = vst [vmem:[#allocation26_spill] sm:$0xff] %v10946_v52  ;;  %1419 = vst.msk [vmem:[%s10941_s20] sm:$0xff] %vm961_vm1, %v10946_v52  ;;  %9210 = vmatprep.mubr.msk.f32.mxu0 %vm961_vm1, %v10946_v52 }
 0x449   : > { %v1367_v21 = vpop.permute.xlu1 %1366  ;;  %9211 = vmatmul.mubr.msk.f32.vlgmr.msra.gmra.mxu0 %vm961_vm1, %v10937_v2  ;;  %v1362_v11 = vpop.permute.xlu0 %1361 }
 0x44a   : > { %v1392_v26 = vadd.f32 %v1367_v21, %v1344_v57  ;;  %v1391_v31 = vadd.f32 %v1362_v11, %v1343_v20 }
 0x44c   : > { %v1400_v17 = vmax.f32 %v1392_v26, 0.0  ;;  %v1399_v19 = vmax.f32 %v1391_v31, 0.0 }
 0x44d   : > { %v1329_v33 = vpop.permute.xlu1 %1328  ;;  %v1324_v35 = vpop.permute.xlu0 %1323 }
 0x44e   : > { %v10957_v36 = vmul.f32 %v1409_v61, %v1400_v17  ;;  %v10959_v38 = vmul.f32 %v1409_v61, %v1399_v19  ;;  %v1346_v39 = vmul.f32 %v1329_v33, %v10638_v27  ;;  %v1345_v47 = vmul.f32 %v1324_v35, %v10640_v30  ;;  %v1620_v17 = vld [vmem:[#allocation5] sm:$0xff]  ;;  %v1623_v33 = vld [vmem:[#allocation5 + $0x18] sm:$0xff]  ;;  %v1622_v35 = vld [vmem:[#allocation5 + $0x10] sm:$0xff] }
 0x450   : > { %14194 = vst [vmem:[#allocation27_spill] sm:$0xff] %v10957_v36  ;;  %14195 = vst [vmem:[#allocation28_spill] sm:$0xff] %v10959_v38  ;;  %9213 = vmatprep.mubr.msk.f32.mxu0 %vm961_vm1, %v10959_v38 }
 0x451   : > { %1422 = vst.msk [vmem:[%s10941_s20 + $0x18] sm:$0xff] %vm961_vm1, %v10957_v36  ;;  %1421 = vst.msk [vmem:[%s10941_s20 + $0x10] sm:$0xff] %vm961_vm1, %v10959_v38  ;;  %v1377_v40 = vpop.permute.xlu1 %1376  ;;  %9214 = vmatmul.mubr.msk.f32.gmra.mxu0 %vm961_vm1, %v10957_v36  ;;  %v1372_v41 = vpop.permute.xlu0 %1371 }
 0x452   : > { %v1394_v42 = vadd.f32 %v1377_v40, %v1346_v39  ;;  %v1393_v44 = vadd.f32 %v1372_v41, %v1345_v47  ;;  %v1625_v39 = vld [vmem:[#allocation5 + $0x28] sm:$0xff]  ;;  %v1624_v47 = vld [vmem:[#allocation5 + $0x20] sm:$0xff]  ;;  %v1627_v40 = vld [vmem:[#allocation5 + $0x38] sm:$0xff] }
 0x453   : > { %v1626_v41 = vld [vmem:[#allocation5 + $0x30] sm:$0xff] }
 0x454   : > { %v1402_v3 = vmax.f32 %v1394_v42, 0.0  ;;  %v1401_v46 = vmax.f32 %v1393_v44, 0.0  ;;  %v1629_v42 = vld [vmem:[#allocation5 + $0x48] sm:$0xff]  ;;  %v1628_v44 = vld [vmem:[#allocation5 + $0x40] sm:$0xff] }
 0x455   : > { %v1339_v22 = vpop.permute.xlu1 %1338  ;;  %v1334_v24 = vpop.permute.xlu0 %1333 }
 0x456   : > { %v10973_v51 = vmul.f32 %v1409_v61, %v1402_v3  ;;  %v10975_v27 = vmul.f32 %v1409_v61, %v1401_v46  ;;  %v1348_v30 = vmul.f32 %v1339_v22, %v10646_v34  ;;  %v1347_v55 = vmul.f32 %v1334_v24, %v10667_v50  ;;  %v1631_v3 = vld [vmem:[#allocation5 + $0x58] sm:$0xff]  ;;  %v1630_v46 = vld [vmem:[#allocation5 + $0x50] sm:$0xff]  ;;  %v1633_v22 = vld [vmem:[#allocation5 + $0x68] sm:$0xff] }
 0x457   : > { %v14117_v34 = vmov 0.0   ;;  %v1632_v24 = vld [vmem:[#allocation5 + $0x60] sm:$0xff] }
 0x458   : > { %14196 = vst [vmem:[#allocation29_spill] sm:$0xff] %v10973_v51  ;;  %14197 = vst [vmem:[#allocation30_spill] sm:$0xff] %v10975_v27  ;;  %9216 = vmatprep.mubr.msk.f32.mxu0 %vm961_vm1, %v10975_v27  ;;  %1769 = vmatprep.subr.mxu0 %v14117_v34 }
 0x459   : > { %1424 = vst.msk [vmem:[%s10941_s20 + $0x28] sm:$0xff] %vm961_vm1, %v10973_v51  ;;  %1423 = vst.msk [vmem:[%s10941_s20 + $0x20] sm:$0xff] %vm961_vm1, %v10975_v27  ;;  %v1387_v58 = vpop.permute.xlu1 %1386  ;;  %9217 = vmatmul.mubr.msk.f32.gmra.mxu0 %vm961_vm1, %v10973_v51  ;;  %v1382_v59 = vpop.permute.xlu0 %1381  ;;  %9222 = vmatprep.subr.mxu1 %v14117_v34 }
 0x45a   : > { %v1396_v63 = vadd.f32 %v1387_v58, %v1348_v30  ;;  %v1395_v13 = vadd.f32 %v1382_v59, %v1347_v55  ;;  %9223 = vmatpush3.msra.mxu1 %v10793_v28  ;;  %v1635_v30 = vld [vmem:[#allocation5 + $0x78] sm:$0xff]  ;;  %v1634_v55 = vld [vmem:[#allocation5 + $0x70] sm:$0xff]  ;;  %9238 = vmatprep.mubr.msk.f32.mxu1 %vm10275_vm4, %v14117_v34 }
 0x45b   : > { %9224 = vmatprep.subr.mxu1 %v14117_v34 }
 0x45c   : > { %v1404_v0 = vmax.f32 %v1396_v63, 0.0  ;;  %v1403_v1 = vmax.f32 %v1395_v13, 0.0  ;;  %9225 = vmatpush3.msra.mxu1 %v10798_v29 }
 0x45d   : > { %9226 = vmatprep.subr.mxu1 %v14117_v34 }
 0x45e   : > { %v10989_v4 = vmul.f32 %v1409_v61, %v1404_v0  ;;  %v10991_v9 = vmul.f32 %v1409_v61, %v1403_v1  ;;  %9227 = vmatpush3.msra.mxu1 %v10810_v32  ;;  %v10274_v61 = vmov 1  }
 0x45f   : > { %9228 = vmatprep.subr.mxu1 %v14117_v34  ;;  %9748 = vset.pattern.permute.xlu0 %v10274_v61 }
 0x460   : > { %14198 = vst [vmem:[#allocation31_spill] sm:$0xff] %v10989_v4  ;;  %14199 = vst [vmem:[#allocation32_spill] sm:$0xff] %v10991_v9  ;;  %9219 = vmatprep.mubr.msk.f32.mxu0 %vm961_vm1, %v10991_v9  ;;  %9229 = vmatpush3.msra.mxu1 %v10820_v37 }
 0x461   : > { %1426 = vst.msk [vmem:[%s10941_s20 + $0x38] sm:$0xff] %vm961_vm1, %v10989_v4  ;;  %1425 = vst.msk [vmem:[%s10941_s20 + $0x30] sm:$0xff] %vm961_vm1, %v10991_v9  ;;  %9220 = vmatmul.mubr.msk.f32.gmra.mxu0 %vm961_vm1, %v10989_v4  ;;  %9230 = vmatprep.subr.mxu1 %v14117_v34 }
 0x462   : > { %9231 = vmatpush3.msra.mxu1 %v10839_v45  ;;  %9749 = vset.pattern.permute.xlu1 %v10274_v61 }
 0x463   : > { %9232 = vmatprep.subr.mxu1 %v14117_v34 }
 0x464   : > { %9233 = vmatpush3.msra.mxu1 %v10847_v49 }
 0x465   : > { %9234 = vmatprep.subr.mxu1 %v14117_v34 }
 0x466   : > { %9235 = vmatpush3.msra.mxu1 %v10860_v54 }
 0x467   : > { %9236 = vmatprep.subr.mxu1 %v14117_v34 }
 0x468   : > { %9237 = vmatpush3.msra.mxu1 %v10867_v56  ;;  %v1621_v56 = vld [vmem:[#allocation5 + $0x8] sm:$0xff] }
 0x469   : > { %8649 = vmatprep.mubr.msk.f32.mxu0 %vm961_vm1, %v1621_v56  ;;  %9239 = vmatmul.mubr.msk.f32.vlgmr.msra.gmra.mxu1 %vm961_vm1, %v10930_v53 }
 0x509   : > { %v11020_v50 = vpop.f32.mrf.mxu0 }
 0x50b   : > { %v11022_v28 = vpop.f32.mrf.mxu0 }
 0x511   : > { %v11024_v29 = vpop.f32.mrf.mxu0 }
 0x513   : > { %v11026_v32 = vpop.f32.mrf.mxu0 }
 0x519   : > { %v9218_v37 = vpop.f32.mrf.mxu0 }
 0x51b   : > { %v11028_v45 = vpop.f32.mrf.mxu0 }
 0x521   : > { %v9221_v49 = vpop.f32.mrf.mxu0 }
 0x522   : > { %1586 = vrot.lane.b32.xlu0 %v9221_v49, %s10272_s27 }
 0x523   : > { %v1555_v54 = vpop.f32.mrf.mxu0 }
 0x524   : > { %1584 = vrot.lane.b32.xlu1 %v1555_v54, %s10272_s27 }
 0x526   : > { %1582 = vrot.lane.b32.xlu0 %v9218_v37, %s10272_s27 }
 0x528   : > { %1580 = vrot.lane.b32.xlu1 %v11028_v45, %s10272_s27 }
 0x52a   : > { %1578 = vrot.lane.b32.xlu0 %v11024_v29, %s10272_s27 }
 0x52c   : > { %1576 = vrot.lane.b32.xlu1 %v11026_v32, %s10272_s27 }
 0x52e   : > { %1574 = vrot.lane.b32.xlu0 %v11020_v50, %s10272_s27 }
 0x530   : > { %1572 = vrot.lane.b32.xlu1 %v11022_v28, %s10272_s27 }
 0x532   : > { %1610 = vrot.lane.b32.xlu0 %v9221_v49, %s10273_s28 }
 0x534   : > { %1608 = vrot.lane.b32.xlu1 %v1555_v54, %s10273_s28 }
 0x536   : > { %1606 = vrot.lane.b32.xlu0 %v9218_v37, %s10273_s28 }
 0x538   : > { %1604 = vrot.lane.b32.xlu1 %v11028_v45, %s10273_s28 }
 0x53a   : > { %1602 = vrot.lane.b32.xlu0 %v11024_v29, %s10273_s28 }
 0x53c   : > { %1600 = vrot.lane.b32.xlu1 %v11026_v32, %s10273_s28 }
 0x53e   : > { %1598 = vrot.lane.b32.xlu0 %v11020_v50, %s10273_s28 }
 0x540   : > { %1596 = vrot.lane.b32.xlu1 %v11022_v28, %s10273_s28  ;;  %s11368_s28 = sshll.u32 %s10922_s24, 6  ;;  %s14115_s24 = smov 112  }
 0x541   : > { %s11376_s18 = scalar_lea.vmem %s14091_s14, %s11368_s28  ;;  %s11785_s23 = scalar_lea.vmem %s14092_s15, %s11368_s28 }
 0x542   : > { %1742 = vperm.xlu0 %9748, %v10571_v6  }
 0x544   : > { %1738 = vperm.xlu1 %9749, %v10584_v8  }
 0x546   : > { %1730 = vperm.xlu0 %9748, %v10593_v10  }
 0x548   : > { %1734 = vperm.xlu1 %9749, %v10576_v7  }
 0x54a   : > { %1722 = vperm.xlu0 %9748, %v10613_v14  }
 0x54c   : > { %1726 = vperm.xlu1 %9749, %v10604_v12  }
 0x54e   : > { %1714 = vperm.xlu0 %9748, %v10633_v18  }
 0x550   : > { %1718 = vperm.xlu1 %9749, %v10624_v16  }
 0x594   : > { %v1587_v15 = vpop.permute.xlu0 %1586 }
 0x595   : > { %1770 = vmatpush1.msra.mxu0 %v1587_v15 }
 0x596   : > { %1771 = vmatprep.subr.mxu0 %v14117_v34  ;;  %v1585_v57 = vpop.permute.xlu1 %1584 }
 0x597   : > { %1772 = vmatpush1.msra.mxu0 %v1585_v57 }
 0x598   : > { %v1583_v6 = vpop.permute.xlu0 %1582  ;;  %1773 = vmatprep.subr.mxu0 %v14117_v34 }
 0x599   : > { %1774 = vmatpush1.msra.mxu0 %v1583_v6 }
 0x59a   : > { %1775 = vmatprep.subr.mxu0 %v14117_v34  ;;  %v1581_v7 = vpop.permute.xlu1 %1580 }
 0x59b   : > { %1776 = vmatpush1.msra.mxu0 %v1581_v7 }
 0x59c   : > { %v1579_v8 = vpop.permute.xlu0 %1578  ;;  %1777 = vmatprep.subr.mxu0 %v14117_v34 }
 0x59d   : > { %1778 = vmatpush1.msra.mxu0 %v1579_v8 }
 0x59e   : > { %1779 = vmatprep.subr.mxu0 %v14117_v34  ;;  %v1577_v10 = vpop.permute.xlu1 %1576 }
 0x59f   : > { %1780 = vmatpush1.msra.mxu0 %v1577_v10 }
 0x5a0   : > { %v1575_v12 = vpop.permute.xlu0 %1574  ;;  %1781 = vmatprep.subr.mxu0 %v14117_v34 }
 0x5a1   : > { %1782 = vmatpush1.msra.mxu0 %v1575_v12 }
 0x5a2   : > { %1783 = vmatprep.subr.mxu0 %v14117_v34  ;;  %v1573_v14 = vpop.permute.xlu1 %1572 }
 0x5a3   : > { %1784 = vmatpush1.msra.mxu0 %v1573_v14 }
 0x5a4   : > { %1785 = vmatprep.subr.mxu0 %v14117_v34  ;;  %v1611_v16 = vpop.permute.xlu0 %1610 }
 0x5a5   : > { %1786 = vmatpush1.msra.mxu0 %v9221_v49 }
 0x5a6   : > { %1787 = vmatprep.subr.mxu0 %v14117_v34  ;;  %v1609_v18 = vpop.permute.xlu1 %1608 }
 0x5a7   : > { %1788 = vmatpush1.msra.mxu0 %v1555_v54 }
 0x5a8   : > { %1789 = vmatprep.subr.mxu0 %v14117_v34  ;;  %v1607_v20 = vpop.permute.xlu0 %1606 }
 0x5a9   : > { %1790 = vmatpush1.msra.mxu0 %v9218_v37 }
 0x5aa   : > { %1791 = vmatprep.subr.mxu0 %v14117_v34  ;;  %v1605_v21 = vpop.permute.xlu1 %1604 }
 0x5ab   : > { %1792 = vmatpush1.msra.mxu0 %v11028_v45 }
 0x5ac   : > { %1793 = vmatprep.subr.mxu0 %v14117_v34  ;;  %v1603_v11 = vpop.permute.xlu0 %1602 }
 0x5ad   : > { %1794 = vmatpush1.msra.mxu0 %v11024_v29 }
 0x5ae   : > { %1795 = vmatprep.subr.mxu0 %v14117_v34  ;;  %v1601_v26 = vpop.permute.xlu1 %1600 }
 0x5af   : > { %1796 = vmatpush1.msra.mxu0 %v11026_v32 }
 0x5b0   : > { %1797 = vmatprep.subr.mxu0 %v14117_v34  ;;  %v1599_v31 = vpop.permute.xlu0 %1598 }
 0x5b1   : > { %1798 = vmatpush1.msra.mxu0 %v11020_v50 }
 0x5b2   : > { %1799 = vmatprep.subr.mxu0 %v14117_v34  ;;  %v1597_v19 = vpop.permute.xlu1 %1596 }
 0x5b3   : > { %1800 = vmatpush1.msra.mxu0 %v11022_v28 }
 0x5b4   : > { %1817 = vmatprep.subr.mxu0 %v14117_v34 }
 0x5b5   : > { %1818 = vmatpush2.msra.mxu0 %v1611_v16 }
 0x5b6   : > { %1819 = vmatprep.subr.mxu0 %v14117_v34 }
 0x5b7   : > { %1820 = vmatpush2.msra.mxu0 %v1609_v18 }
 0x5b8   : > { %1821 = vmatprep.subr.mxu0 %v14117_v34 }
 0x5b9   : > { %1822 = vmatpush2.msra.mxu0 %v1607_v20 }
 0x5ba   : > { %1823 = vmatprep.subr.mxu0 %v14117_v34 }
 0x5bb   : > { %1824 = vmatpush2.msra.mxu0 %v1605_v21 }
 0x5bc   : > { %1825 = vmatprep.subr.mxu0 %v14117_v34 }
 0x5bd   : > { %1826 = vmatpush2.msra.mxu0 %v1603_v11  ;;  %v1743_v1 = vpop.permute.xlu0 %1742 }
 0x5be   : > { %1827 = vmatprep.subr.mxu0 %v14117_v34 }
 0x5bf   : > { %1828 = vmatpush2.msra.mxu0 %v1601_v26  ;;  %v1739_v29 = vpop.permute.xlu1 %1738 }
 0x5c0   : > { %1829 = vmatprep.subr.mxu0 %v14117_v34 }
 0x5c1   : > { %1830 = vmatpush2.msra.mxu0 %v1599_v31  ;;  %v1731_v37 = vpop.permute.xlu0 %1730 }
 0x5c2   : > { %1831 = vmatprep.subr.mxu0 %v14117_v34 }
 0x5c3   : > { %1832 = vmatpush2.msra.mxu0 %v1597_v19  ;;  %v1735_v15 = vpop.permute.xlu1 %1734 }
 0x5c4   : > { %1834 = vmatmul.mubr.f32.vlgmr.msra.gmra.mxu0 %v1620_v17  ;;  %2677 = vmatprep.subr.mxu0 %v14117_v34 }
 0x5c5   : > { %8650 = vmatprep.mubr.msk.f32.mxu0 %vm961_vm1, %v1623_v33 }
 0x5c7   : > { %v1727_v26 = vpop.permute.xlu1 %1726 }
 0x5c8   : > { %1839 = vmatmul.mubr.f32.gmra.mxu0 %v1622_v35 }
 0x5c9   : > { %8651 = vmatprep.mubr.msk.f32.mxu0 %vm961_vm1, %v1625_v39 }
 0x5cc   : > { %1844 = vmatmul.mubr.f32.gmra.mxu0 %v1624_v47  ;;  %v1723_v47 = vpop.permute.xlu0 %1722 }
 0x5cd   : > { %8652 = vmatprep.mubr.msk.f32.mxu0 %vm961_vm1, %v1627_v40 }
 0x5d0   : > { %1849 = vmatmul.mubr.f32.gmra.mxu0 %v1626_v41 }
 0x5d1   : > { %8653 = vmatprep.mubr.msk.f32.mxu0 %vm961_vm1, %v1629_v42 }
 0x5d4   : > { %1854 = vmatmul.mubr.f32.gmra.mxu0 %v1628_v44 }
 0x5d5   : > { %8654 = vmatprep.mubr.msk.f32.mxu0 %vm961_vm1, %v1631_v3  ;;  %v1719_v3 = vpop.permute.xlu1 %1718 }
 0x5d8   : > { %1859 = vmatmul.mubr.f32.gmra.mxu0 %v1630_v46 }
 0x5d9   : > { %8655 = vmatprep.mubr.msk.f32.mxu0 %vm961_vm1, %v1633_v22 }
 0x5dc   : > { %1864 = vmatmul.mubr.f32.gmra.mxu0 %v1632_v24 }
 0x5dd   : > { %8656 = vmatprep.mubr.msk.f32.mxu0 %vm961_vm1, %v1635_v30 }
 0x5e0   : > { %1869 = vmatmul.mubr.f32.gmra.mxu0 %v1634_v55  ;;  %v1715_v55 = vpop.permute.xlu0 %1714 }
 0x684   : > { %v1835_v58 = vpop.f32.mrf.mxu0 }
 0x686   : > { %v1837_v59 = vpop.f32.mrf.mxu0 }
 0x687   : > { %v11134_v59 = vadd.f32 %v1835_v58, %v1715_v55  ;;  %v11153_v58 = vld [vmem:[%s14083_s6] sm:$0xff] }
 0x688   : > { %v1840_v63 = vpop.f32.mrf.mxu0  ;;  %9257 = vmatprep.mubr.msk.f32.mxu1 %vm961_vm1, %v11153_v58 }
 0x689   : > { %v11127_v46 = vadd.f32 %v1840_v63, %v1719_v3 }
 0x68a   : > { %v1842_v13 = vpop.f32.mrf.mxu0 }
 0x68b   : > { %v1909_v63 = vmul.f32 %v11127_v46, %v11127_v46 }
 0x68c   : > { %v1845_v0 = vpop.f32.mrf.mxu0 }
 0x68d   : > { %v11120_v40 = vadd.f32 %v1845_v0, %v1723_v47 }
 0x68e   : > { %v1847_v50 = vpop.f32.mrf.mxu0 }
 0x68f   : > { %v1910_v30 = vmul.f32 %v11120_v40, %v11120_v40  ;;  %v1881_v0 = vsel %vm1874_vm3, %v11120_v40, 0.0  ;;  %v1878_v50 = vsel %vm1874_vm3, %v11127_v46, 0.0 }
 0x690   : > { %v1850_v28 = vpop.f32.mrf.mxu0 }
 0x691   : > { %v11113_v17 = vadd.f32 %v1850_v28, %v1727_v26  ;;  %v1922_v13 = vsel %vm1874_vm3, %v1910_v30, 0.0  ;;  %v1908_v28 = vmul.f32 %v11134_v59, %v11134_v59 }
 0x692   : > { %v1852_v32 = vpop.f32.mrf.mxu0 }
 0x693   : > { %v1911_v44 = vmul.f32 %v11113_v17, %v11113_v17  ;;  %v1884_v24 = vsel %vm1874_vm3, %v11113_v17, 0.0  ;;  %v1875_v32 = vsel %vm1874_vm3, %v11134_v59, 0.0 }
 0x694   : > { %v1855_v45 = vpop.f32.mrf.mxu0 }
 0x695   : > { %v11093_v49 = vadd.f32 %v1855_v45, %v1731_v37  ;;  %v1925_v22 = vsel %vm1874_vm3, %v1911_v44, 0.0 }
 0x696   : > { %v1857_v54 = vpop.f32.mrf.mxu0 }
 0x697   : > { %v1887_v56 = vsel %vm1874_vm3, %v11093_v49, 0.0  ;;  %v1912_v61 = vmul.f32 %v11093_v49, %v11093_v49 }
 0x698   : > { %v1860_v57 = vpop.f32.mrf.mxu0  ;;  %1888 = vadd.xlane.f32.xlu0 %v1887_v56 }
 0x699   : > { %v11099_v6 = vadd.f32 %v1860_v57, %v1735_v15  ;;  %v1928_v7 = vsel %vm1874_vm3, %v1912_v61, 0.0 }
 0x69a   : > { %v1862_v8 = vpop.f32.mrf.mxu0  ;;  %1929 = vadd.xlane.f32.xlu1 %v1928_v7 }
 0x69b   : > { %v1890_v10 = vsel %vm1874_vm3, %v11099_v6, 0.0  ;;  %v1913_v12 = vmul.f32 %v11099_v6, %v11099_v6 }
 0x69c   : > { %v1865_v14 = vpop.f32.mrf.mxu0  ;;  %1891 = vadd.xlane.f32.xlu0 %v1890_v10 }
 0x69d   : > { %v11106_v16 = vadd.f32 %v1865_v14, %v1739_v29  ;;  %v1931_v18 = vsel %vm1874_vm3, %v1913_v12, 0.0  ;;  %v1916_v29 = vsel %vm1874_vm3, %v1908_v28, 0.0 }
 0x69e   : > { %v1867_v20 = vpop.f32.mrf.mxu0  ;;  %1932 = vadd.xlane.f32.xlu1 %v1931_v18 }
 0x69f   : > { %v1893_v21 = vsel %vm1874_vm3, %v11106_v16, 0.0  ;;  %v1914_v11 = vmul.f32 %v11106_v16, %v11106_v16 }
 0x6a0   : > { %v1870_v31 = vpop.f32.mrf.mxu0  ;;  %1894 = vadd.xlane.f32.xlu0 %v1893_v21 }
 0x6a1   : > { %v11115_v19 = vadd.f32 %v1870_v31, %v1743_v1  ;;  %v1934_v33 = vsel %vm1874_vm3, %v1914_v11, 0.0  ;;  %v1919_v1 = vsel %vm1874_vm3, %v1909_v63, 0.0 }
 0x6a2   : > { %v1872_v35 = vpop.f32.mrf.mxu0  ;;  %1935 = vadd.xlane.f32.xlu1 %v1934_v33 }
 0x6a3   : > { %v1915_v39 = vmul.f32 %v11115_v19, %v11115_v19  ;;  %v1896_v41 = vsel %vm1874_vm3, %v11115_v19, 0.0 }
 0x6a5   : > { %v1937_v42 = vsel %vm1874_vm3, %v1915_v39, 0.0 }
 0x6a6   : > { %1897 = vadd.xlane.f32.xlu1 %v1896_v41  ;;  %1938 = vadd.xlane.f32.xlu0 %v1937_v42 }
 0x6aa   : > { %1926 = vadd.xlane.f32.xlu1 %v1925_v22  ;;  %1885 = vadd.xlane.f32.xlu0 %v1884_v24 }
 0x6ae   : > { %1923 = vadd.xlane.f32.xlu1 %v1922_v13  ;;  %1882 = vadd.xlane.f32.xlu0 %v1881_v0 }
 0x6b2   : > { %1920 = vadd.xlane.f32.xlu1 %v1919_v1  ;;  %1879 = vadd.xlane.f32.xlu0 %v1878_v50 }
 0x6b6   : > { %1917 = vadd.xlane.f32.xlu1 %v1916_v29  ;;  %1876 = vadd.xlane.f32.xlu0 %v1875_v32 }
 0x721   : > { %v1889_v37 = vpop.xlane.xlu0 %1888 }
 0x722   : > { %v1904_v33 = vmul.f32 0.03125, %v1889_v37 }
 0x723   : > { %v1930_v45 = vpop.xlane.xlu1 %1929 }
 0x724   : > { %v1944_v11 = vmul.f32 0.03125, %v1930_v45  ;;  %v11171_v45 = vld [vmem:[%s14083_s6 + $0x8] sm:$0xff] }
 0x725   : > { %v1892_v54 = vpop.xlane.xlu0 %1891 }
 0x726   : > { %v1905_v26 = vmul.f32 0.03125, %v1892_v54  ;;  %v1952_v22 = vsel %vm1035_vm2, %v1904_v33, %v1944_v11  ;;  %v11178_v54 = vld [vmem:[%s14083_s6 + $0x10] sm:$0xff] }
 0x727   : > { %v1933_v56 = vpop.xlane.xlu1 %1932 }
 0x728   : > { %v1945_v12 = vmul.f32 0.03125, %v1933_v56  ;;  %v11185_v56 = vld [vmem:[%s14083_s6 + $0x18] sm:$0xff] }
 0x729   : > { %v1895_v53 = vpop.xlane.xlu0 %1894 }
 0x72a   : > { %v1906_v14 = vmul.f32 0.03125, %v1895_v53  ;;  %v1953_v47 = vsel %vm1035_vm2, %v1905_v26, %v1945_v12  ;;  %v11192_v53 = vld [vmem:[%s14083_s6 + $0x20] sm:$0xff] }
 0x72b   : > { %v1936_v61 = vpop.xlane.xlu1 %1935 }
 0x72c   : > { %v1946_v7 = vmul.f32 0.03125, %v1936_v61  ;;  %v11199_v61 = vld [vmem:[%s14083_s6 + $0x28] sm:$0xff] }
 0x72e   : > { %v1954_v31 = vsel %vm1035_vm2, %v1906_v14, %v1946_v7  ;;  %v11217_v7 = vpop.f32.mrf.mxu1 }
 0x72f   : > { %v1939_v15 = vpop.xlane.xlu0 %1938  ;;  %v1898_v57 = vpop.xlane.xlu1 %1897 }
 0x730   : > { %v1947_v8 = vmul.f32 0.03125, %v1939_v15  ;;  %v1907_v10 = vmul.f32 0.03125, %v1898_v57  ;;  %v11206_v15 = vld [vmem:[%s14083_s6 + $0x30] sm:$0xff]  ;;  %v11213_v57 = vld [vmem:[%s14083_s6 + $0x38] sm:$0xff] }
 0x732   : > { %v1955_v18 = vsel %vm1035_vm2, %v1907_v10, %v1947_v8  ;;  %v9240_v8 = vpop.f32.mrf.mxu1 }
 0x733   : > { %v1886_v20 = vpop.xlane.xlu0 %1885  ;;  %9241 = vmatprep.subr.mxu1 %v1955_v18  ;;  %v1927_v21 = vpop.xlane.xlu1 %1926 }
 0x734   : > { %9242 = vmatpush3.msra.mxu1 %v1955_v18  ;;  %v1903_v35 = vmul.f32 0.03125, %v1886_v20  ;;  %v1943_v39 = vmul.f32 0.03125, %v1927_v21 }
 0x735   : > { %9243 = vmatprep.subr.mxu1 %v1954_v31 }
 0x736   : > { %9244 = vmatpush3.msra.mxu1 %v1954_v31  ;;  %v1951_v24 = vsel %vm1035_vm2, %v1903_v35, %v1943_v39 }
 0x737   : > { %v1883_v41 = vpop.xlane.xlu0 %1882  ;;  %9245 = vmatprep.subr.mxu1 %v1953_v47  ;;  %v1924_v42 = vpop.xlane.xlu1 %1923 }
 0x738   : > { %v1902_v44 = vmul.f32 0.03125, %v1883_v41  ;;  %v1942_v3 = vmul.f32 0.03125, %v1924_v42  ;;  %9246 = vmatpush3.msra.mxu1 %v1953_v47 }
 0x739   : > { %9247 = vmatprep.subr.mxu1 %v1952_v22 }
 0x73a   : > { %9248 = vmatpush3.msra.mxu1 %v1952_v22  ;;  %v1950_v63 = vsel %vm1035_vm2, %v1902_v44, %v1942_v3 }
 0x73b   : > { %v1880_v30 = vpop.xlane.xlu0 %1879  ;;  %9249 = vmatprep.subr.mxu1 %v1951_v24  ;;  %v1921_v55 = vpop.xlane.xlu1 %1920 }
 0x73c   : > { %v1901_v13 = vmul.f32 0.03125, %v1880_v30  ;;  %v1941_v0 = vmul.f32 0.03125, %v1921_v55  ;;  %9250 = vmatpush3.msra.mxu1 %v1951_v24 }
 0x73d   : > { %9251 = vmatprep.subr.mxu1 %v1950_v63 }
 0x73e   : > { %9252 = vmatpush3.msra.mxu1 %v1950_v63  ;;  %v1949_v1 = vsel %vm1035_vm2, %v1901_v13, %v1941_v0 }
 0x73f   : > { %v1877_v50 = vpop.xlane.xlu0 %1876  ;;  %9253 = vmatprep.subr.mxu1 %v1949_v1  ;;  %v1918_v28 = vpop.xlane.xlu1 %1917 }
 0x740   : > { %v1900_v29 = vmul.f32 0.03125, %v1877_v50  ;;  %v1940_v32 = vmul.f32 0.03125, %v1918_v28  ;;  %9254 = vmatpush3.msra.mxu1 %v1949_v1 }
 0x742   : > { %v1948_v37 = vsel %vm1035_vm2, %v1900_v29, %v1940_v32 }
 0x743   : > { %9255 = vmatprep.subr.mxu1 %v1948_v37 }
 0x744   : > { %9256 = vmatpush3.msra.mxu1 %v1948_v37 }
 0x745   : > { %9258 = vmatmul.mubr.msk.f32.vlgmr.msra.gmra.mxu1 %vm961_vm1, %v11171_v45 }
 0x746   : > { %9260 = vmatprep.mubr.msk.f32.mxu1 %vm961_vm1, %v11178_v54 }
 0x749   : > { %9261 = vmatmul.mubr.msk.f32.gmra.mxu1 %vm961_vm1, %v11185_v56 }
 0x74a   : > { %9263 = vmatprep.mubr.msk.f32.mxu1 %vm961_vm1, %v11192_v53 }
 0x74d   : > { %9264 = vmatmul.mubr.msk.f32.gmra.mxu1 %vm961_vm1, %v11199_v61 }
 0x74e   : > { %9266 = vmatprep.mubr.msk.f32.mxu1 %vm961_vm1, %v11206_v15 }
 0x751   : > { %9267 = vmatmul.mubr.msk.f32.gmra.mxu1 %vm961_vm1, %v11213_v57 }
 0x805   : > { %v11219_v10 = vpop.f32.mrf.mxu1 }
 0x806   : > { %v2062_v12 = vmul.f32 %v11219_v10, %v11219_v10 }
 0x807   : > { %v11223_v14 = vpop.f32.mrf.mxu1 }
 0x808   : > { %2079 = vrot.lane.b32.xlu1 %v2062_v12, %s10269_s29  ;;  %v2061_v18 = vmul.f32 %v11223_v14, %v11223_v14 }
 0x809   : > { %v11228_v20 = vpop.f32.mrf.mxu1 }
 0x80a   : > { %v2064_v21 = vmul.f32 %v11228_v20, %v11228_v20  ;;  %2077 = vrot.lane.b32.xlu0 %v2061_v18, %s10269_s29 }
 0x80b   : > { %v11233_v11 = vpop.f32.mrf.mxu1 }
 0x80c   : > { %v2063_v26 = vmul.f32 %v11233_v11, %v11233_v11 }
 0x80d   : > { %v11237_v31 = vpop.f32.mrf.mxu1 }
 0x80e   : > { %v2066_v33 = vmul.f32 %v11237_v31, %v11237_v31  ;;  %2083 = vrot.lane.b32.xlu0 %v2064_v21, %s10269_s29  ;;  %2081 = vrot.lane.b32.xlu1 %v2063_v26, %s10269_s29 }
 0x80f   : > { %v11243_v35 = vpop.f32.mrf.mxu1 }
 0x810   : > { %v2065_v39 = vmul.f32 %v11243_v35, %v11243_v35 }
 0x811   : > { %v11247_v47 = vpop.f32.mrf.mxu1 }
 0x812   : > { %v2068_v41 = vmul.f32 %v11247_v47, %v11247_v47  ;;  %2087 = vrot.lane.b32.xlu0 %v2066_v33, %s10269_s29  ;;  %2085 = vrot.lane.b32.xlu1 %v2065_v39, %s10269_s29 }
 0x813   : > { %v11253_v42 = vpop.f32.mrf.mxu1 }
 0x814   : > { %v2067_v44 = vmul.f32 %v11253_v42, %v11253_v42 }
 0x816   : > { %2091 = vrot.lane.b32.xlu0 %v2068_v41, %s10269_s29  ;;  %2089 = vrot.lane.b32.xlu1 %v2067_v44, %s10269_s29 }
 0x87a   : > { %v2080_v3 = vpop.permute.xlu1 %2079 }
 0x87b   : > { %v2102_v22 = vsub.f32 %v11219_v10, %v2080_v3 }
 0x87c   : > { %v2078_v24 = vpop.permute.xlu0 %2077 }
 0x87d   : > { %v2110_v30 = vmax.f32 %v2102_v22, 0.0  ;;  %v2101_v55 = vsub.f32 %v11223_v14, %v2078_v24 }
 0x87f   : > { %v2118_v13 = vadd.f32 1e-05, %v2110_v30  ;;  %v2109_v0 = vmax.f32 %v2101_v55, 0.0 }
 0x880   : > { %v2084_v63 = vpop.permute.xlu0 %2083  ;;  %v2082_v1 = vpop.permute.xlu1 %2081 }
 0x881   : > { %9784 = vrsqrt.f32 %v2118_v13  ;;  %v2117_v50 = vadd.f32 1e-05, %v2109_v0  ;;  %v2104_v28 = vsub.f32 %v11228_v20, %v2084_v63  ;;  %v2103_v29 = vsub.f32 %v11233_v11, %v2082_v1 }
 0x883   : > { %9786 = vrsqrt.f32 %v2117_v50  ;;  %v2112_v32 = vmax.f32 %v2104_v28, 0.0  ;;  %v2111_v37 = vmax.f32 %v2103_v29, 0.0  ;;  %v9920_v28 = vld [vmem:[%s14082_s5 + $0x48] sm:$0xff] }
 0x884   : > { %v2088_v8 = vpop.permute.xlu0 %2087  ;;  %v2086_v12 = vpop.permute.xlu1 %2085 }
 0x885   : > { %v2120_v18 = vadd.f32 1e-05, %v2112_v32  ;;  %v2119_v21 = vadd.f32 1e-05, %v2111_v37  ;;  %v2106_v26 = vsub.f32 %v11237_v31, %v2088_v8  ;;  %v2105_v33 = vsub.f32 %v11243_v35, %v2086_v12  ;;  %v9921_v37 = vld [vmem:[%s14082_s5 + $0x40] sm:$0xff] }
 0x887   : > { %9788 = vrsqrt.f32 %v2120_v18  ;;  %v2114_v39 = vmax.f32 %v2106_v26, 0.0  ;;  %v2113_v41 = vmax.f32 %v2105_v33, 0.0 }
 0x888   : > { %9790 = vrsqrt.f32 %v2119_v21  ;;  %v2092_v44 = vpop.permute.xlu0 %2091  ;;  %v2090_v3 = vpop.permute.xlu1 %2089 }
 0x889   : > { %v2122_v22 = vadd.f32 1e-05, %v2114_v39  ;;  %v2121_v24 = vadd.f32 1e-05, %v2113_v41  ;;  %v2108_v30 = vsub.f32 %v11247_v47, %v2092_v44  ;;  %v2107_v55 = vsub.f32 %v11253_v42, %v2090_v3 }
 0x88b   : > { %9792 = vrsqrt.f32 %v2122_v22  ;;  %v2116_v13 = vmax.f32 %v2108_v30, 0.0  ;;  %v2115_v0 = vmax.f32 %v2107_v55, 0.0 }
 0x88c   : > { %9794 = vrsqrt.f32 %v2121_v24 }
 0x88d   : > { %v2124_v63 = vadd.f32 1e-05, %v2116_v13  ;;  %v2123_v1 = vadd.f32 1e-05, %v2115_v0 }
 0x88e   : > { %v9785_v50 = vpop.eup %9784 }
 0x88f   : > { %9796 = vrsqrt.f32 %v2124_v63  ;;  %v2134_v29 = vmul.f32 %v9920_v28, %v9785_v50 }
 0x890   : > { %v9787_v32 = vpop.eup %9786  ;;  %9798 = vrsqrt.f32 %v2123_v1 }
 0x891   : > { %2151 = vrot.lane.b32.xlu0 %v2134_v29, %s14113_s21  ;;  %v2133_v8 = vmul.f32 %v9921_v37, %v9787_v32  ;;  %v9923_v32 = vld [vmem:[%s14082_s5 + $0x80] sm:$0xff] }
 0x893   : > { %2149 = vrot.lane.b32.xlu1 %v2133_v8, %s14113_s21 }
 0x894   : > { %v9789_v12 = vpop.eup %9788 }
 0x895   : > { %v9791_v18 = vpop.eup %9790  ;;  %v2136_v21 = vmul.f32 %v9789_v12, %v10854_v5 }
 0x896   : > { %v2135_v26 = vmul.f32 %v9791_v18, %v10831_v43  ;;  %v11338_v18 = vld [vmem:[%s14086_s9] sm:$0xff] }
 0x897   : > { %2155 = vrot.lane.b32.xlu0 %v2136_v21, %s14113_s21 }
 0x898   : > { %v9793_v33 = vpop.eup %9792  ;;  %2153 = vrot.lane.b32.xlu1 %v2135_v26, %s14113_s21 }
 0x899   : > { %v9795_v39 = vpop.eup %9794  ;;  %v2138_v41 = vmul.f32 %v9793_v33, %v10880_v62 }
 0x89a   : > { %v2137_v44 = vmul.f32 %v9795_v39, %v10874_v60  ;;  %v9925_v39 = vld [vmem:[%s14082_s5 + $0x90] sm:$0xff] }
 0x89b   : > { %2159 = vrot.lane.b32.xlu0 %v2138_v41, %s14113_s21 }
 0x89c   : > { %v9797_v3 = vpop.eup %9796  ;;  %2157 = vrot.lane.b32.xlu1 %v2137_v44, %s14113_s21 }
 0x89d   : > { %v9799_v22 = vpop.eup %9798  ;;  %v11284_v5 = vmul.f32 %v9797_v3, %v10902_v25  ;;  %v9926_v3 = vld [vmem:[%s14082_s5 + $0xa0] sm:$0xff] }
 0x89e   : > { %v2139_v43 = vmul.f32 %v9799_v22, %v10897_v23 }
 0x89f   : > { %2163 = vrot.lane.b32.xlu0 %v11284_v5, %s14113_s21 }
 0x8a0   : > { %2161 = vrot.lane.b32.xlu1 %v2139_v43, %s14113_s21  ;;  %s14128_s21 = smov 120  }
 0x903   : > { %v2152_v24 = vpop.permute.xlu0 %2151 }
 0x904   : > { %v2174_v62 = vmul.f32 %v11219_v10, %v2152_v24 }
 0x905   : > { %v2150_v60 = vpop.permute.xlu1 %2149 }
 0x906   : > { %v2173_v30 = vmul.f32 %v2150_v60, %v11223_v14  ;;  %2191 = vrot.lane.b32.xlu0 %v2174_v62, %s10269_s29  ;;  %v9927_v62 = vld [vmem:[%s14082_s5 + $0xb0] sm:$0xff] }
 0x908   : > { %2189 = vrot.lane.b32.xlu1 %v2173_v30, %s10269_s29  ;;  %v9928_v30 = vld [vmem:[%s14082_s5 + $0xa8] sm:$0xff] }
 0x909   : > { %v2156_v55 = vpop.permute.xlu0 %2155 }
 0x90a   : > { %v2176_v25 = vmul.f32 %v11228_v20, %v2156_v55  ;;  %v2154_v13 = vpop.permute.xlu1 %2153 }
 0x90b   : > { %v2175_v23 = vmul.f32 %v2154_v13, %v11233_v11  ;;  %v9929_v13 = vld [vmem:[%s14082_s5 + $0xb8] sm:$0xff] }
 0x90c   : > { %2195 = vrot.lane.b32.xlu0 %v2176_v25, %s10269_s29 }
 0x90d   : > { %2193 = vrot.lane.b32.xlu1 %v2175_v23, %s10269_s29  ;;  %v2160_v0 = vpop.permute.xlu0 %2159 }
 0x90e   : > { %v2178_v10 = vmul.f32 %v11237_v31, %v2160_v0  ;;  %v2158_v63 = vpop.permute.xlu1 %2157 }
 0x90f   : > { %v2177_v14 = vmul.f32 %v2158_v63, %v11243_v35  ;;  %v11311_v35 = vld [vmem:[%s14086_s9 + $0x18] sm:$0xff] }
 0x910   : > { %2199 = vrot.lane.b32.xlu0 %v2178_v10, %s10269_s29  ;;  %9269 = vmatprep.subr.mxu1 %v11311_v35 }
 0x911   : > { %2197 = vrot.lane.b32.xlu1 %v2177_v14, %s10269_s29  ;;  %v2164_v1 = vpop.permute.xlu0 %2163  ;;  %9270 = vmatpush3.msra.mxu1 %v11311_v35 }
 0x912   : > { %v2180_v20 = vmul.f32 %v11247_v47, %v2164_v1  ;;  %v2162_v50 = vpop.permute.xlu1 %2161  ;;  %v9922_v47 = vld [vmem:[%s14082_s5 + $0x88] sm:$0xff] }
 0x913   : > { %v2179_v11 = vmul.f32 %v2162_v50, %v11253_v42 }
 0x914   : > { %2203 = vrot.lane.b32.xlu0 %v2180_v20, %s10269_s29 }
 0x915   : > { %2201 = vrot.lane.b32.xlu1 %v2179_v11, %s10269_s29 }
 0x918   : > { %2226 = vperm.xlu0 %9748, %v2134_v29   ;;  %v11321_v29 = vld [vmem:[%s14086_s9 + $0x10] sm:$0xff] }
 0x919   : > { %2222 = vperm.xlu1 %9749, %v2133_v8   ;;  %9271 = vmatprep.subr.mxu1 %v11321_v29  ;;  %v11331_v8 = vld [vmem:[%s14086_s9 + $0x8] sm:$0xff] }
 0x91a   : > { %9272 = vmatpush3.msra.mxu1 %v11321_v29 }
 0x91b   : > { %9273 = vmatprep.subr.mxu1 %v11331_v8 }
 0x91c   : > { %2234 = vperm.xlu0 %9748, %v2136_v21   ;;  %9274 = vmatpush3.msra.mxu1 %v11331_v8  ;;  %v9924_v21 = vld [vmem:[%s14082_s5 + $0x98] sm:$0xff] }
 0x91d   : > { %2230 = vperm.xlu1 %9749, %v2135_v26   ;;  %9275 = vmatprep.subr.mxu1 %v11338_v18 }
 0x91e   : > { %9276 = vmatpush3.msra.mxu1 %v11338_v18 }
 0x91f   : > { %9289 = vmatprep.subr.mxu1 %v14117_v34 }
 0x920   : > { %1709 = vrot.lane.b32.xlu0 %v11217_v7, %s10272_s27 }
 0x921   : > { %2242 = vperm.xlu1 %9749, %v2138_v41  }
 0x924   : > { %2238 = vperm.xlu0 %9748, %v2137_v44  }
 0x978   : > { %v2192_v31 = vpop.permute.xlu0 %2191 }
 0x979   : > { %v2214_v42 = vsub.f32 %v9922_v47, %v2192_v31 }
 0x97a   : > { %v2190_v28 = vpop.permute.xlu1 %2189 }
 0x97b   : > { %v2213_v37 = vsub.f32 %v9923_v32, %v2190_v28  ;;  %2268 = vperm.xlu0 %9748, %v2214_v42  }
 0x97d   : > { %2263 = vperm.xlu1 %9749, %v2213_v37  }
 0x97e   : > { %v2196_v12 = vpop.permute.xlu0 %2195 }
 0x97f   : > { %v2216_v26 = vsub.f32 %v9924_v21, %v2196_v12  ;;  %v2194_v33 = vpop.permute.xlu1 %2193  ;;  %2246 = vperm.xlu0 %9748, %v2139_v43  }
 0x980   : > { %v2215_v41 = vsub.f32 %v9925_v39, %v2194_v33 }
 0x981   : > { %2278 = vperm.xlu1 %9749, %v2216_v26  }
 0x982   : > { %v2200_v43 = vpop.permute.xlu0 %2199 }
 0x983   : > { %v2198_v44 = vpop.permute.xlu1 %2197  ;;  %v2218_v55 = vsub.f32 %v9928_v30, %v2200_v43 }
 0x984   : > { %v2217_v22 = vsub.f32 %v9926_v3, %v2198_v44 }
 0x985   : > { %2273 = vperm.xlu1 %9749, %v2215_v41  }
 0x986   : > { %2283 = vperm.xlu0 %9748, %v2217_v22   ;;  %v2204_v25 = vpop.permute.xlu0 %2203 }
 0x987   : > { %v2202_v24 = vpop.permute.xlu1 %2201  ;;  %v2220_v23 = vsub.f32 %v9929_v13, %v2204_v25 }
 0x988   : > { %v2219_v60 = vsub.f32 %v9927_v62, %v2202_v24 }
 0x989   : > { %2250 = vperm.xlu1 %9749, %v11284_v5  }
 0x98a   : > { %2293 = vperm.xlu0 %9748, %v2219_v60  }
 0x98d   : > { %2288 = vperm.xlu1 %9749, %v2218_v55  }
 0x991   : > { %2298 = vperm.xlu1 %9749, %v2220_v23  }
 0x993   : > { %v2227_v0 = vpop.permute.xlu0 %2226 }
 0x994   : > { %v2223_v63 = vpop.permute.xlu1 %2222  ;;  %v2254_v50 = vmul.f32 %v2227_v0, %v11127_v46 }
 0x995   : > { %v2253_v47 = vmul.f32 %v2223_v63, %v11134_v59 }
 0x997   : > { %v2235_v10 = vpop.permute.xlu0 %2234 }
 0x998   : > { %v2231_v5 = vpop.permute.xlu1 %2230  ;;  %v2256_v46 = vmul.f32 %v2235_v10, %v11113_v17 }
 0x999   : > { %v2255_v41 = vmul.f32 %v2231_v5, %v11120_v40 }
 0x99b   : > { %v1710_v14 = vpop.permute.xlu0 %1709 }
 0x99c   : > { %v2243_v20 = vpop.permute.xlu1 %2242  ;;  %v11364_v11 = vmax.f32 %v11217_v7, %v1710_v14 }
 0x99d   : > { %v2258_v23 = vmul.f32 %v2243_v20, %v11099_v6 }
 0x99e   : > { %v2320_v32 = vrot.slane %v11364_v11, %v10928_v48 }
 0x99f   : > { %v2239_v1 = vpop.permute.xlu0 %2238 }
 0x9a0   : > { %v2257_v3 = vmul.f32 %v2239_v1, %v11093_v49 }
 0x9f6   : > { %v2269_v31 = vpop.permute.xlu0 %2268 }
 0x9f7   : > { %v2302_v42 = vadd.f32 %v2269_v31, %v2254_v50 }
 0x9f8   : > { %v2264_v28 = vpop.permute.xlu1 %2263 }
 0x9f9   : > { %v2310_v37 = vmax.f32 %v2302_v42, 0.0  ;;  %v2301_v12 = vadd.f32 %v2264_v28, %v2253_v47 }
 0x9fa   : > { %v2247_v33 = vpop.permute.xlu0 %2246 }
 0x9fb   : > { %v2322_v59 = vmul.f32 %v2320_v32, %v2310_v37  ;;  %v2309_v7 = vmax.f32 %v2301_v12, 0.0  ;;  %v2259_v49 = vmul.f32 %v2247_v33, %v11106_v16  ;;  %v2528_v37 = vld [vmem:[#allocation5 + $0x88] sm:$0xff]  ;;  %v10277_v12 = vmov 2   ;;  %v9935_v33 = vld [vmem:[%s14082_s5 + $0x18] sm:$0xff] }
 0x9fc   : > { %v2279_v21 = vpop.permute.xlu1 %2278  ;;  %8674 = vmatprep.mubr.msk.f32.mxu0 %vm961_vm1, %v2528_v37  ;;  %9750 = vset.pattern.permute.xlu0 %v10277_v12 }
 0x9fd   : > { %2330 = vst.msk [vmem:[%s11376_s18 + $0x8] sm:$0xff] %vm1874_vm3, %v2322_v59  ;;  %v2321_v26 = vmul.f32 %v2320_v32, %v2309_v7  ;;  %v2304_v39 = vadd.f32 %v2279_v21, %v2256_v46  ;;  %9751 = vset.pattern.permute.xlu1 %v10277_v12  ;;  %v9930_v46 = vld [vmem:[%s14082_s5 + $0x38] sm:$0xff]  ;;  %v9932_v7 = vld [vmem:[%s14082_s5 + $0x20] sm:$0xff]  ;;  %v9933_v21 = vld [vmem:[%s14082_s5 + $0x28] sm:$0xff] }
 0x9ff   : > { %2329 = vst.msk [vmem:[%s11376_s18] sm:$0xff] %vm1874_vm3, %v2321_v26  ;;  %v2312_v44 = vmax.f32 %v2304_v39, 0.0  ;;  %9277 = vmatprep.mubr.msk.f32.mxu1 %vm1874_vm3, %v2321_v26  ;;  %v9934_v26 = vld [vmem:[%s14082_s5 + $0x10] sm:$0xff]  ;;  %v9936_v39 = vld [vmem:[%s14082_s5] sm:$0xff] }
 0xa00   : > { %9278 = vmatmul.mubr.msk.f32.vlgmr.msra.gmra.mxu1 %vm1874_vm3, %v2322_v59  ;;  %v2274_v17 = vpop.permute.xlu1 %2273  ;;  %v9931_v59 = vld [vmem:[%s14082_s5 + $0x30] sm:$0xff] }
 0xa01   : > { %v2324_v22 = vmul.f32 %v2320_v32, %v2312_v44  ;;  %v2284_v43 = vpop.permute.xlu0 %2283  ;;  %v2303_v24 = vadd.f32 %v2274_v17, %v2255_v41  ;;  %9290 = vmatpush3.msra.mxu1 %v11311_v35  ;;  %v9937_v41 = vld [vmem:[%s14082_s5 + $0x8] sm:$0xff] }
 0xa02   : > { %v2305_v62 = vadd.f32 %v2284_v43, %v2257_v3  ;;  %9291 = vmatprep.subr.mxu1 %v14117_v34 }
 0xa03   : > { %2332 = vst.msk [vmem:[%s11376_s18 + $0x18] sm:$0xff] %vm1874_vm3, %v2324_v22  ;;  %v2311_v40 = vmax.f32 %v2303_v24, 0.0  ;;  %9292 = vmatpush3.msra.mxu1 %v11321_v29 }
 0xa04   : > { %v2313_v60 = vmax.f32 %v2305_v62, 0.0  ;;  %v2251_v30 = vpop.permute.xlu1 %2250  ;;  %9293 = vmatprep.subr.mxu1 %v14117_v34 }
 0xa05   : > { %v2323_v55 = vmul.f32 %v2320_v32, %v2311_v40  ;;  %v2294_v25 = vpop.permute.xlu0 %2293  ;;  %9294 = vmatpush3.msra.mxu1 %v11331_v8  ;;  %v2260_v6 = vmul.f32 %v2251_v30, %v11115_v19 }
 0xa06   : > { %v2325_v35 = vmul.f32 %v2320_v32, %v2313_v60  ;;  %v2307_v13 = vadd.f32 %v2294_v25, %v2259_v49  ;;  %9295 = vmatprep.subr.mxu1 %v14117_v34 }
 0xa07   : > { %2331 = vst.msk [vmem:[%s11376_s18 + $0x10] sm:$0xff] %vm1874_vm3, %v2323_v55  ;;  %9280 = vmatprep.mubr.msk.f32.mxu1 %vm1874_vm3, %v2323_v55  ;;  %9296 = vmatpush3.msra.mxu1 %v11338_v18 }
 0xa08   : > { %2333 = vst.msk [vmem:[%s11376_s18 + $0x20] sm:$0xff] %vm1874_vm3, %v2325_v35  ;;  %v2315_v16 = vmax.f32 %v2307_v13, 0.0  ;;  %9281 = vmatmul.mubr.msk.f32.gmra.mxu1 %vm1874_vm3, %v2324_v22  ;;  %v2289_v29 = vpop.permute.xlu1 %2288 }
 0xa09   : > { %v2306_v8 = vadd.f32 %v2289_v29, %v2258_v23  ;;  %9283 = vmatprep.mubr.msk.f32.mxu1 %vm1874_vm3, %v2325_v35  ;;  %v2527_v23 = vld [vmem:[#allocation5 + $0x80] sm:$0xff]  ;;  %v2530_v29 = vld [vmem:[#allocation5 + $0x98] sm:$0xff] }
 0xa0a   : > { %v2327_v0 = vmul.f32 %v2320_v32, %v2315_v16 }
 0xa0b   : > { %v2314_v10 = vmax.f32 %v2306_v8, 0.0  ;;  %v2529_v8 = vld [vmem:[#allocation5 + $0x90] sm:$0xff] }
 0xa0c   : > { %2335 = vst.msk [vmem:[%s11376_s18 + $0x30] sm:$0xff] %vm1874_vm3, %v2327_v0  ;;  %v2299_v63 = vpop.permute.xlu1 %2298 }
 0xa0d   : > { %v2326_v14 = vmul.f32 %v2320_v32, %v2314_v10  ;;  %v2308_v5 = vadd.f32 %v2299_v63, %v2260_v6  ;;  %v2531_v6 = vld [vmem:[#allocation5 + $0xa0] sm:$0xff]  ;;  %v2534_v10 = vld [vmem:[#allocation5 + $0xb8] sm:$0xff]  ;;  %v2533_v63 = vld [vmem:[#allocation5 + $0xb0] sm:$0xff] }
 0xa0f   : > { %2334 = vst.msk [vmem:[%s11376_s18 + $0x28] sm:$0xff] %vm1874_vm3, %v2326_v14  ;;  %v2316_v18 = vmax.f32 %v2308_v5, 0.0  ;;  %9284 = vmatmul.mubr.msk.f32.gmra.mxu1 %vm1874_vm3, %v2326_v14  ;;  %v2536_v14 = vld [vmem:[#allocation5 + $0xc8] sm:$0xff]  ;;  %v2535_v5 = vld [vmem:[#allocation5 + $0xc0] sm:$0xff] }
 0xa10   : > { %9286 = vmatprep.mubr.msk.f32.mxu1 %vm1874_vm3, %v2327_v0  ;;  %v2532_v0 = vld [vmem:[#allocation5 + $0xa8] sm:$0xff] }
 0xa11   : > { %v2328_v1 = vmul.f32 %v2320_v32, %v2316_v18  ;;  %v2538_v18 = vld [vmem:[#allocation5 + $0xd8] sm:$0xff] }
 0xa13   : > { %2336 = vst.msk [vmem:[%s11376_s18 + $0x38] sm:$0xff] %vm1874_vm3, %v2328_v1  ;;  %9287 = vmatmul.mubr.msk.f32.gmra.mxu1 %vm1874_vm3, %v2328_v1  ;;  %v2537_v1 = vld [vmem:[#allocation5 + $0xd0] sm:$0xff]  ;;  %s12570_s18 = scalar_lea.vmem %s14094_s17, %s11368_s28 }
 0xa14   : > { %9297 = vmatprep.mubr.msk.f32.mxu1 %vm10275_vm4, %v14117_v34 }
 0xa17   : > { %9298 = vmatmul.mubr.msk.f32.vlgmr.msra.gmra.mxu1 %vm1874_vm3, %v11364_v11 }
 0xa18   : > { %9316 = vmatprep.mubr.msk.f32.mxu1 %vm961_vm1, %v11153_v58 }
 0xac0   : > { %v11421_v19 = vpop.f32.mrf.mxu1 }
 0xac2   : > { %v11423_v20 = vpop.f32.mrf.mxu1 }
 0xac8   : > { %v11425_v50 = vpop.f32.mrf.mxu1 }
 0xaca   : > { %v11427_v31 = vpop.f32.mrf.mxu1 }
 0xacf   : > { %v11429_v47 = vpop.f32.mrf.mxu1 }
 0xad1   : > { %v11431_v42 = vpop.f32.mrf.mxu1 }
 0xad3   : > { %v11433_v28 = vpop.f32.mrf.mxu1 }
 0xad4   : > { %2492 = vrot.lane.b32.xlu0 %v11433_v28, %s14115_s24 }
 0xad5   : > { %v11437_v11 = vpop.f32.mrf.mxu1 }
 0xad6   : > { %2490 = vrot.lane.b32.xlu1 %v11437_v11, %s14115_s24 }
 0xad7   : > { %v11441_v58 = vpop.f32.mrf.mxu1 }
 0xad8   : > { %2488 = vrot.lane.b32.xlu0 %v11429_v47, %s14115_s24 }
 0xad9   : > { %v9299_v32 = vpop.f32.mrf.mxu1 }
 0xada   : > { %2486 = vrot.lane.b32.xlu1 %v11431_v42, %s14115_s24 }
 0xadc   : > { %2484 = vrot.lane.b32.xlu0 %v11425_v50, %s14115_s24 }
 0xade   : > { %2482 = vrot.lane.b32.xlu1 %v11427_v31, %s14115_s24 }
 0xae0   : > { %2480 = vrot.lane.b32.xlu0 %v11421_v19, %s14115_s24 }
 0xae2   : > { %2478 = vrot.lane.b32.xlu1 %v11423_v20, %s14115_s24  ;;  %s14130_s24 = smov 5  }
 0xae4   : > { %2516 = vrot.lane.b32.xlu0 %v11433_v28, %s10272_s27 }
 0xae6   : > { %2514 = vrot.lane.b32.xlu1 %v11437_v11, %s10272_s27 }
 0xae8   : > { %2512 = vrot.lane.b32.xlu0 %v11429_v47, %s10272_s27 }
 0xaea   : > { %2510 = vrot.lane.b32.xlu1 %v11431_v42, %s10272_s27 }
 0xaec   : > { %2508 = vrot.lane.b32.xlu0 %v11425_v50, %s10272_s27 }
 0xaee   : > { %2506 = vrot.lane.b32.xlu1 %v11427_v31, %s10272_s27 }
 0xaf0   : > { %2504 = vrot.lane.b32.xlu0 %v11421_v19, %s10272_s27 }
 0xaf2   : > { %2502 = vrot.lane.b32.xlu1 %v11423_v20, %s10272_s27  ;;  %s10293_s27 = smov 121  }
 0xaf4   : > { %2650 = vperm.xlu0 %9750, %v9930_v46  }
 0xaf6   : > { %2646 = vperm.xlu1 %9751, %v9931_v59  }
 0xaf8   : > { %2638 = vperm.xlu0 %9750, %v9932_v7  }
 0xafa   : > { %2642 = vperm.xlu1 %9751, %v9933_v21  }
 0xafc   : > { %2630 = vperm.xlu0 %9750, %v9934_v26  }
 0xafe   : > { %2634 = vperm.xlu1 %9751, %v9935_v33  }
 0xb00   : > { %2622 = vperm.xlu0 %9750, %v9936_v39  }
 0xb02   : > { %2626 = vperm.xlu1 %9751, %v9937_v41  }
 0xb46   : > { %v2493_v44 = vpop.permute.xlu0 %2492 }
 0xb47   : > { %2678 = vmatpush1.msra.mxu0 %v2493_v44 }
 0xb48   : > { %2679 = vmatprep.subr.mxu0 %v14117_v34  ;;  %v2491_v3 = vpop.permute.xlu1 %2490 }
 0xb49   : > { %2680 = vmatpush1.msra.mxu0 %v2491_v3 }
 0xb4a   : > { %v2489_v17 = vpop.permute.xlu0 %2488  ;;  %2681 = vmatprep.subr.mxu0 %v14117_v34 }
 0xb4b   : > { %2682 = vmatpush1.msra.mxu0 %v2489_v17 }
 0xb4c   : > { %2683 = vmatprep.subr.mxu0 %v14117_v34  ;;  %v2487_v22 = vpop.permute.xlu1 %2486 }
 0xb4d   : > { %2684 = vmatpush1.msra.mxu0 %v2487_v22 }
 0xb4e   : > { %v2485_v43 = vpop.permute.xlu0 %2484  ;;  %2685 = vmatprep.subr.mxu0 %v14117_v34 }
 0xb4f   : > { %2686 = vmatpush1.msra.mxu0 %v2485_v43 }
 0xb50   : > { %2687 = vmatprep.subr.mxu0 %v14117_v34  ;;  %v2483_v24 = vpop.permute.xlu1 %2482 }
 0xb51   : > { %2688 = vmatpush1.msra.mxu0 %v2483_v24 }
 0xb52   : > { %v2481_v62 = vpop.permute.xlu0 %2480  ;;  %2689 = vmatprep.subr.mxu0 %v14117_v34 }
 0xb53   : > { %2690 = vmatpush1.msra.mxu0 %v2481_v62 }
 0xb54   : > { %2691 = vmatprep.subr.mxu0 %v14117_v34  ;;  %v2479_v40 = vpop.permute.xlu1 %2478 }
 0xb55   : > { %2692 = vmatpush1.msra.mxu0 %v2479_v40 }
 0xb56   : > { %2693 = vmatprep.subr.mxu0 %v14117_v34  ;;  %v2517_v49 = vpop.permute.xlu0 %2516 }
 0xb57   : > { %2694 = vmatpush1.msra.mxu0 %v11433_v28 }
 0xb58   : > { %2695 = vmatprep.subr.mxu0 %v14117_v34  ;;  %v2515_v60 = vpop.permute.xlu1 %2514 }
 0xb59   : > { %2696 = vmatpush1.msra.mxu0 %v11437_v11 }
 0xb5a   : > { %2697 = vmatprep.subr.mxu0 %v14117_v34  ;;  %v2513_v30 = vpop.permute.xlu0 %2512 }
 0xb5b   : > { %2698 = vmatpush1.msra.mxu0 %v11429_v47 }
 0xb5c   : > { %2699 = vmatprep.subr.mxu0 %v14117_v34  ;;  %v2511_v55 = vpop.permute.xlu1 %2510 }
 0xb5d   : > { %2700 = vmatpush1.msra.mxu0 %v11431_v42 }
 0xb5e   : > { %2701 = vmatprep.subr.mxu0 %v14117_v34  ;;  %v2509_v25 = vpop.permute.xlu0 %2508 }
 0xb5f   : > { %2702 = vmatpush1.msra.mxu0 %v11425_v50  ;;  %v2542_v50 = vld [vmem:[#allocation5 + $0xf8] sm:$0xff] }
 0xb60   : > { %2703 = vmatprep.subr.mxu0 %v14117_v34  ;;  %v2507_v35 = vpop.permute.xlu1 %2506 }
 0xb61   : > { %2704 = vmatpush1.msra.mxu0 %v11427_v31  ;;  %v2541_v31 = vld [vmem:[#allocation5 + $0xf0] sm:$0xff] }
 0xb62   : > { %2705 = vmatprep.subr.mxu0 %v14117_v34  ;;  %v2505_v13 = vpop.permute.xlu0 %2504 }
 0xb63   : > { %2706 = vmatpush1.msra.mxu0 %v11421_v19  ;;  %v2540_v19 = vld [vmem:[#allocation5 + $0xe8] sm:$0xff] }
 0xb64   : > { %2707 = vmatprep.subr.mxu0 %v14117_v34  ;;  %v2503_v16 = vpop.permute.xlu1 %2502 }
 0xb65   : > { %2708 = vmatpush1.msra.mxu0 %v11423_v20  ;;  %v2539_v20 = vld [vmem:[#allocation5 + $0xe0] sm:$0xff] }
 0xb66   : > { %2725 = vmatprep.subr.mxu0 %v14117_v34 }
 0xb67   : > { %2726 = vmatpush2.msra.mxu0 %v2517_v49 }
 0xb68   : > { %2727 = vmatprep.subr.mxu0 %v14117_v34 }
 0xb69   : > { %2728 = vmatpush2.msra.mxu0 %v2515_v60 }
 0xb6a   : > { %2729 = vmatprep.subr.mxu0 %v14117_v34 }
 0xb6b   : > { %2730 = vmatpush2.msra.mxu0 %v2513_v30 }
 0xb6c   : > { %2731 = vmatprep.subr.mxu0 %v14117_v34 }
 0xb6d   : > { %2732 = vmatpush2.msra.mxu0 %v2511_v55 }
 0xb6e   : > { %2733 = vmatprep.subr.mxu0 %v14117_v34 }
 0xb6f   : > { %2734 = vmatpush2.msra.mxu0 %v2509_v25  ;;  %v2651_v37 = vpop.permute.xlu0 %2650 }
 0xb70   : > { %2735 = vmatprep.subr.mxu0 %v14117_v34 }
 0xb71   : > { %2736 = vmatpush2.msra.mxu0 %v2507_v35  ;;  %v2647_v59 = vpop.permute.xlu1 %2646 }
 0xb72   : > { %2737 = vmatprep.subr.mxu0 %v14117_v34 }
 0xb73   : > { %2738 = vmatpush2.msra.mxu0 %v2505_v13  ;;  %v2639_v21 = vpop.permute.xlu0 %2638 }
 0xb74   : > { %2739 = vmatprep.subr.mxu0 %v14117_v34 }
 0xb75   : > { %2740 = vmatpush2.msra.mxu0 %v2503_v16  ;;  %v2643_v3 = vpop.permute.xlu1 %2642 }
 0xb76   : > { %2742 = vmatmul.mubr.f32.vlgmr.msra.gmra.mxu0 %v2527_v23  ;;  %3614 = vmatprep.subr.mxu0 %v14117_v34 }
 0xb77   : > { %8675 = vmatprep.mubr.msk.f32.mxu0 %vm961_vm1, %v2530_v29 }
 0xb79   : > { %v2635_v13 = vpop.permute.xlu1 %2634 }
 0xb7a   : > { %2747 = vmatmul.mubr.f32.gmra.mxu0 %v2529_v8 }
 0xb7b   : > { %8676 = vmatprep.mubr.msk.f32.mxu0 %vm961_vm1, %v2532_v0 }
 0xb7e   : > { %2752 = vmatmul.mubr.f32.gmra.mxu0 %v2531_v6 }
 0xb7f   : > { %8677 = vmatprep.mubr.msk.f32.mxu0 %vm961_vm1, %v2534_v10  ;;  %v2631_v10 = vpop.permute.xlu0 %2630 }
 0xb82   : > { %2757 = vmatmul.mubr.f32.gmra.mxu0 %v2533_v63 }
 0xb83   : > { %8678 = vmatprep.mubr.msk.f32.mxu0 %vm961_vm1, %v2536_v14 }
 0xb86   : > { %2762 = vmatmul.mubr.f32.gmra.mxu0 %v2535_v5 }
 0xb87   : > { %8679 = vmatprep.mubr.msk.f32.mxu0 %vm961_vm1, %v2538_v18 }
 0xb8a   : > { %2767 = vmatmul.mubr.f32.gmra.mxu0 %v2537_v1  ;;  %v2627_v1 = vpop.permute.xlu1 %2626 }
 0xb8b   : > { %8680 = vmatprep.mubr.msk.f32.mxu0 %vm961_vm1, %v2540_v19 }
 0xb8e   : > { %2772 = vmatmul.mubr.f32.gmra.mxu0 %v2539_v20 }
 0xb8f   : > { %8681 = vmatprep.mubr.msk.f32.mxu0 %vm961_vm1, %v2542_v50 }
 0xb92   : > { %2777 = vmatmul.mubr.f32.gmra.mxu0 %v2541_v31 }
 0xc36   : > { %v2743_v47 = vpop.f32.mrf.mxu0 }
 0xc38   : > { %v2745_v42 = vpop.f32.mrf.mxu0 }
 0xc39   : > { %v2623_v42 = vpop.permute.xlu0 %2622 }
 0xc3a   : > { %v2748_v28 = vpop.f32.mrf.mxu0 }
 0xc3b   : > { %v11569_v19 = vadd.f32 %v2748_v28, %v2627_v1 }
 0xc3c   : > { %v2750_v11 = vpop.f32.mrf.mxu0 }
 0xc3d   : > { %v11576_v11 = vadd.f32 %v2743_v47, %v2623_v42  ;;  %v2816_v28 = vmul.f32 %v11569_v19, %v11569_v19 }
 0xc3e   : > { %v2753_v32 = vpop.f32.mrf.mxu0 }
 0xc3f   : > { %v11562_v63 = vadd.f32 %v2753_v32, %v2631_v10 }
 0xc40   : > { %v2755_v12 = vpop.f32.mrf.mxu0 }
 0xc41   : > { %v2817_v31 = vmul.f32 %v11562_v63, %v11562_v63  ;;  %v2826_v12 = vsel %vm831_vm0, %v2816_v28, 0.0 }
 0xc42   : > { %v2758_v46 = vpop.f32.mrf.mxu0 }
 0xc43   : > { %v11555_v16 = vadd.f32 %v2758_v46, %v2635_v13  ;;  %v2829_v32 = vsel %vm831_vm0, %v2817_v31, 0.0  ;;  %v2785_v46 = vsel %vm831_vm0, %v11569_v19, 0.0 }
 0xc44   : > { %v2760_v7 = vpop.f32.mrf.mxu0 }
 0xc45   : > { %v2818_v18 = vmul.f32 %v11555_v16, %v11555_v16  ;;  %v2791_v50 = vsel %vm831_vm0, %v11555_v16, 0.0  ;;  %v2782_v7 = vsel %vm831_vm0, %v11576_v11, 0.0 }
 0xc46   : > { %v2763_v26 = vpop.f32.mrf.mxu0 }
 0xc47   : > { %v11535_v33 = vadd.f32 %v2763_v26, %v2639_v21  ;;  %v2832_v20 = vsel %vm831_vm0, %v2818_v18, 0.0 }
 0xc48   : > { %v2765_v39 = vpop.f32.mrf.mxu0 }
 0xc49   : > { %v2794_v41 = vsel %vm831_vm0, %v11535_v33, 0.0  ;;  %v2819_v44 = vmul.f32 %v11535_v33, %v11535_v33 }
 0xc4a   : > { %v2768_v17 = vpop.f32.mrf.mxu0  ;;  %2795 = vadd.xlane.f32.xlu0 %v2794_v41 }
 0xc4b   : > { %v11541_v22 = vadd.f32 %v2768_v17, %v2643_v3  ;;  %v2835_v43 = vsel %vm831_vm0, %v2819_v44, 0.0 }
 0xc4c   : > { %v2770_v24 = vpop.f32.mrf.mxu0  ;;  %2836 = vadd.xlane.f32.xlu1 %v2835_v43 }
 0xc4d   : > { %v2797_v62 = vsel %vm831_vm0, %v11541_v22, 0.0  ;;  %v2820_v40 = vmul.f32 %v11541_v22, %v11541_v22 }
 0xc4e   : > { %v2773_v49 = vpop.f32.mrf.mxu0  ;;  %2798 = vadd.xlane.f32.xlu0 %v2797_v62 }
 0xc4f   : > { %v11548_v60 = vadd.f32 %v2773_v49, %v2647_v59  ;;  %v2838_v30 = vsel %vm831_vm0, %v2820_v40, 0.0  ;;  %v2815_v59 = vmul.f32 %v11576_v11, %v11576_v11 }
 0xc50   : > { %v2775_v55 = vpop.f32.mrf.mxu0  ;;  %2839 = vadd.xlane.f32.xlu1 %v2838_v30 }
 0xc51   : > { %v2800_v25 = vsel %vm831_vm0, %v11548_v60, 0.0  ;;  %v2821_v35 = vmul.f32 %v11548_v60, %v11548_v60  ;;  %v2823_v47 = vsel %vm831_vm0, %v2815_v59, 0.0 }
 0xc52   : > { %v2778_v23 = vpop.f32.mrf.mxu0  ;;  %2801 = vadd.xlane.f32.xlu0 %v2800_v25 }
 0xc53   : > { %v11557_v29 = vadd.f32 %v2778_v23, %v2651_v37  ;;  %v2841_v8 = vsel %vm831_vm0, %v2821_v35, 0.0  ;;  %v2788_v37 = vsel %vm831_vm0, %v11562_v63, 0.0 }
 0xc54   : > { %v2780_v0 = vpop.f32.mrf.mxu0  ;;  %2842 = vadd.xlane.f32.xlu1 %v2841_v8 }
 0xc55   : > { %v2822_v6 = vmul.f32 %v11557_v29, %v11557_v29  ;;  %v2803_v14 = vsel %vm831_vm0, %v11557_v29, 0.0 }
 0xc57   : > { %v2844_v5 = vsel %vm831_vm0, %v2822_v6, 0.0 }
 0xc58   : > { %2804 = vadd.xlane.f32.xlu1 %v2803_v14  ;;  %2845 = vadd.xlane.f32.xlu0 %v2844_v5 }
 0xc5c   : > { %2833 = vadd.xlane.f32.xlu1 %v2832_v20  ;;  %2792 = vadd.xlane.f32.xlu0 %v2791_v50 }
 0xc60   : > { %2830 = vadd.xlane.f32.xlu1 %v2829_v32  ;;  %2789 = vadd.xlane.f32.xlu0 %v2788_v37 }
 0xc64   : > { %2827 = vadd.xlane.f32.xlu1 %v2826_v12  ;;  %2786 = vadd.xlane.f32.xlu0 %v2785_v46 }
 0xc68   : > { %2824 = vadd.xlane.f32.xlu1 %v2823_v47  ;;  %2783 = vadd.xlane.f32.xlu0 %v2782_v7 }
 0xcd3   : > { %v2796_v21 = vpop.xlane.xlu0 %2795 }
 0xcd4   : > { %v2811_v0 = vmul.f32 0.0625, %v2796_v21 }
 0xcd5   : > { %v2837_v26 = vpop.xlane.xlu1 %2836 }
 0xcd6   : > { %v2851_v13 = vmul.f32 0.0625, %v2837_v26 }
 0xcd7   : > { %v2799_v39 = vpop.xlane.xlu0 %2798 }
 0xcd8   : > { %v2812_v23 = vmul.f32 0.0625, %v2799_v39  ;;  %v2859_v50 = vsel %vm1035_vm2, %v2811_v0, %v2851_v13 }
 0xcd9   : > { %v2840_v41 = vpop.xlane.xlu1 %2839 }
 0xcda   : > { %v2852_v49 = vmul.f32 0.0625, %v2840_v41 }
 0xcdb   : > { %v2802_v44 = vpop.xlane.xlu0 %2801 }
 0xcdc   : > { %v2813_v30 = vmul.f32 0.0625, %v2802_v44  ;;  %v2860_v14 = vsel %vm1035_vm2, %v2812_v23, %v2852_v49 }
 0xcdd   : > { %v2843_v3 = vpop.xlane.xlu1 %2842 }
 0xcde   : > { %v2853_v24 = vmul.f32 0.0625, %v2843_v3 }
 0xce0   : > { %v2861_v8 = vsel %vm1035_vm2, %v2813_v30, %v2853_v24 }
 0xce1   : > { %v2846_v17 = vpop.xlane.xlu0 %2845  ;;  %v2805_v43 = vpop.xlane.xlu1 %2804 }
 0xce2   : > { %v2854_v62 = vmul.f32 0.0625, %v2846_v17  ;;  %v2814_v40 = vmul.f32 0.0625, %v2805_v43 }
 0xce4   : > { %v2862_v55 = vsel %vm1035_vm2, %v2814_v40, %v2854_v62 }
 0xce5   : > { %v2793_v25 = vpop.xlane.xlu0 %2792  ;;  %9300 = vmatprep.subr.mxu1 %v2862_v55  ;;  %v2834_v35 = vpop.xlane.xlu1 %2833 }
 0xce6   : > { %9301 = vmatpush3.msra.mxu1 %v2862_v55  ;;  %v2810_v6 = vmul.f32 0.0625, %v2793_v25  ;;  %v2850_v10 = vmul.f32 0.0625, %v2834_v35 }
 0xce7   : > { %9302 = vmatprep.subr.mxu1 %v2861_v8 }
 0xce8   : > { %9303 = vmatpush3.msra.mxu1 %v2861_v8  ;;  %v2858_v31 = vsel %vm1035_vm2, %v2810_v6, %v2850_v10 }
 0xce9   : > { %v2790_v5 = vpop.xlane.xlu0 %2789  ;;  %9304 = vmatprep.subr.mxu1 %v2860_v14  ;;  %v2831_v18 = vpop.xlane.xlu1 %2830 }
 0xcea   : > { %v2809_v1 = vmul.f32 0.0625, %v2790_v5  ;;  %v2849_v20 = vmul.f32 0.0625, %v2831_v18  ;;  %9305 = vmatpush3.msra.mxu1 %v2860_v14 }
 0xceb   : > { %9306 = vmatprep.subr.mxu1 %v2859_v50 }
 0xcec   : > { %9307 = vmatpush3.msra.mxu1 %v2859_v50  ;;  %v2857_v12 = vsel %vm1035_vm2, %v2809_v1, %v2849_v20 }
 0xced   : > { %v2787_v42 = vpop.xlane.xlu0 %2786  ;;  %9308 = vmatprep.subr.mxu1 %v2858_v31  ;;  %v2828_v32 = vpop.xlane.xlu1 %2827 }
 0xcee   : > { %v2808_v37 = vmul.f32 0.0625, %v2787_v42  ;;  %v2848_v28 = vmul.f32 0.0625, %v2828_v32  ;;  %9309 = vmatpush3.msra.mxu1 %v2858_v31 }
 0xcef   : > { %9310 = vmatprep.subr.mxu1 %v2857_v12 }
 0xcf0   : > { %9311 = vmatpush3.msra.mxu1 %v2857_v12  ;;  %v2856_v46 = vsel %vm1035_vm2, %v2808_v37, %v2848_v28 }
 0xcf1   : > { %v2784_v59 = vpop.xlane.xlu0 %2783  ;;  %9312 = vmatprep.subr.mxu1 %v2856_v46  ;;  %v2825_v47 = vpop.xlane.xlu1 %2824 }
 0xcf2   : > { %v2807_v7 = vmul.f32 0.0625, %v2784_v59  ;;  %v2847_v21 = vmul.f32 0.0625, %v2825_v47  ;;  %9313 = vmatpush3.msra.mxu1 %v2856_v46 }
 0xcf4   : > { %v2855_v26 = vsel %vm1035_vm2, %v2807_v7, %v2847_v21 }
 0xcf5   : > { %9314 = vmatprep.subr.mxu1 %v2855_v26 }
 0xcf6   : > { %9315 = vmatpush3.msra.mxu1 %v2855_v26 }
 0xcf7   : > { %9317 = vmatmul.mubr.msk.f32.vlgmr.msra.gmra.mxu1 %vm961_vm1, %v11171_v45 }
 0xcf8   : > { %9319 = vmatprep.mubr.msk.f32.mxu1 %vm961_vm1, %v11178_v54 }
 0xcfb   : > { %9320 = vmatmul.mubr.msk.f32.gmra.mxu1 %vm961_vm1, %v11185_v56 }
 0xcfc   : > { %9322 = vmatprep.mubr.msk.f32.mxu1 %vm961_vm1, %v11192_v53 }
 0xcff   : > { %9323 = vmatmul.mubr.msk.f32.gmra.mxu1 %vm961_vm1, %v11199_v61 }
 0xd00   : > { %9325 = vmatprep.mubr.msk.f32.mxu1 %vm961_vm1, %v11206_v15 }
 0xd03   : > { %9326 = vmatmul.mubr.msk.f32.gmra.mxu1 %vm961_vm1, %v11213_v57 }
 0xdb7   : > { %v11613_v39 = vpop.f32.mrf.mxu1 }
 0xdb8   : > { %v2969_v45 = vmul.f32 %v11613_v39, %v11613_v39 }
 0xdb9   : > { %v11617_v54 = vpop.f32.mrf.mxu1 }
 0xdba   : > { %v2968_v56 = vmul.f32 %v11617_v54, %v11617_v54  ;;  %2986 = vrot.lane.b32.xlu1 %v2969_v45, %s10269_s29 }
 0xdbb   : > { %v11622_v53 = vpop.f32.mrf.mxu1 }
 0xdbc   : > { %v2971_v61 = vmul.f32 %v11622_v53, %v11622_v53  ;;  %2984 = vrot.lane.b32.xlu0 %v2968_v56, %s10269_s29 }
 0xdbd   : > { %v11627_v15 = vpop.f32.mrf.mxu1 }
 0xdbe   : > { %v2970_v57 = vmul.f32 %v11627_v15, %v11627_v15 }
 0xdbf   : > { %v11631_v41 = vpop.f32.mrf.mxu1 }
 0xdc0   : > { %v2973_v44 = vmul.f32 %v11631_v41, %v11631_v41  ;;  %2990 = vrot.lane.b32.xlu0 %v2971_v61, %s10269_s29  ;;  %2988 = vrot.lane.b32.xlu1 %v2970_v57, %s10269_s29 }
 0xdc1   : > { %v11637_v3 = vpop.f32.mrf.mxu1 }
 0xdc2   : > { %v2972_v17 = vmul.f32 %v11637_v3, %v11637_v3 }
 0xdc3   : > { %v11641_v43 = vpop.f32.mrf.mxu1 }
 0xdc4   : > { %v2975_v24 = vmul.f32 %v11641_v43, %v11641_v43  ;;  %2994 = vrot.lane.b32.xlu0 %v2973_v44, %s10269_s29  ;;  %2992 = vrot.lane.b32.xlu1 %v2972_v17, %s10269_s29 }
 0xdc5   : > { %v11647_v62 = vpop.f32.mrf.mxu1 }
 0xdc6   : > { %v2974_v40 = vmul.f32 %v11647_v62, %v11647_v62 }
 0xdc8   : > { %2998 = vrot.lane.b32.xlu0 %v2975_v24, %s10269_s29  ;;  %2996 = vrot.lane.b32.xlu1 %v2974_v40, %s10269_s29 }
 0xe2c   : > { %v2987_v49 = vpop.permute.xlu1 %2986 }
 0xe2d   : > { %v3009_v30 = vsub.f32 %v11613_v39, %v2987_v49 }
 0xe2e   : > { %v2985_v55 = vpop.permute.xlu0 %2984 }
 0xe2f   : > { %v3017_v25 = vmax.f32 %v3009_v30, 0.0  ;;  %v3008_v35 = vsub.f32 %v11617_v54, %v2985_v55 }
 0xe31   : > { %v3025_v13 = vadd.f32 1e-05, %v3017_v25  ;;  %v3016_v23 = vmax.f32 %v3008_v35, 0.0  ;;  %v9938_v35 = vld [vmem:[%s14082_s5 + $0x48] sm:$0xff] }
 0xe32   : > { %v2991_v8 = vpop.permute.xlu0 %2990  ;;  %v2989_v0 = vpop.permute.xlu1 %2988 }
 0xe33   : > { %9800 = vrsqrt.f32 %v3025_v13  ;;  %v3024_v6 = vadd.f32 1e-05, %v3016_v23  ;;  %v3011_v10 = vsub.f32 %v11622_v53, %v2991_v8  ;;  %v3010_v14 = vsub.f32 %v11627_v15, %v2989_v0  ;;  %v9939_v8 = vld [vmem:[%s14082_s5 + $0x40] sm:$0xff] }
 0xe35   : > { %9802 = vrsqrt.f32 %v3024_v6  ;;  %v3019_v5 = vmax.f32 %v3011_v10, 0.0  ;;  %v3018_v18 = vmax.f32 %v3010_v14, 0.0  ;;  %v9940_v10 = vld [vmem:[%s14082_s5 + $0x58] sm:$0xff] }
 0xe36   : > { %v2995_v1 = vpop.permute.xlu0 %2994  ;;  %v2993_v20 = vpop.permute.xlu1 %2992 }
 0xe37   : > { %v3027_v50 = vadd.f32 1e-05, %v3019_v5  ;;  %v3026_v31 = vadd.f32 1e-05, %v3018_v18  ;;  %v3013_v42 = vsub.f32 %v11631_v41, %v2995_v1  ;;  %v3012_v32 = vsub.f32 %v11637_v3, %v2993_v20  ;;  %v9941_v18 = vld [vmem:[%s14082_s5 + $0x50] sm:$0xff] }
 0xe39   : > { %9804 = vrsqrt.f32 %v3027_v50  ;;  %v3021_v37 = vmax.f32 %v3013_v42, 0.0  ;;  %v3020_v28 = vmax.f32 %v3012_v32, 0.0  ;;  %v9942_v50 = vld [vmem:[%s14082_s5 + $0x68] sm:$0xff]  ;;  %v9943_v32 = vld [vmem:[%s14082_s5 + $0x60] sm:$0xff] }
 0xe3a   : > { %9806 = vrsqrt.f32 %v3026_v31  ;;  %v2999_v12 = vpop.permute.xlu0 %2998  ;;  %v2997_v46 = vpop.permute.xlu1 %2996 }
 0xe3b   : > { %v3029_v59 = vadd.f32 1e-05, %v3021_v37  ;;  %v3028_v47 = vadd.f32 1e-05, %v3020_v28  ;;  %v3015_v7 = vsub.f32 %v11641_v43, %v2999_v12  ;;  %v3014_v21 = vsub.f32 %v11647_v62, %v2997_v46  ;;  %v9944_v12 = vld [vmem:[%s14082_s5 + $0x78] sm:$0xff] }
 0xe3d   : > { %9808 = vrsqrt.f32 %v3029_v59  ;;  %v3023_v26 = vmax.f32 %v3015_v7, 0.0  ;;  %v3022_v45 = vmax.f32 %v3014_v21, 0.0 }
 0xe3e   : > { %9810 = vrsqrt.f32 %v3028_v47  ;;  %v9945_v47 = vld [vmem:[%s14082_s5 + $0x70] sm:$0xff] }
 0xe3f   : > { %v3031_v56 = vadd.f32 1e-05, %v3023_v26  ;;  %v3030_v61 = vadd.f32 1e-05, %v3022_v45 }
 0xe40   : > { %v9801_v57 = vpop.eup %9800 }
 0xe41   : > { %9812 = vrsqrt.f32 %v3031_v56  ;;  %3050 = vrot.lane.b32.xlu0 %v9801_v57, %s10269_s29 }
 0xe42   : > { %v9803_v44 = vpop.eup %9802  ;;  %9814 = vrsqrt.f32 %v3030_v61 }
 0xe43   : > { %3048 = vrot.lane.b32.xlu1 %v9803_v44, %s10269_s29 }
 0xe46   : > { %v9805_v17 = vpop.eup %9804 }
 0xe47   : > { %v9807_v24 = vpop.eup %9806  ;;  %3054 = vrot.lane.b32.xlu0 %v9805_v17, %s10269_s29 }
 0xe48   : > { %3052 = vrot.lane.b32.xlu1 %v9807_v24, %s10269_s29 }
 0xe4a   : > { %v9809_v40 = vpop.eup %9808 }
 0xe4b   : > { %v9811_v49 = vpop.eup %9810  ;;  %3058 = vrot.lane.b32.xlu0 %v9809_v40, %s10269_s29 }
 0xe4c   : > { %3056 = vrot.lane.b32.xlu1 %v9811_v49, %s10269_s29 }
 0xe4e   : > { %v9813_v30 = vpop.eup %9812 }
 0xe4f   : > { %v9815_v55 = vpop.eup %9814  ;;  %3062 = vrot.lane.b32.xlu0 %v9813_v30, %s10269_s29 }
 0xe50   : > { %3060 = vrot.lane.b32.xlu1 %v9815_v55, %s10269_s29  ;;  %v9947_v55 = vld [vmem:[%s14082_s5 + $0x80] sm:$0xff] }
 0xeb3   : > { %v3051_v25 = vpop.permute.xlu0 %3050 }
 0xeb4   : > { %v3073_v13 = vmul.f32 %v9938_v35, %v3051_v25  ;;  %v11728_v35 = vld [vmem:[#allocation7 + $0x8] sm:$0xff] }
 0xeb5   : > { %v3049_v23 = vpop.permute.xlu1 %3048  ;;  %9328 = vmatprep.subr.mxu1 %v11728_v35 }
 0xeb6   : > { %v3072_v0 = vmul.f32 %v9939_v8, %v3049_v23  ;;  %3090 = vrot.lane.b32.xlu0 %v3073_v13, %s14153_s26  ;;  %9329 = vmatpush3.msra.mxu1 %v11728_v35  ;;  %v11732_v23 = vld [vmem:[#allocation7] sm:$0xff]  ;;  %v11737_v8 = vld [vmem:[%s14082_s5 + $0x98] sm:$0xff] }
 0xeb7   : > { %9330 = vmatprep.subr.mxu1 %v11732_v23 }
 0xeb8   : > { %3088 = vrot.lane.b32.xlu1 %v3072_v0, %s14153_s26  ;;  %9331 = vmatpush3.msra.mxu1 %v11732_v23 }
 0xeb9   : > { %v3055_v6 = vpop.permute.xlu0 %3054  ;;  %9344 = vmatprep.subr.mxu1 %v14117_v34 }
 0xeba   : > { %v3075_v14 = vmul.f32 %v9940_v10, %v3055_v6  ;;  %v3053_v5 = vpop.permute.xlu1 %3052  ;;  %v11746_v10 = vld [vmem:[%s14082_s5 + $0x90] sm:$0xff] }
 0xebb   : > { %v3074_v1 = vmul.f32 %v9941_v18, %v3053_v5  ;;  %v11752_v18 = vld [vmem:[%s14082_s5 + $0xa0] sm:$0xff] }
 0xebc   : > { %3094 = vrot.lane.b32.xlu0 %v3075_v14, %s14153_s26 }
 0xebd   : > { %3092 = vrot.lane.b32.xlu1 %v3074_v1, %s14153_s26  ;;  %v3059_v20 = vpop.permute.xlu0 %3058 }
 0xebe   : > { %v3077_v31 = vmul.f32 %v9942_v50, %v3059_v20  ;;  %v3057_v42 = vpop.permute.xlu1 %3056 }
 0xebf   : > { %v3076_v37 = vmul.f32 %v9943_v32, %v3057_v42  ;;  %v11765_v32 = vld [vmem:[%s14082_s5 + $0xa8] sm:$0xff] }
 0xec0   : > { %3098 = vrot.lane.b32.xlu0 %v3077_v31, %s14153_s26 }
 0xec1   : > { %3096 = vrot.lane.b32.xlu1 %v3076_v37, %s14153_s26  ;;  %v3063_v28 = vpop.permute.xlu0 %3062 }
 0xec2   : > { %v11696_v46 = vmul.f32 %v9944_v12, %v3063_v28  ;;  %v3061_v59 = vpop.permute.xlu1 %3060  ;;  %v11771_v12 = vld [vmem:[%s14082_s5 + $0xb8] sm:$0xff] }
 0xec3   : > { %v3078_v7 = vmul.f32 %v9945_v47, %v3061_v59 }
 0xec4   : > { %3102 = vrot.lane.b32.xlu0 %v11696_v46, %s14153_s26 }
 0xec5   : > { %3100 = vrot.lane.b32.xlu1 %v3078_v7, %s14153_s26 }
 0xf28   : > { %v3091_v21 = vpop.permute.xlu0 %3090 }
 0xf29   : > { %v3113_v26 = vmul.f32 %v11613_v39, %v3091_v21 }
 0xf2a   : > { %v3089_v45 = vpop.permute.xlu1 %3088 }
 0xf2b   : > { %v3112_v56 = vmul.f32 %v3089_v45, %v11617_v54  ;;  %3130 = vrot.lane.b32.xlu0 %v3113_v26, %s10279_s10 }
 0xf2d   : > { %3128 = vrot.lane.b32.xlu1 %v3112_v56, %s10279_s10 }
 0xf2e   : > { %v3095_v61 = vpop.permute.xlu0 %3094 }
 0xf2f   : > { %v3115_v57 = vmul.f32 %v11622_v53, %v3095_v61  ;;  %v3093_v44 = vpop.permute.xlu1 %3092 }
 0xf30   : > { %v3114_v17 = vmul.f32 %v3093_v44, %v11627_v15 }
 0xf31   : > { %3134 = vrot.lane.b32.xlu0 %v3115_v57, %s10279_s10 }
 0xf32   : > { %3132 = vrot.lane.b32.xlu1 %v3114_v17, %s10279_s10  ;;  %v3099_v24 = vpop.permute.xlu0 %3098 }
 0xf33   : > { %v3117_v39 = vmul.f32 %v11631_v41, %v3099_v24  ;;  %v3097_v40 = vpop.permute.xlu1 %3096 }
 0xf34   : > { %v3116_v54 = vmul.f32 %v3097_v40, %v11637_v3  ;;  %v9946_v3 = vld [vmem:[%s14082_s5 + $0x88] sm:$0xff] }
 0xf35   : > { %3138 = vrot.lane.b32.xlu0 %v3117_v39, %s10279_s10 }
 0xf36   : > { %3136 = vrot.lane.b32.xlu1 %v3116_v54, %s10279_s10  ;;  %v3103_v49 = vpop.permute.xlu0 %3102 }
 0xf37   : > { %v3119_v53 = vmul.f32 %v11641_v43, %v3103_v49  ;;  %v3101_v30 = vpop.permute.xlu1 %3100 }
 0xf38   : > { %v3118_v15 = vmul.f32 %v3101_v30, %v11647_v62 }
 0xf39   : > { %3142 = vrot.lane.b32.xlu0 %v3119_v53, %s10279_s10 }
 0xf3a   : > { %3140 = vrot.lane.b32.xlu1 %v3118_v15, %s10279_s10 }
 0xf3d   : > { %3165 = vperm.xlu0 %9750, %v3073_v13  }
 0xf3e   : > { %3161 = vperm.xlu1 %9751, %v3072_v0  }
 0xf41   : > { %3173 = vperm.xlu0 %9750, %v3075_v14  }
 0xf42   : > { %3169 = vperm.xlu1 %9751, %v3074_v1  }
 0xf45   : > { %2617 = vrot.lane.b32.xlu0 %v11441_v58, %s14200_s11 }
 0xf46   : > { %3181 = vperm.xlu1 %9751, %v3077_v31   ;;  %v11758_v31 = vld [vmem:[%s14082_s5 + $0xb0] sm:$0xff] }
 0xf49   : > { %3177 = vperm.xlu0 %9750, %v3076_v37  }
 0xf9d   : > { %v3131_v41 = vpop.permute.xlu0 %3130 }
 0xf9e   : > { %v3153_v43 = vsub.f32 %v9946_v3, %v3131_v41 }
 0xf9f   : > { %v3129_v62 = vpop.permute.xlu1 %3128 }
 0xfa0   : > { %v3152_v25 = vsub.f32 %v9947_v55, %v3129_v62  ;;  %3207 = vperm.xlu0 %9750, %v3153_v43  }
 0xfa2   : > { %3202 = vperm.xlu1 %9751, %v3152_v25  }
 0xfa3   : > { %v3135_v13 = vpop.permute.xlu0 %3134 }
 0xfa4   : > { %v3155_v0 = vsub.f32 %v11737_v8, %v3135_v13  ;;  %v3133_v6 = vpop.permute.xlu1 %3132  ;;  %3185 = vperm.xlu0 %9750, %v3078_v7  }
 0xfa5   : > { %v3154_v14 = vsub.f32 %v11746_v10, %v3133_v6 }
 0xfa6   : > { %3217 = vperm.xlu1 %9751, %v3155_v0  }
 0xfa7   : > { %v3139_v20 = vpop.permute.xlu0 %3138 }
 0xfa8   : > { %v3137_v5 = vpop.permute.xlu1 %3136  ;;  %v3157_v37 = vsub.f32 %v11765_v32, %v3139_v20 }
 0xfa9   : > { %v3156_v1 = vsub.f32 %v11752_v18, %v3137_v5 }
 0xfaa   : > { %3212 = vperm.xlu1 %9751, %v3154_v14  }
 0xfab   : > { %3222 = vperm.xlu0 %9750, %v3156_v1   ;;  %v3143_v28 = vpop.permute.xlu0 %3142 }
 0xfac   : > { %v3141_v50 = vpop.permute.xlu1 %3140  ;;  %v3159_v59 = vsub.f32 %v11771_v12, %v3143_v28 }
 0xfad   : > { %v3158_v42 = vsub.f32 %v11758_v31, %v3141_v50 }
 0xfae   : > { %3189 = vperm.xlu1 %9751, %v11696_v46  }
 0xfaf   : > { %3232 = vperm.xlu0 %9750, %v3158_v42  }
 0xfb2   : > { %3227 = vperm.xlu1 %9751, %v3157_v37  }
 0xfb6   : > { %3237 = vperm.xlu1 %9751, %v3159_v59  }
 0xfb8   : > { %v3166_v47 = vpop.permute.xlu0 %3165 }
 0xfb9   : > { %v3162_v7 = vpop.permute.xlu1 %3161  ;;  %v3193_v61 = vmul.f32 %v3166_v47, %v11569_v19 }
 0xfba   : > { %v3192_v17 = vmul.f32 %v3162_v7, %v11576_v11 }
 0xfbc   : > { %v3174_v46 = vpop.permute.xlu0 %3173 }
 0xfbd   : > { %v3170_v26 = vpop.permute.xlu1 %3169 }
 0xfbe   : > { %v3194_v3 = vmul.f32 %v3170_v26, %v11562_v63 }
 0xfc0   : > { %v2618_v21 = vpop.permute.xlu0 %2617 }
 0xfc1   : > { %v3182_v56 = vpop.permute.xlu1 %3181  ;;  %v11776_v57 = vmax.f32 %v11441_v58, %v2618_v21  ;;  %v3195_v58 = vmul.f32 %v3174_v46, %v11555_v16 }
 0xfc3   : > { %v3259_v40 = vrot.slane %v11776_v57, %v10928_v48 }
 0xfc4   : > { %v3178_v45 = vpop.permute.xlu0 %3177 }
 0xfc5   : > { %v3196_v62 = vmul.f32 %v3178_v45, %v11535_v33 }
0x101b   : > { %v3208_v44 = vpop.permute.xlu0 %3207 }
0x101c   : > { %v3241_v24 = vadd.f32 %v3208_v44, %v3193_v61 }
0x101d   : > { %v3203_v39 = vpop.permute.xlu1 %3202 }
0x101e   : > { %v3249_v54 = vmax.f32 %v3241_v24, 0.0  ;;  %v3240_v49 = vadd.f32 %v3203_v39, %v3192_v17 }
0x101f   : > { %v3186_v15 = vpop.permute.xlu0 %3185 }
0x1020   : > { %v3261_v19 = vmul.f32 %v3259_v40, %v3249_v54  ;;  %v3248_v53 = vmax.f32 %v3240_v49, 0.0  ;;  %v3198_v33 = vmul.f32 %v3186_v15, %v11548_v60  ;;  %v3465_v54 = vld [vmem:[#allocation5 + $0x108] sm:$0xff]  ;;  %v10281_v49 = vmov 3   ;;  %v11915_v15 = vld [vmem:[%s14082_s5 + $0x18] sm:$0xff] }
0x1021   : > { %v3218_v30 = vpop.permute.xlu1 %3217  ;;  %8699 = vmatprep.mubr.msk.f32.mxu0 %vm961_vm1, %v3465_v54  ;;  %9752 = vset.pattern.permute.xlu0 %v10281_v49 }
0x1022   : > { %3269 = vst.msk [vmem:[%s11785_s23 + $0x8] sm:$0xff] %vm831_vm0, %v3261_v19  ;;  %v3260_v11 = vmul.f32 %v3259_v40, %v3248_v53  ;;  %v3243_v41 = vadd.f32 %v3218_v30, %v3195_v58  ;;  %9753 = vset.pattern.permute.xlu1 %v10281_v49  ;;  %v11885_v58 = vld [vmem:[%s14082_s5 + $0x38] sm:$0xff]  ;;  %v11897_v53 = vld [vmem:[%s14082_s5 + $0x20] sm:$0xff]  ;;  %v11903_v30 = vld [vmem:[%s14082_s5 + $0x28] sm:$0xff] }
0x1024   : > { %3268 = vst.msk [vmem:[%s11785_s23] sm:$0xff] %vm831_vm0, %v3260_v11  ;;  %v3251_v43 = vmax.f32 %v3243_v41, 0.0  ;;  %9332 = vmatprep.mubr.msk.f32.mxu1 %vm831_vm0, %v3260_v11  ;;  %v11909_v11 = vld [vmem:[%s14082_s5 + $0x10] sm:$0xff]  ;;  %v11921_v41 = vld [vmem:[%s14082_s5] sm:$0xff] }
0x1025   : > { %9333 = vmatmul.mubr.msk.f32.vlgmr.msra.gmra.mxu1 %vm831_vm0, %v3261_v19  ;;  %v3213_v16 = vpop.permute.xlu1 %3212  ;;  %v11891_v19 = vld [vmem:[%s14082_s5 + $0x30] sm:$0xff] }
0x1026   : > { %v3263_v55 = vmul.f32 %v3259_v40, %v3251_v43  ;;  %v3223_v25 = vpop.permute.xlu0 %3222  ;;  %v3242_v13 = vadd.f32 %v3213_v16, %v3194_v3  ;;  %9345 = vmatpush3.msra.mxu1 %v11728_v35  ;;  %v3197_v35 = vmul.f32 %v3182_v56, %v11541_v22  ;;  %v11927_v3 = vld [vmem:[%s14082_s5 + $0x8] sm:$0xff] }
0x1027   : > { %v3244_v0 = vadd.f32 %v3223_v25, %v3196_v62  ;;  %9346 = vmatprep.subr.mxu1 %v14117_v34 }
0x1028   : > { %3271 = vst.msk [vmem:[%s11785_s23 + $0x18] sm:$0xff] %vm831_vm0, %v3263_v55  ;;  %v3250_v63 = vmax.f32 %v3242_v13, 0.0  ;;  %9347 = vmatpush3.msra.mxu1 %v11732_v23 }
0x1029   : > { %v3252_v6 = vmax.f32 %v3244_v0, 0.0  ;;  %v3190_v14 = vpop.permute.xlu1 %3189 }
0x102a   : > { %v3262_v5 = vmul.f32 %v3259_v40, %v3250_v63  ;;  %v3233_v1 = vpop.permute.xlu0 %3232  ;;  %v3199_v28 = vmul.f32 %v3190_v14, %v11557_v29  ;;  %v11827_v29 = vld [vmem:[%s14083_s6] sm:$0xff] }
0x102b   : > { %v3264_v20 = vmul.f32 %v3259_v40, %v3252_v6  ;;  %v3246_v50 = vadd.f32 %v3233_v1, %v3198_v33 }
0x102c   : > { %3270 = vst.msk [vmem:[%s11785_s23 + $0x10] sm:$0xff] %vm831_vm0, %v3262_v5  ;;  %9335 = vmatprep.mubr.msk.f32.mxu1 %vm831_vm0, %v3262_v5 }
0x102d   : > { %3272 = vst.msk [vmem:[%s11785_s23 + $0x20] sm:$0xff] %vm831_vm0, %v3264_v20  ;;  %v3254_v42 = vmax.f32 %v3246_v50, 0.0  ;;  %9336 = vmatmul.mubr.msk.f32.gmra.mxu1 %vm831_vm0, %v3263_v55  ;;  %v3228_v60 = vpop.permute.xlu1 %3227 }
0x102e   : > { %v3245_v23 = vadd.f32 %v3228_v60, %v3197_v35  ;;  %9338 = vmatprep.mubr.msk.f32.mxu1 %vm831_vm0, %v3264_v20  ;;  %v3464_v35 = vld [vmem:[#allocation5 + $0x100] sm:$0xff]  ;;  %v3467_v60 = vld [vmem:[#allocation5 + $0x118] sm:$0xff] }
0x102f   : > { %v3266_v37 = vmul.f32 %v3259_v40, %v3254_v42 }
0x1030   : > { %v3253_v59 = vmax.f32 %v3245_v23, 0.0  ;;  %v3466_v23 = vld [vmem:[#allocation5 + $0x110] sm:$0xff] }
0x1031   : > { %3274 = vst.msk [vmem:[%s11785_s23 + $0x30] sm:$0xff] %vm831_vm0, %v3266_v37  ;;  %v3238_v22 = vpop.permute.xlu1 %3237 }
0x1032   : > { %v3265_v47 = vmul.f32 %v3259_v40, %v3253_v59  ;;  %v3247_v46 = vadd.f32 %v3238_v22, %v3199_v28  ;;  %v3468_v28 = vld [vmem:[#allocation5 + $0x120] sm:$0xff]  ;;  %v3471_v59 = vld [vmem:[#allocation5 + $0x138] sm:$0xff]  ;;  %v3470_v22 = vld [vmem:[#allocation5 + $0x130] sm:$0xff] }
0x1034   : > { %3273 = vst.msk [vmem:[%s11785_s23 + $0x28] sm:$0xff] %vm831_vm0, %v3265_v47  ;;  %v3255_v7 = vmax.f32 %v3247_v46, 0.0  ;;  %9339 = vmatmul.mubr.msk.f32.gmra.mxu1 %vm831_vm0, %v3265_v47  ;;  %v3473_v47 = vld [vmem:[#allocation5 + $0x148] sm:$0xff]  ;;  %v3472_v46 = vld [vmem:[#allocation5 + $0x140] sm:$0xff] }
0x1035   : > { %9341 = vmatprep.mubr.msk.f32.mxu1 %vm831_vm0, %v3266_v37  ;;  %v3469_v37 = vld [vmem:[#allocation5 + $0x128] sm:$0xff] }
0x1036   : > { %v3267_v21 = vmul.f32 %v3259_v40, %v3255_v7  ;;  %v3475_v7 = vld [vmem:[#allocation5 + $0x158] sm:$0xff] }
0x1038   : > { %3275 = vst.msk [vmem:[%s11785_s23 + $0x38] sm:$0xff] %vm831_vm0, %v3267_v21  ;;  %9342 = vmatmul.mubr.msk.f32.gmra.mxu1 %vm831_vm0, %v3267_v21  ;;  %v3474_v21 = vld [vmem:[#allocation5 + $0x150] sm:$0xff]  ;;  %s12235_s23 = scalar_lea.vmem %s14093_s16, %s11368_s28 }
0x1039   : > { %9348 = vmatprep.mubr.msk.f32.mxu1 %vm10275_vm4, %v14117_v34 }
0x103c   : > { %9349 = vmatmul.mubr.msk.f32.vlgmr.msra.gmra.mxu1 %vm831_vm0, %v11776_v57 }
0x103d   : > { %9367 = vmatprep.mubr.msk.f32.mxu1 %vm961_vm1, %v11827_v29 }
0x10e5   : > { %v11831_v26 = vpop.f32.mrf.mxu1 }
0x10e7   : > { %v11833_v45 = vpop.f32.mrf.mxu1 }
0x10ed   : > { %v11835_v56 = vpop.f32.mrf.mxu1 }
0x10ef   : > { %v11837_v61 = vpop.f32.mrf.mxu1 }
0x10f4   : > { %v11839_v44 = vpop.f32.mrf.mxu1 }
0x10f6   : > { %v11841_v17 = vpop.f32.mrf.mxu1 }
0x10f8   : > { %v11843_v57 = vpop.f32.mrf.mxu1 }
0x10f9   : > { %3429 = vrot.lane.b32.xlu0 %v11843_v57, %s14128_s21 }
0x10fa   : > { %v11847_v24 = vpop.f32.mrf.mxu1 }
0x10fb   : > { %3427 = vrot.lane.b32.xlu1 %v11847_v24, %s14128_s21 }
0x10fc   : > { %v11851_v39 = vpop.f32.mrf.mxu1 }
0x10fd   : > { %3425 = vrot.lane.b32.xlu0 %v11839_v44, %s14128_s21 }
0x10fe   : > { %v9350_v40 = vpop.f32.mrf.mxu1 }
0x10ff   : > { %3423 = vrot.lane.b32.xlu1 %v11841_v17, %s14128_s21 }
0x1101   : > { %3421 = vrot.lane.b32.xlu0 %v11835_v56, %s14128_s21 }
0x1103   : > { %3419 = vrot.lane.b32.xlu1 %v11837_v61, %s14128_s21 }
0x1105   : > { %3417 = vrot.lane.b32.xlu0 %v11831_v26, %s14128_s21 }
0x1107   : > { %3415 = vrot.lane.b32.xlu1 %v11833_v45, %s14128_s21 }
0x1109   : > { %3453 = vrot.lane.b32.xlu0 %v11843_v57, %s14200_s11 }
0x110b   : > { %3451 = vrot.lane.b32.xlu1 %v11847_v24, %s14200_s11 }
0x110d   : > { %3449 = vrot.lane.b32.xlu0 %v11839_v44, %s14200_s11 }
0x110f   : > { %3447 = vrot.lane.b32.xlu1 %v11841_v17, %s14200_s11 }
0x1111   : > { %3445 = vrot.lane.b32.xlu0 %v11835_v56, %s14200_s11 }
0x1113   : > { %3443 = vrot.lane.b32.xlu1 %v11837_v61, %s14200_s11 }
0x1115   : > { %3441 = vrot.lane.b32.xlu0 %v11831_v26, %s14200_s11 }
0x1117   : > { %3439 = vrot.lane.b32.xlu1 %v11833_v45, %s14200_s11  ;;  %s10283_s11 = smov 3  }
0x1119   : > { %3587 = vperm.xlu0 %9752, %v11885_v58  }
0x111b   : > { %3583 = vperm.xlu1 %9753, %v11891_v19  }
0x111d   : > { %3575 = vperm.xlu0 %9752, %v11897_v53  }
0x111f   : > { %3579 = vperm.xlu1 %9753, %v11903_v30  }
0x1121   : > { %3567 = vperm.xlu0 %9752, %v11909_v11  }
0x1123   : > { %3571 = vperm.xlu1 %9753, %v11915_v15  }
0x1125   : > { %3559 = vperm.xlu0 %9752, %v11921_v41  }
0x1127   : > { %3563 = vperm.xlu1 %9753, %v11927_v3  }
0x116b   : > { %v3430_v43 = vpop.permute.xlu0 %3429 }
0x116c   : > { %3615 = vmatpush1.msra.mxu0 %v3430_v43 }
0x116d   : > { %3616 = vmatprep.subr.mxu0 %v14117_v34  ;;  %v3428_v62 = vpop.permute.xlu1 %3427 }
0x116e   : > { %3617 = vmatpush1.msra.mxu0 %v3428_v62 }
0x116f   : > { %v3426_v16 = vpop.permute.xlu0 %3425  ;;  %3618 = vmatprep.subr.mxu0 %v14117_v34 }
0x1170   : > { %3619 = vmatpush1.msra.mxu0 %v3426_v16 }
0x1171   : > { %3620 = vmatprep.subr.mxu0 %v14117_v34  ;;  %v3424_v55 = vpop.permute.xlu1 %3423 }
0x1172   : > { %3621 = vmatpush1.msra.mxu0 %v3424_v55 }
0x1173   : > { %v3422_v25 = vpop.permute.xlu0 %3421  ;;  %3622 = vmatprep.subr.mxu0 %v14117_v34 }
0x1174   : > { %3623 = vmatpush1.msra.mxu0 %v3422_v25 }
0x1175   : > { %3624 = vmatprep.subr.mxu0 %v14117_v34  ;;  %v3420_v13 = vpop.permute.xlu1 %3419 }
0x1176   : > { %3625 = vmatpush1.msra.mxu0 %v3420_v13 }
0x1177   : > { %v3418_v0 = vpop.permute.xlu0 %3417  ;;  %3626 = vmatprep.subr.mxu0 %v14117_v34 }
0x1178   : > { %3627 = vmatpush1.msra.mxu0 %v3418_v0 }
0x1179   : > { %3628 = vmatprep.subr.mxu0 %v14117_v34  ;;  %v3416_v63 = vpop.permute.xlu1 %3415 }
0x117a   : > { %3629 = vmatpush1.msra.mxu0 %v3416_v63 }
0x117b   : > { %3630 = vmatprep.subr.mxu0 %v14117_v34  ;;  %v3454_v33 = vpop.permute.xlu0 %3453 }
0x117c   : > { %3631 = vmatpush1.msra.mxu0 %v11843_v57 }
0x117d   : > { %3632 = vmatprep.subr.mxu0 %v14117_v34  ;;  %v3452_v6 = vpop.permute.xlu1 %3451 }
0x117e   : > { %3633 = vmatpush1.msra.mxu0 %v11847_v24 }
0x117f   : > { %3634 = vmatprep.subr.mxu0 %v14117_v34  ;;  %v3450_v14 = vpop.permute.xlu0 %3449 }
0x1180   : > { %3635 = vmatpush1.msra.mxu0 %v11839_v44 }
0x1181   : > { %3636 = vmatprep.subr.mxu0 %v14117_v34  ;;  %v3448_v5 = vpop.permute.xlu1 %3447 }
0x1182   : > { %3637 = vmatpush1.msra.mxu0 %v11841_v17 }
0x1183   : > { %3638 = vmatprep.subr.mxu0 %v14117_v34  ;;  %v3446_v1 = vpop.permute.xlu0 %3445 }
0x1184   : > { %3639 = vmatpush1.msra.mxu0 %v11835_v56  ;;  %v3479_v56 = vld [vmem:[#allocation5 + $0x178] sm:$0xff] }
0x1185   : > { %3640 = vmatprep.subr.mxu0 %v14117_v34  ;;  %v3444_v20 = vpop.permute.xlu1 %3443 }
0x1186   : > { %3641 = vmatpush1.msra.mxu0 %v11837_v61  ;;  %v3478_v61 = vld [vmem:[#allocation5 + $0x170] sm:$0xff] }
0x1187   : > { %3642 = vmatprep.subr.mxu0 %v14117_v34  ;;  %v3442_v50 = vpop.permute.xlu0 %3441 }
0x1188   : > { %3643 = vmatpush1.msra.mxu0 %v11831_v26  ;;  %v3477_v26 = vld [vmem:[#allocation5 + $0x168] sm:$0xff] }
0x1189   : > { %3644 = vmatprep.subr.mxu0 %v14117_v34  ;;  %v3440_v42 = vpop.permute.xlu1 %3439 }
0x118a   : > { %3645 = vmatpush1.msra.mxu0 %v11833_v45  ;;  %v3476_v45 = vld [vmem:[#allocation5 + $0x160] sm:$0xff] }
0x118b   : > { %3662 = vmatprep.subr.mxu0 %v14117_v34 }
0x118c   : > { %3663 = vmatpush2.msra.mxu0 %v3454_v33 }
0x118d   : > { %3664 = vmatprep.subr.mxu0 %v14117_v34 }
0x118e   : > { %3665 = vmatpush2.msra.mxu0 %v3452_v6 }
0x118f   : > { %3666 = vmatprep.subr.mxu0 %v14117_v34 }
0x1190   : > { %3667 = vmatpush2.msra.mxu0 %v3450_v14 }
0x1191   : > { %3668 = vmatprep.subr.mxu0 %v14117_v34 }
0x1192   : > { %3669 = vmatpush2.msra.mxu0 %v3448_v5 }
0x1193   : > { %3670 = vmatprep.subr.mxu0 %v14117_v34 }
0x1194   : > { %3671 = vmatpush2.msra.mxu0 %v3446_v1  ;;  %v3588_v54 = vpop.permute.xlu0 %3587 }
0x1195   : > { %3672 = vmatprep.subr.mxu0 %v14117_v34 }
0x1196   : > { %3673 = vmatpush2.msra.mxu0 %v3444_v20  ;;  %v3584_v62 = vpop.permute.xlu1 %3583 }
0x1197   : > { %3674 = vmatprep.subr.mxu0 %v14117_v34 }
0x1198   : > { %3675 = vmatpush2.msra.mxu0 %v3442_v50  ;;  %v3576_v55 = vpop.permute.xlu0 %3575 }
0x1199   : > { %3676 = vmatprep.subr.mxu0 %v14117_v34 }
0x119a   : > { %3677 = vmatpush2.msra.mxu0 %v3440_v42  ;;  %v3580_v6 = vpop.permute.xlu1 %3579 }
0x119b   : > { %3679 = vmatmul.mubr.f32.vlgmr.msra.gmra.mxu0 %v3464_v35  ;;  %4551 = vmatprep.subr.mxu0 %v14117_v34 }
0x119c   : > { %8700 = vmatprep.mubr.msk.f32.mxu0 %vm961_vm1, %v3467_v60 }
0x119f   : > { %3684 = vmatmul.mubr.f32.gmra.mxu0 %v3466_v23 }
0x11a0   : > { %8701 = vmatprep.mubr.msk.f32.mxu0 %vm961_vm1, %v3469_v37 }
0x11a3   : > { %3689 = vmatmul.mubr.f32.gmra.mxu0 %v3468_v28 }
0x11a4   : > { %8702 = vmatprep.mubr.msk.f32.mxu0 %vm961_vm1, %v3471_v59 }
0x11a7   : > { %3694 = vmatmul.mubr.f32.gmra.mxu0 %v3470_v22  ;;  %v3572_v22 = vpop.permute.xlu1 %3571 }
0x11a8   : > { %8703 = vmatprep.mubr.msk.f32.mxu0 %vm961_vm1, %v3473_v47 }
0x11ab   : > { %3699 = vmatmul.mubr.f32.gmra.mxu0 %v3472_v46 }
0x11ac   : > { %8704 = vmatprep.mubr.msk.f32.mxu0 %vm961_vm1, %v3475_v7 }
0x11af   : > { %3704 = vmatmul.mubr.f32.gmra.mxu0 %v3474_v21 }
0x11b0   : > { %8705 = vmatprep.mubr.msk.f32.mxu0 %vm961_vm1, %v3477_v26 }
0x11b3   : > { %3709 = vmatmul.mubr.f32.gmra.mxu0 %v3476_v45 }
0x11b4   : > { %8706 = vmatprep.mubr.msk.f32.mxu0 %vm961_vm1, %v3479_v56  ;;  %v3568_v56 = vpop.permute.xlu0 %3567 }
0x11b7   : > { %3714 = vmatmul.mubr.f32.gmra.mxu0 %v3478_v61 }
0x125b   : > { %v3680_v44 = vpop.f32.mrf.mxu0 }
0x125d   : > { %v3682_v17 = vpop.f32.mrf.mxu0 }
0x125f   : > { %v3685_v57 = vpop.f32.mrf.mxu0 }
0x1261   : > { %v3687_v24 = vpop.f32.mrf.mxu0 }
0x1263   : > { %v3690_v40 = vpop.f32.mrf.mxu0 }
0x1264   : > { %v11996_v61 = vadd.f32 %v3690_v40, %v3568_v56 }
0x1265   : > { %v3692_v49 = vpop.f32.mrf.mxu0 }
0x1266   : > { %v3755_v40 = vmul.f32 %v11996_v61, %v11996_v61 }
0x1267   : > { %v3695_v43 = vpop.f32.mrf.mxu0 }
0x1268   : > { %v11989_v46 = vadd.f32 %v3695_v43, %v3572_v22 }
0x1269   : > { %v3697_v16 = vpop.f32.mrf.mxu0 }
0x126a   : > { %v3756_v49 = vmul.f32 %v11989_v46, %v11989_v46  ;;  %v3729_v16 = vsel %vm3719_vm5, %v11989_v46, 0.0 }
0x126b   : > { %v3700_v25 = vpop.f32.mrf.mxu0 }
0x126c   : > { %v11969_v13 = vadd.f32 %v3700_v25, %v3576_v55  ;;  %v3560_v55 = vpop.permute.xlu0 %3559 }
0x126d   : > { %v3702_v0 = vpop.f32.mrf.mxu0  ;;  %v12010_v25 = vadd.f32 %v3680_v44, %v3560_v55 }
0x126e   : > { %v3732_v63 = vsel %vm3719_vm5, %v11969_v13, 0.0  ;;  %v3757_v33 = vmul.f32 %v11969_v13, %v11969_v13  ;;  %v3767_v0 = vsel %vm3719_vm5, %v3755_v40, 0.0 }
0x126f   : > { %v3705_v14 = vpop.f32.mrf.mxu0  ;;  %3733 = vadd.xlane.f32.xlu0 %v3732_v63  ;;  %v3726_v63 = vsel %vm3719_vm5, %v11996_v61, 0.0 }
0x1270   : > { %v11975_v5 = vadd.f32 %v3705_v14, %v3580_v6  ;;  %v3773_v1 = vsel %vm3719_vm5, %v3757_v33, 0.0  ;;  %v3753_v14 = vmul.f32 %v12010_v25, %v12010_v25 }
0x1271   : > { %v3707_v20 = vpop.f32.mrf.mxu0  ;;  %3774 = vadd.xlane.f32.xlu1 %v3773_v1  ;;  %v3720_v1 = vsel %vm3719_vm5, %v12010_v25, 0.0 }
0x1272   : > { %v3735_v50 = vsel %vm3719_vm5, %v11975_v5, 0.0  ;;  %v3758_v35 = vmul.f32 %v11975_v5, %v11975_v5  ;;  %v3761_v44 = vsel %vm3719_vm5, %v3753_v14, 0.0 }
0x1273   : > { %v3710_v42 = vpop.f32.mrf.mxu0  ;;  %3736 = vadd.xlane.f32.xlu0 %v3735_v50 }
0x1274   : > { %v11982_v60 = vadd.f32 %v3710_v42, %v3584_v62  ;;  %v3776_v23 = vsel %vm3719_vm5, %v3758_v35, 0.0  ;;  %v3770_v62 = vsel %vm3719_vm5, %v3756_v49, 0.0 }
0x1275   : > { %v3712_v37 = vpop.f32.mrf.mxu0  ;;  %3777 = vadd.xlane.f32.xlu1 %v3776_v23 }
0x1276   : > { %v3738_v28 = vsel %vm3719_vm5, %v11982_v60, 0.0  ;;  %v3759_v59 = vmul.f32 %v11982_v60, %v11982_v60 }
0x1277   : > { %v3715_v47 = vpop.f32.mrf.mxu0  ;;  %3739 = vadd.xlane.f32.xlu0 %v3738_v28 }
0x1278   : > { %v11991_v7 = vadd.f32 %v3715_v47, %v3588_v54  ;;  %v3779_v21 = vsel %vm3719_vm5, %v3759_v59, 0.0  ;;  %v3564_v54 = vpop.permute.xlu1 %3563 }
0x1279   : > { %v3717_v26 = vpop.f32.mrf.mxu0  ;;  %3780 = vadd.xlane.f32.xlu1 %v3779_v21  ;;  %v12003_v43 = vadd.f32 %v3685_v57, %v3564_v54 }
0x127a   : > { %v3760_v45 = vmul.f32 %v11991_v7, %v11991_v7  ;;  %v3741_v17 = vsel %vm3719_vm5, %v11991_v7, 0.0 }
0x127b   : > { %v3754_v57 = vmul.f32 %v12003_v43, %v12003_v43  ;;  %v3723_v6 = vsel %vm3719_vm5, %v12003_v43, 0.0 }
0x127c   : > { %v3782_v24 = vsel %vm3719_vm5, %v3760_v45, 0.0 }
0x127d   : > { %3742 = vadd.xlane.f32.xlu1 %v3741_v17  ;;  %3783 = vadd.xlane.f32.xlu0 %v3782_v24  ;;  %v3764_v33 = vsel %vm3719_vm5, %v3754_v57, 0.0 }
0x1281   : > { %3771 = vadd.xlane.f32.xlu1 %v3770_v62  ;;  %3730 = vadd.xlane.f32.xlu0 %v3729_v16 }
0x1285   : > { %3768 = vadd.xlane.f32.xlu1 %v3767_v0  ;;  %3727 = vadd.xlane.f32.xlu0 %v3726_v63 }
0x1289   : > { %3765 = vadd.xlane.f32.xlu1 %v3764_v33  ;;  %3724 = vadd.xlane.f32.xlu0 %v3723_v6 }
0x128d   : > { %3762 = vadd.xlane.f32.xlu1 %v3761_v44  ;;  %3721 = vadd.xlane.f32.xlu0 %v3720_v1 }
0x12f8   : > { %v3734_v20 = vpop.xlane.xlu0 %3733 }
0x12f9   : > { %v3749_v16 = vmul.f32 0.125, %v3734_v20 }
0x12fa   : > { %v3775_v50 = vpop.xlane.xlu1 %3774 }
0x12fb   : > { %v3789_v49 = vmul.f32 0.125, %v3775_v50 }
0x12fc   : > { %v3737_v35 = vpop.xlane.xlu0 %3736 }
0x12fd   : > { %v3750_v54 = vmul.f32 0.125, %v3737_v35  ;;  %v3797_v14 = vsel %vm1035_vm2, %v3749_v16, %v3789_v49  ;;  %v12078_v49 = vld [vmem:[%s14083_s6 + $0x38] sm:$0xff] }
0x12fe   : > { %v3778_v42 = vpop.xlane.xlu1 %3777 }
0x12ff   : > { %v3790_v26 = vmul.f32 0.125, %v3778_v42 }
0x1300   : > { %v3740_v23 = vpop.xlane.xlu0 %3739 }
0x1301   : > { %v3751_v45 = vmul.f32 0.125, %v3740_v23  ;;  %v3798_v0 = vsel %vm1035_vm2, %v3750_v54, %v3790_v26  ;;  %v12043_v26 = vld [vmem:[%s14083_s6 + $0x10] sm:$0xff] }
0x1302   : > { %v3781_v37 = vpop.xlane.xlu1 %3780 }
0x1303   : > { %v3791_v22 = vmul.f32 0.125, %v3781_v37 }
0x1305   : > { %v3799_v62 = vsel %vm1035_vm2, %v3751_v45, %v3791_v22  ;;  %v12050_v45 = vld [vmem:[%s14083_s6 + $0x18] sm:$0xff] }
0x1306   : > { %v3784_v28 = vpop.xlane.xlu0 %3783  ;;  %v3743_v59 = vpop.xlane.xlu1 %3742 }
0x1307   : > { %v3792_v47 = vmul.f32 0.125, %v3784_v28  ;;  %v3752_v21 = vmul.f32 0.125, %v3743_v59 }
0x1309   : > { %v3800_v56 = vsel %vm1035_vm2, %v3752_v21, %v3792_v47  ;;  %v12036_v21 = vld [vmem:[%s14083_s6 + $0x8] sm:$0xff] }
0x130a   : > { %v3731_v17 = vpop.xlane.xlu0 %3730  ;;  %9351 = vmatprep.subr.mxu1 %v3800_v56  ;;  %v3772_v24 = vpop.xlane.xlu1 %3771 }
0x130b   : > { %9352 = vmatpush3.msra.mxu1 %v3800_v56  ;;  %v3748_v40 = vmul.f32 0.125, %v3731_v17  ;;  %v3788_v55 = vmul.f32 0.125, %v3772_v24  ;;  %v12057_v56 = vld [vmem:[%s14083_s6 + $0x20] sm:$0xff]  ;;  %v12064_v17 = vld [vmem:[%s14083_s6 + $0x28] sm:$0xff]  ;;  %v12071_v24 = vld [vmem:[%s14083_s6 + $0x30] sm:$0xff] }
0x130c   : > { %9353 = vmatprep.subr.mxu1 %v3799_v62 }
0x130d   : > { %9354 = vmatpush3.msra.mxu1 %v3799_v62  ;;  %v3796_v44 = vsel %vm1035_vm2, %v3748_v40, %v3788_v55 }
0x130e   : > { %v3728_v63 = vpop.xlane.xlu0 %3727  ;;  %9355 = vmatprep.subr.mxu1 %v3798_v0  ;;  %v3769_v57 = vpop.xlane.xlu1 %3768 }
0x130f   : > { %v3747_v33 = vmul.f32 0.125, %v3728_v63  ;;  %v3787_v6 = vmul.f32 0.125, %v3769_v57  ;;  %9356 = vmatpush3.msra.mxu1 %v3798_v0 }
0x1310   : > { %9357 = vmatprep.subr.mxu1 %v3797_v14 }
0x1311   : > { %9358 = vmatpush3.msra.mxu1 %v3797_v14  ;;  %v3795_v42 = vsel %vm1035_vm2, %v3747_v33, %v3787_v6 }
0x1312   : > { %v3725_v1 = vpop.xlane.xlu0 %3724  ;;  %9359 = vmatprep.subr.mxu1 %v3796_v44  ;;  %v3766_v20 = vpop.xlane.xlu1 %3765 }
0x1313   : > { %v3746_v50 = vmul.f32 0.125, %v3725_v1  ;;  %v3786_v35 = vmul.f32 0.125, %v3766_v20  ;;  %9360 = vmatpush3.msra.mxu1 %v3796_v44 }
0x1314   : > { %9361 = vmatprep.subr.mxu1 %v3795_v42 }
0x1315   : > { %9362 = vmatpush3.msra.mxu1 %v3795_v42  ;;  %v3794_v23 = vsel %vm1035_vm2, %v3746_v50, %v3786_v35 }
0x1316   : > { %v3722_v37 = vpop.xlane.xlu0 %3721  ;;  %9363 = vmatprep.subr.mxu1 %v3794_v23  ;;  %v3763_v28 = vpop.xlane.xlu1 %3762 }
0x1317   : > { %v3745_v59 = vmul.f32 0.125, %v3722_v37  ;;  %v3785_v22 = vmul.f32 0.125, %v3763_v28  ;;  %9364 = vmatpush3.msra.mxu1 %v3794_v23 }
0x1319   : > { %v3793_v47 = vsel %vm1035_vm2, %v3745_v59, %v3785_v22 }
0x131a   : > { %9365 = vmatprep.subr.mxu1 %v3793_v47 }
0x131b   : > { %9366 = vmatpush3.msra.mxu1 %v3793_v47 }
0x131c   : > { %9368 = vmatmul.mubr.msk.f32.vlgmr.msra.gmra.mxu1 %vm961_vm1, %v12036_v21 }
0x131d   : > { %9370 = vmatprep.mubr.msk.f32.mxu1 %vm961_vm1, %v12043_v26 }
0x1320   : > { %9371 = vmatmul.mubr.msk.f32.gmra.mxu1 %vm961_vm1, %v12050_v45 }
0x1321   : > { %9373 = vmatprep.mubr.msk.f32.mxu1 %vm961_vm1, %v12057_v56 }
0x1324   : > { %9374 = vmatmul.mubr.msk.f32.gmra.mxu1 %vm961_vm1, %v12064_v17 }
0x1325   : > { %9376 = vmatprep.mubr.msk.f32.mxu1 %vm961_vm1, %v12071_v24 }
0x1328   : > { %9377 = vmatmul.mubr.msk.f32.gmra.mxu1 %vm961_vm1, %v12078_v49 }
0x13dc   : > { %v12082_v54 = vpop.f32.mrf.mxu1 }
0x13dd   : > { %v3907_v62 = vmul.f32 %v12082_v54, %v12082_v54 }
0x13de   : > { %v12086_v16 = vpop.f32.mrf.mxu1 }
0x13df   : > { %v3906_v40 = vmul.f32 %v12086_v16, %v12086_v16  ;;  %3924 = vrot.lane.b32.xlu1 %v3907_v62, %s10269_s29 }
0x13e0   : > { %v12091_v55 = vpop.f32.mrf.mxu1 }
0x13e1   : > { %v3909_v0 = vmul.f32 %v12091_v55, %v12091_v55  ;;  %3922 = vrot.lane.b32.xlu0 %v3906_v40, %s10269_s29 }
0x13e2   : > { %v12096_v63 = vpop.f32.mrf.mxu1 }
0x13e3   : > { %v3908_v57 = vmul.f32 %v12096_v63, %v12096_v63 }
0x13e4   : > { %v12100_v33 = vpop.f32.mrf.mxu1 }
0x13e5   : > { %v3911_v6 = vmul.f32 %v12100_v33, %v12100_v33  ;;  %3928 = vrot.lane.b32.xlu0 %v3909_v0, %s10269_s29  ;;  %3926 = vrot.lane.b32.xlu1 %v3908_v57, %s10269_s29 }
0x13e6   : > { %v12106_v14 = vpop.f32.mrf.mxu1 }
0x13e7   : > { %v3910_v44 = vmul.f32 %v12106_v14, %v12106_v14 }
0x13e8   : > { %v12110_v1 = vpop.f32.mrf.mxu1 }
0x13e9   : > { %v3913_v20 = vmul.f32 %v12110_v1, %v12110_v1  ;;  %3932 = vrot.lane.b32.xlu0 %v3911_v6, %s10269_s29  ;;  %3930 = vrot.lane.b32.xlu1 %v3910_v44, %s10269_s29 }
0x13ea   : > { %v12116_v50 = vpop.f32.mrf.mxu1 }
0x13eb   : > { %v3912_v35 = vmul.f32 %v12116_v50, %v12116_v50 }
0x13ed   : > { %3936 = vrot.lane.b32.xlu0 %v3913_v20, %s10269_s29  ;;  %3934 = vrot.lane.b32.xlu1 %v3912_v35, %s10269_s29 }
0x1451   : > { %v3925_v42 = vpop.permute.xlu1 %3924 }
0x1452   : > { %v3947_v23 = vsub.f32 %v12082_v54, %v3925_v42 }
0x1453   : > { %v3923_v37 = vpop.permute.xlu0 %3922 }
0x1454   : > { %v3955_v28 = vmax.f32 %v3947_v23, 0.0  ;;  %v3946_v59 = vsub.f32 %v12086_v16, %v3923_v37 }
0x1456   : > { %v3963_v22 = vadd.f32 1e-05, %v3955_v28  ;;  %v3954_v47 = vmax.f32 %v3946_v59, 0.0 }
0x1457   : > { %v3929_v62 = vpop.permute.xlu0 %3928  ;;  %v3927_v40 = vpop.permute.xlu1 %3926 }
0x1458   : > { %9816 = vrsqrt.f32 %v3963_v22  ;;  %v3962_v0 = vadd.f32 1e-05, %v3954_v47  ;;  %v3949_v57 = vsub.f32 %v12091_v55, %v3929_v62  ;;  %v3948_v6 = vsub.f32 %v12096_v63, %v3927_v40 }
0x145a   : > { %9818 = vrsqrt.f32 %v3962_v0  ;;  %v3957_v44 = vmax.f32 %v3949_v57, 0.0  ;;  %v3956_v20 = vmax.f32 %v3948_v6, 0.0 }
0x145b   : > { %v3933_v35 = vpop.permute.xlu0 %3932  ;;  %v3931_v34 = vpop.permute.xlu1 %3930 }
0x145c   : > { %v3965_v42 = vadd.f32 1e-05, %v3957_v44  ;;  %v3964_v4 = vadd.f32 1e-05, %v3956_v20  ;;  %v3951_v23 = vsub.f32 %v12100_v33, %v3933_v35  ;;  %v3950_v37 = vsub.f32 %v12106_v14, %v3931_v34 }
0x145e   : > { %9820 = vrsqrt.f32 %v3965_v42  ;;  %v3959_v28 = vmax.f32 %v3951_v23, 0.0  ;;  %v3958_v59 = vmax.f32 %v3950_v37, 0.0 }
0x145f   : > { %9822 = vrsqrt.f32 %v3964_v4  ;;  %v3937_v22 = vpop.permute.xlu0 %3936  ;;  %v3935_v47 = vpop.permute.xlu1 %3934 }
0x1460   : > { %v3967_v62 = vadd.f32 1e-05, %v3959_v28  ;;  %v3966_v9 = vadd.f32 1e-05, %v3958_v59  ;;  %v3953_v40 = vsub.f32 %v12110_v1, %v3937_v22  ;;  %v3952_v0 = vsub.f32 %v12116_v50, %v3935_v47  ;;  %v12141_v22 = vld [vmem:[%s14082_s5 + $0x48] sm:$0xff] }
0x1462   : > { %9824 = vrsqrt.f32 %v3967_v62  ;;  %v3961_v57 = vmax.f32 %v3953_v40, 0.0  ;;  %v3960_v6 = vmax.f32 %v3952_v0, 0.0  ;;  %v12147_v40 = vld [vmem:[%s14082_s5 + $0x40] sm:$0xff] }
0x1463   : > { %9826 = vrsqrt.f32 %v3966_v9 }
0x1464   : > { %v3969_v44 = vadd.f32 1e-05, %v3961_v57  ;;  %v3968_v20 = vadd.f32 1e-05, %v3960_v6  ;;  %v12153_v6 = vld [vmem:[%s14082_s5 + $0x58] sm:$0xff] }
0x1465   : > { %v9817_v35 = vpop.eup %9816 }
0x1466   : > { %9828 = vrsqrt.f32 %v3969_v44  ;;  %3988 = vrot.lane.b32.xlu0 %v9817_v35, %s10279_s10  ;;  %v12159_v35 = vld [vmem:[%s14082_s5 + $0x50] sm:$0xff] }
0x1467   : > { %v9819_v34 = vpop.eup %9818  ;;  %9830 = vrsqrt.f32 %v3968_v20 }
0x1468   : > { %3986 = vrot.lane.b32.xlu1 %v9819_v34, %s10279_s10 }
0x146b   : > { %v9821_v4 = vpop.eup %9820 }
0x146c   : > { %v9823_v42 = vpop.eup %9822  ;;  %3992 = vrot.lane.b32.xlu0 %v9821_v4, %s10279_s10 }
0x146d   : > { %3990 = vrot.lane.b32.xlu1 %v9823_v42, %s10279_s10  ;;  %v12165_v42 = vld [vmem:[%s14082_s5 + $0x68] sm:$0xff] }
0x146f   : > { %v9825_v23 = vpop.eup %9824 }
0x1470   : > { %v9827_v37 = vpop.eup %9826  ;;  %3996 = vrot.lane.b32.xlu0 %v9825_v23, %s10279_s10 }
0x1471   : > { %3994 = vrot.lane.b32.xlu1 %v9827_v37, %s10279_s10 }
0x1473   : > { %v9829_v9 = vpop.eup %9828 }
0x1474   : > { %v9831_v28 = vpop.eup %9830  ;;  %4000 = vrot.lane.b32.xlu0 %v9829_v9, %s10279_s10  ;;  %v12171_v9 = vld [vmem:[%s14082_s5 + $0x60] sm:$0xff] }
0x1475   : > { %3998 = vrot.lane.b32.xlu1 %v9831_v28, %s10279_s10 }
0x14d8   : > { %v3989_v59 = vpop.permute.xlu0 %3988 }
0x14d9   : > { %v4011_v47 = vmul.f32 %v12141_v22, %v3989_v59 }
0x14da   : > { %v3987_v62 = vpop.permute.xlu1 %3986 }
0x14db   : > { %v4010_v0 = vmul.f32 %v12147_v40, %v3987_v62  ;;  %4028 = vrot.lane.b32.xlu0 %v4011_v47, %s10282_s25  ;;  %v12177_v62 = vld [vmem:[%s14082_s5 + $0x78] sm:$0xff] }
0x14dd   : > { %4026 = vrot.lane.b32.xlu1 %v4010_v0, %s10282_s25 }
0x14de   : > { %v3993_v57 = vpop.permute.xlu0 %3992 }
0x14df   : > { %v4013_v44 = vmul.f32 %v12153_v6, %v3993_v57  ;;  %v3991_v20 = vpop.permute.xlu1 %3990 }
0x14e0   : > { %v4012_v34 = vmul.f32 %v12159_v35, %v3991_v20 }
0x14e1   : > { %4032 = vrot.lane.b32.xlu0 %v4013_v44, %s10282_s25 }
0x14e2   : > { %4030 = vrot.lane.b32.xlu1 %v4012_v34, %s10282_s25  ;;  %v3997_v4 = vpop.permute.xlu0 %3996 }
0x14e3   : > { %v4015_v23 = vmul.f32 %v12165_v42, %v3997_v4  ;;  %v3995_v37 = vpop.permute.xlu1 %3994  ;;  %v12185_v4 = vld [vmem:[%s14082_s5 + $0x70] sm:$0xff] }
0x14e4   : > { %v4014_v28 = vmul.f32 %v12171_v9, %v3995_v37  ;;  %14201 = vst [vmem:[#allocation33_spill] sm:$0xff] %v12185_v4 }
0x14e5   : > { %4036 = vrot.lane.b32.xlu0 %v4015_v23, %s10282_s25 }
0x14e6   : > { %4034 = vrot.lane.b32.xlu1 %v4014_v28, %s10282_s25  ;;  %v4001_v59 = vpop.permute.xlu0 %4000 }
0x14e7   : > { %v12180_v57 = vmul.f32 %v12177_v62, %v4001_v59  ;;  %v3999_v20 = vpop.permute.xlu1 %3998 }
0x14e8   : > { %v4016_v51 = vmul.f32 %v12185_v4, %v3999_v20 }
0x14e9   : > { %4040 = vrot.lane.b32.xlu0 %v12180_v57, %s10282_s25 }
0x14ea   : > { %4038 = vrot.lane.b32.xlu1 %v4016_v51, %s10282_s25  ;;  %s10284_s25 = smov 124  }
0x154d   : > { %v4029_v37 = vpop.permute.xlu0 %4028 }
0x154e   : > { %v4051_v27 = vmul.f32 %v12082_v54, %v4029_v37 }
0x154f   : > { %v4027_v36 = vpop.permute.xlu1 %4026 }
0x1550   : > { %v4050_v38 = vmul.f32 %v4027_v36, %v12086_v16  ;;  %4068 = vrot.lane.b32.xlu0 %v4051_v27, %s10283_s11 }
0x1552   : > { %4066 = vrot.lane.b32.xlu1 %v4050_v38, %s10283_s11 }
0x1553   : > { %v4033_v59 = vpop.permute.xlu0 %4032 }
0x1554   : > { %v4053_v2 = vmul.f32 %v12091_v55, %v4033_v59  ;;  %v4031_v52 = vpop.permute.xlu1 %4030  ;;  %v12210_v55 = vld [vmem:[%s14082_s5 + $0x88] sm:$0xff] }
0x1555   : > { %v4052_v20 = vmul.f32 %v4031_v52, %v12096_v63 }
0x1556   : > { %4072 = vrot.lane.b32.xlu0 %v4053_v2, %s10283_s11 }
0x1557   : > { %4070 = vrot.lane.b32.xlu1 %v4052_v20, %s10283_s11  ;;  %v4037_v4 = vpop.permute.xlu0 %4036 }
0x1558   : > { %v4055_v54 = vmul.f32 %v12100_v33, %v4037_v4  ;;  %v4035_v37 = vpop.permute.xlu1 %4034 }
0x1559   : > { %v4054_v36 = vmul.f32 %v4035_v37, %v12106_v14  ;;  %v12216_v14 = vld [vmem:[%s14082_s5 + $0x80] sm:$0xff] }
0x155a   : > { %4076 = vrot.lane.b32.xlu0 %v4055_v54, %s10283_s11 }
0x155b   : > { %4074 = vrot.lane.b32.xlu1 %v4054_v36, %s10283_s11  ;;  %v4041_v38 = vpop.permute.xlu0 %4040 }
0x155c   : > { %v4057_v27 = vmul.f32 %v12110_v1, %v4041_v38  ;;  %v4039_v16 = vpop.permute.xlu1 %4038 }
0x155d   : > { %v4056_v52 = vmul.f32 %v4039_v16, %v12116_v50 }
0x155e   : > { %4080 = vrot.lane.b32.xlu0 %v4057_v27, %s10283_s11 }
0x155f   : > { %4078 = vrot.lane.b32.xlu1 %v4056_v52, %s10283_s11 }
0x1562   : > { %4103 = vperm.xlu0 %9752, %v4011_v47   ;;  %v4214_v47 = vld [vmem:[#allocation8] sm:$0xff] }
0x1563   : > { %4099 = vperm.xlu1 %9753, %v4010_v0   ;;  %9379 = vmatprep.subr.mxu1 %v4214_v47 }
0x1564   : > { %9380 = vmatpush3.msra.mxu1 %v4214_v47 }
0x1566   : > { %4111 = vperm.xlu0 %9752, %v4013_v44  }
0x1567   : > { %4107 = vperm.xlu1 %9753, %v4012_v34   ;;  %v14202_v34 = vmov 0.0  }
0x1568   : > { %9393 = vmatprep.subr.mxu1 %v14202_v34 }
0x156a   : > { %3554 = vrot.lane.b32.xlu0 %v11851_v39, %s14128_s21 }
0x156b   : > { %4119 = vperm.xlu1 %9753, %v4015_v23  }
0x156e   : > { %4115 = vperm.xlu0 %9752, %v4014_v28  }
0x15c2   : > { %v4069_v2 = vpop.permute.xlu0 %4068 }
0x15c3   : > { %v4091_v63 = vsub.f32 %v12210_v55, %v4069_v2 }
0x15c4   : > { %v4067_v33 = vpop.permute.xlu1 %4066 }
0x15c5   : > { %v4090_v1 = vsub.f32 %v12216_v14, %v4067_v33  ;;  %4145 = vperm.xlu0 %9752, %v4091_v63  }
0x15c7   : > { %4140 = vperm.xlu1 %9753, %v4090_v1  }
0x15c8   : > { %v4073_v50 = vpop.permute.xlu0 %4072 }
0x15c9   : > { %v4093_v0 = vsub.f32 %v11737_v8, %v4073_v50  ;;  %v4071_v44 = vpop.permute.xlu1 %4070  ;;  %4123 = vperm.xlu0 %9752, %v4016_v51  }
0x15ca   : > { %v4092_v23 = vsub.f32 %v11746_v10, %v4071_v44 }
0x15cb   : > { %4155 = vperm.xlu1 %9753, %v4093_v0  }
0x15cc   : > { %v4077_v59 = vpop.permute.xlu0 %4076 }
0x15cd   : > { %v4075_v28 = vpop.permute.xlu1 %4074  ;;  %v4095_v51 = vsub.f32 %v11765_v32, %v4077_v59 }
0x15ce   : > { %v4094_v4 = vsub.f32 %v11752_v18, %v4075_v28 }
0x15cf   : > { %4150 = vperm.xlu1 %9753, %v4092_v23  }
0x15d0   : > { %4160 = vperm.xlu0 %9752, %v4094_v4   ;;  %v4081_v8 = vpop.permute.xlu0 %4080 }
0x15d1   : > { %v4079_v20 = vpop.permute.xlu1 %4078  ;;  %v4097_v37 = vsub.f32 %v11771_v12, %v4081_v8 }
0x15d2   : > { %v4096_v54 = vsub.f32 %v11758_v31, %v4079_v20 }
0x15d3   : > { %4127 = vperm.xlu1 %9753, %v12180_v57  }
0x15d4   : > { %4170 = vperm.xlu0 %9752, %v4096_v54  }
0x15d7   : > { %4165 = vperm.xlu1 %9753, %v4095_v51  }
0x15db   : > { %4175 = vperm.xlu1 %9753, %v4097_v37  }
0x15dd   : > { %v4104_v10 = vpop.permute.xlu0 %4103 }
0x15de   : > { %v4100_v18 = vpop.permute.xlu1 %4099  ;;  %v4131_v31 = vmul.f32 %v4104_v10, %v12003_v43 }
0x15df   : > { %v4130_v32 = vmul.f32 %v4100_v18, %v12010_v25 }
0x15e1   : > { %v4112_v36 = vpop.permute.xlu0 %4111 }
0x15e2   : > { %v4108_v27 = vpop.permute.xlu1 %4107  ;;  %v4133_v43 = vmul.f32 %v4112_v36, %v11989_v46 }
0x15e3   : > { %v4132_v4 = vmul.f32 %v4108_v27, %v11996_v61 }
0x15e5   : > { %v3555_v38 = vpop.permute.xlu0 %3554 }
0x15e6   : > { %v4120_v52 = vpop.permute.xlu1 %4119  ;;  %v3557_v57 = vmax.f32 %v11851_v39, %v3555_v38 }
0x15e8   : > { %v4197_v12 = vrot.slane %v3557_v57, %v10928_v48 }
0x15e9   : > { %v4116_v16 = vpop.permute.xlu0 %4115 }
0x15ea   : > { %v4134_v20 = vmul.f32 %v4116_v16, %v11969_v13 }
0x1640   : > { %v4146_v2 = vpop.permute.xlu0 %4145 }
0x1641   : > { %v4179_v63 = vadd.f32 %v4146_v2, %v4131_v31  ;;  %v4135_v31 = vmul.f32 %v4120_v52, %v11975_v5 }
0x1642   : > { %v4141_v33 = vpop.permute.xlu1 %4140 }
0x1643   : > { %v4187_v1 = vmax.f32 %v4179_v63, 0.0  ;;  %v4178_v50 = vadd.f32 %v4141_v33, %v4130_v32 }
0x1644   : > { %v4124_v23 = vpop.permute.xlu0 %4123 }
0x1645   : > { %v4199_v0 = vmul.f32 %v4197_v12, %v4187_v1  ;;  %v4186_v39 = vmax.f32 %v4178_v50, 0.0  ;;  %v4136_v10 = vmul.f32 %v4124_v23, %v11982_v60 }
0x1646   : > { %v4156_v44 = vpop.permute.xlu1 %4155 }
0x1647   : > { %4207 = vst.msk [vmem:[%s12235_s23 + $0x8] sm:$0xff] %vm3719_vm5, %v4199_v0  ;;  %v4198_v25 = vmul.f32 %v4197_v12, %v4186_v39  ;;  %v4181_v28 = vadd.f32 %v4156_v44, %v4133_v43 }
0x1649   : > { %4206 = vst.msk [vmem:[%s12235_s23] sm:$0xff] %vm3719_vm5, %v4198_v25  ;;  %v4189_v59 = vmax.f32 %v4181_v28, 0.0  ;;  %9381 = vmatprep.mubr.msk.f32.mxu1 %vm3719_vm5, %v4198_v25 }
0x164a   : > { %9382 = vmatmul.mubr.msk.f32.vlgmr.msra.gmra.mxu1 %vm3719_vm5, %v4199_v0  ;;  %v4151_v46 = vpop.permute.xlu1 %4150 }
0x164b   : > { %v4201_v54 = vmul.f32 %v4197_v12, %v4189_v59  ;;  %v4161_v51 = vpop.permute.xlu0 %4160  ;;  %v4180_v8 = vadd.f32 %v4151_v46, %v4132_v4  ;;  %9394 = vmatpush3.msra.mxu1 %v4214_v47  ;;  %v4402_v4 = vld [vmem:[#allocation5 + $0x188] sm:$0xff]  ;;  %v10285_v59 = vmov 4  }
0x164c   : > { %v4182_v37 = vadd.f32 %v4161_v51, %v4134_v20  ;;  %8724 = vmatprep.mubr.msk.f32.mxu0 %vm961_vm1, %v4402_v4  ;;  %9754 = vset.pattern.permute.xlu0 %v10285_v59 }
0x164d   : > { %4209 = vst.msk [vmem:[%s12235_s23 + $0x18] sm:$0xff] %vm3719_vm5, %v4201_v54  ;;  %v4188_v61 = vmax.f32 %v4180_v8, 0.0  ;;  %9755 = vset.pattern.permute.xlu1 %v10285_v59 }
0x164e   : > { %v4190_v36 = vmax.f32 %v4182_v37, 0.0  ;;  %v4128_v18 = vpop.permute.xlu1 %4127 }
0x164f   : > { %v4200_v38 = vmul.f32 %v4197_v12, %v4188_v61  ;;  %v4171_v13 = vpop.permute.xlu0 %4170  ;;  %v4137_v63 = vmul.f32 %v4128_v18, %v11991_v7  ;;  %v4404_v18 = vld [vmem:[#allocation5 + $0x198] sm:$0xff] }
0x1650   : > { %v4202_v27 = vmul.f32 %v4197_v12, %v4190_v36  ;;  %v4184_v16 = vadd.f32 %v4171_v13, %v4136_v10  ;;  %v4401_v10 = vld [vmem:[#allocation5 + $0x180] sm:$0xff]  ;;  %v4406_v13 = vld [vmem:[#allocation5 + $0x1a8] sm:$0xff] }
0x1651   : > { %4208 = vst.msk [vmem:[%s12235_s23 + $0x10] sm:$0xff] %vm3719_vm5, %v4200_v38  ;;  %9384 = vmatprep.mubr.msk.f32.mxu1 %vm3719_vm5, %v4200_v38  ;;  %v4403_v38 = vld [vmem:[#allocation5 + $0x190] sm:$0xff] }
0x1652   : > { %4210 = vst.msk [vmem:[%s12235_s23 + $0x20] sm:$0xff] %vm3719_vm5, %v4202_v27  ;;  %v4192_v47 = vmax.f32 %v4184_v16, 0.0  ;;  %9385 = vmatmul.mubr.msk.f32.gmra.mxu1 %vm3719_vm5, %v4201_v54  ;;  %v4166_v60 = vpop.permute.xlu1 %4165  ;;  %v4408_v16 = vld [vmem:[#allocation5 + $0x1b8] sm:$0xff] }
0x1653   : > { %v4183_v2 = vadd.f32 %v4166_v60, %v4135_v31  ;;  %9387 = vmatprep.mubr.msk.f32.mxu1 %vm3719_vm5, %v4202_v27  ;;  %v4405_v27 = vld [vmem:[#allocation5 + $0x1a0] sm:$0xff]  ;;  %v4407_v31 = vld [vmem:[#allocation5 + $0x1b0] sm:$0xff] }
0x1654   : > { %v4204_v32 = vmul.f32 %v4197_v12, %v4192_v47  ;;  %v4410_v47 = vld [vmem:[#allocation5 + $0x1c8] sm:$0xff]  ;;  %v4409_v60 = vld [vmem:[#allocation5 + $0x1c0] sm:$0xff] }
0x1655   : > { %v4191_v33 = vmax.f32 %v4183_v2, 0.0  ;;  %v4412_v2 = vld [vmem:[#allocation5 + $0x1d8] sm:$0xff] }
0x1656   : > { %4212 = vst.msk [vmem:[%s12235_s23 + $0x30] sm:$0xff] %vm3719_vm5, %v4204_v32  ;;  %v4176_v5 = vpop.permute.xlu1 %4175 }
0x1657   : > { %v4203_v52 = vmul.f32 %v4197_v12, %v4191_v33  ;;  %v4185_v1 = vadd.f32 %v4176_v5, %v4137_v63  ;;  %v4414_v63 = vld [vmem:[#allocation5 + $0x1e8] sm:$0xff]  ;;  %v4413_v33 = vld [vmem:[#allocation5 + $0x1e0] sm:$0xff]  ;;  %v4416_v5 = vld [vmem:[#allocation5 + $0x1f8] sm:$0xff] }
0x1659   : > { %4211 = vst.msk [vmem:[%s12235_s23 + $0x28] sm:$0xff] %vm3719_vm5, %v4203_v52  ;;  %v4193_v50 = vmax.f32 %v4185_v1, 0.0  ;;  %9388 = vmatmul.mubr.msk.f32.gmra.mxu1 %vm3719_vm5, %v4203_v52  ;;  %v4415_v52 = vld [vmem:[#allocation5 + $0x1f0] sm:$0xff] }
0x165a   : > { %9390 = vmatprep.mubr.msk.f32.mxu1 %vm3719_vm5, %v4204_v32  ;;  %v4411_v32 = vld [vmem:[#allocation5 + $0x1d0] sm:$0xff] }
0x165b   : > { %v4205_v43 = vmul.f32 %v4197_v12, %v4193_v50 }
0x165d   : > { %4213 = vst.msk [vmem:[%s12235_s23 + $0x38] sm:$0xff] %vm3719_vm5, %v4205_v43  ;;  %9391 = vmatmul.mubr.msk.f32.gmra.mxu1 %vm3719_vm5, %v4205_v43  ;;  %s14243_s23 = smov 126  }
0x165e   : > { %9395 = vmatprep.mubr.msk.f32.mxu1 %vm10275_vm4, %v14202_v34 }
0x1661   : > { %9396 = vmatmul.mubr.msk.f32.vlgmr.msra.gmra.mxu1 %vm3719_vm5, %v3557_v57 }
0x1662   : > { %9414 = vmatprep.mubr.msk.f32.mxu1 %vm961_vm1, %v11827_v29 }
0x170a   : > { %v12272_v7 = vpop.f32.mrf.mxu1 }
0x170c   : > { %v12274_v0 = vpop.f32.mrf.mxu1 }
0x1712   : > { %v12276_v39 = vpop.f32.mrf.mxu1 }
0x1714   : > { %v12278_v44 = vpop.f32.mrf.mxu1 }
0x1719   : > { %v12280_v12 = vpop.f32.mrf.mxu1 }
0x171b   : > { %v12282_v25 = vpop.f32.mrf.mxu1 }
0x171d   : > { %v9392_v23 = vpop.f32.mrf.mxu1 }
0x171e   : > { %4366 = vrot.lane.b32.xlu0 %v9392_v23, %s10284_s25 }
0x171f   : > { %v4335_v57 = vpop.f32.mrf.mxu1 }
0x1720   : > { %4364 = vrot.lane.b32.xlu1 %v4335_v57, %s10284_s25 }
0x1721   : > { %v12286_v29 = vpop.f32.mrf.mxu1 }
0x1722   : > { %4362 = vrot.lane.b32.xlu0 %v12280_v12, %s10284_s25 }
0x1723   : > { %v9397_v28 = vpop.f32.mrf.mxu1 }
0x1724   : > { %4360 = vrot.lane.b32.xlu1 %v12282_v25, %s10284_s25 }
0x1726   : > { %4358 = vrot.lane.b32.xlu0 %v12276_v39, %s10284_s25 }
0x1728   : > { %4356 = vrot.lane.b32.xlu1 %v12278_v44, %s10284_s25 }
0x172a   : > { %4354 = vrot.lane.b32.xlu0 %v12272_v7, %s10284_s25 }
0x172c   : > { %4352 = vrot.lane.b32.xlu1 %v12274_v0, %s10284_s25 }
0x172e   : > { %4390 = vrot.lane.b32.xlu0 %v9392_v23, %s14128_s21 }
0x1730   : > { %4388 = vrot.lane.b32.xlu1 %v4335_v57, %s14128_s21 }
0x1732   : > { %4386 = vrot.lane.b32.xlu0 %v12280_v12, %s14128_s21 }
0x1734   : > { %4384 = vrot.lane.b32.xlu1 %v12282_v25, %s14128_s21 }
0x1736   : > { %4382 = vrot.lane.b32.xlu0 %v12276_v39, %s14128_s21 }
0x1738   : > { %4380 = vrot.lane.b32.xlu1 %v12278_v44, %s14128_s21 }
0x173a   : > { %4378 = vrot.lane.b32.xlu0 %v12272_v7, %s14128_s21 }
0x173c   : > { %4376 = vrot.lane.b32.xlu1 %v12274_v0, %s14128_s21  ;;  %s14224_s21 = smov 127  }
0x173e   : > { %4524 = vperm.xlu0 %9754, %v11885_v58  }
0x1740   : > { %4520 = vperm.xlu1 %9755, %v11891_v19  }
0x1742   : > { %4512 = vperm.xlu0 %9754, %v11897_v53  }
0x1744   : > { %4516 = vperm.xlu1 %9755, %v11903_v30  }
0x1746   : > { %4504 = vperm.xlu0 %9754, %v11909_v11  }
0x1748   : > { %4508 = vperm.xlu1 %9755, %v11915_v15  }
0x174a   : > { %4496 = vperm.xlu0 %9754, %v11921_v41  }
0x174c   : > { %4500 = vperm.xlu1 %9755, %v11927_v3  }
0x1790   : > { %v4367_v20 = vpop.permute.xlu0 %4366 }
0x1791   : > { %4552 = vmatpush1.msra.mxu0 %v4367_v20 }
0x1792   : > { %4553 = vmatprep.subr.mxu0 %v14202_v34  ;;  %v4365_v46 = vpop.permute.xlu1 %4364 }
0x1793   : > { %4554 = vmatpush1.msra.mxu0 %v4365_v46 }
0x1794   : > { %v4363_v58 = vpop.permute.xlu0 %4362  ;;  %4555 = vmatprep.subr.mxu0 %v14202_v34 }
0x1795   : > { %4556 = vmatpush1.msra.mxu0 %v4363_v58 }
0x1796   : > { %4557 = vmatprep.subr.mxu0 %v14202_v34  ;;  %v4361_v19 = vpop.permute.xlu1 %4360 }
0x1797   : > { %4558 = vmatpush1.msra.mxu0 %v4361_v19 }
0x1798   : > { %v4359_v53 = vpop.permute.xlu0 %4358  ;;  %4559 = vmatprep.subr.mxu0 %v14202_v34 }
0x1799   : > { %4560 = vmatpush1.msra.mxu0 %v4359_v53 }
0x179a   : > { %4561 = vmatprep.subr.mxu0 %v14202_v34  ;;  %v4357_v30 = vpop.permute.xlu1 %4356 }
0x179b   : > { %4562 = vmatpush1.msra.mxu0 %v4357_v30 }
0x179c   : > { %v4355_v11 = vpop.permute.xlu0 %4354  ;;  %4563 = vmatprep.subr.mxu0 %v14202_v34 }
0x179d   : > { %4564 = vmatpush1.msra.mxu0 %v4355_v11 }
0x179e   : > { %4565 = vmatprep.subr.mxu0 %v14202_v34  ;;  %v4353_v15 = vpop.permute.xlu1 %4352 }
0x179f   : > { %4566 = vmatpush1.msra.mxu0 %v4353_v15 }
0x17a0   : > { %4567 = vmatprep.subr.mxu0 %v14202_v34  ;;  %v4391_v41 = vpop.permute.xlu0 %4390 }
0x17a1   : > { %4568 = vmatpush1.msra.mxu0 %v9392_v23 }
0x17a2   : > { %4569 = vmatprep.subr.mxu0 %v14202_v34  ;;  %v4389_v3 = vpop.permute.xlu1 %4388 }
0x17a3   : > { %4570 = vmatpush1.msra.mxu0 %v4335_v57 }
0x17a4   : > { %4571 = vmatprep.subr.mxu0 %v14202_v34  ;;  %v4387_v54 = vpop.permute.xlu0 %4386 }
0x17a5   : > { %4572 = vmatpush1.msra.mxu0 %v12280_v12 }
0x17a6   : > { %4573 = vmatprep.subr.mxu0 %v14202_v34  ;;  %v4385_v51 = vpop.permute.xlu1 %4384 }
0x17a7   : > { %4574 = vmatpush1.msra.mxu0 %v12282_v25 }
0x17a8   : > { %4575 = vmatprep.subr.mxu0 %v14202_v34  ;;  %v4383_v8 = vpop.permute.xlu0 %4382 }
0x17a9   : > { %4576 = vmatpush1.msra.mxu0 %v12276_v39 }
0x17aa   : > { %4577 = vmatprep.subr.mxu0 %v14202_v34  ;;  %v4381_v37 = vpop.permute.xlu1 %4380 }
0x17ab   : > { %4578 = vmatpush1.msra.mxu0 %v12278_v44 }
0x17ac   : > { %4579 = vmatprep.subr.mxu0 %v14202_v34  ;;  %v4379_v61 = vpop.permute.xlu0 %4378 }
0x17ad   : > { %4580 = vmatpush1.msra.mxu0 %v12272_v7 }
0x17ae   : > { %4581 = vmatprep.subr.mxu0 %v14202_v34  ;;  %v4377_v36 = vpop.permute.xlu1 %4376 }
0x17af   : > { %4582 = vmatpush1.msra.mxu0 %v12274_v0 }
0x17b0   : > { %4599 = vmatprep.subr.mxu0 %v14202_v34 }
0x17b1   : > { %4600 = vmatpush2.msra.mxu0 %v4391_v41 }
0x17b2   : > { %4601 = vmatprep.subr.mxu0 %v14202_v34 }
0x17b3   : > { %4602 = vmatpush2.msra.mxu0 %v4389_v3 }
0x17b4   : > { %4603 = vmatprep.subr.mxu0 %v14202_v34 }
0x17b5   : > { %4604 = vmatpush2.msra.mxu0 %v4387_v54 }
0x17b6   : > { %4605 = vmatprep.subr.mxu0 %v14202_v34 }
0x17b7   : > { %4606 = vmatpush2.msra.mxu0 %v4385_v51 }
0x17b8   : > { %4607 = vmatprep.subr.mxu0 %v14202_v34 }
0x17b9   : > { %4608 = vmatpush2.msra.mxu0 %v4383_v8  ;;  %v4525_v39 = vpop.permute.xlu0 %4524 }
0x17ba   : > { %4609 = vmatprep.subr.mxu0 %v14202_v34 }
0x17bb   : > { %4610 = vmatpush2.msra.mxu0 %v4381_v37  ;;  %v4521_v25 = vpop.permute.xlu1 %4520 }
0x17bc   : > { %4611 = vmatprep.subr.mxu0 %v14202_v34 }
0x17bd   : > { %4612 = vmatpush2.msra.mxu0 %v4379_v61  ;;  %v4513_v57 = vpop.permute.xlu0 %4512 }
0x17be   : > { %4613 = vmatprep.subr.mxu0 %v14202_v34 }
0x17bf   : > { %4614 = vmatpush2.msra.mxu0 %v4377_v36  ;;  %v4517_v58 = vpop.permute.xlu1 %4516 }
0x17c0   : > { %4616 = vmatmul.mubr.f32.vlgmr.msra.gmra.mxu0 %v4401_v10  ;;  %5492 = vmatprep.subr.mxu0 %v14202_v34 }
0x17c1   : > { %8725 = vmatprep.mubr.msk.f32.mxu0 %vm961_vm1, %v4404_v18 }
0x17c3   : > { %v4509_v10 = vpop.permute.xlu1 %4508 }
0x17c4   : > { %4621 = vmatmul.mubr.f32.gmra.mxu0 %v4403_v38 }
0x17c5   : > { %8726 = vmatprep.mubr.msk.f32.mxu0 %vm961_vm1, %v4406_v13 }
0x17c8   : > { %4626 = vmatmul.mubr.f32.gmra.mxu0 %v4405_v27 }
0x17c9   : > { %8727 = vmatprep.mubr.msk.f32.mxu0 %vm961_vm1, %v4408_v16 }
0x17cc   : > { %4631 = vmatmul.mubr.f32.gmra.mxu0 %v4407_v31  ;;  %v4505_v31 = vpop.permute.xlu0 %4504 }
0x17cd   : > { %8728 = vmatprep.mubr.msk.f32.mxu0 %vm961_vm1, %v4410_v47 }
0x17d0   : > { %4636 = vmatmul.mubr.f32.gmra.mxu0 %v4409_v60 }
0x17d1   : > { %8729 = vmatprep.mubr.msk.f32.mxu0 %vm961_vm1, %v4412_v2 }
0x17d4   : > { %4641 = vmatmul.mubr.f32.gmra.mxu0 %v4411_v32 }
0x17d5   : > { %8730 = vmatprep.mubr.msk.f32.mxu0 %vm961_vm1, %v4414_v63  ;;  %v4501_v63 = vpop.permute.xlu1 %4500 }
0x17d8   : > { %4646 = vmatmul.mubr.f32.gmra.mxu0 %v4413_v33 }
0x17d9   : > { %8731 = vmatprep.mubr.msk.f32.mxu0 %vm961_vm1, %v4416_v5 }
0x17dc   : > { %4651 = vmatmul.mubr.f32.gmra.mxu0 %v4415_v52 }
0x1880   : > { %v4617_v1 = vpop.f32.mrf.mxu0 }
0x1882   : > { %v4619_v50 = vpop.f32.mrf.mxu0 }
0x1884   : > { %v4622_v43 = vpop.f32.mrf.mxu0 }
0x1885   : > { %v12394_v33 = vadd.f32 %v4622_v43, %v4501_v63 }
0x1886   : > { %v4624_v7 = vpop.f32.mrf.mxu0 }
0x1887   : > { %v4497_v7 = vpop.permute.xlu0 %4496  ;;  %v4691_v43 = vmul.f32 %v12394_v33, %v12394_v33 }
0x1888   : > { %v4627_v0 = vpop.f32.mrf.mxu0 }
0x1889   : > { %v12387_v47 = vadd.f32 %v4627_v0, %v4505_v31  ;;  %v12401_v0 = vadd.f32 %v4617_v1, %v4497_v7 }
0x188a   : > { %v4629_v44 = vpop.f32.mrf.mxu0 }
0x188b   : > { %v4692_v50 = vmul.f32 %v12387_v47, %v12387_v47  ;;  %v4663_v44 = vsel %vm4656_vm6, %v12387_v47, 0.0 }
0x188c   : > { %v4632_v12 = vpop.f32.mrf.mxu0 }
0x188d   : > { %v12380_v18 = vadd.f32 %v4632_v12, %v4509_v10  ;;  %v4701_v12 = vsel %vm4656_vm6, %v4691_v43, 0.0 }
0x188e   : > { %v4634_v23 = vpop.f32.mrf.mxu0 }
0x188f   : > { %v4693_v32 = vmul.f32 %v12380_v18, %v12380_v18  ;;  %v4666_v52 = vsel %vm4656_vm6, %v12380_v18, 0.0  ;;  %v4690_v23 = vmul.f32 %v12401_v0, %v12401_v0 }
0x1890   : > { %v4637_v28 = vpop.f32.mrf.mxu0 }
0x1891   : > { %v12360_v4 = vadd.f32 %v4637_v28, %v4513_v57  ;;  %v4707_v5 = vsel %vm4656_vm6, %v4693_v32, 0.0  ;;  %v4698_v1 = vsel %vm4656_vm6, %v4690_v23, 0.0  ;;  %v4657_v57 = vsel %vm4656_vm6, %v12401_v0, 0.0 }
0x1892   : > { %v4639_v59 = vpop.f32.mrf.mxu0 }
0x1893   : > { %v4669_v20 = vsel %vm4656_vm6, %v12360_v4, 0.0  ;;  %v4694_v46 = vmul.f32 %v12360_v4, %v12360_v4 }
0x1894   : > { %v4642_v19 = vpop.f32.mrf.mxu0  ;;  %4670 = vadd.xlane.f32.xlu0 %v4669_v20 }
0x1895   : > { %v12366_v53 = vadd.f32 %v4642_v19, %v4517_v58  ;;  %v4710_v30 = vsel %vm4656_vm6, %v4694_v46, 0.0 }
0x1896   : > { %v4644_v11 = vpop.f32.mrf.mxu0  ;;  %4711 = vadd.xlane.f32.xlu1 %v4710_v30 }
0x1897   : > { %v4672_v15 = vsel %vm4656_vm6, %v12366_v53, 0.0  ;;  %v4695_v41 = vmul.f32 %v12366_v53, %v12366_v53 }
0x1898   : > { %v4647_v3 = vpop.f32.mrf.mxu0  ;;  %4673 = vadd.xlane.f32.xlu0 %v4672_v15 }
0x1899   : > { %v12373_v54 = vadd.f32 %v4647_v3, %v4521_v25  ;;  %v4713_v51 = vsel %vm4656_vm6, %v4695_v41, 0.0  ;;  %v4660_v25 = vsel %vm4656_vm6, %v12394_v33, 0.0 }
0x189a   : > { %v4649_v8 = vpop.f32.mrf.mxu0  ;;  %4714 = vadd.xlane.f32.xlu1 %v4713_v51 }
0x189b   : > { %v4675_v37 = vsel %vm4656_vm6, %v12373_v54, 0.0  ;;  %v4696_v61 = vmul.f32 %v12373_v54, %v12373_v54 }
0x189c   : > { %v4652_v36 = vpop.f32.mrf.mxu0  ;;  %4676 = vadd.xlane.f32.xlu0 %v4675_v37 }
0x189d   : > { %v12382_v38 = vadd.f32 %v4652_v36, %v4525_v39  ;;  %v4716_v13 = vsel %vm4656_vm6, %v4696_v61, 0.0  ;;  %v4704_v39 = vsel %vm4656_vm6, %v4692_v50, 0.0 }
0x189e   : > { %v4654_v27 = vpop.f32.mrf.mxu0  ;;  %4717 = vadd.xlane.f32.xlu1 %v4716_v13 }
0x189f   : > { %v4697_v16 = vmul.f32 %v12382_v38, %v12382_v38  ;;  %v4678_v60 = vsel %vm4656_vm6, %v12382_v38, 0.0 }
0x18a1   : > { %v4719_v2 = vsel %vm4656_vm6, %v4697_v16, 0.0 }
0x18a2   : > { %4679 = vadd.xlane.f32.xlu1 %v4678_v60  ;;  %4720 = vadd.xlane.f32.xlu0 %v4719_v2 }
0x18a6   : > { %4708 = vadd.xlane.f32.xlu1 %v4707_v5  ;;  %4667 = vadd.xlane.f32.xlu0 %v4666_v52 }
0x18aa   : > { %4705 = vadd.xlane.f32.xlu1 %v4704_v39  ;;  %4664 = vadd.xlane.f32.xlu0 %v4663_v44 }
0x18ae   : > { %4702 = vadd.xlane.f32.xlu1 %v4701_v12  ;;  %4661 = vadd.xlane.f32.xlu0 %v4660_v25 }
0x18b2   : > { %4699 = vadd.xlane.f32.xlu1 %v4698_v1  ;;  %4658 = vadd.xlane.f32.xlu0 %v4657_v57 }
0x191d   : > { %v4671_v28 = vpop.xlane.xlu0 %4670 }
0x191e   : > { %v4686_v16 = vmul.f32 0.25, %v4671_v28 }
0x191f   : > { %v4712_v59 = vpop.xlane.xlu1 %4711 }
0x1920   : > { %v4726_v36 = vmul.f32 0.25, %v4712_v59 }
0x1921   : > { %v4674_v20 = vpop.xlane.xlu0 %4673 }
0x1922   : > { %v4687_v13 = vmul.f32 0.25, %v4674_v20  ;;  %v4734_v50 = vsel %vm1035_vm2, %v4686_v16, %v4726_v36 }
0x1923   : > { %v4715_v46 = vpop.xlane.xlu1 %4714 }
0x1924   : > { %v4727_v51 = vmul.f32 0.25, %v4715_v46 }
0x1925   : > { %v4677_v58 = vpop.xlane.xlu0 %4676 }
0x1926   : > { %v4688_v8 = vmul.f32 0.25, %v4677_v58  ;;  %v4735_v2 = vsel %vm1035_vm2, %v4687_v13, %v4727_v51 }
0x1927   : > { %v4718_v19 = vpop.xlane.xlu1 %4717 }
0x1928   : > { %v4728_v15 = vmul.f32 0.25, %v4718_v19 }
0x192a   : > { %v4736_v27 = vsel %vm1035_vm2, %v4688_v8, %v4728_v15 }
0x192b   : > { %v4721_v30 = vpop.xlane.xlu0 %4720  ;;  %v4680_v11 = vpop.xlane.xlu1 %4679 }
0x192c   : > { %v4729_v41 = vmul.f32 0.25, %v4721_v30  ;;  %v4689_v3 = vmul.f32 0.25, %v4680_v11 }
0x192e   : > { %v4737_v37 = vsel %vm1035_vm2, %v4689_v3, %v4729_v41 }
0x192f   : > { %v4668_v61 = vpop.xlane.xlu0 %4667  ;;  %9398 = vmatprep.subr.mxu1 %v4737_v37  ;;  %v4709_v10 = vpop.xlane.xlu1 %4708 }
0x1930   : > { %9399 = vmatpush3.msra.mxu1 %v4737_v37  ;;  %v4685_v31 = vmul.f32 0.25, %v4668_v61  ;;  %v4725_v60 = vmul.f32 0.25, %v4709_v10 }
0x1931   : > { %9400 = vmatprep.subr.mxu1 %v4736_v27 }
0x1932   : > { %9401 = vmatpush3.msra.mxu1 %v4736_v27  ;;  %v4733_v7 = vsel %vm1035_vm2, %v4685_v31, %v4725_v60 }
0x1933   : > { %v4665_v32 = vpop.xlane.xlu0 %4664  ;;  %9402 = vmatprep.subr.mxu1 %v4735_v2  ;;  %v4706_v63 = vpop.xlane.xlu1 %4705 }
0x1934   : > { %v4684_v5 = vmul.f32 0.25, %v4665_v32  ;;  %v4724_v52 = vmul.f32 0.25, %v4706_v63  ;;  %9403 = vmatpush3.msra.mxu1 %v4735_v2 }
0x1935   : > { %9404 = vmatprep.subr.mxu1 %v4734_v50 }
0x1936   : > { %9405 = vmatpush3.msra.mxu1 %v4734_v50  ;;  %v4732_v25 = vsel %vm1035_vm2, %v4684_v5, %v4724_v52 }
0x1937   : > { %v4662_v39 = vpop.xlane.xlu0 %4661  ;;  %9406 = vmatprep.subr.mxu1 %v4733_v7  ;;  %v4703_v44 = vpop.xlane.xlu1 %4702 }
0x1938   : > { %v4683_v43 = vmul.f32 0.25, %v4662_v39  ;;  %v4723_v12 = vmul.f32 0.25, %v4703_v44  ;;  %9407 = vmatpush3.msra.mxu1 %v4733_v7 }
0x1939   : > { %9408 = vmatprep.subr.mxu1 %v4732_v25 }
0x193a   : > { %9409 = vmatpush3.msra.mxu1 %v4732_v25  ;;  %v4731_v23 = vsel %vm1035_vm2, %v4683_v43, %v4723_v12 }
0x193b   : > { %v4659_v1 = vpop.xlane.xlu0 %4658  ;;  %9410 = vmatprep.subr.mxu1 %v4731_v23  ;;  %v4700_v57 = vpop.xlane.xlu1 %4699 }
0x193c   : > { %v4682_v28 = vmul.f32 0.25, %v4659_v1  ;;  %v4722_v59 = vmul.f32 0.25, %v4700_v57  ;;  %9411 = vmatpush3.msra.mxu1 %v4731_v23 }
0x193e   : > { %v4730_v20 = vsel %vm1035_vm2, %v4682_v28, %v4722_v59 }
0x193f   : > { %9412 = vmatprep.subr.mxu1 %v4730_v20 }
0x1940   : > { %9413 = vmatpush3.msra.mxu1 %v4730_v20 }
0x1941   : > { %9415 = vmatmul.mubr.msk.f32.vlgmr.msra.gmra.mxu1 %vm961_vm1, %v12036_v21 }
0x1942   : > { %9417 = vmatprep.mubr.msk.f32.mxu1 %vm961_vm1, %v12043_v26 }
0x1945   : > { %9418 = vmatmul.mubr.msk.f32.gmra.mxu1 %vm961_vm1, %v12050_v45 }
0x1946   : > { %9420 = vmatprep.mubr.msk.f32.mxu1 %vm961_vm1, %v12057_v56 }
0x1949   : > { %9421 = vmatmul.mubr.msk.f32.gmra.mxu1 %vm961_vm1, %v12064_v17 }
0x194a   : > { %9423 = vmatprep.mubr.msk.f32.mxu1 %vm961_vm1, %v12071_v24 }
0x194d   : > { %9424 = vmatmul.mubr.msk.f32.gmra.mxu1 %vm961_vm1, %v12078_v49 }
0x1a01   : > { %v12438_v46 = vpop.f32.mrf.mxu1 }
0x1a02   : > { %v4844_v21 = vmul.f32 %v12438_v46, %v12438_v46 }
0x1a03   : > { %v12442_v26 = vpop.f32.mrf.mxu1 }
0x1a04   : > { %v4843_v45 = vmul.f32 %v12442_v26, %v12442_v26  ;;  %4861 = vrot.lane.b32.xlu1 %v4844_v21, %s10269_s29 }
0x1a05   : > { %v12447_v56 = vpop.f32.mrf.mxu1 }
0x1a06   : > { %v4846_v17 = vmul.f32 %v12447_v56, %v12447_v56  ;;  %4859 = vrot.lane.b32.xlu0 %v4843_v45, %s10269_s29 }
0x1a07   : > { %v12452_v24 = vpop.f32.mrf.mxu1 }
0x1a08   : > { %v4845_v49 = vmul.f32 %v12452_v24, %v12452_v24 }
0x1a09   : > { %v12456_v58 = vpop.f32.mrf.mxu1 }
0x1a0a   : > { %v4848_v19 = vmul.f32 %v12456_v58, %v12456_v58  ;;  %4865 = vrot.lane.b32.xlu0 %v4846_v17, %s10269_s29  ;;  %4863 = vrot.lane.b32.xlu1 %v4845_v49, %s10269_s29 }
0x1a0b   : > { %v12462_v30 = vpop.f32.mrf.mxu1 }
0x1a0c   : > { %v4847_v11 = vmul.f32 %v12462_v30, %v12462_v30 }
0x1a0d   : > { %v12466_v15 = vpop.f32.mrf.mxu1 }
0x1a0e   : > { %v4850_v41 = vmul.f32 %v12466_v15, %v12466_v15  ;;  %4869 = vrot.lane.b32.xlu0 %v4848_v19, %s10269_s29  ;;  %4867 = vrot.lane.b32.xlu1 %v4847_v11, %s10269_s29 }
0x1a0f   : > { %v12472_v3 = vpop.f32.mrf.mxu1 }
0x1a10   : > { %v4849_v51 = vmul.f32 %v12472_v3, %v12472_v3 }
0x1a12   : > { %4873 = vrot.lane.b32.xlu0 %v4850_v41, %s10269_s29  ;;  %4871 = vrot.lane.b32.xlu1 %v4849_v51, %s10269_s29 }
0x1a76   : > { %v4862_v8 = vpop.permute.xlu1 %4861 }
0x1a77   : > { %v4884_v37 = vsub.f32 %v12438_v46, %v4862_v8 }
0x1a78   : > { %v4860_v61 = vpop.permute.xlu0 %4859 }
0x1a79   : > { %v4892_v10 = vmax.f32 %v4884_v37, 0.0  ;;  %v4883_v36 = vsub.f32 %v12442_v26, %v4860_v61 }
0x1a7b   : > { %v4900_v13 = vadd.f32 1e-05, %v4892_v10  ;;  %v4891_v27 = vmax.f32 %v4883_v36, 0.0 }
0x1a7c   : > { %v4866_v16 = vpop.permute.xlu0 %4865  ;;  %v4864_v31 = vpop.permute.xlu1 %4863 }
0x1a7d   : > { %9832 = vrsqrt.f32 %v4900_v13  ;;  %v4899_v60 = vadd.f32 1e-05, %v4891_v27  ;;  %v4886_v2 = vsub.f32 %v12447_v56, %v4866_v16  ;;  %v4885_v32 = vsub.f32 %v12452_v24, %v4864_v31 }
0x1a7f   : > { %9834 = vrsqrt.f32 %v4899_v60  ;;  %v4894_v63 = vmax.f32 %v4886_v2, 0.0  ;;  %v4893_v5 = vmax.f32 %v4885_v32, 0.0 }
0x1a80   : > { %v4870_v52 = vpop.permute.xlu0 %4869  ;;  %v4868_v50 = vpop.permute.xlu1 %4867 }
0x1a81   : > { %v4902_v7 = vadd.f32 1e-05, %v4894_v63  ;;  %v4901_v39 = vadd.f32 1e-05, %v4893_v5  ;;  %v4888_v44 = vsub.f32 %v12456_v58, %v4870_v52  ;;  %v4887_v43 = vsub.f32 %v12462_v30, %v4868_v50 }
0x1a83   : > { %9836 = vrsqrt.f32 %v4902_v7  ;;  %v4896_v12 = vmax.f32 %v4888_v44, 0.0  ;;  %v4895_v25 = vmax.f32 %v4887_v43, 0.0 }
0x1a84   : > { %9838 = vrsqrt.f32 %v4901_v39  ;;  %v4874_v23 = vpop.permute.xlu0 %4873  ;;  %v4872_v1 = vpop.permute.xlu1 %4871 }
0x1a85   : > { %v4904_v57 = vadd.f32 1e-05, %v4896_v12  ;;  %v4903_v28 = vadd.f32 1e-05, %v4895_v25  ;;  %v4890_v59 = vsub.f32 %v12466_v15, %v4874_v23  ;;  %v4889_v20 = vsub.f32 %v12472_v3, %v4872_v1 }
0x1a87   : > { %9840 = vrsqrt.f32 %v4904_v57  ;;  %v4898_v21 = vmax.f32 %v4890_v59, 0.0  ;;  %v4897_v45 = vmax.f32 %v4889_v20, 0.0  ;;  %v12536_v20 = vld [vmem:[%s14089_s12] sm:$0xf] }
0x1a88   : > { %9842 = vrsqrt.f32 %v4903_v28  ;;  %9426 = vmatprep.subr.msk.mxu1 %vm5176_vm7, %v12536_v20 }
0x1a89   : > { %v4906_v17 = vadd.f32 1e-05, %v4898_v21  ;;  %v4905_v49 = vadd.f32 1e-05, %v4897_v45  ;;  %v9980_v21 = vld [vmem:[%s14082_s5 + $0x98] sm:$0xff]  ;;  %9427 = vmatpush3.msk.msra.mxu1 %vm5176_vm7, %v12536_v20 }
0x1a8a   : > { %v9833_v19 = vpop.eup %9832  ;;  %9440 = vmatprep.subr.mxu1 %v14202_v34 }
0x1a8b   : > { %9844 = vrsqrt.f32 %v4906_v17  ;;  %4925 = vrot.lane.b32.xlu0 %v9833_v19, %s10283_s11  ;;  %v9982_v19 = vld [vmem:[%s14082_s5 + $0xa0] sm:$0xff] }
0x1a8c   : > { %v9835_v11 = vpop.eup %9834  ;;  %9846 = vrsqrt.f32 %v4905_v49 }
0x1a8d   : > { %4923 = vrot.lane.b32.xlu1 %v9835_v11, %s10283_s11 }
0x1a90   : > { %v9837_v41 = vpop.eup %9836 }
0x1a91   : > { %v9839_v51 = vpop.eup %9838  ;;  %4929 = vrot.lane.b32.xlu0 %v9837_v41, %s10283_s11 }
0x1a92   : > { %4927 = vrot.lane.b32.xlu1 %v9839_v51, %s10283_s11 }
0x1a94   : > { %v9841_v8 = vpop.eup %9840 }
0x1a95   : > { %v9843_v37 = vpop.eup %9842  ;;  %4933 = vrot.lane.b32.xlu0 %v9841_v8, %s10283_s11  ;;  %v9983_v8 = vld [vmem:[%s14082_s5 + $0xb0] sm:$0xff] }
0x1a96   : > { %4931 = vrot.lane.b32.xlu1 %v9843_v37, %s10283_s11 }
0x1a98   : > { %v9845_v61 = vpop.eup %9844 }
0x1a99   : > { %v9847_v10 = vpop.eup %9846  ;;  %4937 = vrot.lane.b32.xlu0 %v9845_v61, %s10283_s11  ;;  %v9984_v61 = vld [vmem:[%s14082_s5 + $0xa8] sm:$0xff] }
0x1a9a   : > { %4935 = vrot.lane.b32.xlu1 %v9847_v10, %s10283_s11  ;;  %s10286_s11 = smov 4  }
0x1afd   : > { %v4926_v36 = vpop.permute.xlu0 %4925 }
0x1afe   : > { %v4948_v13 = vmul.f32 %v12141_v22, %v4926_v36 }
0x1aff   : > { %v4924_v27 = vpop.permute.xlu1 %4923 }
0x1b00   : > { %v4947_v16 = vmul.f32 %v12147_v40, %v4924_v27  ;;  %4965 = vrot.lane.b32.xlu0 %v4948_v13, %s10284_s25 }
0x1b02   : > { %4963 = vrot.lane.b32.xlu1 %v4947_v16, %s10284_s25 }
0x1b03   : > { %v4930_v31 = vpop.permute.xlu0 %4929 }
0x1b04   : > { %v4950_v60 = vmul.f32 %v12153_v6, %v4930_v31  ;;  %v4928_v2 = vpop.permute.xlu1 %4927 }
0x1b05   : > { %v4949_v32 = vmul.f32 %v12159_v35, %v4928_v2  ;;  %v14203_v35 = vld [vmem:[#allocation33_spill] sm:$0xff] }
0x1b06   : > { %4969 = vrot.lane.b32.xlu0 %v4950_v60, %s10284_s25 }
0x1b07   : > { %4967 = vrot.lane.b32.xlu1 %v4949_v32, %s10284_s25  ;;  %v4934_v63 = vpop.permute.xlu0 %4933 }
0x1b08   : > { %v4952_v22 = vmul.f32 %v12165_v42, %v4934_v63  ;;  %v4932_v5 = vpop.permute.xlu1 %4931 }
0x1b09   : > { %v4951_v40 = vmul.f32 %v12171_v9, %v4932_v5 }
0x1b0a   : > { %4973 = vrot.lane.b32.xlu0 %v4952_v22, %s10284_s25 }
0x1b0b   : > { %4971 = vrot.lane.b32.xlu1 %v4951_v40, %s10284_s25  ;;  %v4938_v52 = vpop.permute.xlu0 %4937 }
0x1b0c   : > { %v12507_v6 = vmul.f32 %v12177_v62, %v4938_v52  ;;  %v4936_v50 = vpop.permute.xlu1 %4935 }
0x1b0d   : > { %v4953_v7 = vmul.f32 %v14203_v35, %v4936_v50 }
0x1b0e   : > { %4977 = vrot.lane.b32.xlu0 %v12507_v6, %s10284_s25 }
0x1b0f   : > { %4975 = vrot.lane.b32.xlu1 %v4953_v7, %s10284_s25 }
0x1b72   : > { %v4966_v42 = vpop.permute.xlu0 %4965 }
0x1b73   : > { %v4988_v39 = vmul.f32 %v12438_v46, %v4966_v42 }
0x1b74   : > { %v4964_v9 = vpop.permute.xlu1 %4963 }
0x1b75   : > { %v4987_v44 = vmul.f32 %v4964_v9, %v12442_v26  ;;  %5005 = vrot.lane.b32.xlu0 %v4988_v39, %s10286_s11 }
0x1b77   : > { %5003 = vrot.lane.b32.xlu1 %v4987_v44, %s10286_s11 }
0x1b78   : > { %v4970_v62 = vpop.permute.xlu0 %4969 }
0x1b79   : > { %v4990_v43 = vmul.f32 %v12447_v56, %v4970_v62  ;;  %v4968_v12 = vpop.permute.xlu1 %4967 }
0x1b7a   : > { %v4989_v25 = vmul.f32 %v4968_v12, %v12452_v24 }
0x1b7b   : > { %5009 = vrot.lane.b32.xlu0 %v4990_v43, %s10286_s11 }
0x1b7c   : > { %5007 = vrot.lane.b32.xlu1 %v4989_v25, %s10286_s11  ;;  %v4974_v23 = vpop.permute.xlu0 %4973 }
0x1b7d   : > { %v4992_v46 = vmul.f32 %v12456_v58, %v4974_v23  ;;  %v4972_v1 = vpop.permute.xlu1 %4971 }
0x1b7e   : > { %v4991_v26 = vmul.f32 %v4972_v1, %v12462_v30 }
0x1b7f   : > { %5013 = vrot.lane.b32.xlu0 %v4992_v46, %s10286_s11 }
0x1b80   : > { %5011 = vrot.lane.b32.xlu1 %v4991_v26, %s10286_s11  ;;  %v4978_v57 = vpop.permute.xlu0 %4977 }
0x1b81   : > { %v4994_v56 = vmul.f32 %v12466_v15, %v4978_v57  ;;  %v4976_v28 = vpop.permute.xlu1 %4975 }
0x1b82   : > { %v4993_v24 = vmul.f32 %v4976_v28, %v12472_v3 }
0x1b83   : > { %5017 = vrot.lane.b32.xlu0 %v4994_v56, %s10286_s11 }
0x1b84   : > { %5015 = vrot.lane.b32.xlu1 %v4993_v24, %s10286_s11 }
0x1b87   : > { %5040 = vperm.xlu0 %9754, %v4948_v13   ;;  %v9985_v13 = vld [vmem:[%s14082_s5 + $0xb8] sm:$0xff] }
0x1b88   : > { %5036 = vperm.xlu1 %9755, %v4947_v16  }
0x1b8b   : > { %5048 = vperm.xlu0 %9754, %v4950_v60  }
0x1b8c   : > { %5044 = vperm.xlu1 %9755, %v4949_v32  }
0x1b8f   : > { %4491 = vrot.lane.b32.xlu0 %v12286_v29, %s10284_s25 }
0x1b90   : > { %5056 = vperm.xlu1 %9755, %v4952_v22  }
0x1b93   : > { %5052 = vperm.xlu0 %9754, %v4951_v40  }
0x1be7   : > { %v5006_v58 = vpop.permute.xlu0 %5005 }
0x1be8   : > { %v5028_v30 = vsub.f32 %v12210_v55, %v5006_v58  ;;  %v9981_v55 = vld [vmem:[%s14082_s5 + $0x90] sm:$0xff] }
0x1be9   : > { %v5004_v15 = vpop.permute.xlu1 %5003 }
0x1bea   : > { %v5027_v59 = vsub.f32 %v12216_v14, %v5004_v15  ;;  %5082 = vperm.xlu0 %9754, %v5028_v30  }
0x1bec   : > { %5077 = vperm.xlu1 %9755, %v5027_v59  }
0x1bed   : > { %v5010_v3 = vpop.permute.xlu0 %5009 }
0x1bee   : > { %v5030_v45 = vsub.f32 %v9980_v21, %v5010_v3  ;;  %v5008_v17 = vpop.permute.xlu1 %5007  ;;  %5060 = vperm.xlu0 %9754, %v4953_v7  }
0x1bef   : > { %v5029_v14 = vsub.f32 %v9981_v55, %v5008_v17 }
0x1bf0   : > { %5092 = vperm.xlu1 %9755, %v5030_v45  }
0x1bf1   : > { %v5014_v41 = vpop.permute.xlu0 %5013 }
0x1bf2   : > { %v5012_v49 = vpop.permute.xlu1 %5011  ;;  %v5032_v10 = vsub.f32 %v9984_v61, %v5014_v41 }
0x1bf3   : > { %v5031_v11 = vsub.f32 %v9982_v19, %v5012_v49 }
0x1bf4   : > { %5087 = vperm.xlu1 %9755, %v5029_v14  }
0x1bf5   : > { %5097 = vperm.xlu0 %9754, %v5031_v11   ;;  %v5018_v36 = vpop.permute.xlu0 %5017 }
0x1bf6   : > { %v5016_v51 = vpop.permute.xlu1 %5015  ;;  %v5034_v27 = vsub.f32 %v9985_v13, %v5018_v36 }
0x1bf7   : > { %v5033_v37 = vsub.f32 %v9983_v8, %v5016_v51 }
0x1bf8   : > { %5064 = vperm.xlu1 %9755, %v12507_v6  }
0x1bf9   : > { %5107 = vperm.xlu0 %9754, %v5033_v37  }
0x1bfc   : > { %5102 = vperm.xlu1 %9755, %v5032_v10  }
0x1c00   : > { %5112 = vperm.xlu1 %9755, %v5034_v27  }
0x1c02   : > { %v5041_v16 = vpop.permute.xlu0 %5040 }
0x1c03   : > { %v5037_v60 = vpop.permute.xlu1 %5036  ;;  %v5068_v5 = vmul.f32 %v5041_v16, %v12394_v33  ;;  %v5343_v16 = vld [vmem:[#allocation5 + $0x208] sm:$0xff] }
0x1c04   : > { %v5067_v6 = vmul.f32 %v5037_v60, %v12401_v0  ;;  %8751 = vmatprep.mubr.msk.f32.mxu0 %vm961_vm1, %v5343_v16  ;;  %v12670_v60 = vld [vmem:[%s14082_s5 + $0x38] sm:$0xff] }
0x1c06   : > { %v5049_v31 = vpop.permute.xlu0 %5048 }
0x1c07   : > { %v5045_v32 = vpop.permute.xlu1 %5044  ;;  %v5070_v33 = vmul.f32 %v5049_v31, %v12380_v18  ;;  %v14132_v31 = vmov 5  }
0x1c08   : > { %v5069_v12 = vmul.f32 %v5045_v32, %v12387_v47  ;;  %9756 = vset.pattern.permute.xlu0 %v14132_v31  ;;  %9757 = vset.pattern.permute.xlu1 %v14132_v31  ;;  %v12682_v32 = vld [vmem:[%s14082_s5 + $0x20] sm:$0xff] }
0x1c0a   : > { %v4492_v2 = vpop.permute.xlu0 %4491 }
0x1c0b   : > { %v5057_v22 = vpop.permute.xlu1 %5056  ;;  %v4494_v40 = vmax.f32 %v12286_v29, %v4492_v2  ;;  %v12676_v2 = vld [vmem:[%s14082_s5 + $0x30] sm:$0xff] }
0x1c0c   : > { %v5072_v59 = vmul.f32 %v5057_v22, %v12366_v53  ;;  %v12694_v22 = vld [vmem:[%s14082_s5 + $0x10] sm:$0xff] }
0x1c0d   : > { %v5134_v7 = vrot.slane %v4494_v40, %v10928_v48 }
0x1c0e   : > { %v5053_v63 = vpop.permute.xlu0 %5052 }
0x1c0f   : > { %v5071_v23 = vmul.f32 %v5053_v63, %v12360_v4  ;;  %v12688_v63 = vld [vmem:[%s14082_s5 + $0x28] sm:$0xff] }
0x1c65   : > { %v5083_v52 = vpop.permute.xlu0 %5082 }
0x1c66   : > { %v5116_v50 = vadd.f32 %v5083_v52, %v5068_v5  ;;  %v12700_v5 = vld [vmem:[%s14082_s5 + $0x18] sm:$0xff]  ;;  %v12712_v52 = vld [vmem:[%s14082_s5 + $0x8] sm:$0xff] }
0x1c67   : > { %v5078_v35 = vpop.permute.xlu1 %5077 }
0x1c68   : > { %v5124_v42 = vmax.f32 %v5116_v50, 0.0  ;;  %v5115_v39 = vadd.f32 %v5078_v35, %v5067_v6 }
0x1c69   : > { %v5061_v62 = vpop.permute.xlu0 %5060 }
0x1c6a   : > { %v5136_v9 = vmul.f32 %v5134_v7, %v5124_v42  ;;  %v5123_v29 = vmax.f32 %v5115_v39, 0.0  ;;  %v5073_v56 = vmul.f32 %v5061_v62, %v12373_v54 }
0x1c6b   : > { %v5093_v44 = vpop.permute.xlu1 %5092 }
0x1c6c   : > { %5144 = vst.msk [vmem:[%s12570_s18 + $0x8] sm:$0xff] %vm4656_vm6, %v5136_v9  ;;  %v5135_v0 = vmul.f32 %v5134_v7, %v5123_v29  ;;  %v5118_v43 = vadd.f32 %v5093_v44, %v5070_v33 }
0x1c6e   : > { %5143 = vst.msk [vmem:[%s12570_s18] sm:$0xff] %vm4656_vm6, %v5135_v0  ;;  %v5126_v25 = vmax.f32 %v5118_v43, 0.0  ;;  %9428 = vmatprep.mubr.msk.f32.mxu1 %vm4656_vm6, %v5135_v0 }
0x1c6f   : > { %9429 = vmatmul.mubr.msk.f32.vlgmr.msra.gmra.mxu1 %vm4656_vm6, %v5136_v9  ;;  %v5088_v18 = vpop.permute.xlu1 %5087 }
0x1c70   : > { %v5138_v46 = vmul.f32 %v5134_v7, %v5126_v25  ;;  %v5098_v1 = vpop.permute.xlu0 %5097  ;;  %v5117_v26 = vadd.f32 %v5088_v18, %v5069_v12  ;;  %9441 = vmatpush3.msk.msra.mxu1 %vm5176_vm7, %v12536_v20 }
0x1c71   : > { %v5119_v57 = vadd.f32 %v5098_v1, %v5071_v23  ;;  %v5342_v23 = vld [vmem:[#allocation5 + $0x200] sm:$0xff]  ;;  %v5344_v1 = vld [vmem:[#allocation5 + $0x210] sm:$0xff] }
0x1c72   : > { %5146 = vst.msk [vmem:[%s12570_s18 + $0x18] sm:$0xff] %vm4656_vm6, %v5138_v46  ;;  %v5125_v47 = vmax.f32 %v5117_v26, 0.0  ;;  %v5347_v26 = vld [vmem:[#allocation5 + $0x228] sm:$0xff] }
0x1c73   : > { %v5127_v28 = vmax.f32 %v5119_v57, 0.0  ;;  %v5065_v24 = vpop.permute.xlu1 %5064  ;;  %v5346_v57 = vld [vmem:[#allocation5 + $0x220] sm:$0xff] }
0x1c74   : > { %v5137_v4 = vmul.f32 %v5134_v7, %v5125_v47  ;;  %v5108_v58 = vpop.permute.xlu0 %5107  ;;  %v5074_v45 = vmul.f32 %v5065_v24, %v12382_v38  ;;  %v12610_v38 = vld [vmem:[%s14083_s6] sm:$0xff]  ;;  %v5349_v47 = vld [vmem:[#allocation5 + $0x238] sm:$0xff] }
0x1c75   : > { %v5139_v30 = vmul.f32 %v5134_v7, %v5127_v28  ;;  %v5121_v15 = vadd.f32 %v5108_v58, %v5073_v56  ;;  %v5348_v56 = vld [vmem:[#allocation5 + $0x230] sm:$0xff]  ;;  %v5351_v28 = vld [vmem:[#allocation5 + $0x248] sm:$0xff]  ;;  %v5350_v24 = vld [vmem:[#allocation5 + $0x240] sm:$0xff] }
0x1c76   : > { %5145 = vst.msk [vmem:[%s12570_s18 + $0x10] sm:$0xff] %vm4656_vm6, %v5137_v4  ;;  %9431 = vmatprep.mubr.msk.f32.mxu1 %vm4656_vm6, %v5137_v4  ;;  %v5353_v4 = vld [vmem:[#allocation5 + $0x258] sm:$0xff]  ;;  %v5352_v58 = vld [vmem:[#allocation5 + $0x250] sm:$0xff] }
0x1c77   : > { %5147 = vst.msk [vmem:[%s12570_s18 + $0x20] sm:$0xff] %vm4656_vm6, %v5139_v30  ;;  %v5129_v3 = vmax.f32 %v5121_v15, 0.0  ;;  %9432 = vmatmul.mubr.msk.f32.gmra.mxu1 %vm4656_vm6, %v5138_v46  ;;  %v5103_v54 = vpop.permute.xlu1 %5102  ;;  %v5345_v46 = vld [vmem:[#allocation5 + $0x218] sm:$0xff]  ;;  %v5354_v15 = vld [vmem:[#allocation5 + $0x260] sm:$0xff] }
0x1c78   : > { %v5120_v20 = vadd.f32 %v5103_v54, %v5072_v59  ;;  %9434 = vmatprep.mubr.msk.f32.mxu1 %vm4656_vm6, %v5139_v30  ;;  %v5355_v30 = vld [vmem:[#allocation5 + $0x268] sm:$0xff]  ;;  %v5357_v59 = vld [vmem:[#allocation5 + $0x278] sm:$0xff] }
0x1c79   : > { %v5141_v21 = vmul.f32 %v5134_v7, %v5129_v3  ;;  %v5356_v3 = vld [vmem:[#allocation5 + $0x270] sm:$0xff] }
0x1c7a   : > { %v5128_v17 = vmax.f32 %v5120_v20, 0.0 }
0x1c7b   : > { %5149 = vst.msk [vmem:[%s12570_s18 + $0x30] sm:$0xff] %vm4656_vm6, %v5141_v21  ;;  %v5113_v53 = vpop.permute.xlu1 %5112 }
0x1c7c   : > { %v5140_v55 = vmul.f32 %v5134_v7, %v5128_v17  ;;  %v5122_v14 = vadd.f32 %v5113_v53, %v5074_v45 }
0x1c7e   : > { %5148 = vst.msk [vmem:[%s12570_s18 + $0x28] sm:$0xff] %vm4656_vm6, %v5140_v55  ;;  %v5130_v49 = vmax.f32 %v5122_v14, 0.0  ;;  %9435 = vmatmul.mubr.msk.f32.gmra.mxu1 %vm4656_vm6, %v5140_v55 }
0x1c7f   : > { %9437 = vmatprep.mubr.msk.f32.mxu1 %vm4656_vm6, %v5141_v21 }
0x1c80   : > { %v5142_v19 = vmul.f32 %v5134_v7, %v5130_v49 }
0x1c82   : > { %5150 = vst.msk [vmem:[%s12570_s18 + $0x38] sm:$0xff] %vm4656_vm6, %v5142_v19  ;;  %9438 = vmatmul.mubr.msk.f32.gmra.mxu1 %vm4656_vm6, %v5142_v19  ;;  %s8299_s18 = sshll.u32 %s10941_s20, 4  ;;  %s13941_s18 = int_to_ptr.vmem [resolvable:$true] %s8299_s18 }
0x1c83   : > { %9442 = vmatprep.mubr.msk.f32.mxu1 %vm10275_vm4, %v14202_v34 }
0x1c86   : > { %9443 = vmatmul.mubr.msk.f32.vlgmr.msra.gmra.mxu1 %vm4656_vm6, %v4494_v40  ;;  %v12706_v40 = vld [vmem:[%s14082_s5] sm:$0xff] }
0x1c87   : > { %9461 = vmatprep.mubr.msk.f32.mxu1 %vm961_vm1, %v12610_v38 }
0x1d2f   : > { %v12614_v11 = vpop.f32.mrf.mxu1 }
0x1d31   : > { %v12616_v41 = vpop.f32.mrf.mxu1 }
0x1d37   : > { %v12618_v51 = vpop.f32.mrf.mxu1 }
0x1d39   : > { %v12620_v8 = vpop.f32.mrf.mxu1 }
0x1d3e   : > { %v12622_v37 = vpop.f32.mrf.mxu1 }
0x1d40   : > { %v12624_v61 = vpop.f32.mrf.mxu1 }
0x1d42   : > { %v12626_v10 = vpop.f32.mrf.mxu1 }
0x1d43   : > { %5307 = vrot.lane.b32.xlu0 %v12626_v10, %s14153_s26 }
0x1d44   : > { %v12630_v36 = vpop.f32.mrf.mxu1 }
0x1d45   : > { %5305 = vrot.lane.b32.xlu1 %v12630_v36, %s14153_s26 }
0x1d46   : > { %v12634_v13 = vpop.f32.mrf.mxu1 }
0x1d47   : > { %14204 = vst [vmem:[#allocation33_spill] sm:$0xff] %v12634_v13  ;;  %5303 = vrot.lane.b32.xlu0 %v12622_v37, %s14153_s26 }
0x1d48   : > { %v9444_v27 = vpop.f32.mrf.mxu1 }
0x1d49   : > { %5301 = vrot.lane.b32.xlu1 %v12624_v61, %s14153_s26 }
0x1d4b   : > { %5299 = vrot.lane.b32.xlu0 %v12618_v51, %s14153_s26 }
0x1d4d   : > { %5297 = vrot.lane.b32.xlu1 %v12620_v8, %s14153_s26 }
0x1d4f   : > { %5295 = vrot.lane.b32.xlu0 %v12614_v11, %s14153_s26 }
0x1d51   : > { %5293 = vrot.lane.b32.xlu1 %v12616_v41, %s14153_s26  ;;  %s10156_s26 = scalar_lea.vmem %s13941_s18, 1024 }
0x1d52   : > { %p10157_p0 = scmp.ne.s32.totalorder %s13941_s18, %s10156_s26 }
0x1d53   : > { %5331 = vrot.lane.b32.xlu0 %v12626_v10, %s10284_s25 }
0x1d54   : > { %p10158_p10 = pnand %p10157_p0, %p14247_p5 }
0x1d55   : > { %5329 = vrot.lane.b32.xlu1 %v12630_v36, %s10284_s25 }
0x1d56   : > { %p10159_p1 = pneg %p10158_p10 }
0x1d57   : > { %5327 = vrot.lane.b32.xlu0 %v12622_v37, %s10284_s25 }
0x1d59   : > { %5325 = vrot.lane.b32.xlu1 %v12624_v61, %s10284_s25 }
0x1d5b   : > { %5323 = vrot.lane.b32.xlu0 %v12618_v51, %s10284_s25 }
0x1d5d   : > { %5321 = vrot.lane.b32.xlu1 %v12620_v8, %s10284_s25 }
0x1d5f   : > { %5319 = vrot.lane.b32.xlu0 %v12614_v11, %s10284_s25 }
0x1d61   : > { %5317 = vrot.lane.b32.xlu1 %v12616_v41, %s10284_s25 }
0x1d63   : > { %5465 = vperm.xlu0 %9756, %v12670_v60  }
0x1d65   : > { %5461 = vperm.xlu1 %9757, %v12676_v2  }
0x1d67   : > { %5453 = vperm.xlu0 %9756, %v12682_v32  }
0x1d69   : > { %5457 = vperm.xlu1 %9757, %v12688_v63  }
0x1d6b   : > { %5445 = vperm.xlu0 %9756, %v12694_v22  }
0x1d6d   : > { %5449 = vperm.xlu1 %9757, %v12700_v5  }
0x1d6f   : > { %5437 = vperm.xlu0 %9756, %v12706_v40  }
0x1d71   : > { %5441 = vperm.xlu1 %9757, %v12712_v52  }
0x1db5   : > { %v5308_v6 = vpop.permute.xlu0 %5307 }
0x1db6   : > { %5493 = vmatpush1.msra.mxu0 %v5308_v6 }
0x1db7   : > { %5494 = vmatprep.subr.mxu0 %v14202_v34  ;;  %v5306_v50 = vpop.permute.xlu1 %5305 }
0x1db8   : > { %5495 = vmatpush1.msra.mxu0 %v5306_v50 }
0x1db9   : > { %v5304_v35 = vpop.permute.xlu0 %5303  ;;  %5496 = vmatprep.subr.mxu0 %v14202_v34 }
0x1dba   : > { %5497 = vmatpush1.msra.mxu0 %v5304_v35 }
0x1dbb   : > { %5498 = vmatprep.subr.mxu0 %v14202_v34  ;;  %v5302_v7 = vpop.permute.xlu1 %5301 }
0x1dbc   : > { %5499 = vmatpush1.msra.mxu0 %v5302_v7 }
0x1dbd   : > { %v5300_v42 = vpop.permute.xlu0 %5299  ;;  %5500 = vmatprep.subr.mxu0 %v14202_v34 }
0x1dbe   : > { %5501 = vmatpush1.msra.mxu0 %v5300_v42 }
0x1dbf   : > { %5502 = vmatprep.subr.mxu0 %v14202_v34  ;;  %v5298_v39 = vpop.permute.xlu1 %5297 }
0x1dc0   : > { %5503 = vmatpush1.msra.mxu0 %v5298_v39 }
0x1dc1   : > { %v5296_v33 = vpop.permute.xlu0 %5295  ;;  %5504 = vmatprep.subr.mxu0 %v14202_v34 }
0x1dc2   : > { %5505 = vmatpush1.msra.mxu0 %v5296_v33 }
0x1dc3   : > { %5506 = vmatprep.subr.mxu0 %v14202_v34  ;;  %v5294_v9 = vpop.permute.xlu1 %5293 }
0x1dc4   : > { %5507 = vmatpush1.msra.mxu0 %v5294_v9 }
0x1dc5   : > { %5508 = vmatprep.subr.mxu0 %v14202_v34  ;;  %v5332_v29 = vpop.permute.xlu0 %5331 }
0x1dc6   : > { %5509 = vmatpush1.msra.mxu0 %v12626_v10 }
0x1dc7   : > { %5510 = vmatprep.subr.mxu0 %v14202_v34  ;;  %v5330_v44 = vpop.permute.xlu1 %5329 }
0x1dc8   : > { %5511 = vmatpush1.msra.mxu0 %v12630_v36 }
0x1dc9   : > { %5512 = vmatprep.subr.mxu0 %v14202_v34  ;;  %v5328_v0 = vpop.permute.xlu0 %5327 }
0x1dca   : > { %5513 = vmatpush1.msra.mxu0 %v12622_v37 }
0x1dcb   : > { %5514 = vmatprep.subr.mxu0 %v14202_v34  ;;  %v5326_v62 = vpop.permute.xlu1 %5325 }
0x1dcc   : > { %5515 = vmatpush1.msra.mxu0 %v12624_v61 }
0x1dcd   : > { %5516 = vmatprep.subr.mxu0 %v14202_v34  ;;  %v5324_v43 = vpop.permute.xlu0 %5323 }
0x1dce   : > { %5517 = vmatpush1.msra.mxu0 %v12618_v51 }
0x1dcf   : > { %5518 = vmatprep.subr.mxu0 %v14202_v34  ;;  %v5322_v12 = vpop.permute.xlu1 %5321 }
0x1dd0   : > { %5519 = vmatpush1.msra.mxu0 %v12620_v8 }
0x1dd1   : > { %5520 = vmatprep.subr.mxu0 %v14202_v34  ;;  %v5320_v25 = vpop.permute.xlu0 %5319 }
0x1dd2   : > { %5521 = vmatpush1.msra.mxu0 %v12614_v11 }
0x1dd3   : > { %5522 = vmatprep.subr.mxu0 %v14202_v34  ;;  %v5318_v18 = vpop.permute.xlu1 %5317 }
0x1dd4   : > { %5523 = vmatpush1.msra.mxu0 %v12616_v41 }
0x1dd5   : > { %5540 = vmatprep.subr.mxu0 %v14202_v34 }
0x1dd6   : > { %5541 = vmatpush2.msra.mxu0 %v5332_v29 }
0x1dd7   : > { %5542 = vmatprep.subr.mxu0 %v14202_v34 }
0x1dd8   : > { %5543 = vmatpush2.msra.mxu0 %v5330_v44 }
0x1dd9   : > { %5544 = vmatprep.subr.mxu0 %v14202_v34 }
0x1dda   : > { %5545 = vmatpush2.msra.mxu0 %v5328_v0 }
0x1ddb   : > { %5546 = vmatprep.subr.mxu0 %v14202_v34 }
0x1ddc   : > { %5547 = vmatpush2.msra.mxu0 %v5326_v62 }
0x1ddd   : > { %5548 = vmatprep.subr.mxu0 %v14202_v34 }
0x1dde   : > { %5549 = vmatpush2.msra.mxu0 %v5324_v43  ;;  %v5466_v53 = vpop.permute.xlu0 %5465 }
0x1ddf   : > { %5550 = vmatprep.subr.mxu0 %v14202_v34 }
0x1de0   : > { %5551 = vmatpush2.msra.mxu0 %v5322_v12  ;;  %v5462_v49 = vpop.permute.xlu1 %5461 }
0x1de1   : > { %5552 = vmatprep.subr.mxu0 %v14202_v34 }
0x1de2   : > { %5553 = vmatpush2.msra.mxu0 %v5320_v25  ;;  %v5454_v11 = vpop.permute.xlu0 %5453 }
0x1de3   : > { %5554 = vmatprep.subr.mxu0 %v14202_v34 }
0x1de4   : > { %5555 = vmatpush2.msra.mxu0 %v5318_v18  ;;  %v5458_v10 = vpop.permute.xlu1 %5457 }
0x1de5   : > { %5557 = vmatmul.mubr.f32.vlgmr.msra.gmra.mxu0 %v5342_v23 }
0x1de6   : > { %8752 = vmatprep.mubr.msk.f32.mxu0 %vm961_vm1, %v5345_v46  ;;  %v5446_v18 = vpop.permute.xlu0 %5445 }
0x1de8   : > { %v5450_v44 = vpop.permute.xlu1 %5449 }
0x1de9   : > { %5562 = vmatmul.mubr.f32.gmra.mxu0 %v5344_v1 }
0x1dea   : > { %8753 = vmatprep.mubr.msk.f32.mxu0 %vm961_vm1, %v5347_v26 }
0x1ded   : > { %5567 = vmatmul.mubr.f32.gmra.mxu0 %v5346_v57 }
0x1dee   : > { %8754 = vmatprep.mubr.msk.f32.mxu0 %vm961_vm1, %v5349_v47  ;;  %v5442_v47 = vpop.permute.xlu1 %5441 }
0x1df1   : > { %5572 = vmatmul.mubr.f32.gmra.mxu0 %v5348_v56 }
0x1df2   : > { %8755 = vmatprep.mubr.msk.f32.mxu0 %vm961_vm1, %v5351_v28 }
0x1df5   : > { %5577 = vmatmul.mubr.f32.gmra.mxu0 %v5350_v24 }
0x1df6   : > { %8756 = vmatprep.mubr.msk.f32.mxu0 %vm961_vm1, %v5353_v4 }
0x1df9   : > { %5582 = vmatmul.mubr.f32.gmra.mxu0 %v5352_v58  ;;  %v5438_v58 = vpop.permute.xlu0 %5437 }
0x1dfa   : > { %8757 = vmatprep.mubr.msk.f32.mxu0 %vm961_vm1, %v5355_v30 }
0x1dfd   : > { %5587 = vmatmul.mubr.f32.gmra.mxu0 %v5354_v15 }
0x1dfe   : > { %8758 = vmatprep.mubr.msk.f32.mxu0 %vm961_vm1, %v5357_v59 }
0x1e01   : > { %5592 = vmatmul.mubr.f32.gmra.mxu0 %v5356_v3 }
0x1e02   : > { %9517 = vmatprep.mubr.msk.f32.mxu0 %vm961_vm1, %v12610_v38 }
0x1ea5   : > { %v5558_v54 = vpop.f32.mrf.mxu0 }
0x1ea6   : > { %v12796_v30 = vadd.f32 %v5558_v54, %v5438_v58 }
0x1ea7   : > { %v5560_v20 = vpop.f32.mrf.mxu0 }
0x1ea8   : > { %14212 = vst [vmem:[#allocation41_spill] sm:$0xff] %v12796_v30 }
0x1ea9   : > { %v5563_v21 = vpop.f32.mrf.mxu0 }
0x1eaa   : > { %v12789_v56 = vadd.f32 %v5563_v21, %v5442_v47 }
0x1eab   : > { %v5565_v45 = vpop.f32.mrf.mxu0 }
0x1eac   : > { %14211 = vst [vmem:[#allocation40_spill] sm:$0xff] %v12789_v56  ;;  %v5632_v3 = vmul.f32 %v12789_v56, %v12789_v56  ;;  %v5601_v21 = vsel %vm5597_vm8, %v12789_v56, 0.0  ;;  %v5631_v45 = vmul.f32 %v12796_v30, %v12796_v30 }
0x1ead   : > { %v5568_v17 = vpop.f32.mrf.mxu0 }
0x1eae   : > { %v12782_v46 = vadd.f32 %v5568_v17, %v5446_v18  ;;  %v5642_v20 = vsel %vm5597_vm8, %v5632_v3, 0.0  ;;  %v5639_v54 = vsel %vm5597_vm8, %v5631_v45, 0.0  ;;  %v5598_v17 = vsel %vm5597_vm8, %v12796_v30, 0.0  ;;  %v6099_v45 = vld [vmem:[%s14084_s7 + $0x38] sm:$0xff] }
0x1eaf   : > { %v5570_v55 = vpop.f32.mrf.mxu0 }
0x1eb0   : > { %14210 = vst [vmem:[#allocation39_spill] sm:$0xff] %v12782_v46  ;;  %v5633_v4 = vmul.f32 %v12782_v46, %v12782_v46  ;;  %v5604_v59 = vsel %vm5597_vm8, %v12782_v46, 0.0 }
0x1eb1   : > { %v5573_v14 = vpop.f32.mrf.mxu0 }
0x1eb2   : > { %v12775_v62 = vadd.f32 %v5573_v14, %v5450_v44  ;;  %v5645_v15 = vsel %vm5597_vm8, %v5633_v4, 0.0 }
0x1eb3   : > { %v5575_v19 = vpop.f32.mrf.mxu0 }
0x1eb4   : > { %14208 = vst [vmem:[#allocation37_spill] sm:$0xff] %v12775_v62  ;;  %v5634_v57 = vmul.f32 %v12775_v62, %v12775_v62  ;;  %v5607_v24 = vsel %vm5597_vm8, %v12775_v62, 0.0 }
0x1eb5   : > { %v5578_v41 = vpop.f32.mrf.mxu0 }
0x1eb6   : > { %v12755_v51 = vadd.f32 %v5578_v41, %v5454_v11  ;;  %v5648_v28 = vsel %vm5597_vm8, %v5634_v57, 0.0 }
0x1eb7   : > { %v5580_v8 = vpop.f32.mrf.mxu0 }
0x1eb8   : > { %14205 = vst [vmem:[#allocation34_spill] sm:$0xff] %v12755_v51  ;;  %v5610_v37 = vsel %vm5597_vm8, %v12755_v51, 0.0  ;;  %v5635_v61 = vmul.f32 %v12755_v51, %v12755_v51 }
0x1eb9   : > { %v5583_v36 = vpop.f32.mrf.mxu0  ;;  %5611 = vadd.xlane.f32.xlu0 %v5610_v37 }
0x1eba   : > { %v12761_v27 = vadd.f32 %v5583_v36, %v5458_v10  ;;  %v5651_v16 = vsel %vm5597_vm8, %v5635_v61, 0.0 }
0x1ebb   : > { %v5585_v6 = vpop.f32.mrf.mxu0  ;;  %5652 = vadd.xlane.f32.xlu1 %v5651_v16 }
0x1ebc   : > { %14206 = vst [vmem:[#allocation35_spill] sm:$0xff] %v12761_v27  ;;  %v5613_v50 = vsel %vm5597_vm8, %v12761_v27, 0.0  ;;  %v5636_v35 = vmul.f32 %v12761_v27, %v12761_v27 }
0x1ebd   : > { %v5588_v7 = vpop.f32.mrf.mxu0  ;;  %5614 = vadd.xlane.f32.xlu0 %v5613_v50 }
0x1ebe   : > { %v12768_v42 = vadd.f32 %v5588_v7, %v5462_v49  ;;  %v5654_v39 = vsel %vm5597_vm8, %v5636_v35, 0.0 }
0x1ebf   : > { %v5590_v33 = vpop.f32.mrf.mxu0  ;;  %5655 = vadd.xlane.f32.xlu1 %v5654_v39 }
0x1ec0   : > { %14207 = vst [vmem:[#allocation36_spill] sm:$0xff] %v12768_v42  ;;  %v5616_v9 = vsel %vm5597_vm8, %v12768_v42, 0.0  ;;  %v5637_v29 = vmul.f32 %v12768_v42, %v12768_v42 }
0x1ec1   : > { %v5593_v0 = vpop.f32.mrf.mxu0  ;;  %5617 = vadd.xlane.f32.xlu0 %v5616_v9 }
0x1ec2   : > { %v12777_v43 = vadd.f32 %v5593_v0, %v5466_v53  ;;  %v5657_v12 = vsel %vm5597_vm8, %v5637_v29, 0.0 }
0x1ec3   : > { %v5595_v25 = vpop.f32.mrf.mxu0  ;;  %5658 = vadd.xlane.f32.xlu1 %v5657_v12 }
0x1ec4   : > { %14209 = vst [vmem:[#allocation38_spill] sm:$0xff] %v12777_v43  ;;  %v5638_v23 = vmul.f32 %v12777_v43, %v12777_v43  ;;  %v5619_v1 = vsel %vm5597_vm8, %v12777_v43, 0.0 }
0x1ec6   : > { %v5660_v26 = vsel %vm5597_vm8, %v5638_v23, 0.0 }
0x1ec7   : > { %5620 = vadd.xlane.f32.xlu1 %v5619_v1  ;;  %5661 = vadd.xlane.f32.xlu0 %v5660_v26 }
0x1ecb   : > { %5649 = vadd.xlane.f32.xlu1 %v5648_v28  ;;  %5608 = vadd.xlane.f32.xlu0 %v5607_v24 }
0x1ecf   : > { %5646 = vadd.xlane.f32.xlu1 %v5645_v15  ;;  %5605 = vadd.xlane.f32.xlu0 %v5604_v59 }
0x1ed3   : > { %5643 = vadd.xlane.f32.xlu1 %v5642_v20  ;;  %5602 = vadd.xlane.f32.xlu0 %v5601_v21 }
0x1ed7   : > { %5640 = vadd.xlane.f32.xlu1 %v5639_v54  ;;  %5599 = vadd.xlane.f32.xlu0 %v5598_v17  ;;  %v6098_v54 = vld [vmem:[%s14084_s7 + $0x30] sm:$0xff]  ;;  %v12828_v17 = vld [vmem:[%s14083_s6 + $0x8] sm:$0xff] }
0x1f42   : > { %v5612_v53 = vpop.xlane.xlu0 %5611 }
0x1f43   : > { %v5627_v9 = vmul.f32 0.5, %v5612_v53  ;;  %v12835_v53 = vld [vmem:[%s14083_s6 + $0x10] sm:$0xff] }
0x1f44   : > { %v5653_v55 = vpop.xlane.xlu1 %5652 }
0x1f45   : > { %v5667_v7 = vmul.f32 0.5, %v5653_v55  ;;  %v6097_v55 = vld [vmem:[%s14084_s7 + $0x28] sm:$0xff] }
0x1f46   : > { %v5615_v14 = vpop.xlane.xlu0 %5614 }
0x1f47   : > { %v5628_v39 = vmul.f32 0.5, %v5615_v14  ;;  %v5675_v1 = vsel %vm1035_vm2, %v5627_v9, %v5667_v7  ;;  %v6096_v14 = vld [vmem:[%s14084_s7 + $0x20] sm:$0xff]  ;;  %v14217_v7 = vld [vmem:[#allocation30_spill] sm:$0xff]  ;;  %v14220_v9 = vld [vmem:[#allocation31_spill] sm:$0xff] }
0x1f48   : > { %v5656_v49 = vpop.xlane.xlu1 %5655 }
0x1f49   : > { %v5668_v36 = vmul.f32 0.5, %v5656_v49  ;;  %v12848_v49 = vld [vmem:[%s14083_s6 + $0x18] sm:$0xff] }
0x1f4a   : > { %v5618_v19 = vpop.xlane.xlu0 %5617 }
0x1f4b   : > { %v5629_v16 = vmul.f32 0.5, %v5618_v19  ;;  %v5676_v0 = vsel %vm1035_vm2, %v5628_v39, %v5668_v36  ;;  %v12855_v19 = vld [vmem:[%s14083_s6 + $0x20] sm:$0xff]  ;;  %v12888_v36 = vld [vmem:[%s14083_s6 + $0x38] sm:$0xff] }
0x1f4c   : > { %v5659_v11 = vpop.xlane.xlu1 %5658  ;;  %v14218_v39 = vld [vmem:[#allocation29_spill] sm:$0xff] }
0x1f4d   : > { %v5669_v37 = vmul.f32 0.5, %v5659_v11  ;;  %v6095_v11 = vld [vmem:[%s14084_s7 + $0x18] sm:$0xff] }
0x1f4f   : > { %v5677_v33 = vsel %vm1035_vm2, %v5629_v16, %v5669_v37  ;;  %v12875_v37 = vld [vmem:[%s14083_s6 + $0x30] sm:$0xff]  ;;  %v14213_v16 = vld [vmem:[#allocation26_spill] sm:$0xff] }
0x1f50   : > { %v5662_v41 = vpop.xlane.xlu0 %5661  ;;  %v5621_v8 = vpop.xlane.xlu1 %5620 }
0x1f51   : > { %v5670_v61 = vmul.f32 0.5, %v5662_v41  ;;  %v5630_v10 = vmul.f32 0.5, %v5621_v8  ;;  %v6094_v41 = vld [vmem:[%s14084_s7 + $0x10] sm:$0xff]  ;;  %v12868_v8 = vld [vmem:[%s14083_s6 + $0x28] sm:$0xff] }
0x1f53   : > { %v5678_v6 = vsel %vm1035_vm2, %v5630_v10, %v5670_v61  ;;  %v6093_v61 = vld [vmem:[%s14084_s7 + $0x8] sm:$0xff]  ;;  %v6092_v10 = vld [vmem:[%s14084_s7] sm:$0xff] }
0x1f54   : > { %v5609_v50 = vpop.xlane.xlu0 %5608  ;;  %9445 = vmatprep.subr.mxu1 %v5678_v6  ;;  %v5650_v35 = vpop.xlane.xlu1 %5649 }
0x1f55   : > { %9446 = vmatpush3.msra.mxu1 %v5678_v6  ;;  %v5626_v29 = vmul.f32 0.5, %v5609_v50  ;;  %v5666_v44 = vmul.f32 0.5, %v5650_v35  ;;  %v14214_v6 = vld [vmem:[#allocation25_spill] sm:$0xff]  ;;  %v14215_v50 = vld [vmem:[#allocation28_spill] sm:$0xff]  ;;  %v14216_v35 = vld [vmem:[#allocation27_spill] sm:$0xff] }
0x1f56   : > { %9447 = vmatprep.subr.mxu1 %v5677_v33 }
0x1f57   : > { %9448 = vmatpush3.msra.mxu1 %v5677_v33  ;;  %v5674_v26 = vsel %vm1035_vm2, %v5626_v29, %v5666_v44  ;;  %v14219_v33 = vld [vmem:[#allocation32_spill] sm:$0xff] }
0x1f58   : > { %v5606_v12 = vpop.xlane.xlu0 %5605  ;;  %9449 = vmatprep.subr.mxu1 %v5676_v0  ;;  %v5647_v25 = vpop.xlane.xlu1 %5646 }
0x1f59   : > { %v5625_v23 = vmul.f32 0.5, %v5606_v12  ;;  %v5665_v18 = vmul.f32 0.5, %v5647_v25  ;;  %9450 = vmatpush3.msra.mxu1 %v5676_v0 }
0x1f5a   : > { %9451 = vmatprep.subr.mxu1 %v5675_v1 }
0x1f5b   : > { %9452 = vmatpush3.msra.mxu1 %v5675_v1  ;;  %v5673_v4 = vsel %vm1035_vm2, %v5625_v23, %v5665_v18 }
0x1f5c   : > { %v5603_v57 = vpop.xlane.xlu0 %5602  ;;  %9453 = vmatprep.subr.mxu1 %v5674_v26  ;;  %v5644_v47 = vpop.xlane.xlu1 %5643 }
0x1f5d   : > { %v5624_v28 = vmul.f32 0.5, %v5603_v57  ;;  %v5664_v24 = vmul.f32 0.5, %v5644_v47  ;;  %9454 = vmatpush3.msra.mxu1 %v5674_v26 }
0x1f5e   : > { %9455 = vmatprep.subr.mxu1 %v5673_v4 }
0x1f5f   : > { %9456 = vmatpush3.msra.mxu1 %v5673_v4  ;;  %v5672_v58 = vsel %vm1035_vm2, %v5624_v28, %v5664_v24 }
0x1f60   : > { %v5600_v15 = vpop.xlane.xlu0 %5599  ;;  %9457 = vmatprep.subr.mxu1 %v5672_v58  ;;  %v5641_v59 = vpop.xlane.xlu1 %5640 }
0x1f61   : > { %v5623_v3 = vmul.f32 0.5, %v5600_v15  ;;  %v5663_v20 = vmul.f32 0.5, %v5641_v59  ;;  %9458 = vmatpush3.msra.mxu1 %v5672_v58  ;;  %v6207_v59 = vld [vmem:[#allocation5 + $0x288] sm:$0xff] }
0x1f63   : > { %v5671_v21 = vsel %vm1035_vm2, %v5623_v3, %v5663_v20  ;;  %v10288_v3 = vmov 6  }
0x1f64   : > { %9459 = vmatprep.subr.mxu1 %v5671_v21  ;;  %9758 = vset.pattern.permute.xlu1 %v10288_v3 }
0x1f65   : > { %9460 = vmatpush3.msra.mxu1 %v5671_v21  ;;  %9759 = vset.pattern.permute.xlu0 %v10288_v3 }
0x1f66   : > { %9462 = vmatmul.mubr.msk.f32.vlgmr.msra.gmra.mxu1 %vm961_vm1, %v12828_v17  ;;  %9473 = vmatprep.subr.mxu1 %v6099_v45 }
0x1f67   : > { %9474 = vmatpush3.msra.mxu1 %v6099_v45  ;;  %9464 = vmatprep.mubr.msk.f32.mxu1 %vm961_vm1, %v12835_v53 }
0x1f68   : > { %9475 = vmatprep.subr.mxu1 %v6098_v54 }
0x1f69   : > { %9476 = vmatpush3.msra.mxu1 %v6098_v54 }
0x1f6a   : > { %9465 = vmatmul.mubr.msk.f32.gmra.mxu1 %vm961_vm1, %v12848_v49  ;;  %9477 = vmatprep.subr.mxu1 %v6097_v55 }
0x1f6b   : > { %9478 = vmatpush3.msra.mxu1 %v6097_v55  ;;  %9467 = vmatprep.mubr.msk.f32.mxu1 %vm961_vm1, %v12855_v19 }
0x1f6c   : > { %9479 = vmatprep.subr.mxu1 %v6096_v14 }
0x1f6d   : > { %9480 = vmatpush3.msra.mxu1 %v6096_v14 }
0x1f6e   : > { %9468 = vmatmul.mubr.msk.f32.gmra.mxu1 %vm961_vm1, %v12868_v8  ;;  %9481 = vmatprep.subr.mxu1 %v6095_v11 }
0x1f6f   : > { %9482 = vmatpush3.msra.mxu1 %v6095_v11  ;;  %9470 = vmatprep.mubr.msk.f32.mxu1 %vm961_vm1, %v12875_v37 }
0x1f70   : > { %9483 = vmatprep.subr.mxu1 %v6094_v41 }
0x1f71   : > { %9484 = vmatpush3.msra.mxu1 %v6094_v41 }
0x1f72   : > { %9471 = vmatmul.mubr.msk.f32.gmra.mxu1 %vm961_vm1, %v12888_v36  ;;  %9485 = vmatprep.subr.mxu1 %v6093_v61 }
0x1f73   : > { %9486 = vmatpush3.msra.mxu1 %v6093_v61  ;;  %9489 = vmatprep.mubr.msk.f32.mxu1 %vm961_vm1, %v14213_v16  ;;  %v6206_v61 = vld [vmem:[#allocation5 + $0x280] sm:$0xff]  ;;  %v6209_v16 = vld [vmem:[#allocation5 + $0x298] sm:$0xff] }
0x1f74   : > { %9487 = vmatprep.subr.mxu1 %v6092_v10 }
0x1f75   : > { %9488 = vmatpush3.msra.mxu1 %v6092_v10 }
0x1f76   : > { %9490 = vmatmul.mubr.msk.f32.vlgmr.msra.gmra.mxu1 %vm961_vm1, %v14214_v6  ;;  %6351 = vmatprep.subr.mxu1 %v14202_v34  ;;  %v6208_v6 = vld [vmem:[#allocation5 + $0x290] sm:$0xff] }
0x1f77   : > { %9492 = vmatprep.mubr.msk.f32.mxu1 %vm961_vm1, %v14215_v50  ;;  %v6211_v50 = vld [vmem:[#allocation5 + $0x2a8] sm:$0xff] }
0x1f7a   : > { %9493 = vmatmul.mubr.msk.f32.gmra.mxu1 %vm961_vm1, %v14216_v35  ;;  %v6210_v35 = vld [vmem:[#allocation5 + $0x2a0] sm:$0xff] }
0x1f7b   : > { %9495 = vmatprep.mubr.msk.f32.mxu1 %vm961_vm1, %v14217_v7  ;;  %v6213_v7 = vld [vmem:[#allocation5 + $0x2b8] sm:$0xff] }
0x1f7e   : > { %9496 = vmatmul.mubr.msk.f32.gmra.mxu1 %vm961_vm1, %v14218_v39  ;;  %v6212_v39 = vld [vmem:[#allocation5 + $0x2b0] sm:$0xff] }
0x1f7f   : > { %9498 = vmatprep.mubr.msk.f32.mxu1 %vm961_vm1, %v14219_v33  ;;  %v6215_v33 = vld [vmem:[#allocation5 + $0x2c8] sm:$0xff] }
0x1f82   : > { %9499 = vmatmul.mubr.msk.f32.gmra.mxu1 %vm961_vm1, %v14220_v9  ;;  %v6214_v9 = vld [vmem:[#allocation5 + $0x2c0] sm:$0xff] }
0x1f83   : > { %8799 = vmatprep.mubr.msk.f32.mxu1 %vm961_vm1, %v6207_v59 }
0x2026   : > { %v12909_v29 = vpop.f32.mrf.mxu1 }
0x2028   : > { %v12911_v44 = vpop.f32.mrf.mxu1 }
0x202a   : > { %v12913_v0 = vpop.f32.mrf.mxu1 }
0x202c   : > { %v12915_v12 = vpop.f32.mrf.mxu1 }
0x202e   : > { %v12917_v25 = vpop.f32.mrf.mxu1 }
0x2030   : > { %v12919_v23 = vpop.f32.mrf.mxu1 }
0x2031   : > { %14221 = vst [vmem:[#allocation26_spill] sm:$0xff] %v12919_v23 }
0x2032   : > { %v12921_v18 = vpop.f32.mrf.mxu1 }
0x2033   : > { %14222 = vst [vmem:[#allocation25_spill] sm:$0xff] %v12921_v18 }
0x2034   : > { %v12923_v1 = vpop.f32.mrf.mxu1 }
0x2035   : > { %14223 = vst [vmem:[#allocation28_spill] sm:$0xff] %v12923_v1 }
0x2036   : > { %v9491_v26 = vpop.f32.mrf.mxu1 }
0x2038   : > { %v6166_v57 = vpop.f32.mrf.mxu1 }
0x203a   : > { %v9494_v47 = vpop.f32.mrf.mxu1 }
0x203c   : > { %v6176_v28 = vpop.f32.mrf.mxu1 }
0x203e   : > { %v9497_v24 = vpop.f32.mrf.mxu1 }
0x2040   : > { %v6186_v4 = vpop.f32.mrf.mxu1 }
0x2042   : > { %v9500_v58 = vpop.f32.mrf.mxu1 }
0x2043   : > { %6244 = vrot.lane.b32.xlu0 %v9500_v58, %s10269_s29  ;;  %6352 = vmatpush1.msra.mxu1 %v9500_v58 }
0x2044   : > { %v6196_v15 = vpop.f32.mrf.mxu1  ;;  %6353 = vmatprep.subr.mxu1 %v14202_v34 }
0x2045   : > { %6242 = vrot.lane.b32.xlu1 %v6196_v15, %s10269_s29  ;;  %6354 = vmatpush1.msra.mxu1 %v6196_v15 }
0x2046   : > { %6355 = vmatprep.subr.mxu1 %v14202_v34 }
0x2047   : > { %6238 = vrot.lane.b32.xlu0 %v6186_v4, %s10269_s29  ;;  %6356 = vmatpush1.msra.mxu1 %v9497_v24 }
0x2048   : > { %6357 = vmatprep.subr.mxu1 %v14202_v34 }
0x2049   : > { %6240 = vrot.lane.b32.xlu1 %v9497_v24, %s10269_s29  ;;  %6358 = vmatpush1.msra.mxu1 %v6186_v4 }
0x204a   : > { %6359 = vmatprep.subr.mxu1 %v14202_v34 }
0x204b   : > { %6234 = vrot.lane.b32.xlu0 %v6176_v28, %s10269_s29  ;;  %6360 = vmatpush1.msra.mxu1 %v9494_v47 }
0x204c   : > { %6361 = vmatprep.subr.mxu1 %v14202_v34 }
0x204d   : > { %6236 = vrot.lane.b32.xlu1 %v9494_v47, %s10269_s29  ;;  %6362 = vmatpush1.msra.mxu1 %v6176_v28 }
0x204e   : > { %6363 = vmatprep.subr.mxu1 %v14202_v34 }
0x204f   : > { %6230 = vrot.lane.b32.xlu0 %v6166_v57, %s10269_s29  ;;  %6364 = vmatpush1.msra.mxu1 %v9491_v26 }
0x2050   : > { %6365 = vmatprep.subr.mxu1 %v14202_v34 }
0x2051   : > { %6232 = vrot.lane.b32.xlu1 %v9491_v26, %s10269_s29  ;;  %6366 = vmatpush1.msra.mxu1 %v6166_v57 }
0x2052   : > { %6367 = vmatprep.subr.mxu1 %v14202_v34 }
0x2053   : > { %6274 = vrot.lane.b32.xlu0 %v6196_v15, %s14224_s21 }
0x2055   : > { %6276 = vrot.lane.b32.xlu1 %v9500_v58, %s14224_s21 }
0x2057   : > { %6270 = vrot.lane.b32.xlu0 %v6186_v4, %s14224_s21  ;;  %v6220_v4 = vld [vmem:[#allocation5 + $0x2f0] sm:$0xff] }
0x2059   : > { %6272 = vrot.lane.b32.xlu1 %v9497_v24, %s14224_s21  ;;  %v6221_v24 = vld [vmem:[#allocation5 + $0x2f8] sm:$0xff] }
0x205b   : > { %6266 = vrot.lane.b32.xlu0 %v6176_v28, %s14224_s21  ;;  %v6218_v28 = vld [vmem:[#allocation5 + $0x2e0] sm:$0xff] }
0x205d   : > { %6268 = vrot.lane.b32.xlu1 %v9494_v47, %s14224_s21  ;;  %v6219_v47 = vld [vmem:[#allocation5 + $0x2e8] sm:$0xff] }
0x205f   : > { %6262 = vrot.lane.b32.xlu0 %v6166_v57, %s14224_s21  ;;  %v6216_v57 = vld [vmem:[#allocation5 + $0x2d0] sm:$0xff] }
0x2061   : > { %6264 = vrot.lane.b32.xlu1 %v9491_v26, %s14224_s21  ;;  %v6217_v26 = vld [vmem:[#allocation5 + $0x2d8] sm:$0xff] }
0x2063   : > { %6320 = vperm.xlu0 %9759, %v12676_v2  }
0x2065   : > { %6324 = vperm.xlu1 %9758, %v12670_v60  }
0x2067   : > { %6308 = vperm.xlu0 %9759, %v12700_v5  }
0x2069   : > { %6316 = vperm.xlu1 %9758, %v12688_v63  }
0x206b   : > { %6300 = vperm.xlu0 %9759, %v12712_v52  }
0x206d   : > { %6312 = vperm.xlu1 %9758, %v12682_v32  }
0x2071   : > { %6304 = vperm.xlu1 %9758, %v12694_v22  }
0x2075   : > { %6296 = vperm.xlu1 %9758, %v12706_v40  }
0x20b5   : > { %v6245_v60 = vpop.permute.xlu0 %6244 }
0x20b6   : > { %8776 = vmatpush1.msk.msra.mxu1 %vm12959_vm9, %v6245_v60 }
0x20b7   : > { %v6243_v2 = vpop.permute.xlu1 %6242  ;;  %6369 = vmatprep.subr.mxu1 %v14202_v34 }
0x20b8   : > { %8778 = vmatpush1.msk.msra.mxu1 %vm12959_vm9, %v6243_v2 }
0x20b9   : > { %v6239_v32 = vpop.permute.xlu0 %6238  ;;  %6371 = vmatprep.subr.mxu1 %v14202_v34 }
0x20bb   : > { %v6241_v63 = vpop.permute.xlu1 %6240 }
0x20bc   : > { %8780 = vmatpush1.msk.msra.mxu1 %vm12959_vm9, %v6241_v63 }
0x20bd   : > { %v6235_v22 = vpop.permute.xlu0 %6234  ;;  %6373 = vmatprep.subr.mxu1 %v14202_v34 }
0x20be   : > { %8782 = vmatpush1.msk.msra.mxu1 %vm12959_vm9, %v6239_v32 }
0x20bf   : > { %v6237_v5 = vpop.permute.xlu1 %6236  ;;  %6375 = vmatprep.subr.mxu1 %v14202_v34 }
0x20c0   : > { %8784 = vmatpush1.msk.msra.mxu1 %vm12959_vm9, %v6237_v5 }
0x20c1   : > { %v6231_v40 = vpop.permute.xlu0 %6230  ;;  %6377 = vmatprep.subr.mxu1 %v14202_v34 }
0x20c2   : > { %8786 = vmatpush1.msk.msra.mxu1 %vm12959_vm9, %v6235_v22 }
0x20c3   : > { %v6233_v52 = vpop.permute.xlu1 %6232  ;;  %6379 = vmatprep.subr.mxu1 %v14202_v34 }
0x20c4   : > { %8788 = vmatpush1.msk.msra.mxu1 %vm12959_vm9, %v6233_v52 }
0x20c5   : > { %v6275_v21 = vpop.permute.xlu0 %6274  ;;  %6381 = vmatprep.subr.mxu1 %v14202_v34 }
0x20c6   : > { %8790 = vmatpush1.msk.msra.mxu1 %vm12959_vm9, %v6231_v40 }
0x20c7   : > { %v6277_v45 = vpop.permute.xlu1 %6276  ;;  %6399 = vmatprep.subr.mxu1 %v14202_v34 }
0x20c8   : > { %8791 = vmatpush2.msk.msra.mxu1 %vm6286_vm10, %v6277_v45 }
0x20c9   : > { %v6271_v54 = vpop.permute.xlu0 %6270  ;;  %6401 = vmatprep.subr.mxu1 %v14202_v34 }
0x20ca   : > { %8792 = vmatpush2.msk.msra.mxu1 %vm6286_vm10, %v6275_v21 }
0x20cb   : > { %v6273_v55 = vpop.permute.xlu1 %6272  ;;  %6403 = vmatprep.subr.mxu1 %v14202_v34 }
0x20cc   : > { %8793 = vmatpush2.msk.msra.mxu1 %vm6286_vm10, %v6273_v55 }
0x20cd   : > { %6405 = vmatprep.subr.mxu1 %v14202_v34  ;;  %v6267_v14 = vpop.permute.xlu0 %6266 }
0x20ce   : > { %8794 = vmatpush2.msk.msra.mxu1 %vm6286_vm10, %v6271_v54 }
0x20cf   : > { %v6269_v11 = vpop.permute.xlu1 %6268  ;;  %6407 = vmatprep.subr.mxu1 %v14202_v34 }
0x20d0   : > { %8795 = vmatpush2.msk.msra.mxu1 %vm6286_vm10, %v6269_v11 }
0x20d1   : > { %6409 = vmatprep.subr.mxu1 %v14202_v34  ;;  %v6263_v10 = vpop.permute.xlu0 %6262 }
0x20d2   : > { %8796 = vmatpush2.msk.msra.mxu1 %vm6286_vm10, %v6267_v14 }
0x20d3   : > { %v6265_v41 = vpop.permute.xlu1 %6264  ;;  %6411 = vmatprep.subr.mxu1 %v14202_v34 }
0x20d4   : > { %8797 = vmatpush2.msk.msra.mxu1 %vm6286_vm10, %v6265_v41 }
0x20d5   : > { %6413 = vmatprep.subr.mxu1 %v14202_v34 }
0x20d6   : > { %8798 = vmatpush2.msk.msra.mxu1 %vm6286_vm10, %v6263_v10 }
0x20d7   : > { %6416 = vmatmul.mubr.f32.vlgmr.msra.gmra.mxu1 %v6206_v61 }
0x20d8   : > { %8800 = vmatprep.mubr.msk.f32.mxu1 %vm961_vm1, %v6209_v16 }
0x20db   : > { %6421 = vmatmul.mubr.f32.gmra.mxu1 %v6208_v6 }
0x20dc   : > { %8801 = vmatprep.mubr.msk.f32.mxu1 %vm961_vm1, %v6211_v50 }
0x20de   : > { %v6321_v41 = vpop.permute.xlu0 %6320 }
0x20df   : > { %6426 = vmatmul.mubr.f32.gmra.mxu1 %v6210_v35 }
0x20e0   : > { %8802 = vmatprep.mubr.msk.f32.mxu1 %vm961_vm1, %v6213_v7  ;;  %v6325_v59 = vpop.permute.xlu1 %6324 }
0x20e3   : > { %6431 = vmatmul.mubr.f32.gmra.mxu1 %v6212_v39 }
0x20e4   : > { %8803 = vmatprep.mubr.msk.f32.mxu1 %vm961_vm1, %v6215_v33  ;;  %v6317_v32 = vpop.permute.xlu1 %6316  ;;  %v6309_v33 = vpop.permute.xlu0 %6308 }
0x20e7   : > { %6436 = vmatmul.mubr.f32.gmra.mxu1 %v6214_v9 }
0x20e8   : > { %8804 = vmatprep.mubr.msk.f32.mxu1 %vm961_vm1, %v6217_v26  ;;  %v6313_v40 = vpop.permute.xlu1 %6312 }
0x20eb   : > { %6441 = vmatmul.mubr.f32.gmra.mxu1 %v6216_v57 }
0x20ec   : > { %8805 = vmatprep.mubr.msk.f32.mxu1 %vm961_vm1, %v6219_v47  ;;  %v6305_v26 = vpop.permute.xlu1 %6304 }
0x20ef   : > { %6446 = vmatmul.mubr.f32.gmra.mxu1 %v6218_v28  ;;  %v6301_v28 = vpop.permute.xlu0 %6300 }
0x20f0   : > { %8806 = vmatprep.mubr.msk.f32.mxu1 %vm961_vm1, %v6221_v24 }
0x20f3   : > { %6451 = vmatmul.mubr.f32.gmra.mxu1 %v6220_v4 }
0x20f4   : > { %9545 = vmatprep.mubr.msk.f32.mxu1 %vm961_vm1, %v12610_v38 }
0x2197   : > { %v6417_v58 = vpop.f32.mrf.mxu1 }
0x2199   : > { %v6419_v15 = vpop.f32.mrf.mxu1 }
0x219a   : > { %v6297_v15 = vpop.permute.xlu1 %6296 }
0x219b   : > { %v6422_v3 = vpop.f32.mrf.mxu1 }
0x219c   : > { %v13039_v24 = vadd.f32 %v6422_v3, %v6301_v28 }
0x219d   : > { %v6424_v60 = vpop.f32.mrf.mxu1 }
0x219e   : > { %v6482_v60 = vmul.f32 %v13039_v24, %v13039_v24 }
0x219f   : > { %v6427_v2 = vpop.f32.mrf.mxu1 }
0x21a0   : > { %v13034_v57 = vadd.f32 %v6427_v2, %v6305_v26 }
0x21a1   : > { %v6429_v63 = vpop.f32.mrf.mxu1 }
0x21a2   : > { %v6483_v4 = vmul.f32 %v13034_v57, %v13034_v57 }
0x21a3   : > { %v6432_v22 = vpop.f32.mrf.mxu1 }
0x21a4   : > { %v13030_v9 = vadd.f32 %v6432_v22, %v6309_v33 }
0x21a5   : > { %v6434_v5 = vpop.f32.mrf.mxu1 }
0x21a6   : > { %v6484_v47 = vmul.f32 %v13030_v9, %v13030_v9 }
0x21a7   : > { %v6437_v52 = vpop.f32.mrf.mxu1 }
0x21a8   : > { %v13011_v21 = vadd.f32 %v6437_v52, %v6313_v40 }
0x21a9   : > { %v6439_v45 = vpop.f32.mrf.mxu1 }
0x21aa   : > { %6464 = vadd.xlane.f32.xlu1 %v13011_v21  ;;  %v6485_v38 = vmul.f32 %v13011_v21, %v13011_v21 }
0x21ab   : > { %v6442_v54 = vpop.f32.mrf.mxu1 }
0x21ac   : > { %v13016_v55 = vadd.f32 %v6442_v54, %v6317_v32  ;;  %6497 = vadd.xlane.f32.xlu0 %v6485_v38 }
0x21ad   : > { %v6444_v14 = vpop.f32.mrf.mxu1 }
0x21ae   : > { %6466 = vadd.xlane.f32.xlu1 %v13016_v55  ;;  %v6486_v11 = vmul.f32 %v13016_v55, %v13016_v55 }
0x21af   : > { %v6447_v61 = vpop.f32.mrf.mxu1 }
0x21b0   : > { %v13021_v10 = vadd.f32 %v6447_v61, %v6321_v41  ;;  %6499 = vadd.xlane.f32.xlu0 %v6486_v11 }
0x21b1   : > { %v6449_v16 = vpop.f32.mrf.mxu1 }
0x21b2   : > { %v6487_v39 = vmul.f32 %v13021_v10, %v13021_v10 }
0x21b3   : > { %v6452_v6 = vpop.f32.mrf.mxu1 }
0x21b4   : > { %v13023_v50 = vadd.f32 %v6452_v6, %v6325_v59  ;;  %6468 = vadd.xlane.f32.xlu0 %v13021_v10  ;;  %v13044_v59 = vadd.f32 %v6417_v58, %v6297_v15 }
0x21b5   : > { %v6454_v35 = vpop.f32.mrf.mxu1 }
0x21b6   : > { %v6488_v7 = vmul.f32 %v13023_v50, %v13023_v50  ;;  %v6481_v2 = vmul.f32 %v13044_v59, %v13044_v59 }
0x21b8   : > { %6503 = vadd.xlane.f32.xlu1 %v6488_v7  ;;  %6501 = vadd.xlane.f32.xlu0 %v6487_v39 }
0x21bc   : > { %6470 = vadd.xlane.f32.xlu0 %v13023_v50  ;;  %6462 = vadd.xlane.f32.xlu1 %v13030_v9 }
0x21c0   : > { %6495 = vadd.xlane.f32.xlu0 %v6484_v47  ;;  %6460 = vadd.xlane.f32.xlu1 %v13034_v57 }
0x21c4   : > { %6493 = vadd.xlane.f32.xlu0 %v6483_v4  ;;  %6458 = vadd.xlane.f32.xlu1 %v13039_v24 }
0x21c8   : > { %6491 = vadd.xlane.f32.xlu0 %v6482_v60  ;;  %6456 = vadd.xlane.f32.xlu1 %v13044_v59 }
0x21cc   : > { %6489 = vadd.xlane.f32.xlu0 %v6481_v2 }
0x2233   : > { %v6465_v32 = vpop.xlane.xlu1 %6464 }
0x2234   : > { %v6477_v33 = vmul.f32 0.0078125, %v6465_v32 }
0x2235   : > { %v6498_v3 = vpop.xlane.xlu0 %6497 }
0x2236   : > { %v6509_v35 = vmul.f32 0.0078125, %v6498_v3 }
0x2237   : > { %v6467_v22 = vpop.xlane.xlu1 %6466 }
0x2238   : > { %v6478_v7 = vmul.f32 0.0078125, %v6467_v22  ;;  %v6517_v2 = vsel %vm1035_vm2, %v6477_v33, %v6509_v35 }
0x2239   : > { %v6500_v63 = vpop.xlane.xlu0 %6499 }
0x223a   : > { %v6510_v11 = vmul.f32 0.0078125, %v6500_v63 }
0x223c   : > { %v6518_v47 = vsel %vm1035_vm2, %v6478_v7, %v6510_v11 }
0x223d   : > { %v6469_v5 = vpop.xlane.xlu0 %6468 }
0x223e   : > { %v6479_v41 = vmul.f32 0.0078125, %v6469_v5 }
0x2241   : > { %v6504_v40 = vpop.xlane.xlu1 %6503  ;;  %v6502_v52 = vpop.xlane.xlu0 %6501 }
0x2242   : > { %v6512_v38 = vmul.f32 0.0078125, %v6504_v40  ;;  %v6511_v54 = vmul.f32 0.0078125, %v6502_v52 }
0x2244   : > { %v6519_v39 = vsel %vm1035_vm2, %v6479_v41, %v6511_v54 }
0x2245   : > { %v6471_v45 = vpop.xlane.xlu0 %6470  ;;  %v6463_v58 = vpop.xlane.xlu1 %6462 }
0x2246   : > { %v6480_v14 = vmul.f32 0.0078125, %v6471_v45  ;;  %v6476_v15 = vmul.f32 0.0078125, %v6463_v58 }
0x2248   : > { %v6520_v61 = vsel %vm1035_vm2, %v6480_v14, %v6512_v38 }
0x2249   : > { %9501 = vmatprep.subr.mxu0 %v6520_v61  ;;  %v6496_v16 = vpop.xlane.xlu0 %6495  ;;  %v6461_v6 = vpop.xlane.xlu1 %6460 }
0x224a   : > { %9502 = vmatpush3.msra.mxu0 %v6520_v61  ;;  %v6508_v26 = vmul.f32 0.0078125, %v6496_v16  ;;  %v6475_v3 = vmul.f32 0.0078125, %v6461_v6 }
0x224b   : > { %9503 = vmatprep.subr.mxu0 %v6519_v39 }
0x224c   : > { %9504 = vmatpush3.msra.mxu0 %v6519_v39  ;;  %v6516_v63 = vsel %vm1035_vm2, %v6476_v15, %v6508_v26 }
0x224d   : > { %9505 = vmatprep.subr.mxu0 %v6518_v47  ;;  %v6494_v28 = vpop.xlane.xlu0 %6493  ;;  %v6459_v4 = vpop.xlane.xlu1 %6458 }
0x224e   : > { %v6507_v60 = vmul.f32 0.0078125, %v6494_v28  ;;  %9506 = vmatpush3.msra.mxu0 %v6518_v47  ;;  %v6474_v32 = vmul.f32 0.0078125, %v6459_v4 }
0x224f   : > { %9507 = vmatprep.subr.mxu0 %v6517_v2 }
0x2250   : > { %9508 = vmatpush3.msra.mxu0 %v6517_v2  ;;  %v6515_v40 = vsel %vm1035_vm2, %v6475_v3, %v6507_v60 }
0x2251   : > { %9509 = vmatprep.subr.mxu0 %v6516_v63  ;;  %v6492_v22 = vpop.xlane.xlu0 %6491  ;;  %v6457_v52 = vpop.xlane.xlu1 %6456 }
0x2252   : > { %v6506_v5 = vmul.f32 0.0078125, %v6492_v22  ;;  %9510 = vmatpush3.msra.mxu0 %v6516_v63  ;;  %v6473_v38 = vmul.f32 0.0078125, %v6457_v52 }
0x2253   : > { %9511 = vmatprep.subr.mxu0 %v6515_v40 }
0x2254   : > { %9512 = vmatpush3.msra.mxu0 %v6515_v40  ;;  %v6514_v45 = vsel %vm1035_vm2, %v6474_v32, %v6506_v5 }
0x2255   : > { %9513 = vmatprep.subr.mxu0 %v6514_v45  ;;  %v6490_v58 = vpop.xlane.xlu0 %6489 }
0x2256   : > { %v6505_v54 = vmul.f32 0.0078125, %v6490_v58  ;;  %9514 = vmatpush3.msra.mxu0 %v6514_v45 }
0x2258   : > { %v6513_v14 = vsel %vm1035_vm2, %v6473_v38, %v6505_v54 }
0x2259   : > { %9515 = vmatprep.subr.mxu0 %v6513_v14 }
0x225a   : > { %9516 = vmatpush3.msra.mxu0 %v6513_v14 }
0x225b   : > { %9518 = vmatmul.mubr.msk.f32.vlgmr.msra.gmra.mxu0 %vm961_vm1, %v12828_v17  ;;  %7059 = vmatprep.subr.mxu0 %v14202_v34 }
0x225c   : > { %9520 = vmatprep.mubr.msk.f32.mxu0 %vm961_vm1, %v12835_v53 }
0x225f   : > { %9521 = vmatmul.mubr.msk.f32.gmra.mxu0 %vm961_vm1, %v12848_v49 }
0x2260   : > { %9523 = vmatprep.mubr.msk.f32.mxu0 %vm961_vm1, %v12855_v19 }
0x2263   : > { %9524 = vmatmul.mubr.msk.f32.gmra.mxu0 %vm961_vm1, %v12868_v8 }
0x2264   : > { %9526 = vmatprep.mubr.msk.f32.mxu0 %vm961_vm1, %v12875_v37 }
0x2267   : > { %9527 = vmatmul.mubr.msk.f32.gmra.mxu0 %vm961_vm1, %v12888_v36 }
0x231b   : > { %v13074_v17 = vpop.f32.mrf.mxu0 }
0x231c   : > { %v6627_v7 = vmul.f32 %v13074_v17, %v13074_v17 }
0x231d   : > { %v13076_v11 = vpop.f32.mrf.mxu0 }
0x231e   : > { %v6626_v33 = vmul.f32 %v13076_v11, %v13076_v11 }
0x231f   : > { %v13078_v53 = vpop.f32.mrf.mxu0 }
0x2320   : > { %v6629_v6 = vmul.f32 %v13078_v53, %v13078_v53 }
0x2321   : > { %v13080_v41 = vpop.f32.mrf.mxu0 }
0x2322   : > { %v6628_v39 = vmul.f32 %v13080_v41, %v13080_v41 }
0x2323   : > { %v13082_v49 = vpop.f32.mrf.mxu0 }
0x2324   : > { %v6631_v16 = vmul.f32 %v13082_v49, %v13082_v49 }
0x2325   : > { %v13084_v19 = vpop.f32.mrf.mxu0 }
0x2326   : > { %v6630_v35 = vmul.f32 %v13084_v19, %v13084_v19 }
0x2327   : > { %v13086_v61 = vpop.f32.mrf.mxu0 }
0x2328   : > { %v6633_v8 = vmul.f32 %v13086_v61, %v13086_v61 }
0x2329   : > { %v13090_v37 = vpop.f32.mrf.mxu0 }
0x232a   : > { %v6632_v36 = vmul.f32 %v13090_v37, %v13090_v37  ;;  %6656 = vrot.lane.b32.xlu1 %v6633_v8, %s10269_s29 }
0x232c   : > { %6654 = vrot.lane.b32.xlu0 %v6632_v36, %s10269_s29 }
0x232e   : > { %6652 = vrot.lane.b32.xlu1 %v6631_v16, %s10269_s29 }
0x2330   : > { %6648 = vrot.lane.b32.xlu0 %v6629_v6, %s10269_s29 }
0x2332   : > { %6650 = vrot.lane.b32.xlu1 %v6630_v35, %s10269_s29 }
0x2334   : > { %6644 = vrot.lane.b32.xlu0 %v6627_v7, %s10269_s29 }
0x2336   : > { %6646 = vrot.lane.b32.xlu1 %v6628_v39, %s10269_s29 }
0x233a   : > { %6642 = vrot.lane.b32.xlu1 %v6626_v33, %s10269_s29 }
0x239c   : > { %v6657_v26 = vpop.permute.xlu1 %6656 }
0x239d   : > { %v6673_v47 = vsub.f32 %v13086_v61, %v6657_v26 }
0x239e   : > { %v6655_v28 = vpop.permute.xlu0 %6654 }
0x239f   : > { %v6681_v4 = vmax.f32 %v6673_v47, 0.0  ;;  %v6672_v15 = vsub.f32 %v13090_v37, %v6655_v28 }
0x23a0   : > { %v6653_v60 = vpop.permute.xlu1 %6652 }
0x23a1   : > { %v6689_v2 = vadd.f32 1e-05, %v6681_v4  ;;  %v6680_v3 = vmax.f32 %v6672_v15, 0.0  ;;  %v6671_v63 = vsub.f32 %v13082_v49, %v6653_v60 }
0x23a2   : > { %v6649_v22 = vpop.permute.xlu0 %6648 }
0x23a3   : > { %9848 = vrsqrt.f32 %v6689_v2  ;;  %v6688_v32 = vadd.f32 1e-05, %v6680_v3  ;;  %v6679_v5 = vmax.f32 %v6671_v63, 0.0  ;;  %v6669_v40 = vsub.f32 %v13078_v53, %v6649_v22 }
0x23a4   : > { %v6651_v52 = vpop.permute.xlu1 %6650 }
0x23a5   : > { %9850 = vrsqrt.f32 %v6688_v32  ;;  %v6687_v45 = vadd.f32 1e-05, %v6679_v5  ;;  %v6677_v58 = vmax.f32 %v6669_v40, 0.0  ;;  %v6670_v38 = vsub.f32 %v13084_v19, %v6651_v52 }
0x23a6   : > { %v6645_v54 = vpop.permute.xlu0 %6644 }
0x23a7   : > { %9852 = vrsqrt.f32 %v6687_v45  ;;  %v6685_v14 = vadd.f32 1e-05, %v6677_v58  ;;  %v6678_v8 = vmax.f32 %v6670_v38, 0.0  ;;  %v6667_v36 = vsub.f32 %v13074_v17, %v6645_v54  ;;  %v13133_v45 = vld [vmem:[%s14082_s5 + $0x78] sm:$0xff]  ;;  %v13139_v54 = vld [vmem:[%s14082_s5 + $0x70] sm:$0xff] }
0x23a8   : > { %v6647_v16 = vpop.permute.xlu1 %6646 }
0x23a9   : > { %v6686_v6 = vadd.f32 1e-05, %v6678_v8  ;;  %v6675_v35 = vmax.f32 %v6667_v36, 0.0  ;;  %v6668_v7 = vsub.f32 %v13080_v41, %v6647_v16  ;;  %9854 = vrsqrt.f32 %v6685_v14  ;;  %v13145_v36 = vld [vmem:[%s14082_s5 + $0x68] sm:$0xff] }
0x23ab   : > { %9856 = vrsqrt.f32 %v6686_v6  ;;  %v6683_v39 = vadd.f32 1e-05, %v6675_v35  ;;  %v6676_v33 = vmax.f32 %v6668_v7, 0.0  ;;  %v13151_v7 = vld [vmem:[%s14082_s5 + $0x60] sm:$0xff] }
0x23ac   : > { %v6643_v26 = vpop.permute.xlu1 %6642 }
0x23ad   : > { %v6684_v47 = vadd.f32 1e-05, %v6676_v33  ;;  %v6666_v28 = vsub.f32 %v13076_v11, %v6643_v26  ;;  %9858 = vrsqrt.f32 %v6683_v39  ;;  %v13157_v33 = vld [vmem:[%s14082_s5 + $0x58] sm:$0xff] }
0x23af   : > { %9860 = vrsqrt.f32 %v6684_v47  ;;  %v6674_v4 = vmax.f32 %v6666_v28, 0.0 }
0x23b0   : > { %v9849_v15 = vpop.eup %9848 }
0x23b1   : > { %v6682_v60 = vadd.f32 1e-05, %v6674_v4  ;;  %6720 = vrot.lane.b32.xlu0 %v9849_v15, %s14130_s24  ;;  %v13163_v4 = vld [vmem:[%s14082_s5 + $0x50] sm:$0xff] }
0x23b2   : > { %v9851_v2 = vpop.eup %9850 }
0x23b3   : > { %9862 = vrsqrt.f32 %v6682_v60  ;;  %6718 = vrot.lane.b32.xlu1 %v9851_v2, %s14130_s24  ;;  %v13169_v60 = vld [vmem:[%s14082_s5 + $0x48] sm:$0xff] }
0x23b4   : > { %v9853_v3 = vpop.eup %9852 }
0x23b5   : > { %6716 = vrot.lane.b32.xlu0 %v9853_v3, %s14130_s24 }
0x23b6   : > { %v9855_v63 = vpop.eup %9854 }
0x23b8   : > { %v9857_v22 = vpop.eup %9856 }
0x23b9   : > { %6714 = vrot.lane.b32.xlu1 %v9857_v22, %s14130_s24  ;;  %6712 = vrot.lane.b32.xlu0 %v9855_v63, %s14130_s24  ;;  %v13175_v63 = vld [vmem:[%s14082_s5 + $0x40] sm:$0xff] }
0x23ba   : > { %v9859_v32 = vpop.eup %9858 }
0x23bc   : > { %v9861_v5 = vpop.eup %9860 }
0x23bd   : > { %6710 = vrot.lane.b32.xlu1 %v9861_v5, %s14130_s24  ;;  %6708 = vrot.lane.b32.xlu0 %v9859_v32, %s14130_s24 }
0x23c0   : > { %v9863_v40 = vpop.eup %9862 }
0x23c1   : > { %6706 = vrot.lane.b32.xlu1 %v9863_v40, %s14130_s24  ;;  %s10291_s24 = smov 6  }
0x2423   : > { %v6721_v52 = vpop.permute.xlu0 %6720 }
0x2424   : > { %v6737_v58 = vmul.f32 %v13133_v45, %v6721_v52 }
0x2425   : > { %v6719_v38 = vpop.permute.xlu1 %6718 }
0x2426   : > { %v6736_v14 = vmul.f32 %v13139_v54, %v6719_v38  ;;  %6760 = vrot.lane.b32.xlu0 %v6737_v58, %s10290_s0 }
0x2427   : > { %v6717_v8 = vpop.permute.xlu0 %6716 }
0x2428   : > { %v6735_v16 = vmul.f32 %v13145_v36, %v6717_v8  ;;  %6758 = vrot.lane.b32.xlu1 %v6736_v14, %s10290_s0 }
0x242a   : > { %6756 = vrot.lane.b32.xlu0 %v6735_v16, %s10290_s0 }
0x242b   : > { %v6715_v6 = vpop.permute.xlu1 %6714  ;;  %v6713_v35 = vpop.permute.xlu0 %6712 }
0x242c   : > { %v6734_v39 = vmul.f32 %v13151_v7, %v6715_v6  ;;  %v6733_v26 = vmul.f32 %v13157_v33, %v6713_v35 }
0x242e   : > { %6754 = vrot.lane.b32.xlu1 %v6734_v39, %s10290_s0  ;;  %6752 = vrot.lane.b32.xlu0 %v6733_v26, %s10290_s0 }
0x242f   : > { %v6711_v47 = vpop.permute.xlu1 %6710  ;;  %v6709_v28 = vpop.permute.xlu0 %6708 }
0x2430   : > { %v6732_v15 = vmul.f32 %v13163_v4, %v6711_v47  ;;  %v6731_v2 = vmul.f32 %v13169_v60, %v6709_v28 }
0x2432   : > { %6750 = vrot.lane.b32.xlu1 %v6732_v15, %s10290_s0  ;;  %6748 = vrot.lane.b32.xlu0 %v6731_v2, %s10290_s0 }
0x2433   : > { %v6707_v3 = vpop.permute.xlu1 %6706 }
0x2434   : > { %v6730_v22 = vmul.f32 %v13175_v63, %v6707_v3 }
0x2436   : > { %6746 = vrot.lane.b32.xlu1 %v6730_v22, %s10290_s0  ;;  %s14154_s0 = sshll.u32 %s10422_s1, 10 }
0x2498   : > { %v6761_v32 = vpop.permute.xlu0 %6760 }
0x2499   : > { %v6777_v5 = vmul.f32 %v13086_v61, %v6761_v32 }
0x249a   : > { %v6759_v40 = vpop.permute.xlu1 %6758 }
0x249b   : > { %v6776_v52 = vmul.f32 %v6759_v40, %v13090_v37  ;;  %6800 = vrot.lane.b32.xlu0 %v6777_v5, %s10291_s24 }
0x249c   : > { %v6757_v38 = vpop.permute.xlu0 %6756 }
0x249d   : > { %v6775_v8 = vmul.f32 %v13082_v49, %v6757_v38  ;;  %6798 = vrot.lane.b32.xlu1 %v6776_v52, %s10291_s24  ;;  %v13221_v52 = vld [vmem:[%s14082_s5 + $0x80] sm:$0xff] }
0x249f   : > { %6796 = vrot.lane.b32.xlu0 %v6775_v8, %s10291_s24 }
0x24a0   : > { %v6755_v6 = vpop.permute.xlu1 %6754  ;;  %v6753_v35 = vpop.permute.xlu0 %6752 }
0x24a1   : > { %v6774_v47 = vmul.f32 %v6755_v6, %v13084_v19  ;;  %v6773_v28 = vmul.f32 %v13078_v53, %v6753_v35  ;;  %v13197_v19 = vld [vmem:[%s14082_s5 + $0xa8] sm:$0xff]  ;;  %v13227_v6 = vld [vmem:[%s14082_s5 + $0x98] sm:$0xff] }
0x24a3   : > { %6794 = vrot.lane.b32.xlu1 %v6774_v47, %s10291_s24  ;;  %6792 = vrot.lane.b32.xlu0 %v6773_v28, %s10291_s24  ;;  %v13233_v47 = vld [vmem:[%s14082_s5 + $0x90] sm:$0xff] }
0x24a4   : > { %v6751_v61 = vpop.permute.xlu1 %6750  ;;  %v6749_v37 = vpop.permute.xlu0 %6748 }
0x24a5   : > { %v6772_v3 = vmul.f32 %v6751_v61, %v13080_v41  ;;  %v6771_v49 = vmul.f32 %v13074_v17, %v6749_v37  ;;  %v13239_v37 = vld [vmem:[%s14082_s5 + $0x88] sm:$0xff] }
0x24a7   : > { %6790 = vrot.lane.b32.xlu1 %v6772_v3, %s10291_s24  ;;  %6788 = vrot.lane.b32.xlu0 %v6771_v49, %s10291_s24 }
0x24a8   : > { %v6747_v32 = vpop.permute.xlu1 %6746 }
0x24a9   : > { %v6770_v5 = vmul.f32 %v6747_v32, %v13076_v11 }
0x24ab   : > { %6786 = vrot.lane.b32.xlu1 %v6770_v5, %s10291_s24  ;;  %6847 = vperm.xlu0 %9759, %v6737_v58   ;;  %v13203_v58 = vld [vmem:[%s14082_s5 + $0xa0] sm:$0xff] }
0x24af   : > { %6843 = vperm.xlu1 %9758, %v6736_v14  }
0x24b3   : > { %6839 = vperm.xlu1 %9758, %v6735_v16  }
0x24b7   : > { %6835 = vperm.xlu1 %9758, %v6734_v39   ;;  %v13209_v39 = vld [vmem:[%s14082_s5 + $0xb8] sm:$0xff] }
0x24bb   : > { %6831 = vperm.xlu1 %9758, %v6733_v26  }
0x24bf   : > { %6827 = vperm.xlu1 %9758, %v6732_v15  }
0x24c3   : > { %6823 = vperm.xlu1 %9758, %v6731_v2   ;;  %v13215_v2 = vld [vmem:[%s14082_s5 + $0xb0] sm:$0xff] }
0x24c7   : > { %6819 = vperm.xlu1 %9758, %v6730_v22  }
0x250d   : > { %v6801_v53 = vpop.permute.xlu0 %6800 }
0x250e   : > { %v6817_v26 = vsub.f32 %v13209_v39, %v6801_v53 }
0x250f   : > { %v6799_v41 = vpop.permute.xlu1 %6798 }
0x2510   : > { %v6816_v22 = vsub.f32 %v13215_v2, %v6799_v41 }
0x2511   : > { %v6797_v17 = vpop.permute.xlu0 %6796 }
0x2512   : > { %v6815_v11 = vsub.f32 %v13197_v19, %v6797_v17 }
0x2514   : > { %6885 = vperm.xlu0 %9759, %v6815_v11  }
0x2515   : > { %v6795_v40 = vpop.permute.xlu1 %6794  ;;  %v6793_v8 = vpop.permute.xlu0 %6792 }
0x2516   : > { %v6814_v14 = vsub.f32 %v13203_v58, %v6795_v40  ;;  %v6813_v35 = vsub.f32 %v13227_v6, %v6793_v8 }
0x2518   : > { %6880 = vperm.xlu0 %9759, %v6814_v14  }
0x2519   : > { %v6791_v16 = vpop.permute.xlu1 %6790  ;;  %v6789_v61 = vpop.permute.xlu0 %6788 }
0x251a   : > { %v6812_v28 = vsub.f32 %v13233_v47, %v6791_v16  ;;  %v6811_v3 = vsub.f32 %v13239_v37, %v6789_v61 }
0x251c   : > { %6895 = vperm.xlu0 %9759, %v6817_v26  }
0x251d   : > { %v6787_v15 = vpop.permute.xlu1 %6786 }
0x251e   : > { %v6810_v38 = vsub.f32 %v13221_v52, %v6787_v15 }
0x2520   : > { %6860 = vperm.xlu1 %9758, %v6810_v38   ;;  %6890 = vperm.xlu0 %9759, %v6816_v22  }
0x2524   : > { %6875 = vperm.xlu0 %9759, %v6813_v35  }
0x2526   : > { %v6848_v53 = vpop.permute.xlu0 %6847 }
0x2527   : > { %v6857_v14 = vmul.f32 %v6848_v53, %v13023_v50 }
0x2528   : > { %6870 = vperm.xlu0 %9759, %v6812_v28  }
0x252a   : > { %v6844_v49 = vpop.permute.xlu1 %6843 }
0x252b   : > { %v6856_v38 = vmul.f32 %v6844_v49, %v13021_v10 }
0x252c   : > { %6865 = vperm.xlu0 %9759, %v6811_v3  }
0x252e   : > { %v6840_v32 = vpop.permute.xlu1 %6839 }
0x252f   : > { %v6855_v26 = vmul.f32 %v6840_v32, %v13016_v55 }
0x2532   : > { %v6836_v5 = vpop.permute.xlu1 %6835 }
0x2533   : > { %v6854_v61 = vmul.f32 %v6836_v5, %v13011_v21 }
0x2536   : > { %v6832_v41 = vpop.permute.xlu1 %6831 }
0x2537   : > { %v6853_v50 = vmul.f32 %v6832_v41, %v13030_v9 }
0x253a   : > { %v6828_v11 = vpop.permute.xlu1 %6827 }
0x253b   : > { %v6852_v21 = vmul.f32 %v6828_v11, %v13034_v57 }
0x253e   : > { %v6824_v22 = vpop.permute.xlu1 %6823 }
0x2542   : > { %v6820_v32 = vpop.permute.xlu1 %6819 }
0x2543   : > { %v6850_v41 = vmul.f32 %v6820_v32, %v13044_v59 }
0x258f   : > { %v6886_v17 = vpop.permute.xlu0 %6885 }
0x2590   : > { %v6903_v8 = vadd.f32 %v6886_v17, %v6855_v26 }
0x2592   : > { %v6911_v53 = vmax.f32 %v6903_v8, 0.0  ;;  %v13284_v8 = vld [vmem:[%s14082_s5 + $0x30] sm:$0xff] }
0x2593   : > { %v6881_v40 = vpop.permute.xlu0 %6880 }
0x2594   : > { %v6902_v31 = vadd.f32 %v6881_v40, %v6854_v61  ;;  %v6851_v40 = vmul.f32 %v6824_v22, %v13039_v24  ;;  %v6916_v24 = vld [vmem:[#allocation5 + $0x308] sm:$0xff]  ;;  %v10292_v22 = vmov 7   ;;  %v13302_v61 = vld [vmem:[%s14082_s5 + $0x10] sm:$0xff] }
0x2595   : > { %8839 = vmatprep.mubr.msk.f32.mxu0 %vm961_vm1, %v6916_v24  ;;  %9760 = vset.pattern.permute.xlu0 %v10292_v22  ;;  %v6920_v24 = vld [vmem:[#allocation5 + $0x328] sm:$0xff] }
0x2596   : > { %v6910_v10 = vmax.f32 %v6902_v31, 0.0  ;;  %9761 = vset.pattern.permute.xlu1 %v10292_v22  ;;  %v6919_v22 = vld [vmem:[#allocation5 + $0x320] sm:$0xff] }
0x2597   : > { %v6896_v16 = vpop.permute.xlu0 %6895 }
0x2598   : > { %v6905_v15 = vadd.f32 %v6896_v16, %v6857_v14 }
0x259a   : > { %v6913_v35 = vmax.f32 %v6905_v15, 0.0 }
0x259b   : > { %v6891_v28 = vpop.permute.xlu0 %6890  ;;  %v6861_v5 = vpop.permute.xlu1 %6860 }
0x259c   : > { %v6904_v3 = vadd.f32 %v6891_v28, %v6856_v38  ;;  %6953 = vrot.lane.b32.xlu0 %v6913_v35, %s10269_s29  ;;  %7060 = vmatpush1.msra.mxu0 %v6913_v35  ;;  %v6898_v57 = vadd.f32 %v6861_v5, %v6850_v41  ;;  %v13278_v38 = vld [vmem:[%s14082_s5 + $0x38] sm:$0xff]  ;;  %v13296_v28 = vld [vmem:[%s14082_s5 + $0x28] sm:$0xff] }
0x259d   : > { %7061 = vmatprep.subr.mxu0 %v14202_v34 }
0x259e   : > { %v6912_v55 = vmax.f32 %v6904_v3, 0.0  ;;  %v6906_v59 = vmax.f32 %v6898_v57, 0.0  ;;  %v13308_v3 = vld [vmem:[%s14082_s5 + $0x18] sm:$0xff] }
0x259f   : > { %v6876_v14 = vpop.permute.xlu0 %6875 }
0x25a0   : > { %v6901_v16 = vadd.f32 %v6876_v14, %v6853_v50  ;;  %6949 = vrot.lane.b32.xlu0 %v6911_v53, %s10269_s29  ;;  %6951 = vrot.lane.b32.xlu1 %v6912_v55, %s10269_s29  ;;  %v13314_v50 = vld [vmem:[%s14082_s5] sm:$0xff] }
0x25a1   : > { %7062 = vmatpush1.msra.mxu0 %v6912_v55 }
0x25a2   : > { %v6909_v49 = vmax.f32 %v6901_v16, 0.0  ;;  %7063 = vmatprep.subr.mxu0 %v14202_v34 }
0x25a3   : > { %7064 = vmatpush1.msra.mxu0 %v6911_v53  ;;  %v6871_v9 = vpop.permute.xlu0 %6870 }
0x25a4   : > { %7065 = vmatprep.subr.mxu0 %v14202_v34  ;;  %v6900_v17 = vadd.f32 %v6871_v9, %v6852_v21  ;;  %6947 = vrot.lane.b32.xlu1 %v6910_v10, %s10269_s29 }
0x25a5   : > { %7066 = vmatpush1.msra.mxu0 %v6910_v10  ;;  %6945 = vrot.lane.b32.xlu0 %v6909_v49, %s10269_s29 }
0x25a6   : > { %v6908_v31 = vmax.f32 %v6900_v17, 0.0  ;;  %7067 = vmatprep.subr.mxu0 %v14202_v34 }
0x25a7   : > { %7068 = vmatpush1.msra.mxu0 %v6909_v49  ;;  %v6866_v11 = vpop.permute.xlu0 %6865 }
0x25a8   : > { %7069 = vmatprep.subr.mxu0 %v14202_v34  ;;  %v6899_v26 = vadd.f32 %v6866_v11, %v6851_v40  ;;  %6943 = vrot.lane.b32.xlu1 %v6908_v31, %s10269_s29  ;;  %v6915_v11 = vld [vmem:[#allocation5 + $0x300] sm:$0xff] }
0x25a9   : > { %7070 = vmatpush1.msra.mxu0 %v6908_v31 }
0x25aa   : > { %v6907_v15 = vmax.f32 %v6899_v26, 0.0  ;;  %7071 = vmatprep.subr.mxu0 %v14202_v34 }
0x25ac   : > { %6939 = vrot.lane.b32.xlu1 %v6906_v59, %s10269_s29  ;;  %6941 = vrot.lane.b32.xlu0 %v6907_v15, %s10269_s29 }
0x25ad   : > { %7072 = vmatpush1.msra.mxu0 %v6907_v15 }
0x25ae   : > { %7073 = vmatprep.subr.mxu0 %v14202_v34 }
0x25af   : > { %7074 = vmatpush1.msra.mxu0 %v6906_v59 }
0x25b0   : > { %6983 = vrot.lane.b32.xlu1 %v6912_v55, %s14224_s21  ;;  %6985 = vrot.lane.b32.xlu0 %v6913_v35, %s14224_s21  ;;  %v13290_v35 = vld [vmem:[%s14082_s5 + $0x20] sm:$0xff] }
0x25b1   : > { %7075 = vmatprep.subr.mxu0 %v14202_v34 }
0x25b4   : > { %6979 = vrot.lane.b32.xlu1 %v6910_v10, %s14224_s21  ;;  %6981 = vrot.lane.b32.xlu0 %v6911_v53, %s14224_s21  ;;  %v13320_v53 = vld [vmem:[%s14082_s5 + $0x8] sm:$0xff] }
0x25b8   : > { %6975 = vrot.lane.b32.xlu1 %v6908_v31, %s14224_s21  ;;  %6977 = vrot.lane.b32.xlu0 %v6909_v49, %s14224_s21 }
0x25bc   : > { %6971 = vrot.lane.b32.xlu1 %v6906_v59, %s14224_s21  ;;  %6973 = vrot.lane.b32.xlu0 %v6907_v15, %s14224_s21  ;;  %v6918_v59 = vld [vmem:[#allocation5 + $0x318] sm:$0xff]  ;;  %v6917_v15 = vld [vmem:[#allocation5 + $0x310] sm:$0xff]  ;;  %s10298_s21 = smov [#allocation10]  }
0x25bd   : > { %s10160_s25 = sshll.u32 %s10298_s21, 4  ;;  %s10161_s25 = int_to_ptr.vmem [resolvable:$false] %s10160_s25 }
0x25be   : > { %p10163_p2 = scmp.lt.s32.totalorder %s13941_s18, %s10161_s25 }
0x25c0   : > { %7032 = vperm.xlu0 %9760, %v13278_v38   ;;  %7028 = vperm.xlu1 %9761, %v13284_v8  }
0x25c4   : > { %7020 = vperm.xlu0 %9760, %v13290_v35   ;;  %7024 = vperm.xlu1 %9761, %v13296_v28  }
0x25c8   : > { %7012 = vperm.xlu0 %9760, %v13302_v61   ;;  %7016 = vperm.xlu1 %9761, %v13308_v3  }
0x25cc   : > { %7004 = vperm.xlu0 %9760, %v13314_v50   ;;  %7008 = vperm.xlu1 %9761, %v13320_v53  }
0x260e   : > { %v6954_v55 = vpop.permute.xlu0 %6953 }
0x260f   : > { %8816 = vmatpush1.msk.msra.mxu0 %vm12959_vm9, %v6954_v55  ;;  %v6922_v55 = vld [vmem:[#allocation5 + $0x338] sm:$0xff] }
0x2610   : > { %7077 = vmatprep.subr.mxu0 %v14202_v34 }
0x2612   : > { %v6952_v32 = vpop.permute.xlu1 %6951  ;;  %v6950_v14 = vpop.permute.xlu0 %6949 }
0x2613   : > { %8818 = vmatpush1.msk.msra.mxu0 %vm12959_vm9, %v6952_v32  ;;  %v6921_v32 = vld [vmem:[#allocation5 + $0x330] sm:$0xff] }
0x2614   : > { %7079 = vmatprep.subr.mxu0 %v14202_v34 }
0x2615   : > { %8820 = vmatpush1.msk.msra.mxu0 %vm12959_vm9, %v6950_v14  ;;  %v6924_v14 = vld [vmem:[#allocation5 + $0x348] sm:$0xff] }
0x2616   : > { %v6948_v16 = vpop.permute.xlu1 %6947  ;;  %7081 = vmatprep.subr.mxu0 %v14202_v34 }
0x2617   : > { %8822 = vmatpush1.msk.msra.mxu0 %vm12959_vm9, %v6948_v16  ;;  %v6946_v21 = vpop.permute.xlu0 %6945  ;;  %v6926_v16 = vld [vmem:[#allocation5 + $0x358] sm:$0xff] }
0x2618   : > { %7083 = vmatprep.subr.mxu0 %v14202_v34 }
0x2619   : > { %8824 = vmatpush1.msk.msra.mxu0 %vm12959_vm9, %v6946_v21  ;;  %v6925_v21 = vld [vmem:[#allocation5 + $0x350] sm:$0xff] }
0x261a   : > { %v6944_v10 = vpop.permute.xlu1 %6943  ;;  %7085 = vmatprep.subr.mxu0 %v14202_v34 }
0x261b   : > { %8826 = vmatpush1.msk.msra.mxu0 %vm12959_vm9, %v6944_v10  ;;  %v6928_v10 = vld [vmem:[#allocation5 + $0x368] sm:$0xff] }
0x261c   : > { %7087 = vmatprep.subr.mxu0 %v14202_v34 }
0x261e   : > { %v6940_v49 = vpop.permute.xlu1 %6939  ;;  %v6942_v5 = vpop.permute.xlu0 %6941 }
0x261f   : > { %8828 = vmatpush1.msk.msra.mxu0 %vm12959_vm9, %v6942_v5  ;;  %v6930_v5 = vld [vmem:[#allocation5 + $0x378] sm:$0xff] }
0x2620   : > { %7089 = vmatprep.subr.mxu0 %v14202_v34 }
0x2621   : > { %8830 = vmatpush1.msk.msra.mxu0 %vm12959_vm9, %v6940_v49  ;;  %v6927_v49 = vld [vmem:[#allocation5 + $0x360] sm:$0xff] }
0x2622   : > { %v6984_v9 = vpop.permute.xlu1 %6983  ;;  %7107 = vmatprep.subr.mxu0 %v14202_v34  ;;  %v6986_v41 = vpop.permute.xlu0 %6985 }
0x2623   : > { %8831 = vmatpush2.msk.msra.mxu0 %vm6286_vm10, %v6986_v41  ;;  %v10026_v41 = vld [vmem:[%s14083_s6] sm:$0xff] }
0x2624   : > { %7109 = vmatprep.subr.mxu0 %v14202_v34 }
0x2625   : > { %8832 = vmatpush2.msk.msra.mxu0 %vm6286_vm10, %v6984_v9  ;;  %v6929_v9 = vld [vmem:[#allocation5 + $0x370] sm:$0xff] }
0x2626   : > { %v6980_v17 = vpop.permute.xlu1 %6979  ;;  %7111 = vmatprep.subr.mxu0 %v14202_v34  ;;  %v6982_v40 = vpop.permute.xlu0 %6981 }
0x2627   : > { %8833 = vmatpush2.msk.msra.mxu0 %vm6286_vm10, %v6982_v40 }
0x2628   : > { %7113 = vmatprep.subr.mxu0 %v14202_v34 }
0x2629   : > { %8834 = vmatpush2.msk.msra.mxu0 %vm6286_vm10, %v6980_v17 }
0x262a   : > { %v6976_v20 = vpop.permute.xlu1 %6975  ;;  %7115 = vmatprep.subr.mxu0 %v14202_v34  ;;  %v6978_v57 = vpop.permute.xlu0 %6977 }
0x262b   : > { %8835 = vmatpush2.msk.msra.mxu0 %vm6286_vm10, %v6978_v57 }
0x262c   : > { %7117 = vmatprep.subr.mxu0 %v14202_v34 }
0x262d   : > { %8836 = vmatpush2.msk.msra.mxu0 %vm6286_vm10, %v6976_v20 }
0x262e   : > { %7119 = vmatprep.subr.mxu0 %v14202_v34  ;;  %v6974_v31 = vpop.permute.xlu0 %6973  ;;  %v6972_v26 = vpop.permute.xlu1 %6971 }
0x262f   : > { %8837 = vmatpush2.msk.msra.mxu0 %vm6286_vm10, %v6974_v31 }
0x2630   : > { %7121 = vmatprep.subr.mxu0 %v14202_v34  ;;  %v6923_v34 = vld [vmem:[#allocation5 + $0x340] sm:$0xff] }
0x2631   : > { %8838 = vmatpush2.msk.msra.mxu0 %vm6286_vm10, %v6972_v26 }
0x2632   : > { %7124 = vmatmul.mubr.f32.vlgmr.msra.gmra.mxu0 %v6915_v11 }
0x2633   : > { %8840 = vmatprep.mubr.msk.f32.mxu0 %vm961_vm1, %v6918_v59 }
0x2636   : > { %7129 = vmatmul.mubr.f32.gmra.mxu0 %v6917_v15 }
0x2637   : > { %8841 = vmatprep.mubr.msk.f32.mxu0 %vm961_vm1, %v6920_v24 }
0x263a   : > { %7134 = vmatmul.mubr.f32.gmra.mxu0 %v6919_v22 }
0x263b   : > { %8842 = vmatprep.mubr.msk.f32.mxu0 %vm961_vm1, %v6922_v55  ;;  %v7033_v11 = vpop.permute.xlu0 %7032  ;;  %v7029_v15 = vpop.permute.xlu1 %7028 }
0x263e   : > { %7139 = vmatmul.mubr.f32.gmra.mxu0 %v6921_v32 }
0x263f   : > { %8843 = vmatprep.mubr.msk.f32.mxu0 %vm961_vm1, %v6924_v14  ;;  %v7021_v22 = vpop.permute.xlu0 %7020 }
0x2642   : > { %7144 = vmatmul.mubr.f32.gmra.mxu0 %v6923_v34 }
0x2643   : > { %8844 = vmatprep.mubr.msk.f32.mxu0 %vm961_vm1, %v6926_v16  ;;  %v7025_v16 = vpop.permute.xlu1 %7024 }
0x2646   : > { %7149 = vmatmul.mubr.f32.gmra.mxu0 %v6925_v21 }
0x2647   : > { %8845 = vmatprep.mubr.msk.f32.mxu0 %vm961_vm1, %v6928_v10 }
0x264a   : > { %7154 = vmatmul.mubr.f32.gmra.mxu0 %v6927_v49 }
0x264b   : > { %8846 = vmatprep.mubr.msk.f32.mxu0 %vm961_vm1, %v6930_v5 }
0x264e   : > { %7159 = vmatmul.mubr.f32.gmra.mxu0 %v6929_v9 }
0x264f   : > { %9601 = vmatprep.mubr.msk.f32.mxu0 %vm961_vm1, %v10026_v41 }
0x26f2   : > { %v7125_v17 = vpop.f32.mrf.mxu0 }
0x26f4   : > { %v7127_v40 = vpop.f32.mrf.mxu0 }
0x26f6   : > { %v7130_v20 = vpop.f32.mrf.mxu0 }
0x26f8   : > { %v7132_v57 = vpop.f32.mrf.mxu0 }
0x26fa   : > { %v7135_v31 = vpop.f32.mrf.mxu0 }
0x26fc   : > { %v7137_v26 = vpop.f32.mrf.mxu0 }
0x26fe   : > { %v7140_v59 = vpop.f32.mrf.mxu0 }
0x2700   : > { %v7142_v24 = vpop.f32.mrf.mxu0 }
0x2702   : > { %v7145_v55 = vpop.f32.mrf.mxu0 }
0x2703   : > { %v13373_v32 = vadd.f32 %v7145_v55, %v7021_v22  ;;  %v7017_v22 = vpop.permute.xlu1 %7016 }
0x2704   : > { %v7147_v14 = vpop.f32.mrf.mxu0 }
0x2705   : > { %7172 = vadd.xlane.f32.xlu0 %v13373_v32  ;;  %v7192_v34 = vmul.f32 %v13373_v32, %v13373_v32  ;;  %v13390_v14 = vadd.f32 %v7140_v59, %v7017_v22 }
0x2706   : > { %v7150_v21 = vpop.f32.mrf.mxu0 }
0x2707   : > { %v13378_v10 = vadd.f32 %v7150_v21, %v7025_v16  ;;  %7204 = vadd.xlane.f32.xlu1 %v7192_v34  ;;  %v7191_v21 = vmul.f32 %v13390_v14, %v13390_v14 }
0x2708   : > { %v7152_v49 = vpop.f32.mrf.mxu0 }
0x2709   : > { %7174 = vadd.xlane.f32.xlu0 %v13378_v10  ;;  %v7193_v5 = vmul.f32 %v13378_v10, %v13378_v10  ;;  %v7009_v49 = vpop.permute.xlu1 %7008 }
0x270a   : > { %v7155_v9 = vpop.f32.mrf.mxu0 }
0x270b   : > { %v13383_v41 = vadd.f32 %v7155_v9, %v7029_v15  ;;  %7206 = vadd.xlane.f32.xlu1 %v7193_v5  ;;  %v7013_v15 = vpop.permute.xlu0 %7012 }
0x270c   : > { %v7157_v40 = vpop.f32.mrf.mxu0  ;;  %v13395_v16 = vadd.f32 %v7135_v31, %v7013_v15 }
0x270d   : > { %7176 = vadd.xlane.f32.xlu0 %v13383_v41  ;;  %v7194_v57 = vmul.f32 %v13383_v41, %v13383_v41 }
0x270e   : > { %v7160_v26 = vpop.f32.mrf.mxu0  ;;  %v7190_v59 = vmul.f32 %v13395_v16, %v13395_v16 }
0x270f   : > { %v13388_v24 = vadd.f32 %v7160_v26, %v7033_v11  ;;  %7208 = vadd.xlane.f32.xlu1 %v7194_v57  ;;  %v13400_v11 = vadd.f32 %v7130_v20, %v7009_v49  ;;  %v7005_v5 = vpop.permute.xlu0 %7004 }
0x2710   : > { %v7162_v55 = vpop.f32.mrf.mxu0  ;;  %v13405_v9 = vadd.f32 %v7125_v17, %v7005_v5 }
0x2711   : > { %v7195_v34 = vmul.f32 %v13388_v24, %v13388_v24  ;;  %v7189_v31 = vmul.f32 %v13400_v11, %v13400_v11 }
0x2712   : > { %v7188_v40 = vmul.f32 %v13405_v9, %v13405_v9 }
0x2713   : > { %7210 = vadd.xlane.f32.xlu0 %v7195_v34  ;;  %7178 = vadd.xlane.f32.xlu1 %v13388_v24 }
0x2717   : > { %7170 = vadd.xlane.f32.xlu0 %v13390_v14  ;;  %7202 = vadd.xlane.f32.xlu1 %v7191_v21 }
0x271b   : > { %7168 = vadd.xlane.f32.xlu0 %v13395_v16  ;;  %7200 = vadd.xlane.f32.xlu1 %v7190_v59 }
0x271f   : > { %7166 = vadd.xlane.f32.xlu0 %v13400_v11  ;;  %7198 = vadd.xlane.f32.xlu1 %v7189_v31 }
0x2723   : > { %7164 = vadd.xlane.f32.xlu0 %v13405_v9  ;;  %7196 = vadd.xlane.f32.xlu1 %v7188_v40 }
0x278e   : > { %v7173_v20 = vpop.xlane.xlu0 %7172 }
0x278f   : > { %v7184_v62 = vmul.f32 0.0078125, %v7173_v20 }
0x2790   : > { %v7205_v57 = vpop.xlane.xlu1 %7204 }
0x2791   : > { %v7216_v27 = vmul.f32 0.0078125, %v7205_v57 }
0x2792   : > { %v7175_v26 = vpop.xlane.xlu0 %7174 }
0x2793   : > { %v7185_v40 = vmul.f32 0.0078125, %v7175_v26 }
0x2794   : > { %v7207_v22 = vpop.xlane.xlu1 %7206 }
0x2795   : > { %v7217_v5 = vmul.f32 0.0078125, %v7207_v22 }
0x2796   : > { %v7177_v55 = vpop.xlane.xlu0 %7176 }
0x2797   : > { %v7186_v43 = vmul.f32 0.0078125, %v7177_v55 }
0x2798   : > { %v7209_v34 = vpop.xlane.xlu1 %7208 }
0x2799   : > { %v7218_v21 = vmul.f32 0.0078125, %v7209_v34  ;;  %v7225_v34 = vsel %vm1035_vm2, %v7185_v40, %v7217_v5  ;;  %v13431_v5 = vld [vmem:[%s14083_s6 + $0x10] sm:$0xff]  ;;  %v13445_v40 = vld [vmem:[%s14083_s6 + $0x20] sm:$0xff] }
0x279a   : > { %14229 = vst [vmem:[#allocation29_spill] sm:$0xff] %v13445_v40 }
0x279b   : > { %v7226_v46 = vsel %vm1035_vm2, %v7186_v43, %v7218_v21 }
0x279c   : > { %v7179_v17 = vpop.xlane.xlu1 %7178  ;;  %v7211_v15 = vpop.xlane.xlu0 %7210 }
0x279d   : > { %v7187_v49 = vmul.f32 0.0078125, %v7179_v17  ;;  %v7219_v59 = vmul.f32 0.0078125, %v7211_v15 }
0x279f   : > { %v7227_v31 = vsel %vm1035_vm2, %v7187_v49, %v7219_v59  ;;  %v7224_v49 = vsel %vm1035_vm2, %v7184_v62, %v7216_v27 }
0x27a0   : > { %v7203_v42 = vpop.xlane.xlu1 %7202  ;;  %9529 = vmatprep.subr.mxu1 %v7227_v31  ;;  %v7171_v51 = vpop.xlane.xlu0 %7170 }
0x27a1   : > { %9530 = vmatpush3.msra.mxu1 %v7227_v31  ;;  %v7215_v48 = vmul.f32 0.0078125, %v7203_v42  ;;  %v7183_v30 = vmul.f32 0.0078125, %v7171_v51  ;;  %v13438_v31 = vld [vmem:[%s14083_s6 + $0x18] sm:$0xff] }
0x27a2   : > { %9531 = vmatprep.subr.mxu1 %v7226_v46  ;;  %14228 = vst [vmem:[#allocation30_spill] sm:$0xff] %v13438_v31 }
0x27a3   : > { %9532 = vmatpush3.msra.mxu1 %v7226_v46  ;;  %v7223_v57 = vsel %vm1035_vm2, %v7183_v30, %v7215_v48  ;;  %v13424_v30 = vld [vmem:[%s14083_s6 + $0x8] sm:$0xff] }
0x27a4   : > { %v7201_v17 = vpop.xlane.xlu1 %7200  ;;  %9533 = vmatprep.subr.mxu1 %v7225_v34  ;;  %v7169_v22 = vpop.xlane.xlu0 %7168  ;;  %14227 = vst [vmem:[#allocation27_spill] sm:$0xff] %v13424_v30 }
0x27a5   : > { %v7214_v55 = vmul.f32 0.0078125, %v7201_v17  ;;  %v7182_v15 = vmul.f32 0.0078125, %v7169_v22  ;;  %9534 = vmatpush3.msra.mxu1 %v7225_v34  ;;  %v13452_v34 = vld [vmem:[%s14083_s6 + $0x28] sm:$0xff]  ;;  %v13459_v17 = vld [vmem:[%s14083_s6 + $0x30] sm:$0xff]  ;;  %v13466_v22 = vld [vmem:[%s14083_s6 + $0x38] sm:$0xff] }
0x27a6   : > { %9535 = vmatprep.subr.mxu1 %v7224_v49  ;;  %14230 = vst [vmem:[#allocation32_spill] sm:$0xff] %v13452_v34  ;;  %14231 = vst [vmem:[#allocation31_spill] sm:$0xff] %v13459_v17 }
0x27a7   : > { %9536 = vmatpush3.msra.mxu1 %v7224_v49  ;;  %v7222_v46 = vsel %vm1035_vm2, %v7182_v15, %v7214_v55  ;;  %14232 = vst [vmem:[#allocation42_spill] sm:$0xff] %v13466_v22 }
0x27a8   : > { %v7199_v43 = vpop.xlane.xlu1 %7198  ;;  %9537 = vmatprep.subr.mxu1 %v7223_v57  ;;  %v7167_v20 = vpop.xlane.xlu0 %7166 }
0x27a9   : > { %v7213_v42 = vmul.f32 0.0078125, %v7199_v43  ;;  %v7181_v51 = vmul.f32 0.0078125, %v7167_v20  ;;  %9538 = vmatpush3.msra.mxu1 %v7223_v57 }
0x27aa   : > { %9539 = vmatprep.subr.mxu1 %v7222_v46 }
0x27ab   : > { %9540 = vmatpush3.msra.mxu1 %v7222_v46  ;;  %v7221_v26 = vsel %vm1035_vm2, %v7181_v51, %v7213_v42 }
0x27ac   : > { %v7197_v21 = vpop.xlane.xlu1 %7196  ;;  %9541 = vmatprep.subr.mxu1 %v7221_v26  ;;  %v7165_v59 = vpop.xlane.xlu0 %7164 }
0x27ad   : > { %v7212_v27 = vmul.f32 0.0078125, %v7197_v21  ;;  %v7180_v62 = vmul.f32 0.0078125, %v7165_v59  ;;  %9542 = vmatpush3.msra.mxu1 %v7221_v26 }
0x27af   : > { %v7220_v48 = vsel %vm1035_vm2, %v7180_v62, %v7212_v27 }
0x27b0   : > { %9543 = vmatprep.subr.mxu1 %v7220_v48 }
0x27b1   : > { %9544 = vmatpush3.msra.mxu1 %v7220_v48 }
0x27b2   : > { %9546 = vmatmul.mubr.msk.f32.vlgmr.msra.gmra.mxu1 %vm961_vm1, %v13424_v30 }
0x27b3   : > { %9548 = vmatprep.mubr.msk.f32.mxu1 %vm961_vm1, %v13431_v5 }
0x27b6   : > { %9549 = vmatmul.mubr.msk.f32.gmra.mxu1 %vm961_vm1, %v13438_v31 }
0x27b7   : > { %9551 = vmatprep.mubr.msk.f32.mxu1 %vm961_vm1, %v13445_v40 }
0x27ba   : > { %9552 = vmatmul.mubr.msk.f32.gmra.mxu1 %vm961_vm1, %v13452_v34 }
0x27bb   : > { %9554 = vmatprep.mubr.msk.f32.mxu1 %vm961_vm1, %v13459_v17 }
0x27be   : > { %9555 = vmatmul.mubr.msk.f32.gmra.mxu1 %vm961_vm1, %v13466_v22 }
0x2872   : > { %v13470_v55 = vpop.f32.mrf.mxu1 }
0x2874   : > { %v13472_v15 = vpop.f32.mrf.mxu1 }
0x2875   : > { %v7333_v48 = vmul.f32 %v13472_v15, %v13472_v15 }
0x2876   : > { %v13474_v49 = vpop.f32.mrf.mxu1 }
0x2877   : > { %v7336_v62 = vmul.f32 %v13474_v49, %v13474_v49 }
0x2878   : > { %v13476_v57 = vpop.f32.mrf.mxu1 }
0x2879   : > { %v7335_v27 = vmul.f32 %v13476_v57, %v13476_v57 }
0x287a   : > { %v13478_v43 = vpop.f32.mrf.mxu1 }
0x287b   : > { %v7338_v59 = vmul.f32 %v13478_v43, %v13478_v43 }
0x287c   : > { %v13480_v20 = vpop.f32.mrf.mxu1 }
0x287d   : > { %v7337_v21 = vmul.f32 %v13480_v20, %v13480_v20 }
0x287e   : > { %v13482_v42 = vpop.f32.mrf.mxu1 }
0x287f   : > { %v7340_v51 = vmul.f32 %v13482_v42, %v13482_v42 }
0x2880   : > { %v13486_v46 = vpop.f32.mrf.mxu1 }
0x2881   : > { %v7339_v26 = vmul.f32 %v13486_v46, %v13486_v46  ;;  %7363 = vrot.lane.b32.xlu0 %v7340_v51, %s10269_s29  ;;  %v7334_v51 = vmul.f32 %v13470_v55, %v13470_v55 }
0x2883   : > { %7361 = vrot.lane.b32.xlu1 %v7339_v26, %s10269_s29 }
0x2885   : > { %7357 = vrot.lane.b32.xlu0 %v7337_v21, %s10269_s29 }
0x2887   : > { %7359 = vrot.lane.b32.xlu1 %v7338_v59, %s10269_s29 }
0x2889   : > { %7353 = vrot.lane.b32.xlu0 %v7335_v27, %s10269_s29 }
0x288b   : > { %7355 = vrot.lane.b32.xlu1 %v7336_v62, %s10269_s29 }
0x288d   : > { %7349 = vrot.lane.b32.xlu0 %v7333_v48, %s10269_s29 }
0x288f   : > { %7351 = vrot.lane.b32.xlu1 %v7334_v51, %s10269_s29 }
0x28f3   : > { %v7364_v26 = vpop.permute.xlu0 %7363 }
0x28f4   : > { %v7380_v21 = vsub.f32 %v13482_v42, %v7364_v26 }
0x28f5   : > { %v7362_v59 = vpop.permute.xlu1 %7361 }
0x28f6   : > { %v7388_v56 = vmax.f32 %v7380_v21, 0.0  ;;  %v7379_v13 = vsub.f32 %v13486_v46, %v7362_v59 }
0x28f7   : > { %v7358_v27 = vpop.permute.xlu0 %7357 }
0x28f8   : > { %v7396_v22 = vadd.f32 1e-05, %v7388_v56  ;;  %v7387_v17 = vmax.f32 %v7379_v13, 0.0  ;;  %v7377_v34 = vsub.f32 %v13480_v20, %v7358_v27 }
0x28f9   : > { %v7360_v62 = vpop.permute.xlu1 %7359 }
0x28fa   : > { %9864 = vrsqrt.f32 %v7396_v22  ;;  %v7395_v40 = vadd.f32 1e-05, %v7387_v17  ;;  %v7385_v31 = vmax.f32 %v7377_v34, 0.0  ;;  %v7378_v48 = vsub.f32 %v13478_v43, %v7360_v62 }
0x28fb   : > { %v7354_v30 = vpop.permute.xlu0 %7353 }
0x28fc   : > { %9866 = vrsqrt.f32 %v7395_v40  ;;  %v7393_v51 = vadd.f32 1e-05, %v7385_v31  ;;  %v7386_v1 = vmax.f32 %v7378_v48, 0.0  ;;  %v7375_v26 = vsub.f32 %v13476_v57, %v7354_v30 }
0x28fd   : > { %v7356_v21 = vpop.permute.xlu1 %7355 }
0x28fe   : > { %v7394_v23 = vadd.f32 1e-05, %v7386_v1  ;;  %v7383_v59 = vmax.f32 %v7375_v26, 0.0  ;;  %v7376_v56 = vsub.f32 %v13474_v49, %v7356_v21  ;;  %9868 = vrsqrt.f32 %v7393_v51 }
0x28ff   : > { %v7350_v13 = vpop.permute.xlu0 %7349 }
0x2900   : > { %9870 = vrsqrt.f32 %v7394_v23  ;;  %v7391_v27 = vadd.f32 1e-05, %v7383_v59  ;;  %v7384_v22 = vmax.f32 %v7376_v56, 0.0  ;;  %v7373_v34 = vsub.f32 %v13472_v15, %v7350_v13 }
0x2901   : > { %v7352_v17 = vpop.permute.xlu1 %7351 }
0x2902   : > { %v7392_v62 = vadd.f32 1e-05, %v7384_v22  ;;  %v7381_v18 = vmax.f32 %v7373_v34, 0.0  ;;  %v7374_v31 = vsub.f32 %v13470_v55, %v7352_v17  ;;  %9872 = vrsqrt.f32 %v7391_v27 }
0x2904   : > { %9874 = vrsqrt.f32 %v7392_v62  ;;  %v7389_v30 = vadd.f32 1e-05, %v7381_v18  ;;  %v7382_v40 = vmax.f32 %v7374_v31, 0.0 }
0x2906   : > { %v7390_v1 = vadd.f32 1e-05, %v7382_v40  ;;  %9876 = vrsqrt.f32 %v7389_v30 }
0x2907   : > { %v9865_v48 = vpop.eup %9864 }
0x2908   : > { %9878 = vrsqrt.f32 %v7390_v1  ;;  %7427 = vrot.lane.b32.xlu1 %v9865_v48, %s10291_s24 }
0x2909   : > { %v9867_v23 = vpop.eup %9866 }
0x290a   : > { %7425 = vrot.lane.b32.xlu0 %v9867_v23, %s10291_s24 }
0x290b   : > { %v9869_v51 = vpop.eup %9868 }
0x290d   : > { %v9871_v26 = vpop.eup %9870 }
0x290e   : > { %7421 = vrot.lane.b32.xlu0 %v9869_v51, %s10291_s24  ;;  %7423 = vrot.lane.b32.xlu1 %v9871_v26, %s10291_s24 }
0x290f   : > { %v9873_v21 = vpop.eup %9872 }
0x2911   : > { %v9875_v59 = vpop.eup %9874 }
0x2912   : > { %7417 = vrot.lane.b32.xlu0 %v9873_v21, %s10291_s24  ;;  %7419 = vrot.lane.b32.xlu1 %v9875_v59, %s10291_s24 }
0x2913   : > { %v9877_v18 = vpop.eup %9876 }
0x2915   : > { %v9879_v56 = vpop.eup %9878 }
0x2916   : > { %7413 = vrot.lane.b32.xlu0 %v9877_v18, %s10291_s24  ;;  %7415 = vrot.lane.b32.xlu1 %v9879_v56, %s10291_s24  ;;  %s10294_s24 = smov 7  }
0x297a   : > { %v7428_v13 = vpop.permute.xlu1 %7427 }
0x297b   : > { %v7444_v27 = vmul.f32 %v13133_v45, %v7428_v13 }
0x297c   : > { %v7426_v22 = vpop.permute.xlu0 %7425 }
0x297d   : > { %v7443_v34 = vmul.f32 %v13139_v54, %v7426_v22  ;;  %7467 = vrot.lane.b32.xlu1 %v7444_v27, %s10293_s27 }
0x297f   : > { %7465 = vrot.lane.b32.xlu0 %v7443_v34, %s10293_s27 }
0x2980   : > { %v7422_v17 = vpop.permute.xlu0 %7421  ;;  %v7424_v62 = vpop.permute.xlu1 %7423 }
0x2981   : > { %v7441_v31 = vmul.f32 %v13151_v7, %v7422_v17  ;;  %v7442_v30 = vmul.f32 %v13145_v36, %v7424_v62 }
0x2983   : > { %7461 = vrot.lane.b32.xlu0 %v7441_v31, %s10293_s27  ;;  %7463 = vrot.lane.b32.xlu1 %v7442_v30, %s10293_s27 }
0x2984   : > { %v7418_v40 = vpop.permute.xlu0 %7417  ;;  %v7420_v1 = vpop.permute.xlu1 %7419 }
0x2985   : > { %v7439_v48 = vmul.f32 %v13163_v4, %v7418_v40  ;;  %v7440_v45 = vmul.f32 %v13157_v33, %v7420_v1 }
0x2987   : > { %7457 = vrot.lane.b32.xlu0 %v7439_v48, %s10293_s27  ;;  %7459 = vrot.lane.b32.xlu1 %v7440_v45, %s10293_s27 }
0x2988   : > { %v7414_v54 = vpop.permute.xlu0 %7413  ;;  %v7416_v23 = vpop.permute.xlu1 %7415 }
0x2989   : > { %v7437_v51 = vmul.f32 %v13175_v63, %v7414_v54  ;;  %v7438_v26 = vmul.f32 %v13169_v60, %v7416_v23 }
0x298b   : > { %7453 = vrot.lane.b32.xlu0 %v7437_v51, %s10293_s27  ;;  %7455 = vrot.lane.b32.xlu1 %v7438_v26, %s10293_s27  ;;  %s10297_s27 = smov 8  }
0x29ef   : > { %v7468_v7 = vpop.permute.xlu1 %7467 }
0x29f0   : > { %v7484_v36 = vmul.f32 %v13482_v42, %v7468_v7 }
0x29f1   : > { %v7466_v21 = vpop.permute.xlu0 %7465 }
0x29f2   : > { %v7483_v59 = vmul.f32 %v7466_v21, %v13486_v46  ;;  %7507 = vrot.lane.b32.xlu1 %v7484_v36, %s10294_s24 }
0x29f4   : > { %7505 = vrot.lane.b32.xlu0 %v7483_v59, %s10294_s24 }
0x29f5   : > { %v7462_v33 = vpop.permute.xlu0 %7461  ;;  %v7464_v4 = vpop.permute.xlu1 %7463 }
0x29f6   : > { %v7481_v18 = vmul.f32 %v7462_v33, %v13480_v20  ;;  %v7482_v63 = vmul.f32 %v13478_v43, %v7464_v4 }
0x29f8   : > { %7501 = vrot.lane.b32.xlu0 %v7481_v18, %s10294_s24  ;;  %7503 = vrot.lane.b32.xlu1 %v7482_v63, %s10294_s24 }
0x29f9   : > { %v7458_v60 = vpop.permute.xlu0 %7457  ;;  %v7460_v42 = vpop.permute.xlu1 %7459 }
0x29fa   : > { %v7479_v56 = vmul.f32 %v7458_v60, %v13476_v57  ;;  %v7480_v46 = vmul.f32 %v13474_v49, %v7460_v42 }
0x29fc   : > { %7497 = vrot.lane.b32.xlu0 %v7479_v56, %s10294_s24  ;;  %7499 = vrot.lane.b32.xlu1 %v7480_v46, %s10294_s24 }
0x29fd   : > { %v7454_v13 = vpop.permute.xlu0 %7453  ;;  %v7456_v22 = vpop.permute.xlu1 %7455 }
0x29fe   : > { %v7477_v20 = vmul.f32 %v7454_v13, %v13472_v15  ;;  %v7478_v43 = vmul.f32 %v13470_v55, %v7456_v22 }
0x2a00   : > { %7493 = vrot.lane.b32.xlu0 %v7477_v20, %s10294_s24  ;;  %7495 = vrot.lane.b32.xlu1 %v7478_v43, %s10294_s24 }
0x2a04   : > { %7550 = vperm.xlu0 %9760, %v7443_v34   ;;  %7554 = vperm.xlu1 %9761, %v7444_v27  }
0x2a08   : > { %7546 = vperm.xlu0 %9760, %v7442_v30  }
0x2a0c   : > { %7542 = vperm.xlu0 %9760, %v7441_v31  }
0x2a10   : > { %7538 = vperm.xlu0 %9760, %v7440_v45  }
0x2a14   : > { %7534 = vperm.xlu0 %9760, %v7439_v48  }
0x2a18   : > { %7530 = vperm.xlu0 %9760, %v7438_v26  }
0x2a1c   : > { %7526 = vperm.xlu0 %9760, %v7437_v51  }
0x2a64   : > { %v7508_v49 = vpop.permute.xlu1 %7507 }
0x2a65   : > { %v7524_v27 = vsub.f32 %v13209_v39, %v7508_v49  ;;  %v7621_v39 = vld [vmem:[%s14081_s4] sm:$0xff] }
0x2a66   : > { %v7506_v57 = vpop.permute.xlu0 %7505  ;;  %9573 = vmatprep.mubr.msk.f32.mxu1 %vm961_vm1, %v7621_v39 }
0x2a67   : > { %v7523_v31 = vsub.f32 %v13215_v2, %v7506_v57  ;;  %v14233_v2 = vmov 5  }
0x2a6a   : > { %v7502_v17 = vpop.permute.xlu0 %7501  ;;  %v7504_v62 = vpop.permute.xlu1 %7503 }
0x2a6b   : > { %v7522_v15 = vsub.f32 %v13197_v19, %v7504_v62  ;;  %v7521_v40 = vsub.f32 %v13203_v58, %v7502_v17  ;;  %v7622_v62 = vld [vmem:[%s14081_s4 + $0x8] sm:$0xff] }
0x2a6d   : > { %7592 = vperm.xlu1 %9761, %v7522_v15   ;;  %v7625_v15 = vld [vmem:[%s14081_s4 + $0x20] sm:$0xff] }
0x2a6e   : > { %v7498_v55 = vpop.permute.xlu0 %7497  ;;  %v7500_v30 = vpop.permute.xlu1 %7499 }
0x2a6f   : > { %v7520_v48 = vsub.f32 %v13227_v6, %v7500_v30  ;;  %v7519_v19 = vsub.f32 %v13233_v47, %v7498_v55  ;;  %v7626_v55 = vld [vmem:[%s14081_s4 + $0x28] sm:$0xff] }
0x2a71   : > { %7587 = vperm.xlu1 %9761, %v7521_v40   ;;  %v7627_v40 = vld [vmem:[%s14081_s4 + $0x30] sm:$0xff] }
0x2a72   : > { %v7494_v1 = vpop.permute.xlu0 %7493  ;;  %v7496_v45 = vpop.permute.xlu1 %7495 }
0x2a73   : > { %v7517_v34 = vsub.f32 %v13221_v52, %v7494_v1  ;;  %v7518_v58 = vsub.f32 %v13239_v37, %v7496_v45  ;;  %v10295_v52 = vmov 8   ;;  %v7628_v1 = vld [vmem:[%s14081_s4 + $0x38] sm:$0xff] }
0x2a75   : > { %7567 = vperm.xlu0 %9760, %v7517_v34   ;;  %7602 = vperm.xlu1 %9761, %v7524_v27  }
0x2a79   : > { %7597 = vperm.xlu1 %9761, %v7523_v31   ;;  %9763 = vset.pattern.permute.xlu0 %v10295_v52 }
0x2a7a   : > { %7654 = vperm.xlu0 %9763, %v13284_v8  }
0x2a7d   : > { %7582 = vperm.xlu1 %9761, %v7520_v48  }
0x2a7e   : > { %7642 = vperm.xlu0 %9763, %v13308_v3  }
0x2a7f   : > { %v7551_v6 = vpop.permute.xlu0 %7550 }
0x2a81   : > { %7577 = vperm.xlu1 %9761, %v7519_v19  }
0x2a82   : > { %7634 = vperm.xlu0 %9763, %v13320_v53  }
0x2a83   : > { %v7547_v47 = vpop.permute.xlu0 %7546 }
0x2a84   : > { %v7562_v51 = vmul.f32 %v7547_v47, %v13378_v10 }
0x2a85   : > { %7572 = vperm.xlu1 %9761, %v7518_v58  }
0x2a86   : > { %9765 = vset.pattern.permute.xlu0 %v14233_v2 }
0x2a87   : > { %v7543_v37 = vpop.permute.xlu0 %7542 }
0x2a88   : > { %v7561_v36 = vmul.f32 %v7543_v37, %v13373_v32 }
0x2a89   : > { %9762 = vset.pattern.permute.xlu1 %v10295_v52 }
0x2a8a   : > { %7658 = vperm.xlu1 %9762, %v13278_v38   ;;  %v7555_v38 = vpop.permute.xlu1 %7554 }
0x2a8b   : > { %v7539_v8 = vpop.permute.xlu0 %7538 }
0x2a8c   : > { %v7560_v33 = vmul.f32 %v7539_v8, %v13390_v14 }
0x2a8e   : > { %7650 = vperm.xlu1 %9762, %v13296_v28  }
0x2a8f   : > { %v7535_v3 = vpop.permute.xlu0 %7534 }
0x2a90   : > { %v7559_v10 = vmul.f32 %v7535_v3, %v13395_v16 }
0x2a92   : > { %7646 = vperm.xlu1 %9762, %v13290_v35   ;;  %v7564_v35 = vmul.f32 %v7555_v38, %v13388_v24 }
0x2a96   : > { %7638 = vperm.xlu1 %9762, %v13302_v61   ;;  %v7563_v61 = vmul.f32 %v7551_v6, %v13383_v41 }
0x2a9a   : > { %7630 = vperm.xlu1 %9762, %v13314_v50   ;;  %v7531_v50 = vpop.permute.xlu0 %7530 }
0x2a9b   : > { %v7558_v14 = vmul.f32 %v7531_v50, %v13400_v11  ;;  %v7623_v11 = vld [vmem:[%s14081_s4 + $0x10] sm:$0xff] }
0x2a9e   : > { %9764 = vset.pattern.permute.xlu1 %v14233_v2  ;;  %v7527_v41 = vpop.permute.xlu0 %7526 }
0x2a9f   : > { %v7557_v22 = vmul.f32 %v7527_v41, %v13405_v9  ;;  %v7624_v9 = vld [vmem:[%s14081_s4 + $0x18] sm:$0xff]  ;;  %v5785_v41 = vmul.f32 %v12909_v29, %v12909_v29 }
0x2ae8   : > { %v7593_v28 = vpop.permute.xlu1 %7592 }
0x2ae9   : > { %v7610_v21 = vadd.f32 %v7593_v28, %v7562_v51 }
0x2aeb   : > { %v7618_v63 = vmax.f32 %v7610_v21, 0.0 }
0x2aec   : > { %v7588_v54 = vpop.permute.xlu1 %7587 }
0x2aed   : > { %v7609_v4 = vadd.f32 %v7588_v54, %v7561_v36 }
0x2aef   : > { %v7617_v42 = vmax.f32 %v7609_v4, 0.0 }
0x2af0   : > { %v7603_v23 = vpop.permute.xlu1 %7602  ;;  %v7568_v13 = vpop.permute.xlu0 %7567 }
0x2af1   : > { %v7612_v53 = vadd.f32 %v7603_v23, %v7564_v35  ;;  %v7605_v49 = vadd.f32 %v7568_v13, %v7557_v22 }
0x2af3   : > { %v7620_v26 = vmax.f32 %v7612_v53, 0.0  ;;  %v7613_v17 = vmax.f32 %v7605_v49, 0.0 }
0x2af4   : > { %v7598_v7 = vpop.permute.xlu1 %7597 }
0x2af5   : > { %v7611_v59 = vadd.f32 %v7598_v7, %v7563_v61  ;;  %9557 = vmatprep.subr.mxu1 %v7620_v26  ;;  %v7655_v2 = vpop.permute.xlu0 %7654 }
0x2af6   : > { %9558 = vmatpush3.msra.mxu1 %v7620_v26 }
0x2af7   : > { %v7619_v18 = vmax.f32 %v7611_v59, 0.0 }
0x2af8   : > { %v7583_v24 = vpop.permute.xlu1 %7582 }
0x2af9   : > { %v7608_v60 = vadd.f32 %v7583_v24, %v7560_v33  ;;  %9559 = vmatprep.subr.mxu1 %v7619_v18  ;;  %v7643_v28 = vpop.permute.xlu0 %7642  ;;  %v5786_v24 = vmul.f32 %v12915_v12, %v12915_v12 }
0x2afa   : > { %9560 = vmatpush3.msra.mxu1 %v7619_v18  ;;  %v5784_v18 = vmul.f32 %v12911_v44, %v12911_v44 }
0x2afb   : > { %9561 = vmatprep.subr.mxu1 %v7618_v63  ;;  %v7616_v56 = vmax.f32 %v7608_v60, 0.0  ;;  %v5789_v60 = vmul.f32 %v12917_v25, %v12917_v25 }
0x2afc   : > { %9562 = vmatpush3.msra.mxu1 %v7618_v63  ;;  %v7578_v32 = vpop.permute.xlu1 %7577  ;;  %v5787_v63 = vmul.f32 %v12913_v0, %v12913_v0 }
0x2afd   : > { %v7607_v46 = vadd.f32 %v7578_v32, %v7559_v10  ;;  %9563 = vmatprep.subr.mxu1 %v7617_v42  ;;  %v7635_v51 = vpop.permute.xlu0 %7634  ;;  %v14234_v10 = vld [vmem:[#allocation25_spill] sm:$0xff]  ;;  %v14235_v32 = vld [vmem:[#allocation26_spill] sm:$0xff] }
0x2afe   : > { %9564 = vmatpush3.msra.mxu1 %v7617_v42  ;;  %v5791_v42 = vmul.f32 %v14234_v10, %v14234_v10 }
0x2aff   : > { %v7615_v20 = vmax.f32 %v7607_v46, 0.0  ;;  %9565 = vmatprep.subr.mxu1 %v7616_v56  ;;  %v14236_v46 = vld [vmem:[#allocation28_spill] sm:$0xff] }
0x2b00   : > { %9566 = vmatpush3.msra.mxu1 %v7616_v56  ;;  %v7573_v43 = vpop.permute.xlu1 %7572  ;;  %v5788_v56 = vmul.f32 %v14235_v32, %v14235_v32  ;;  %v5790_v13 = vmul.f32 %v14236_v46, %v14236_v46 }
0x2b01   : > { %v7606_v57 = vadd.f32 %v7573_v43, %v7558_v14  ;;  %9567 = vmatprep.subr.mxu1 %v7615_v20 }
0x2b02   : > { %9568 = vmatpush3.msra.mxu1 %v7615_v20 }
0x2b03   : > { %v7614_v16 = vmax.f32 %v7606_v57, 0.0 }
0x2b05   : > { %9569 = vmatprep.subr.mxu1 %v7614_v16  ;;  %v7659_v27 = vpop.permute.xlu1 %7658 }
0x2b06   : > { %9570 = vmatpush3.msra.mxu1 %v7614_v16 }
0x2b07   : > { %9571 = vmatprep.subr.mxu1 %v7613_v17 }
0x2b08   : > { %9572 = vmatpush3.msra.mxu1 %v7613_v17 }
0x2b09   : > { %9574 = vmatmul.mubr.msk.f32.vlgmr.msra.gmra.mxu1 %vm961_vm1, %v7622_v62  ;;  %v7651_v48 = vpop.permute.xlu1 %7650 }
0x2b0a   : > { %9576 = vmatprep.mubr.msk.f32.mxu1 %vm961_vm1, %v7623_v11 }
0x2b0d   : > { %9577 = vmatmul.mubr.msk.f32.gmra.mxu1 %vm961_vm1, %v7624_v9  ;;  %v7647_v47 = vpop.permute.xlu1 %7646 }
0x2b0e   : > { %9579 = vmatprep.mubr.msk.f32.mxu1 %vm961_vm1, %v7625_v15 }
0x2b11   : > { %9580 = vmatmul.mubr.msk.f32.gmra.mxu1 %vm961_vm1, %v7626_v55  ;;  %v7639_v23 = vpop.permute.xlu1 %7638 }
0x2b12   : > { %9582 = vmatprep.mubr.msk.f32.mxu1 %vm961_vm1, %v7627_v40 }
0x2b15   : > { %9583 = vmatmul.mubr.msk.f32.gmra.mxu1 %vm961_vm1, %v7628_v1  ;;  %v7631_v7 = vpop.permute.xlu1 %7630 }
0x2b16   : > { %9604 = vmatprep.mubr.msk.f32.mxu1 %vm961_vm1, %v13431_v5 }
0x2bc9   : > { %v9575_v34 = vpop.f32.mrf.mxu1 }
0x2bca   : > { %v13637_v50 = vadd.f32 %v9575_v34, %v7635_v51 }
0x2bcb   : > { %v7751_v31 = vpop.f32.mrf.mxu1 }
0x2bcc   : > { %v13643_v21 = vadd.f32 %v7751_v31, %v7631_v7  ;;  %v7815_v33 = vmul.f32 %v13637_v50, %v13637_v50 }
0x2bcd   : > { %v9578_v30 = vpop.f32.mrf.mxu1 }
0x2bce   : > { %v13625_v54 = vadd.f32 %v9578_v30, %v7643_v28  ;;  %v7814_v4 = vmul.f32 %v13643_v21, %v13643_v21 }
0x2bcf   : > { %v7761_v19 = vpop.f32.mrf.mxu1 }
0x2bd0   : > { %v7817_v35 = vmul.f32 %v13625_v54, %v13625_v54  ;;  %v13632_v61 = vadd.f32 %v7761_v19, %v7639_v23 }
0x2bd1   : > { %v9581_v45 = vpop.f32.mrf.mxu1 }
0x2bd2   : > { %v13612_v58 = vadd.f32 %v9581_v45, %v7651_v48  ;;  %v7816_v59 = vmul.f32 %v13632_v61, %v13632_v61 }
0x2bd3   : > { %v7771_v39 = vpop.f32.mrf.mxu1 }
0x2bd4   : > { %7800 = vadd.xlane.f32.xlu1 %v13612_v58  ;;  %v7819_v6 = vmul.f32 %v13612_v58, %v13612_v58  ;;  %v13617_v38 = vadd.f32 %v7771_v39, %v7647_v47 }
0x2bd5   : > { %v9584_v37 = vpop.f32.mrf.mxu1 }
0x2bd6   : > { %v13619_v5 = vadd.f32 %v9584_v37, %v7659_v27  ;;  %7832 = vadd.xlane.f32.xlu0 %v7819_v6  ;;  %v7818_v3 = vmul.f32 %v13617_v38, %v13617_v38 }
0x2bd7   : > { %v7781_v53 = vpop.f32.mrf.mxu1 }
0x2bd8   : > { %7798 = vadd.xlane.f32.xlu1 %v13617_v38  ;;  %v7821_v8 = vmul.f32 %v13619_v5, %v13619_v5  ;;  %v13634_v26 = vadd.f32 %v7781_v53, %v7655_v2 }
0x2bda   : > { %7804 = vadd.xlane.f32.xlu0 %v13619_v5  ;;  %v7820_v36 = vmul.f32 %v13634_v26, %v13634_v26 }
0x2bdc   : > { %7836 = vadd.xlane.f32.xlu1 %v7821_v8 }
0x2bde   : > { %7830 = vadd.xlane.f32.xlu0 %v7818_v3 }
0x2be0   : > { %7796 = vadd.xlane.f32.xlu1 %v13625_v54 }
0x2be2   : > { %7828 = vadd.xlane.f32.xlu0 %v7817_v35 }
0x2be4   : > { %7794 = vadd.xlane.f32.xlu1 %v13632_v61 }
0x2be6   : > { %7802 = vadd.xlane.f32.xlu0 %v13634_v26 }
0x2be8   : > { %7792 = vadd.xlane.f32.xlu1 %v13637_v50 }
0x2bea   : > { %7834 = vadd.xlane.f32.xlu0 %v7820_v36 }
0x2bec   : > { %7790 = vadd.xlane.f32.xlu1 %v13643_v21 }
0x2bee   : > { %7826 = vadd.xlane.f32.xlu0 %v7816_v59 }
0x2bf2   : > { %7824 = vadd.xlane.f32.xlu0 %v7815_v33 }
0x2bf6   : > { %7822 = vadd.xlane.f32.xlu0 %v7814_v4 }
0x2bfd   : > { %5800 = vrot.lane.b32.xlu1 %v5784_v18, %s10269_s29 }
0x2c01   : > { %5804 = vrot.lane.b32.xlu1 %v5786_v24, %s10269_s29  ;;  %v14237_v24 = vld [vmem:[#allocation27_spill] sm:$0xff] }
0x2c05   : > { %5806 = vrot.lane.b32.xlu1 %v5787_v63, %s10269_s29  ;;  %v14238_v63 = vld [vmem:[#allocation30_spill] sm:$0xff] }
0x2c09   : > { %5810 = vrot.lane.b32.xlu1 %v5789_v60, %s10269_s29  ;;  %v14239_v60 = vld [vmem:[#allocation29_spill] sm:$0xff] }
0x2c0c   : > { %5802 = vrot.lane.b32.xlu0 %v5785_v41, %s10269_s29  ;;  %v14240_v41 = vld [vmem:[#allocation32_spill] sm:$0xff] }
0x2c0d   : > { %5814 = vrot.lane.b32.xlu1 %v5791_v42, %s10269_s29  ;;  %v14241_v42 = vld [vmem:[#allocation31_spill] sm:$0xff] }
0x2c10   : > { %5808 = vrot.lane.b32.xlu0 %v5788_v56, %s10269_s29  ;;  %v14242_v56 = vld [vmem:[#allocation42_spill] sm:$0xff] }
0x2c14   : > { %5812 = vrot.lane.b32.xlu0 %v5790_v13, %s10269_s29 }
0x2c5d   : > { %v7801_v14 = vpop.xlane.xlu1 %7800 }
0x2c5e   : > { %v7811_v31 = vmul.f32 0.0078125, %v7801_v14 }
0x2c5f   : > { %v7833_v22 = vpop.xlane.xlu0 %7832 }
0x2c60   : > { %v7843_v1 = vmul.f32 0.0078125, %v7833_v22 }
0x2c61   : > { %v7799_v20 = vpop.xlane.xlu1 %7798 }
0x2c62   : > { %v7810_v39 = vmul.f32 0.0078125, %v7799_v20  ;;  %v7851_v6 = vsel %vm1035_vm2, %v7811_v31, %v7843_v1 }
0x2c63   : > { %v7805_v43 = vpop.xlane.xlu0 %7804 }
0x2c64   : > { %v7813_v57 = vmul.f32 0.0078125, %v7805_v43 }
0x2c65   : > { %v7837_v49 = vpop.xlane.xlu1 %7836 }
0x2c66   : > { %v7845_v16 = vmul.f32 0.0078125, %v7837_v49 }
0x2c67   : > { %v7831_v17 = vpop.xlane.xlu0 %7830 }
0x2c68   : > { %v7853_v62 = vsel %vm1035_vm2, %v7813_v57, %v7845_v16  ;;  %v7842_v30 = vmul.f32 0.0078125, %v7831_v17 }
0x2c69   : > { %9585 = vmatprep.subr.mxu0 %v7853_v62  ;;  %9613 = vmatprep.subr.mxu1 %v7853_v62  ;;  %v7797_v11 = vpop.xlane.xlu1 %7796 }
0x2c6a   : > { %9586 = vmatpush3.msra.mxu0 %v7853_v62  ;;  %9621 = vmatpush3.msra.mxu1 %v7853_v62  ;;  %v7809_v47 = vmul.f32 0.0078125, %v7797_v11  ;;  %v7850_v8 = vsel %vm1035_vm2, %v7810_v39, %v7842_v30 }
0x2c6b   : > { %v7829_v9 = vpop.xlane.xlu0 %7828 }
0x2c6c   : > { %v7841_v2 = vmul.f32 0.0078125, %v7829_v9 }
0x2c6d   : > { %v7795_v55 = vpop.xlane.xlu1 %7794 }
0x2c6e   : > { %v7808_v3 = vmul.f32 0.0078125, %v7795_v55  ;;  %v7849_v23 = vsel %vm1035_vm2, %v7809_v47, %v7841_v2 }
0x2c6f   : > { %v7803_v15 = vpop.xlane.xlu0 %7802 }
0x2c70   : > { %v7812_v27 = vmul.f32 0.0078125, %v7803_v15 }
0x2c71   : > { %v7793_v19 = vpop.xlane.xlu1 %7792 }
0x2c72   : > { %v7807_v51 = vmul.f32 0.0078125, %v7793_v19 }
0x2c73   : > { %v7835_v40 = vpop.xlane.xlu0 %7834 }
0x2c74   : > { %v7844_v34 = vmul.f32 0.0078125, %v7835_v40 }
0x2c75   : > { %v7791_v53 = vpop.xlane.xlu1 %7790 }
0x2c76   : > { %v7852_v48 = vsel %vm1035_vm2, %v7812_v27, %v7844_v34  ;;  %v7806_v59 = vmul.f32 0.0078125, %v7791_v53 }
0x2c77   : > { %v7827_v45 = vpop.xlane.xlu0 %7826  ;;  %9587 = vmatprep.subr.mxu0 %v7852_v48  ;;  %9614 = vmatprep.subr.mxu1 %v7852_v48 }
0x2c78   : > { %9588 = vmatpush3.msra.mxu0 %v7852_v48  ;;  %9622 = vmatpush3.msra.mxu1 %v7852_v48  ;;  %v7840_v37 = vmul.f32 0.0078125, %v7827_v45 }
0x2c79   : > { %9589 = vmatprep.subr.mxu0 %v7851_v6  ;;  %9615 = vmatprep.subr.mxu1 %v7851_v6  ;;  %v5801_v13 = vpop.permute.xlu1 %5800 }
0x2c7a   : > { %9590 = vmatpush3.msra.mxu0 %v7851_v6  ;;  %9623 = vmatpush3.msra.mxu1 %v7851_v6  ;;  %v7848_v7 = vsel %vm1035_vm2, %v7808_v3, %v7840_v37  ;;  %v5824_v49 = vsub.f32 %v12911_v44, %v5801_v13 }
0x2c7b   : > { %v7825_v28 = vpop.xlane.xlu0 %7824  ;;  %9591 = vmatprep.subr.mxu0 %v7850_v8  ;;  %9616 = vmatprep.subr.mxu1 %v7850_v8 }
0x2c7c   : > { %v7839_v35 = vmul.f32 0.0078125, %v7825_v28  ;;  %9592 = vmatpush3.msra.mxu0 %v7850_v8  ;;  %9624 = vmatpush3.msra.mxu1 %v7850_v8  ;;  %v5832_v62 = vmax.f32 %v5824_v49, 0.0 }
0x2c7d   : > { %9593 = vmatprep.subr.mxu0 %v7849_v23  ;;  %9617 = vmatprep.subr.mxu1 %v7849_v23  ;;  %v5805_v14 = vpop.permute.xlu1 %5804 }
0x2c7e   : > { %9594 = vmatpush3.msra.mxu0 %v7849_v23  ;;  %9625 = vmatpush3.msra.mxu1 %v7849_v23  ;;  %v7847_v4 = vsel %vm1035_vm2, %v7807_v51, %v7839_v35  ;;  %v5826_v11 = vsub.f32 %v12915_v12, %v5805_v14  ;;  %v5840_v30 = vadd.f32 1e-05, %v5832_v62 }
0x2c7f   : > { %v7823_v36 = vpop.xlane.xlu0 %7822  ;;  %9595 = vmatprep.subr.mxu0 %v7848_v7  ;;  %9618 = vmatprep.subr.mxu1 %v7848_v7 }
0x2c80   : > { %v7838_v33 = vmul.f32 0.0078125, %v7823_v36  ;;  %9596 = vmatpush3.msra.mxu0 %v7848_v7  ;;  %9626 = vmatpush3.msra.mxu1 %v7848_v7  ;;  %v5834_v48 = vmax.f32 %v5826_v11, 0.0 }
0x2c81   : > { %9597 = vmatprep.subr.mxu0 %v7847_v4  ;;  %9619 = vmatprep.subr.mxu1 %v7847_v4  ;;  %v5807_v22 = vpop.permute.xlu1 %5806 }
0x2c82   : > { %9598 = vmatpush3.msra.mxu0 %v7847_v4  ;;  %9627 = vmatpush3.msra.mxu1 %v7847_v4  ;;  %v7846_v18 = vsel %vm1035_vm2, %v7806_v59, %v7838_v33  ;;  %v5827_v16 = vsub.f32 %v12913_v0, %v5807_v22  ;;  %v5842_v35 = vadd.f32 1e-05, %v5834_v48 }
0x2c83   : > { %9599 = vmatprep.subr.mxu0 %v7846_v18  ;;  %9620 = vmatprep.subr.mxu1 %v7846_v18  ;;  %v5803_v20 = vpop.permute.xlu0 %5802 }
0x2c84   : > { %9600 = vmatpush3.msra.mxu0 %v7846_v18  ;;  %9628 = vmatpush3.msra.mxu1 %v7846_v18  ;;  %v5825_v43 = vsub.f32 %v12909_v29, %v5803_v20  ;;  %v5835_v40 = vmax.f32 %v5827_v16, 0.0 }
0x2c85   : > { %9602 = vmatmul.mubr.msk.f32.vlgmr.msra.gmra.mxu0 %vm961_vm1, %v14237_v24  ;;  %9605 = vmatmul.mubr.msk.f32.vlgmr.msra.gmra.mxu1 %vm961_vm1, %v14238_v63  ;;  %v5811_v57 = vpop.permute.xlu1 %5810 }
0x2c86   : > { %9607 = vmatprep.mubr.msk.f32.mxu1 %vm961_vm1, %v14239_v60  ;;  %v5833_v17 = vmax.f32 %v5825_v43, 0.0  ;;  %v5829_v27 = vsub.f32 %v12917_v25, %v5811_v57  ;;  %v5843_v8 = vadd.f32 1e-05, %v5835_v40 }
0x2c87   : > { %v5809_v9 = vpop.permute.xlu0 %5808 }
0x2c88   : > { %v5841_v1 = vadd.f32 1e-05, %v5833_v17  ;;  %v5828_v39 = vsub.f32 %v14235_v32, %v5809_v9  ;;  %v5837_v28 = vmax.f32 %v5829_v27, 0.0 }
0x2c89   : > { %9608 = vmatmul.mubr.msk.f32.gmra.mxu1 %vm961_vm1, %v14240_v41  ;;  %v5815_v34 = vpop.permute.xlu1 %5814 }
0x2c8a   : > { %9610 = vmatprep.mubr.msk.f32.mxu1 %vm961_vm1, %v14241_v42  ;;  %9880 = vrsqrt.f32 %v5841_v1  ;;  %v5831_v3 = vsub.f32 %v14234_v10, %v5815_v34  ;;  %v5836_v53 = vmax.f32 %v5828_v39, 0.0  ;;  %v5845_v33 = vadd.f32 1e-05, %v5837_v28 }
0x2c8b   : > { %v5813_v47 = vpop.permute.xlu0 %5812  ;;  %9882 = vrsqrt.f32 %v5840_v30 }
0x2c8c   : > { %v5830_v51 = vsub.f32 %v14236_v46, %v5813_v47  ;;  %9884 = vrsqrt.f32 %v5843_v8  ;;  %v5839_v4 = vmax.f32 %v5831_v3, 0.0  ;;  %v5844_v63 = vadd.f32 1e-05, %v5836_v53 }
0x2c8d   : > { %9611 = vmatmul.mubr.msk.f32.gmra.mxu1 %vm961_vm1, %v14242_v56  ;;  %9886 = vrsqrt.f32 %v5842_v35 }
0x2c8e   : > { %v5838_v60 = vmax.f32 %v5830_v51, 0.0  ;;  %9888 = vrsqrt.f32 %v5845_v33  ;;  %v5847_v42 = vadd.f32 1e-05, %v5839_v4 }
0x2c8f   : > { %9890 = vrsqrt.f32 %v5844_v63 }
0x2c90   : > { %v5846_v13 = vadd.f32 1e-05, %v5838_v60  ;;  %9892 = vrsqrt.f32 %v5847_v42 }
0x2c92   : > { %9894 = vrsqrt.f32 %v5846_v13 }
0x2c97   : > { %v9881_v14 = vpop.eup %9880 }
0x2c98   : > { %v9883_v22 = vpop.eup %9882 }
0x2c99   : > { %v9885_v20 = vpop.eup %9884 }
0x2c9a   : > { %v9887_v43 = vpop.eup %9886 }
0x2c9b   : > { %v9889_v49 = vpop.eup %9888 }
0x2c9c   : > { %v9891_v57 = vpop.eup %9890 }
0x2c9d   : > { %v9893_v16 = vpop.eup %9892 }
0x2c9f   : > { %v9895_v17 = vpop.eup %9894 }
0x2d45   : > { %v13700_v15 = vpop.f32.mrf.mxu0  ;;  %v13702_v55 = vpop.f32.mrf.mxu1 }
0x2d46   : > { %v7960_v31 = vmul.f32 %v13700_v15, %v13700_v15  ;;  %v7962_v6 = vmul.f32 %v13702_v55, %v13702_v55 }
0x2d47   : > { %v13707_v19 = vpop.f32.mrf.mxu0  ;;  %v13709_v45 = vpop.f32.mrf.mxu1 }
0x2d48   : > { %v7959_v2 = vmul.f32 %v13707_v19, %v13707_v19  ;;  %7977 = vrot.lane.b32.xlu1 %v7960_v31, %s10269_s29  ;;  %v7961_v7 = vmul.f32 %v13709_v45, %v13709_v45 }
0x2d49   : > { %v13717_v37 = vpop.f32.mrf.mxu1 }
0x2d4a   : > { %7975 = vrot.lane.b32.xlu0 %v7959_v2, %s10269_s29  ;;  %v7964_v36 = vmul.f32 %v13717_v37, %v13717_v37 }
0x2d4b   : > { %v13721_v23 = vpop.f32.mrf.mxu1 }
0x2d4c   : > { %7981 = vrot.lane.b32.xlu1 %v7962_v6, %s10269_s29  ;;  %v7963_v18 = vmul.f32 %v13721_v23, %v13721_v23 }
0x2d4d   : > { %v13729_v59 = vpop.f32.mrf.mxu1 }
0x2d4e   : > { %7979 = vrot.lane.b32.xlu0 %v7961_v7, %s10269_s29  ;;  %v7966_v41 = vmul.f32 %v13729_v59, %v13729_v59 }
0x2d4f   : > { %v13734_v24 = vpop.f32.mrf.mxu1 }
0x2d50   : > { %7985 = vrot.lane.b32.xlu1 %v7964_v36, %s10269_s29  ;;  %v7965_v56 = vmul.f32 %v13734_v24, %v13734_v24 }
0x2d52   : > { %7983 = vrot.lane.b32.xlu0 %v7963_v18, %s10269_s29 }
0x2d54   : > { %7989 = vrot.lane.b32.xlu1 %v7966_v41, %s10269_s29 }
0x2d56   : > { %7987 = vrot.lane.b32.xlu0 %v7965_v56, %s10269_s29 }
0x2d58   : > { %5866 = vrot.lane.b32.xlu1 %v9881_v14, %s10286_s11 }
0x2d5a   : > { %5864 = vrot.lane.b32.xlu0 %v9883_v22, %s10286_s11 }
0x2d5c   : > { %5870 = vrot.lane.b32.xlu1 %v9885_v20, %s10286_s11 }
0x2d5e   : > { %5868 = vrot.lane.b32.xlu0 %v9887_v43, %s10286_s11 }
0x2d60   : > { %5874 = vrot.lane.b32.xlu1 %v9889_v49, %s10286_s11 }
0x2d62   : > { %5872 = vrot.lane.b32.xlu0 %v9891_v57, %s10286_s11 }
0x2d64   : > { %5878 = vrot.lane.b32.xlu1 %v9893_v16, %s10286_s11 }
0x2d66   : > { %5876 = vrot.lane.b32.xlu0 %v9895_v17, %s10286_s11  ;;  %s10296_s11 = smov 123  }
0x2dba   : > { %v7978_v62 = vpop.permute.xlu1 %7977 }
0x2dbb   : > { %v8000_v11 = vsub.f32 %v13700_v15, %v7978_v62 }
0x2dbc   : > { %v7976_v9 = vpop.permute.xlu0 %7975 }
0x2dbd   : > { %v8008_v40 = vmax.f32 %v8000_v11, 0.0  ;;  %v7999_v1 = vsub.f32 %v13707_v19, %v7976_v9 }
0x2dbe   : > { %v7982_v27 = vpop.permute.xlu1 %7981 }
0x2dbf   : > { %v8016_v34 = vadd.f32 1e-05, %v8008_v40  ;;  %v8007_v31 = vmax.f32 %v7999_v1, 0.0  ;;  %v8002_v30 = vsub.f32 %v13702_v55, %v7982_v27  ;;  %v10034_v1 = vld [vmem:[%s14082_s5 + $0x40] sm:$0xff] }
0x2dc0   : > { %v7980_v48 = vpop.permute.xlu0 %7979 }
0x2dc1   : > { %9896 = vrsqrt.f32 %v8016_v34  ;;  %v8015_v39 = vadd.f32 1e-05, %v8007_v31  ;;  %v8010_v2 = vmax.f32 %v8002_v30, 0.0  ;;  %v8001_v6 = vsub.f32 %v13709_v45, %v7980_v48  ;;  %v10035_v30 = vld [vmem:[%s14082_s5 + $0x50] sm:$0xff] }
0x2dc2   : > { %v7986_v47 = vpop.permute.xlu1 %7985 }
0x2dc3   : > { %9898 = vrsqrt.f32 %v8015_v39  ;;  %v8018_v8 = vadd.f32 1e-05, %v8010_v2  ;;  %v8009_v28 = vmax.f32 %v8001_v6, 0.0  ;;  %v8004_v3 = vsub.f32 %v13717_v37, %v7986_v47  ;;  %v14244_v39 = vld [vmem:[#allocation33_spill] sm:$0xff]  ;;  %v10036_v2 = vld [vmem:[%s14082_s5 + $0x48] sm:$0xff] }
0x2dc4   : > { %v7984_v35 = vpop.permute.xlu0 %7983  ;;  %v10037_v47 = vld [vmem:[%s14082_s5 + $0x60] sm:$0xff] }
0x2dc5   : > { %9900 = vrsqrt.f32 %v8018_v8  ;;  %v8017_v53 = vadd.f32 1e-05, %v8009_v28  ;;  %v8012_v51 = vmax.f32 %v8004_v3, 0.0  ;;  %v8003_v7 = vsub.f32 %v13721_v23, %v7984_v35  ;;  %v10038_v35 = vld [vmem:[%s14082_s5 + $0x58] sm:$0xff] }
0x2dc6   : > { %v7990_v36 = vpop.permute.xlu1 %7989 }
0x2dc7   : > { %9902 = vrsqrt.f32 %v8017_v53  ;;  %v8020_v33 = vadd.f32 1e-05, %v8012_v51  ;;  %v8011_v4 = vmax.f32 %v8003_v7, 0.0  ;;  %v8006_v18 = vsub.f32 %v13729_v59, %v7990_v36  ;;  %v10039_v51 = vld [vmem:[%s14082_s5 + $0x70] sm:$0xff]  ;;  %v10040_v36 = vld [vmem:[%s14082_s5 + $0x68] sm:$0xff] }
0x2dc8   : > { %v7988_v63 = vpop.permute.xlu0 %7987 }
0x2dc9   : > { %9904 = vrsqrt.f32 %v8020_v33  ;;  %v8019_v60 = vadd.f32 1e-05, %v8011_v4  ;;  %v8014_v41 = vmax.f32 %v8006_v18, 0.0  ;;  %v8005_v42 = vsub.f32 %v13734_v24, %v7988_v63  ;;  %v10041_v18 = vld [vmem:[%s14082_s5 + $0x78] sm:$0xff] }
0x2dca   : > { %v5867_v11 = vpop.permute.xlu1 %5866 }
0x2dcb   : > { %9906 = vrsqrt.f32 %v8019_v60  ;;  %v8022_v56 = vadd.f32 1e-05, %v8014_v41  ;;  %v8013_v13 = vmax.f32 %v8005_v42, 0.0  ;;  %v13784_v6 = vmul.f32 %v10036_v2, %v5867_v11 }
0x2dcc   : > { %v5865_v57 = vpop.permute.xlu0 %5864 }
0x2dcd   : > { %9908 = vrsqrt.f32 %v8022_v56  ;;  %v8021_v14 = vadd.f32 1e-05, %v8013_v13  ;;  %v13770_v27 = vmul.f32 %v10034_v1, %v5865_v57 }
0x2dce   : > { %v9897_v22 = vpop.eup %9896  ;;  %v5871_v34 = vpop.permute.xlu1 %5870 }
0x2dcf   : > { %9910 = vrsqrt.f32 %v8021_v14  ;;  %8041 = vrot.lane.b32.xlu1 %v9897_v22, %s10294_s24  ;;  %v13796_v53 = vmul.f32 %v10038_v35, %v5871_v34 }
0x2dd0   : > { %v9899_v20 = vpop.eup %9898  ;;  %v5869_v9 = vpop.permute.xlu0 %5868 }
0x2dd1   : > { %8039 = vrot.lane.b32.xlu0 %v9899_v20, %s10294_s24  ;;  %v13777_v48 = vmul.f32 %v10035_v30, %v5869_v9 }
0x2dd2   : > { %v9901_v43 = vpop.eup %9900  ;;  %v5875_v28 = vpop.permute.xlu1 %5874 }
0x2dd3   : > { %8045 = vrot.lane.b32.xlu1 %v9901_v43, %s10294_s24  ;;  %v13808_v33 = vmul.f32 %v10040_v36, %v5875_v28 }
0x2dd4   : > { %v9903_v49 = vpop.eup %9902  ;;  %v5873_v31 = vpop.permute.xlu0 %5872 }
0x2dd5   : > { %8043 = vrot.lane.b32.xlu0 %v9903_v49, %s10294_s24  ;;  %v13790_v8 = vmul.f32 %v10037_v47, %v5873_v31 }
0x2dd6   : > { %v9905_v16 = vpop.eup %9904  ;;  %v5879_v4 = vpop.permute.xlu1 %5878 }
0x2dd7   : > { %8049 = vrot.lane.b32.xlu1 %v9905_v16, %s10294_s24  ;;  %v13815_v63 = vmul.f32 %v10041_v18, %v5879_v4 }
0x2dd8   : > { %v9907_v17 = vpop.eup %9906  ;;  %v5877_v3 = vpop.permute.xlu0 %5876 }
0x2dd9   : > { %8047 = vrot.lane.b32.xlu0 %v9907_v17, %s10294_s24  ;;  %v13802_v7 = vmul.f32 %v10039_v51, %v5877_v3 }
0x2dda   : > { %v9909_v62 = vpop.eup %9908 }
0x2ddb   : > { %8053 = vrot.lane.b32.xlu1 %v9909_v62, %s10294_s24 }
0x2ddc   : > { %v9911_v40 = vpop.eup %9910 }
0x2ddd   : > { %8051 = vrot.lane.b32.xlu0 %v9911_v40, %s10294_s24  ;;  %s14245_s24 = smov 120  }
0x2ddf   : > { %5904 = vrot.lane.b32.xlu1 %v13770_v27, %s10296_s11 }
0x2de1   : > { %5432 = vrot.lane.b32.xlu0 %v14244_v39, %s14243_s23  ;;  %s10162_s23 = scalar_lea.vmem %s10161_s25, 2048 }
0x2de2   : > { %p10164_p3 = scmp.lt.s32.totalorder %s10162_s23, %s10156_s26 }
0x2de3   : > { %5908 = vrot.lane.b32.xlu1 %v13777_v48, %s10296_s11 }
0x2de4   : > { %p10165_p9 = por %p10164_p3, %p10163_p2 }
0x2de5   : > { %5906 = vrot.lane.b32.xlu0 %v13784_v6, %s10296_s11 }
0x2de6   : > { %p10166_p7 = pnand %p10165_p9, %p10159_p1 }
0x2de7   : > { %5912 = vrot.lane.b32.xlu1 %v13790_v8, %s10296_s11 }
0x2de9   : > { %5910 = vrot.lane.b32.xlu0 %v13796_v53, %s10296_s11 }
0x2deb   : > { %5916 = vrot.lane.b32.xlu1 %v13802_v7, %s10296_s11 }
0x2ded   : > { %5914 = vrot.lane.b32.xlu0 %v13808_v33, %s10296_s11 }
0x2df1   : > { %5918 = vrot.lane.b32.xlu0 %v13815_v63, %s10296_s11  ;;  %s14246_s11 = smov 5  }
0x2e41   : > { %v8042_v60 = vpop.permute.xlu1 %8041 }
0x2e42   : > { %v13818_v41 = vmul.f32 %v10036_v2, %v8042_v60 }
0x2e43   : > { %v8040_v42 = vpop.permute.xlu0 %8039 }
0x2e44   : > { %v13820_v56 = vmul.f32 %v10034_v1, %v8040_v42  ;;  %8081 = vrot.lane.b32.xlu0 %v13818_v41, %s14245_s24 }
0x2e45   : > { %v8046_v13 = vpop.permute.xlu1 %8045 }
0x2e46   : > { %v13824_v14 = vmul.f32 %v10038_v35, %v8046_v13  ;;  %8079 = vrot.lane.b32.xlu1 %v13820_v56, %s14245_s24 }
0x2e47   : > { %v8044_v22 = vpop.permute.xlu0 %8043 }
0x2e48   : > { %v13828_v20 = vmul.f32 %v10035_v30, %v8044_v22  ;;  %8085 = vrot.lane.b32.xlu0 %v13824_v14, %s14245_s24 }
0x2e49   : > { %v8050_v43 = vpop.permute.xlu1 %8049 }
0x2e4a   : > { %v13832_v49 = vmul.f32 %v10040_v36, %v8050_v43  ;;  %8083 = vrot.lane.b32.xlu1 %v13828_v20, %s14245_s24 }
0x2e4b   : > { %v8048_v57 = vpop.permute.xlu0 %8047 }
0x2e4c   : > { %v13836_v16 = vmul.f32 %v10037_v47, %v8048_v57  ;;  %8089 = vrot.lane.b32.xlu0 %v13832_v49, %s14245_s24  ;;  %v10043_v57 = vld [vmem:[%s14082_s5 + $0x80] sm:$0xff] }
0x2e4d   : > { %v8054_v17 = vpop.permute.xlu1 %8053 }
0x2e4e   : > { %v13840_v62 = vmul.f32 %v10041_v18, %v8054_v17  ;;  %8087 = vrot.lane.b32.xlu1 %v13836_v16, %s14245_s24 }
0x2e4f   : > { %v8052_v11 = vpop.permute.xlu0 %8051 }
0x2e50   : > { %v13844_v9 = vmul.f32 %v10039_v51, %v8052_v11  ;;  %8093 = vrot.lane.b32.xlu0 %v13840_v62, %s14245_s24 }
0x2e51   : > { %v5905_v40 = vpop.permute.xlu1 %5904 }
0x2e52   : > { %8091 = vrot.lane.b32.xlu1 %v13844_v9, %s14245_s24  ;;  %v5928_v34 = vmul.f32 %v5905_v40, %v12911_v44  ;;  %v10045_v40 = vld [vmem:[%s14082_s5 + $0x90] sm:$0xff] }
0x2e53   : > { %v13850_v1 = vpop.permute.xlu0 %5432 }
0x2e55   : > { %v5909_v31 = vpop.permute.xlu1 %5908 }
0x2e56   : > { %5944 = vrot.lane.b32.xlu1 %v5928_v34, %s14246_s11  ;;  %v5930_v2 = vmul.f32 %v5909_v31, %v12915_v12  ;;  %v10046_v34 = vld [vmem:[%s14082_s5 + $0xa8] sm:$0xff] }
0x2e57   : > { %v5907_v30 = vpop.permute.xlu0 %5906 }
0x2e58   : > { %v5929_v47 = vmul.f32 %v12909_v29, %v5907_v30  ;;  %v10047_v30 = vld [vmem:[%s14082_s5 + $0xa0] sm:$0xff] }
0x2e59   : > { %v5913_v28 = vpop.permute.xlu1 %5912 }
0x2e5a   : > { %5948 = vrot.lane.b32.xlu1 %v5930_v2, %s14246_s11  ;;  %5946 = vrot.lane.b32.xlu0 %v5929_v47, %s14246_s11  ;;  %v5932_v35 = vmul.f32 %v5913_v28, %v14235_v32  ;;  %v10048_v28 = vld [vmem:[%s14082_s5 + $0xb0] sm:$0xff] }
0x2e5b   : > { %v5911_v3 = vpop.permute.xlu0 %5910 }
0x2e5c   : > { %v5931_v51 = vmul.f32 %v12913_v0, %v5911_v3 }
0x2e5d   : > { %v5917_v36 = vpop.permute.xlu1 %5916 }
0x2e5e   : > { %5952 = vrot.lane.b32.xlu1 %v5932_v35, %s14246_s11  ;;  %5950 = vrot.lane.b32.xlu0 %v5931_v51, %s14246_s11  ;;  %v5934_v12 = vmul.f32 %v5917_v36, %v14236_v46  ;;  %v10049_v51 = vld [vmem:[%s14082_s5 + $0xb8] sm:$0xff] }
0x2e5f   : > { %v5915_v44 = vpop.permute.xlu0 %5914 }
0x2e60   : > { %v5933_v29 = vmul.f32 %v12917_v25, %v5915_v44 }
0x2e62   : > { %5956 = vrot.lane.b32.xlu1 %v5934_v12, %s14246_s11  ;;  %5954 = vrot.lane.b32.xlu0 %v5933_v29, %s14246_s11 }
0x2e63   : > { %v5919_v4 = vpop.permute.xlu0 %5918 }
0x2e64   : > { %v5935_v18 = vmul.f32 %v14234_v10, %v5919_v4 }
0x2e66   : > { %5977 = vperm.xlu1 %9764, %v13770_v27   ;;  %5958 = vrot.lane.b32.xlu0 %v5935_v18, %s14246_s11  ;;  %s13938_s11 = scalar_lea.hbm %s14090_s13, %s14154_s0 }
0x2e6a   : > { %5985 = vperm.xlu1 %9764, %v13777_v48   ;;  %5981 = vperm.xlu0 %9765, %v13784_v6  }
0x2e6e   : > { %5989 = vperm.xlu1 %9764, %v13796_v53  }
0x2eb6   : > { %v8082_v0 = vpop.permute.xlu0 %8081 }
0x2eb7   : > { %v8104_v25 = vmul.f32 %v13700_v15, %v8082_v0 }
0x2eb8   : > { %v8080_v32 = vpop.permute.xlu1 %8079 }
0x2eb9   : > { %v8103_v46 = vmul.f32 %v8080_v32, %v13707_v19  ;;  %8121 = vrot.lane.b32.xlu1 %v8104_v25, %s10297_s27 }
0x2eba   : > { %v8086_v10 = vpop.permute.xlu0 %8085 }
0x2ebb   : > { %v8106_v27 = vmul.f32 %v13702_v55, %v8086_v10  ;;  %8119 = vrot.lane.b32.xlu0 %v8103_v46, %s10297_s27 }
0x2ebc   : > { %v8084_v60 = vpop.permute.xlu1 %8083 }
0x2ebd   : > { %v8105_v48 = vmul.f32 %v8084_v60, %v13709_v45  ;;  %8125 = vrot.lane.b32.xlu1 %v8106_v27, %s10297_s27 }
0x2ebe   : > { %v8090_v6 = vpop.permute.xlu0 %8089 }
0x2ebf   : > { %v8108_v53 = vmul.f32 %v13717_v37, %v8090_v6  ;;  %8123 = vrot.lane.b32.xlu0 %v8105_v48, %s10297_s27 }
0x2ec0   : > { %v8088_v15 = vpop.permute.xlu1 %8087 }
0x2ec1   : > { %v8107_v19 = vmul.f32 %v8088_v15, %v13721_v23  ;;  %8129 = vrot.lane.b32.xlu1 %v8108_v53, %s10297_s27 }
0x2ec2   : > { %v8094_v42 = vpop.permute.xlu0 %8093 }
0x2ec3   : > { %v8110_v55 = vmul.f32 %v13729_v59, %v8094_v42  ;;  %8127 = vrot.lane.b32.xlu0 %v8107_v19, %s10297_s27  ;;  %v10042_v59 = vld [vmem:[%s14082_s5 + $0x88] sm:$0xff] }
0x2ec4   : > { %v8092_v13 = vpop.permute.xlu1 %8091 }
0x2ec5   : > { %v8109_v45 = vmul.f32 %v8092_v13, %v13734_v24  ;;  %8133 = vrot.lane.b32.xlu1 %v8110_v55, %s10297_s27 }
0x2ec7   : > { %8131 = vrot.lane.b32.xlu0 %v8109_v45, %s10297_s27 }
0x2ec8   : > { %v5945_v37 = vpop.permute.xlu1 %5944 }
0x2ec9   : > { %5997 = vperm.xlu1 %9764, %v13808_v33   ;;  %v5968_v17 = vsub.f32 %v10043_v57, %v5945_v37 }
0x2ecb   : > { %5993 = vperm.xlu0 %9765, %v13790_v8   ;;  %v10044_v8 = vld [vmem:[%s14082_s5 + $0x98] sm:$0xff] }
0x2ecc   : > { %v5947_v23 = vpop.permute.xlu0 %5946  ;;  %v5949_v22 = vpop.permute.xlu1 %5948 }
0x2ecd   : > { %6005 = vperm.xlu1 %9764, %v13815_v63   ;;  %v5969_v43 = vsub.f32 %v10042_v59, %v5947_v23 }
0x2ecf   : > { %6001 = vperm.xlu0 %9765, %v13802_v7   ;;  %v5970_v7 = vsub.f32 %v10045_v40, %v5949_v22 }
0x2ed0   : > { %v5951_v24 = vpop.permute.xlu0 %5950  ;;  %v5953_v63 = vpop.permute.xlu1 %5952 }
0x2ed1   : > { %6023 = vperm.xlu1 %9764, %v5969_v43   ;;  %v5971_v33 = vsub.f32 %v10044_v8, %v5951_v24  ;;  %v5972_v2 = vsub.f32 %v10047_v30, %v5953_v63 }
0x2ed3   : > { %6018 = vperm.xlu0 %9765, %v5968_v17  }
0x2ed4   : > { %v5955_v11 = vpop.permute.xlu0 %5954  ;;  %v5957_v47 = vpop.permute.xlu1 %5956 }
0x2ed5   : > { %6033 = vperm.xlu1 %9764, %v5971_v33   ;;  %v5973_v31 = vsub.f32 %v10046_v34, %v5955_v11  ;;  %v5974_v3 = vsub.f32 %v10048_v28, %v5957_v47 }
0x2ed7   : > { %6028 = vperm.xlu0 %9765, %v5970_v7  }
0x2ed8   : > { %v5959_v35 = vpop.permute.xlu0 %5958 }
0x2ed9   : > { %6043 = vperm.xlu1 %9764, %v5973_v31   ;;  %v5975_v36 = vsub.f32 %v10049_v51, %v5959_v35 }
0x2edb   : > { %6038 = vperm.xlu0 %9765, %v5972_v2  }
0x2edd   : > { %9766 = vset.pattern.permute.xlu1 %v10295_v52 }
0x2ede   : > { %8152 = vperm.xlu1 %9766, %v13820_v56  }
0x2edf   : > { %6048 = vperm.xlu0 %9765, %v5974_v3  }
0x2ee1   : > { %v13926_v56 = vpop.permute.xlu1 %5977 }
0x2ee2   : > { %8160 = vperm.xlu1 %9766, %v13828_v20  }
0x2ee3   : > { %6053 = vperm.xlu0 %9765, %v5975_v36  }
0x2ee5   : > { %v13928_v44 = vpop.permute.xlu1 %5985  ;;  %v5982_v12 = vpop.permute.xlu0 %5981 }
0x2ee6   : > { %8164 = vperm.xlu1 %9766, %v13824_v14  }
0x2ee7   : > { %9767 = vset.pattern.permute.xlu0 %v10295_v52 }
0x2ee8   : > { %8156 = vperm.xlu0 %9767, %v13818_v41  }
0x2ee9   : > { %v13930_v20 = vpop.permute.xlu1 %5989 }
0x2eea   : > { %8172 = vperm.xlu1 %9766, %v13832_v49  }
0x2eec   : > { %8168 = vperm.xlu0 %9767, %v13836_v16  }
0x2eee   : > { %8180 = vperm.xlu1 %9766, %v13840_v62  }
0x2ef0   : > { %8176 = vperm.xlu0 %9767, %v13844_v9  }
0x2f2b   : > { %v8122_v14 = vpop.permute.xlu1 %8121 }
0x2f2c   : > { %v8144_v29 = vsub.f32 %v10042_v59, %v8122_v14 }
0x2f2d   : > { %v8120_v52 = vpop.permute.xlu0 %8119 }
0x2f2e   : > { %8198 = vperm.xlu1 %9766, %v8144_v29   ;;  %v8143_v62 = vsub.f32 %v10043_v57, %v8120_v52 }
0x2f2f   : > { %v8126_v41 = vpop.permute.xlu1 %8125 }
0x2f30   : > { %v8146_v4 = vsub.f32 %v10044_v8, %v8126_v41 }
0x2f31   : > { %v8124_v49 = vpop.permute.xlu0 %8123 }
0x2f32   : > { %v8145_v18 = vsub.f32 %v10045_v40, %v8124_v49  ;;  %8208 = vperm.xlu1 %9766, %v8146_v4  }
0x2f33   : > { %v8130_v16 = vpop.permute.xlu1 %8129 }
0x2f34   : > { %8203 = vperm.xlu0 %9767, %v8145_v18   ;;  %v8148_v0 = vsub.f32 %v10046_v34, %v8130_v16 }
0x2f35   : > { %v8128_v9 = vpop.permute.xlu0 %8127 }
0x2f36   : > { %8193 = vperm.xlu1 %9766, %v8143_v62   ;;  %v8147_v32 = vsub.f32 %v10047_v30, %v8128_v9 }
0x2f37   : > { %v8134_v25 = vpop.permute.xlu1 %8133 }
0x2f38   : > { %8218 = vperm.xlu0 %9767, %v8148_v0   ;;  %v8150_v10 = vsub.f32 %v10049_v51, %v8134_v25 }
0x2f39   : > { %v8132_v46 = vpop.permute.xlu0 %8131 }
0x2f3a   : > { %8213 = vperm.xlu1 %9766, %v8147_v32   ;;  %v8149_v27 = vsub.f32 %v10048_v28, %v8132_v46 }
0x2f3c   : > { %8228 = vperm.xlu0 %9767, %v8150_v10  }
0x2f3e   : > { %8223 = vperm.xlu1 %9766, %v8149_v27  }
0x2f3f   : > { %10169 = shalt.err (!%p10166_p7)
}
0x2f40   : > { %s10170_s20 = scalar_lea.hbm %s13938_s11, 1024  ;;  %s10174_s21 = scalar_lea.hbm %s14090_s13, 2048 }
0x2f41   : > { %p10171_p4 = scmp.ne.s32.totalorder %s13938_s11, %s10170_s20  ;;  %p10175_p11 = scmp.lt.s32.totalorder %s13938_s11, %s14090_s13 }
0x2f42   : > { %p10176_p13 = scmp.lt.s32.totalorder %s10174_s21, %s10170_s20 }
0x2f43   : > { %p10172_p8 = pnand %p10171_p4, %p14247_p5 }
0x2f44   : > { %p10177_p12 = por %p10176_p13, %p10175_p11 }
0x2f45   : > { %p10173_p6 = pneg %p10172_p8 }
0x2f47   : > { %p10178_p0 = pnand %p10177_p12, %p10173_p6 }
0x2f49   : > { %10181 = shalt.err (!%p10178_p0)
}
0x2f4a   : > { %s14155_s26 = smov 128   ;;  %s14248_s25 = scalar_lea.sflag [#allocation4], %s10542_s19  ;;  %v5998_v60 = vpop.permute.xlu1 %5997  ;;  %v5994_v48 = vpop.permute.xlu0 %5993  ;;  %v5435_v15 = vmax.f32 %v14244_v39, %v13850_v1  ;;  %v14249_v19 = vld [vmem:[#allocation40_spill] sm:$0xff]  ;;  %v14250_v13 = vld [vmem:[#allocation41_spill] sm:$0xff]  ;;  %v14254_v1 = vld [vmem:[#allocation39_spill] sm:$0xff] }
0x2f4b   : > { %9643 = dma.vmem_to_hbm [thread:$0]  (%p14247_p5), %s13941_s18, 1024, %s13938_s11, %s14248_s25, %s14155_s26, %s14155_s26, %s10297_s27   ;;  %v6009_v42 = vmul.f32 %v5982_v12, %v14249_v19  ;;  %v6008_v45 = vmul.f32 %v13926_v56, %v14250_v13  ;;  %v14251_v22 = vld [vmem:[#allocation24_spill] sm:$0xff]  ;;  %v14252_v43 = vld [vmem:[#allocation37_spill] sm:$0xff]  ;;  %v6010_v8 = vmul.f32 %v13928_v44, %v14254_v1  ;;  %v14255_v7 = vld [vmem:[#allocation35_spill] sm:$0xff] }
0x2f4c   : > { %v6075_v59 = vrot.slane %v5435_v15, %v14251_v22  ;;  %v6011_v24 = vmul.f32 %v13930_v20, %v14252_v43  ;;  %s14253_s18 = sld [smem:[#allocation49_spill]]  ;;  %v6013_v34 = vmul.f32 %v5998_v60, %v14255_v7  ;;  %v14256_v28 = vld [vmem:[#allocation34_spill] sm:$0xff]  ;;  %v14257_v14 = vld [vmem:[#allocation36_spill] sm:$0xff]  ;;  %s14260_s10 = sshll.u32 %s10422_s1, 10 }
0x2f4d   : > { %v6012_v3 = vmul.f32 %v5994_v48, %v14256_v28  ;;  %v14258_v16 = vld [vmem:[#allocation38_spill] sm:$0xff]  ;;  %s14261_s25 = sld [smem:[#allocation50_spill]]  ;;  %s8286_s11 = scalar_lea.sflag [#allocation12], %s10542_s19 }
0x2f4e   : > { %v6006_v6 = vpop.permute.xlu1 %6005  ;;  %v6002_v53 = vpop.permute.xlu0 %6001 }
0x2f4f   : > { %v6014_v29 = vmul.f32 %v6002_v53, %v14257_v14  ;;  %v6015_v62 = vmul.f32 %v6006_v6, %v14258_v16 }
0x2f52   : > { %v6024_v55 = vpop.permute.xlu1 %6023  ;;  %v6019_v23 = vpop.permute.xlu0 %6018  ;;  %s13981_s29 = scalar_lea.vmem %s14253_s18, %s11368_s28  ;;  %s14259_s28 = sshll.u32 %s10542_s19, 6 }
0x2f53   : > { %v6057_v37 = vadd.f32 %v6024_v55, %v6009_v42  ;;  %v6056_v17 = vadd.f32 %v6019_v23, %v6008_v45  ;;  %s14010_s23 = scalar_lea.vmem [#allocation11], %s14259_s28  ;;  %s14032_s0 = scalar_lea.hbm %s14261_s25, %s14260_s10 }
0x2f54   : > { %s8330_s20 = sshll.u32 %s14010_s23, 4  ;;  %s14024_s20 = int_to_ptr.vmem [resolvable:$true] %s8330_s20 }
0x2f55   : > { %v6065_v57 = vmax.f32 %v6057_v37, 0.0  ;;  %v6064_v63 = vmax.f32 %v6056_v17, 0.0  ;;  %s10182_s18 = scalar_lea.vmem %s14024_s20, 1024 }
0x2f56   : > { %v6034_v39 = vpop.permute.xlu1 %6033  ;;  %v6029_v40 = vpop.permute.xlu0 %6028  ;;  %p10183_p10 = scmp.ne.s32.totalorder %s14024_s20, %s10182_s18 }
0x2f57   : > { %v6077_v33 = vmul.f32 %v6075_v59, %v6065_v57  ;;  %v6059_v11 = vadd.f32 %v6034_v39, %v6011_v24  ;;  %v6076_v31 = vmul.f32 %v6075_v59, %v6064_v63  ;;  %v6058_v2 = vadd.f32 %v6029_v40, %v6010_v8 }
0x2f58   : > { %p10184_p1 = pnand %p10183_p10, %p14247_p5 }
0x2f59   : > { %6085 = vst.msk [vmem:[%s13981_s29 + $0x8] sm:$0xff] %vm5597_vm8, %v6077_v33  ;;  %v6067_v30 = vmax.f32 %v6059_v11, 0.0  ;;  %6084 = vst.msk [vmem:[%s13981_s29] sm:$0xff] %vm5597_vm8, %v6076_v31  ;;  %v6066_v51 = vmax.f32 %v6058_v2, 0.0 }
0x2f5a   : > { %v6044_v47 = vpop.permute.xlu1 %6043  ;;  %v6039_v56 = vpop.permute.xlu0 %6038  ;;  %p10185_p2 = pneg %p10184_p1 }
0x2f5b   : > { %v6079_v35 = vmul.f32 %v6075_v59, %v6067_v30  ;;  %v6061_v36 = vadd.f32 %v6044_v47, %v6013_v34  ;;  %v6078_v44 = vmul.f32 %v6075_v59, %v6066_v51  ;;  %v6060_v12 = vadd.f32 %v6039_v56, %v6012_v3 }
0x2f5d   : > { %6087 = vst.msk [vmem:[%s13981_s29 + $0x18] sm:$0xff] %vm5597_vm8, %v6079_v35  ;;  %v6069_v20 = vmax.f32 %v6061_v36, 0.0  ;;  %6086 = vst.msk [vmem:[%s13981_s29 + $0x10] sm:$0xff] %vm5597_vm8, %v6078_v44  ;;  %v6068_v41 = vmax.f32 %v6060_v12, 0.0 }
0x2f5e   : > { %v6049_v4 = vpop.permute.xlu0 %6048  ;;  %v8153_v27 = vpop.permute.xlu1 %8152 }
0x2f5f   : > { %v6081_v52 = vmul.f32 %v6075_v59, %v6069_v20  ;;  %v6080_v49 = vmul.f32 %v6075_v59, %v6068_v41  ;;  %v6062_v18 = vadd.f32 %v6049_v4, %v6014_v29 }
0x2f61   : > { %6089 = vst.msk [vmem:[%s13981_s29 + $0x28] sm:$0xff] %vm5597_vm8, %v6081_v52  ;;  %6088 = vst.msk [vmem:[%s13981_s29 + $0x20] sm:$0xff] %vm5597_vm8, %v6080_v49  ;;  %v6070_v9 = vmax.f32 %v6062_v18, 0.0 }
0x2f62   : > { %v6054_v0 = vpop.permute.xlu0 %6053  ;;  %v8161_v60 = vpop.permute.xlu1 %8160 }
0x2f63   : > { %v6082_v25 = vmul.f32 %v6075_v59, %v6070_v9  ;;  %v6063_v32 = vadd.f32 %v6054_v0, %v6015_v62 }
0x2f65   : > { %6090 = vst.msk [vmem:[%s13981_s29 + $0x30] sm:$0xff] %vm5597_vm8, %v6082_v25  ;;  %v6071_v46 = vmax.f32 %v6063_v32, 0.0 }
0x2f66   : > { %v8165_v48 = vpop.permute.xlu1 %8164  ;;  %v8157_v53 = vpop.permute.xlu0 %8156 }
0x2f67   : > { %v6083_v10 = vmul.f32 %v6075_v59, %v6071_v46  ;;  %v8184_v42 = vmul.f32 %v8157_v53, %v13637_v50  ;;  %v8186_v37 = vmul.f32 %v8165_v48, %v13625_v54  ;;  %v8185_v59 = vmul.f32 %v8161_v60, %v13632_v61 }
0x2f68   : > { %v8183_v50 = vmul.f32 %v8153_v27, %v13643_v21 }
0x2f69   : > { %6091 = vst.msk [vmem:[%s13981_s29 + $0x38] sm:$0xff] %vm5597_vm8, %v6083_v10  ;;  %s10300_s29 = smov [#allocation11]  }
0x2f6a   : > { %v8173_v15 = vpop.permute.xlu1 %8172  ;;  %v8169_v19 = vpop.permute.xlu0 %8168  ;;  %s10186_s28 = sshll.u32 %s10300_s29, 4  ;;  %s10187_s28 = int_to_ptr.vmem [resolvable:$false] %s10186_s28 }
0x2f6b   : > { %v8188_v54 = vmul.f32 %v8173_v15, %v13612_v58  ;;  %v8187_v33 = vmul.f32 %v8169_v19, %v13617_v38  ;;  %s10188_s26 = scalar_lea.vmem %s10187_s28, 2048  ;;  %p10189_p3 = scmp.lt.s32.totalorder %s14024_s20, %s10187_s28 }
0x2f6c   : > { %p10190_p9 = scmp.lt.s32.totalorder %s10188_s26, %s10182_s18 }
0x2f6e   : > { %v8181_v6 = vpop.permute.xlu1 %8180  ;;  %v8177_v45 = vpop.permute.xlu0 %8176  ;;  %p10191_p7 = por %p10190_p9, %p10189_p3 }
0x2f6f   : > { %v8190_v21 = vmul.f32 %v8181_v6, %v13619_v5  ;;  %v8189_v31 = vmul.f32 %v8177_v45, %v13634_v26 }
0x2f70   : > { %p10192_p4 = pnand %p10191_p7, %p10185_p2 }
0x2fa9   : > { %v8199_v55 = vpop.permute.xlu1 %8198 }
0x2faa   : > { %v8232_v13 = vadd.f32 %v8199_v55, %v8184_v42 }
0x2fac   : > { %v8240_v23 = vmax.f32 %v8232_v13, 0.0 }
0x2fad   : > { %v8209_v22 = vpop.permute.xlu1 %8208 }
0x2fae   : > { %8248 = vst [vmem:[%s14010_s23 + $0x8] sm:$0xff] %v8240_v23  ;;  %v8234_v43 = vadd.f32 %v8209_v22, %v8186_v37 }
0x2faf   : > { %v8204_v24 = vpop.permute.xlu0 %8203 }
0x2fb0   : > { %v8242_v57 = vmax.f32 %v8234_v43, 0.0  ;;  %v8233_v17 = vadd.f32 %v8204_v24, %v8185_v59 }
0x2fb1   : > { %v8194_v39 = vpop.permute.xlu1 %8193 }
0x2fb2   : > { %8250 = vst [vmem:[%s14010_s23 + $0x18] sm:$0xff] %v8242_v57  ;;  %v8241_v61 = vmax.f32 %v8233_v17, 0.0  ;;  %v8231_v1 = vadd.f32 %v8194_v39, %v8183_v50 }
0x2fb3   : > { %v8219_v8 = vpop.permute.xlu0 %8218 }
0x2fb4   : > { %8249 = vst [vmem:[%s14010_s23 + $0x10] sm:$0xff] %v8241_v61  ;;  %v8239_v63 = vmax.f32 %v8231_v1, 0.0  ;;  %v8236_v11 = vadd.f32 %v8219_v8, %v8188_v54 }
0x2fb5   : > { %v8214_v40 = vpop.permute.xlu1 %8213 }
0x2fb6   : > { %8247 = vst [vmem:[%s14010_s23] sm:$0xff] %v8239_v63  ;;  %v8244_v7 = vmax.f32 %v8236_v11, 0.0  ;;  %v8235_v58 = vadd.f32 %v8214_v40, %v8187_v33 }
0x2fb7   : > { %v8229_v34 = vpop.permute.xlu0 %8228 }
0x2fb8   : > { %8252 = vst [vmem:[%s14010_s23 + $0x28] sm:$0xff] %v8244_v7  ;;  %v8243_v38 = vmax.f32 %v8235_v58, 0.0  ;;  %v8238_v30 = vadd.f32 %v8229_v34, %v8190_v21 }
0x2fb9   : > { %v8224_v2 = vpop.permute.xlu1 %8223 }
0x2fba   : > { %8251 = vst [vmem:[%s14010_s23 + $0x20] sm:$0xff] %v8243_v38  ;;  %v8246_v47 = vmax.f32 %v8238_v30, 0.0  ;;  %v8237_v28 = vadd.f32 %v8224_v2, %v8189_v31 }
0x2fbc   : > { %8254 = vst [vmem:[%s14010_s23 + $0x38] sm:$0xff] %v8246_v47  ;;  %v8245_v5 = vmax.f32 %v8237_v28, 0.0 }
0x2fbe   : > { %8253 = vst [vmem:[%s14010_s23 + $0x30] sm:$0xff] %v8245_v5 }
0x2fbf   : > { %10195 = shalt.err (!%p10192_p4)
}
0x2fc0   : > { %s10196_s1 = scalar_lea.hbm %s14032_s0, 1024  ;;  %s10200_s10 = scalar_lea.hbm %s14261_s25, 2048 }
0x2fc1   : > { %p10197_p8 = scmp.ne.s32.totalorder %s14032_s0, %s10196_s1  ;;  %p10201_p13 = scmp.lt.s32.totalorder %s14032_s0, %s14261_s25 }
0x2fc2   : > { %p10202_p12 = scmp.lt.s32.totalorder %s10200_s10, %s10196_s1 }
0x2fc3   : > { %p10198_p6 = pnand %p10197_p8, %p14247_p5 }
0x2fc4   : > { %p10203_p0 = por %p10202_p12, %p10201_p13 }
0x2fc5   : > { %p10199_p11 = pneg %p10198_p6 }
0x2fc7   : > { %p10204_p10 = pnand %p10203_p0, %p10199_p11 }
0x2fc9   : > { %10207 = shalt.err (!%p10204_p10)
}
0x2fca   : > { %s14262_s26 = smov 128  }
0x2fcb   : > { %9644 = dma.vmem_to_hbm [thread:$0]  (%p14247_p5), %s14024_s20, 1024, %s14032_s0, %s8286_s11, %s14262_s26, %s14262_s26, %s10297_s27  }
0x2fcc PF: > { %s14263_s18 = sld [smem:[#allocation18_spill]] }
0x2fcd   : > { %s14264_s29 = sld [smem:[#allocation21_spill]] }
0x2fce   : > { %s14265_s28 = sld [smem:[#allocation20_spill]] }
0x2fd2   : > { %s8345_s19 = sand.u32 1, %s14263_s18  }
0x2fd3   : > { %p14266_p1 = scmp.ne.s32.totalorder %s14264_s29, 0  ;;  %s8346_s1 = scalar_lea.sflag [#allocation4], %s8345_s19 }
0x2fd4   : > { %p14267_p2 = scmp.ge.s32.totalorder %s14265_s28, 2 }
0x2fd6   : > { %p9662_p3 = pnand %p14267_p2, %p14266_p1 }
0x2fd8   : > { %p9663_p9 = pneg %p9662_p3 }
0x2fda   : > { %10237 = dma.done.wait (%p9663_p9), %s8346_s1, 1024  }
0x2fdb   : > { %10239 = vsyncadd (%p9663_p9), %s8346_s1, 4294966272  ;;  %s8395_s23 = scalar_lea.sflag [#allocation12], %s8345_s19 }
0x2fdc   : > { %10241 = dma.done.wait (%p9663_p9), %s8395_s23, 1024  }
0x2fdd   : > { %10243 = vsyncadd (%p9663_p9), %s8395_s23, 4294966272  ;;  %s14268_s21 = sld [smem:[#allocation22_spill]]  ;;  %s14271_s0 = smov %s10250_s30 }
0x2fde   : > { %s14269_s3 = sld [smem:[#allocation19_spill]] }
0x2fdf   : > { %s14270_s20 = sld [smem:[#allocation23_spill]] }
0x2fe3   : > { %p38_p5 = scmp.ge.s32.totalorder %s14268_s21, 4  }
0x2fe4   : > { %s14272_s30 = smov %s14269_s3 }
0x2fe5   :  { %40 = sbr.rel (!%p38_p5) target bundleno = 18 (0x12), region = 215 }
0x2fea   :  { %8400 = vsyncpa [#allocation3], 1 }
0x2feb   :  { %8402 = vsyncpa [#allocation3 + $0x1], 1 }
0x2fec   :  { %8403 = vsyncpa [#allocation6], 1 }
0x2fed   :  { %8404 = vsyncpa [#allocation9], 1 }
0x2fee   :  { %8405 = vsyncpa [#allocation4], 1 }
0x2fef   :  { %8407 = vsyncpa [#allocation4 + $0x1], 1 }
0x2ff0   :  { %8408 = vsyncpa [#allocation12], 1 }
0x2ff1   :  { %8410 = vsyncpa [#allocation12 + $0x1], 1 }

</bundles_post_ra>
